<compile_context>
chip_gen: v7x
topology: tpu7x:2x2x1
jax: 0.10.0
libtpu: 0.0.40
codegen_flags: <defaults>
</compile_context>

<pallas_src>
import jax
import jax.numpy as jnp
from jax import lax
from jax.experimental import pallas as pl
from jax.experimental.pallas import tpu as pltpu


def _dot(a, b):
    return jnp.dot(a, b, preferred_element_type=jnp.float32)


# ---------------- fused Pallas kernel (one grid step == Bt samples) ----------------

def _lenet_kernel(xr_ref, w1b_ref, b1_ref, p1_ref,
                  a1_ref, w2b_ref, b2_ref, p2_ref,
                  rp2_ref, wf1_ref, bf1_ref, wf2_ref, bf2_ref, o_ref):
    # ---- conv1 + bias + ReLU: ONE GEMM (kh taps folded into K via row-im2col) ----
    # xr_ref: (Bt*24, 140); w1b_ref: (140, 480) -> r1: (Bt*24, 480)
    r1 = jnp.maximum(_dot(xr_ref[...], w1b_ref[...]) + b1_ref[...], 0.0)

    # ---- width/channel half of the 2x2 avg pool (constant right matmul) ----
    r1p = _dot(r1, p1_ref[...])                                   # (Bt*24, 240)

    # ---- conv2: 5 kh taps; the row half of the pool + the kh row shift are ----
    # ---- folded into the constant block-diagonal matrices a1_ref[kh].       ----
    acc2 = _dot(_dot(a1_ref[0], r1p), w2b_ref[0])                 # (Bt*8, 400)
    for kh in range(1, 5):
        acc2 = acc2 + _dot(_dot(a1_ref[kh], r1p), w2b_ref[kh])
    r2 = jnp.maximum(acc2 + b2_ref[...], 0.0)                     # (Bt*8, 400)

    # ---- width/channel half of the second 2x2 avg pool ----
    r2p = _dot(r2, p2_ref[...])                                   # (Bt*8, 200)

    # ---- fc1 + ReLU: 4 h-taps; row pool + per-sample h extraction folded ----
    # ---- into the constant block-diagonal matrices rp2_ref[h].            ----
    accf = _dot(_dot(rp2_ref[0], r2p), wf1_ref[0])                # (Bt, 500)
    for h in range(1, 4):
        accf = accf + _dot(_dot(rp2_ref[h], r2p), wf1_ref[h])
    hfc = jnp.maximum(accf + bf1_ref[...], 0.0)                   # (Bt, 500)

    # ---- fc2 + log_softmax ----
    z = _dot(hfc, wf2_ref[...]) + bf2_ref[...]                    # (Bt, 10)
    m = jnp.max(z, axis=1, keepdims=True)
    lse = m + jnp.log(jnp.sum(jnp.exp(z - m), axis=1, keepdims=True))
    o_ref[...] = (z - lse).astype(o_ref.dtype)


# ------------- one-time weight preprocessing (outside the forward path) -----------

def prepare_params(params, bt=16):
    """Rearrange PyTorch-layout weights into the constant operands the fused kernel
    consumes (banded conv matrices, block-diagonal pooling/selection matrices,
    permuted fc weights).  Run once; results are reused for every forward call."""
    w1, b1, w2, b2, wf1, bf1, wf2, bf2 = params
    f32 = jnp.float32
    K = 5
    W1, Ho1, Wo1, C1 = 28, 24, 24, 20          # conv1 geometry
    Hp1, Wp1 = 12, 12                          # after pool1
    Ho2, Wo2, Cin2, C2 = 8, 8, 20, 50          # conv2 geometry
    Hp2, Wp2 = 4, 4                            # after pool2

    # conv1 banded weight over the row-im2col input (kh folded into K):
    #   w1b[kh*28 + j, wo*20 + co] = w1[co, 0, kh, j - wo]  if 0 <= j - wo < 5
    w1_khkwco = jnp.transpose(w1[:, 0, :, :], (1, 2, 0)).astype(f32)   # (kh, kw, co)
    dj = jnp.arange(W1)[:, None] - jnp.arange(Wo1)[None, :]            # (28, 24)
    valid1 = (dj >= 0) & (dj < K)
    djc = jnp.clip(dj, 0, K - 1)
    w1b = jnp.concatenate(
        [jnp.where(valid1[:, :, None], w1_khkwco[kh][djc], 0.0).reshape(W1, Wo1 * C1)
         for kh in range(K)], axis=0)                                  # (140, 480)
    b1row = jnp.tile(b1.astype(f32), Wo1).reshape(1, Wo1 * C1)         # (1, 480)

    # width/channel pooling after conv1: (480, 240)
    pw1 = (jnp.arange(Wo1)[:, None] // 2 == jnp.arange(Wp1)[None, :]).astype(f32)
    p1 = 0.5 * jnp.kron(pw1, jnp.eye(C1, dtype=f32))                   # (480, 240)

    # conv2 kh taps: row half of pool1 + kh row shift as block-diag (bt*8, bt*24)
    eye_bt = jnp.eye(bt, dtype=f32)
    rows = jnp.arange(Ho2)
    a_taps = []
    for kh in range(K):
        a = jnp.zeros((Ho2, Ho1), f32)
        a = a.at[rows, 2 * (rows + kh)].set(0.5)
        a = a.at[rows, 2 * (rows + kh) + 1].set(0.5)
        a_taps.append(jnp.kron(eye_bt, a))
    a_stack = jnp.stack(a_taps, axis=0)                                # (5, bt*8, bt*24)

    # conv2 banded weights per kh tap: w2b[kh][w*20+ci, wo*50+co] = w2[co,ci,kh,w-wo]
    w2r = jnp.transpose(w2, (2, 3, 1, 0)).astype(f32)                  # (kh, kw, ci, co)
    dj2 = jnp.arange(Wp1)[:, None] - jnp.arange(Wo2)[None, :]          # (12, 8)
    valid2 = (dj2 >= 0) & (dj2 < K)
    dj2c = jnp.clip(dj2, 0, K - 1)
    w2b_taps = []
    for kh in range(K):
        t = jnp.where(valid2[:, :, None, None], w2r[kh][dj2c], 0.0)    # (12, 8, ci, co)
        w2b_taps.append(jnp.transpose(t, (0, 2, 1, 3)).reshape(Wp1 * Cin2, Wo2 * C2))
    w2b_stack = jnp.stack(w2b_taps, axis=0)                            # (5, 240, 400)
    b2row = jnp.tile(b2.astype(f32), Wo2).reshape(1, Wo2 * C2)         # (1, 400)

    # width/channel pooling after conv2: (400, 200)
    pw2 = (jnp.arange(Wo2)[:, None] // 2 == jnp.arange(Wp2)[None, :]).astype(f32)
    p2 = 0.5 * jnp.kron(pw2, jnp.eye(C2, dtype=f32))                   # (400, 200)

    # fc1 h-taps: row half of pool2 + per-sample h extraction as block-diag (bt, bt*8)
    rp_taps = []
    for h in range(Hp2):
        r = jnp.zeros((1, Ho2), f32).at[0, 2 * h].set(0.5).at[0, 2 * h + 1].set(0.5)
        rp_taps.append(jnp.kron(eye_bt, r))
    rp2_stack = jnp.stack(rp_taps, axis=0)                             # (4, bt, bt*8)

    # fc1 weight per h-tap, PyTorch NCHW flatten (c*16 + h*4 + w) folded in:
    #   wf1_stack[h, w*50 + c, n] = wf1[n, c*16 + h*4 + w]
    wf1r = wf1.astype(f32).reshape(500, C2, Hp2, Wp2)                  # (n, c, h, w)
    wf1_stack = jnp.transpose(wf1r, (2, 3, 1, 0)).reshape(Hp2, Wp2 * C2, 500)
    bf1row = bf1.astype(f32).reshape(1, 500)

    wf2t = jnp.transpose(wf2.astype(f32), (1, 0))                      # (500, 10)
    bf2row = bf2.astype(f32).reshape(1, 10)

    return dict(bt=bt, w1b=w1b, b1=b1row, p1=p1, a=a_stack, w2b=w2b_stack,
                b2=b2row, p2=p2, rp2=rp2_stack, wf1=wf1_stack, bf1=bf1row,
                wf2=wf2t, bf2=bf2row)


# ---------------- forward pass ----------------

def lenet_forward(x_nchw, prepped):
    bt = prepped['bt']
    B = x_nchw.shape[0]
    Bp = ((B + bt - 1) // bt) * bt
    x = x_nchw.astype(jnp.float32).reshape(B, 28, 28)    # Cin == 1: NCHW == NHWC
    if Bp != B:
        x = jnp.pad(x, ((0, Bp - B), (0, 0), (0, 0)))

    # row-im2col for conv1 (~13 KB/sample extra HBM): xr[b*24+ho, kh*28+j] = x[b, ho+kh, j]
    xr = jnp.concatenate([x[:, kh:kh + 24, :] for kh in range(5)], axis=2)
    xr = xr.reshape(Bp * 24, 140)

    out = pl.pallas_call(
        _lenet_kernel,
        out_shape=jax.ShapeDtypeStruct((Bp, 10), jnp.float32),
        grid_spec=pltpu.PrefetchScalarGridSpec(
            num_scalar_prefetch=0,
            grid=(Bp // bt,),
            in_specs=[
                pl.BlockSpec((bt * 24, 140), lambda b: (b, 0)),       # im2col'd input
                pl.BlockSpec((140, 480), lambda b: (0, 0)),           # conv1 banded W
                pl.BlockSpec((1, 480), lambda b: (0, 0)),             # conv1 bias row
                pl.BlockSpec((480, 240), lambda b: (0, 0)),           # pool1 width matrix
                pl.BlockSpec((5, bt * 8, bt * 24), lambda b: (0, 0, 0)),  # conv2 row taps
                pl.BlockSpec((5, 240, 400), lambda b: (0, 0, 0)),     # conv2 banded W
                pl.BlockSpec((1, 400), lambda b: (0, 0)),             # conv2 bias row
                pl.BlockSpec((400, 200), lambda b: (0, 0)),           # pool2 width matrix
                pl.BlockSpec((4, bt, bt * 8), lambda b: (0, 0, 0)),   # fc1 h-tap selectors
                pl.BlockSpec((4, 200, 500), lambda b: (0, 0, 0)),     # fc1 W (permuted)
                pl.BlockSpec((1, 500), lambda b: (0, 0)),             # fc1 bias
                pl.BlockSpec((500, 10), lambda b: (0, 0)),            # fc2 W^T
                pl.BlockSpec((1, 10), lambda b: (0, 0)),              # fc2 bias
            ],
            out_specs=pl.BlockSpec((bt, 10), lambda b: (b, 0)),
        ),
        compiler_params=pltpu.CompilerParams(
            dimension_semantics=("parallel",),
            vmem_limit_bytes=32 * 1024 * 1024),
    )(xr, prepped['w1b'], prepped['b1'], prepped['p1'], prepped['a'],
      prepped['w2b'], prepped['b2'], prepped['p2'], prepped['rp2'],
      prepped['wf1'], prepped['bf1'], prepped['wf2'], prepped['bf2'])
    return out[:B]


# ---------------- pure-JAX reference ----------------

def reference_forward(x, params):
    w1, b1, w2, b2, wf1, bf1, wf2, bf2 = params

    def conv(x, w, b):
        y = lax.conv_general_dilated(
            x, w, window_strides=(1, 1), padding='VALID',
            dimension_numbers=('NCHW', 'OIHW', 'NCHW'))
        return jax.nn.relu(y + b[None, :, None, None])

    def pool(x):
        B, C, H, W = x.shape
        return x.reshape(B, C, H // 2, 2, W // 2, 2).mean(axis=(3, 5))

    x = pool(conv(x, w1, b1))
    x = pool(conv(x, w2, b2))
    x = x.reshape(x.shape[0], -1)
    x = jax.nn.relu(x @ wf1.T + bf1)
    return jax.nn.log_softmax(x @ wf2.T + bf2, axis=1)


if __name__ == "__main__":
    key = jax.random.PRNGKey(0)
    ks = jax.random.split(key, 9)
    params = (
        jax.random.normal(ks[0], (20, 1, 5, 5), jnp.float32) * 0.2,   # conv1.weight
        jax.random.normal(ks[1], (20,), jnp.float32) * 0.1,           # conv1.bias
        jax.random.normal(ks[2], (50, 20, 5, 5), jnp.float32) * 0.05, # conv2.weight
        jax.random.normal(ks[3], (50,), jnp.float32) * 0.05,          # conv2.bias
        jax.random.normal(ks[4], (500, 800), jnp.float32) * 0.03,     # fc1.weight
        jax.random.normal(ks[5], (500,), jnp.float32) * 0.03,         # fc1.bias
        jax.random.normal(ks[6], (10, 500), jnp.float32) * 0.05,      # fc2.weight
        jax.random.normal(ks[7], (10,), jnp.float32) * 0.05,          # fc2.bias
    )
    x = jax.random.normal(ks[8], (2, 1, 28, 28), jnp.float32)

    prepped = prepare_params(params, bt=16)   # one-time weight preprocessing
    out = jax.block_until_ready(lenet_forward(x, prepped))

    ref = jax.block_until_ready(reference_forward(x, params))
    assert out.shape == (2, 10)
    assert jnp.allclose(out, ref, atol=1e-3, rtol=1e-3), "mismatch vs JAX reference"

    print("KERNEL_OK")
</pallas_src>

<mosaic_0001>
module attributes {stable_mosaic.version = 11 : i64} {
  func.func @_lenet_kernel(%arg0: i32, %arg1: memref<384x140xf32, #tpu.memory_space<vmem>>, %arg2: memref<140x480xf32, #tpu.memory_space<vmem>>, %arg3: memref<1x480xf32, #tpu.memory_space<vmem>>, %arg4: memref<480x240xf32, #tpu.memory_space<vmem>>, %arg5: memref<5x128x384xf32, #tpu.memory_space<vmem>>, %arg6: memref<5x240x400xf32, #tpu.memory_space<vmem>>, %arg7: memref<1x400xf32, #tpu.memory_space<vmem>>, %arg8: memref<400x200xf32, #tpu.memory_space<vmem>>, %arg9: memref<4x16x128xf32, #tpu.memory_space<vmem>>, %arg10: memref<4x200x500xf32, #tpu.memory_space<vmem>>, %arg11: memref<1x500xf32, #tpu.memory_space<vmem>>, %arg12: memref<500x10xf32, #tpu.memory_space<vmem>>, %arg13: memref<1x10xf32, #tpu.memory_space<vmem>>, %arg14: memref<16x10xf32, #tpu.memory_space<vmem>>) attributes {dimension_semantics = [#tpu.dimension_semantics<parallel>], iteration_bounds = array<i64: 1>, scalar_prefetch = 0 : i64, scratch_operands = 0 : i64, tpu.core_type = #tpu.core_type<tc>, window_params = [{transform_indices = @transform_0, window_bounds = array<i64: 384, 140>}, {pipeline_mode = #tpu.pipeline_mode<synchronous>, transform_indices = @transform_1, window_bounds = array<i64: 140, 480>}, {pipeline_mode = #tpu.pipeline_mode<synchronous>, transform_indices = @transform_2, window_bounds = array<i64: 1, 480>}, {pipeline_mode = #tpu.pipeline_mode<synchronous>, transform_indices = @transform_3, window_bounds = array<i64: 480, 240>}, {pipeline_mode = #tpu.pipeline_mode<synchronous>, transform_indices = @transform_4, window_bounds = array<i64: 5, 128, 384>}, {pipeline_mode = #tpu.pipeline_mode<synchronous>, transform_indices = @transform_5, window_bounds = array<i64: 5, 240, 400>}, {pipeline_mode = #tpu.pipeline_mode<synchronous>, transform_indices = @transform_6, window_bounds = array<i64: 1, 400>}, {pipeline_mode = #tpu.pipeline_mode<synchronous>, transform_indices = @transform_7, window_bounds = array<i64: 400, 200>}, {pipeline_mode = #tpu.pipeline_mode<synchronous>, transform_indices = @transform_8, window_bounds = array<i64: 4, 16, 128>}, {pipeline_mode = #tpu.pipeline_mode<synchronous>, transform_indices = @transform_9, window_bounds = array<i64: 4, 200, 500>}, {pipeline_mode = #tpu.pipeline_mode<synchronous>, transform_indices = @transform_10, window_bounds = array<i64: 1, 500>}, {pipeline_mode = #tpu.pipeline_mode<synchronous>, transform_indices = @transform_11, window_bounds = array<i64: 500, 10>}, {pipeline_mode = #tpu.pipeline_mode<synchronous>, transform_indices = @transform_12, window_bounds = array<i64: 1, 10>}, {transform_indices = @transform_13, window_bounds = array<i64: 16, 10>}]} {
    %c0 = arith.constant 0 : index
    %c0_0 = arith.constant 0 : index
    %0 = vector.load %arg1[%c0, %c0_0] : memref<384x140xf32, #tpu.memory_space<vmem>>, vector<384x140xf32>
    %c0_1 = arith.constant 0 : index
    %c0_2 = arith.constant 0 : index
    %1 = vector.load %arg2[%c0_1, %c0_2] : memref<140x480xf32, #tpu.memory_space<vmem>>, vector<140x480xf32>
    %cst = arith.constant dense<0.000000e+00> : vector<384x480xf32>
    %2 = tpu.matmul %0, %1, %cst {dimension_numbers = #tpu.dot_dimension_numbers<[1], [0], [0], [1], [0, 0, 1, 1], [], []>} : vector<384x140xf32>, vector<140x480xf32>, vector<384x480xf32> -> vector<384x480xf32>
    %c0_3 = arith.constant 0 : index
    %c0_4 = arith.constant 0 : index
    %3 = vector.load %arg3[%c0_3, %c0_4] : memref<1x480xf32, #tpu.memory_space<vmem>>, vector<1x480xf32>
    %4 = vector.broadcast %3 : vector<1x480xf32> to vector<384x480xf32>
    %5 = arith.addf %2, %4 : vector<384x480xf32>
    %cst_5 = arith.constant 0.000000e+00 : f32
    %6 = vector.broadcast %cst_5 : f32 to vector<384x480xf32>
    %7 = arith.maximumf %5, %6 : vector<384x480xf32>
    %c0_6 = arith.constant 0 : index
    %c0_7 = arith.constant 0 : index
    %8 = vector.load %arg4[%c0_6, %c0_7] : memref<480x240xf32, #tpu.memory_space<vmem>>, vector<480x240xf32>
    %cst_8 = arith.constant dense<0.000000e+00> : vector<384x240xf32>
    %9 = tpu.matmul %7, %8, %cst_8 {dimension_numbers = #tpu.dot_dimension_numbers<[1], [0], [0], [1], [0, 0, 1, 1], [], []>} : vector<384x480xf32>, vector<480x240xf32>, vector<384x240xf32> -> vector<384x240xf32>
    %c0_9 = arith.constant 0 : index
    %c0_10 = arith.constant 0 : index
    %c0_11 = arith.constant 0 : index
    %10 = vector.load %arg5[%c0_9, %c0_10, %c0_11] : memref<5x128x384xf32, #tpu.memory_space<vmem>>, vector<1x128x384xf32>
    %11 = vector.shape_cast %10 : vector<1x128x384xf32> to vector<128x384xf32>
    %cst_12 = arith.constant dense<0.000000e+00> : vector<128x240xf32>
    %12 = tpu.matmul %11, %9, %cst_12 {dimension_numbers = #tpu.dot_dimension_numbers<[1], [0], [0], [1], [0, 0, 1, 1], [], []>} : vector<128x384xf32>, vector<384x240xf32>, vector<128x240xf32> -> vector<128x240xf32>
    %c0_13 = arith.constant 0 : index
    %c0_14 = arith.constant 0 : index
    %c0_15 = arith.constant 0 : index
    %13 = vector.load %arg6[%c0_13, %c0_14, %c0_15] : memref<5x240x400xf32, #tpu.memory_space<vmem>>, vector<1x240x400xf32>
    %14 = vector.shape_cast %13 : vector<1x240x400xf32> to vector<240x400xf32>
    %cst_16 = arith.constant dense<0.000000e+00> : vector<128x400xf32>
    %15 = tpu.matmul %12, %14, %cst_16 {dimension_numbers = #tpu.dot_dimension_numbers<[1], [0], [0], [1], [0, 0, 1, 1], [], []>} : vector<128x240xf32>, vector<240x400xf32>, vector<128x400xf32> -> vector<128x400xf32>
    %c1 = arith.constant 1 : index
    %c0_17 = arith.constant 0 : index
    %c0_18 = arith.constant 0 : index
    %16 = vector.load %arg5[%c1, %c0_17, %c0_18] : memref<5x128x384xf32, #tpu.memory_space<vmem>>, vector<1x128x384xf32>
    %17 = vector.shape_cast %16 : vector<1x128x384xf32> to vector<128x384xf32>
    %cst_19 = arith.constant dense<0.000000e+00> : vector<128x240xf32>
    %18 = tpu.matmul %17, %9, %cst_19 {dimension_numbers = #tpu.dot_dimension_numbers<[1], [0], [0], [1], [0, 0, 1, 1], [], []>} : vector<128x384xf32>, vector<384x240xf32>, vector<128x240xf32> -> vector<128x240xf32>
    %c1_20 = arith.constant 1 : index
    %c0_21 = arith.constant 0 : index
    %c0_22 = arith.constant 0 : index
    %19 = vector.load %arg6[%c1_20, %c0_21, %c0_22] : memref<5x240x400xf32, #tpu.memory_space<vmem>>, vector<1x240x400xf32>
    %20 = vector.shape_cast %19 : vector<1x240x400xf32> to vector<240x400xf32>
    %cst_23 = arith.constant dense<0.000000e+00> : vector<128x400xf32>
    %21 = tpu.matmul %18, %20, %cst_23 {dimension_numbers = #tpu.dot_dimension_numbers<[1], [0], [0], [1], [0, 0, 1, 1], [], []>} : vector<128x240xf32>, vector<240x400xf32>, vector<128x400xf32> -> vector<128x400xf32>
    %22 = arith.addf %15, %21 : vector<128x400xf32>
    %c2 = arith.constant 2 : index
    %c0_24 = arith.constant 0 : index
    %c0_25 = arith.constant 0 : index
    %23 = vector.load %arg5[%c2, %c0_24, %c0_25] : memref<5x128x384xf32, #tpu.memory_space<vmem>>, vector<1x128x384xf32>
    %24 = vector.shape_cast %23 : vector<1x128x384xf32> to vector<128x384xf32>
    %cst_26 = arith.constant dense<0.000000e+00> : vector<128x240xf32>
    %25 = tpu.matmul %24, %9, %cst_26 {dimension_numbers = #tpu.dot_dimension_numbers<[1], [0], [0], [1], [0, 0, 1, 1], [], []>} : vector<128x384xf32>, vector<384x240xf32>, vector<128x240xf32> -> vector<128x240xf32>
    %c2_27 = arith.constant 2 : index
    %c0_28 = arith.constant 0 : index
    %c0_29 = arith.constant 0 : index
    %26 = vector.load %arg6[%c2_27, %c0_28, %c0_29] : memref<5x240x400xf32, #tpu.memory_space<vmem>>, vector<1x240x400xf32>
    %27 = vector.shape_cast %26 : vector<1x240x400xf32> to vector<240x400xf32>
    %cst_30 = arith.constant dense<0.000000e+00> : vector<128x400xf32>
    %28 = tpu.matmul %25, %27, %cst_30 {dimension_numbers = #tpu.dot_dimension_numbers<[1], [0], [0], [1], [0, 0, 1, 1], [], []>} : vector<128x240xf32>, vector<240x400xf32>, vector<128x400xf32> -> vector<128x400xf32>
    %29 = arith.addf %22, %28 : vector<128x400xf32>
    %c3 = arith.constant 3 : index
    %c0_31 = arith.constant 0 : index
    %c0_32 = arith.constant 0 : index
    %30 = vector.load %arg5[%c3, %c0_31, %c0_32] : memref<5x128x384xf32, #tpu.memory_space<vmem>>, vector<1x128x384xf32>
    %31 = vector.shape_cast %30 : vector<1x128x384xf32> to vector<128x384xf32>
    %cst_33 = arith.constant dense<0.000000e+00> : vector<128x240xf32>
    %32 = tpu.matmul %31, %9, %cst_33 {dimension_numbers = #tpu.dot_dimension_numbers<[1], [0], [0], [1], [0, 0, 1, 1], [], []>} : vector<128x384xf32>, vector<384x240xf32>, vector<128x240xf32> -> vector<128x240xf32>
    %c3_34 = arith.constant 3 : index
    %c0_35 = arith.constant 0 : index
    %c0_36 = arith.constant 0 : index
    %33 = vector.load %arg6[%c3_34, %c0_35, %c0_36] : memref<5x240x400xf32, #tpu.memory_space<vmem>>, vector<1x240x400xf32>
    %34 = vector.shape_cast %33 : vector<1x240x400xf32> to vector<240x400xf32>
    %cst_37 = arith.constant dense<0.000000e+00> : vector<128x400xf32>
    %35 = tpu.matmul %32, %34, %cst_37 {dimension_numbers = #tpu.dot_dimension_numbers<[1], [0], [0], [1], [0, 0, 1, 1], [], []>} : vector<128x240xf32>, vector<240x400xf32>, vector<128x400xf32> -> vector<128x400xf32>
    %36 = arith.addf %29, %35 : vector<128x400xf32>
    %c4 = arith.constant 4 : index
    %c0_38 = arith.constant 0 : index
    %c0_39 = arith.constant 0 : index
    %37 = vector.load %arg5[%c4, %c0_38, %c0_39] : memref<5x128x384xf32, #tpu.memory_space<vmem>>, vector<1x128x384xf32>
    %38 = vector.shape_cast %37 : vector<1x128x384xf32> to vector<128x384xf32>
    %cst_40 = arith.constant dense<0.000000e+00> : vector<128x240xf32>
    %39 = tpu.matmul %38, %9, %cst_40 {dimension_numbers = #tpu.dot_dimension_numbers<[1], [0], [0], [1], [0, 0, 1, 1], [], []>} : vector<128x384xf32>, vector<384x240xf32>, vector<128x240xf32> -> vector<128x240xf32>
    %c4_41 = arith.constant 4 : index
    %c0_42 = arith.constant 0 : index
    %c0_43 = arith.constant 0 : index
    %40 = vector.load %arg6[%c4_41, %c0_42, %c0_43] : memref<5x240x400xf32, #tpu.memory_space<vmem>>, vector<1x240x400xf32>
    %41 = vector.shape_cast %40 : vector<1x240x400xf32> to vector<240x400xf32>
    %cst_44 = arith.constant dense<0.000000e+00> : vector<128x400xf32>
    %42 = tpu.matmul %39, %41, %cst_44 {dimension_numbers = #tpu.dot_dimension_numbers<[1], [0], [0], [1], [0, 0, 1, 1], [], []>} : vector<128x240xf32>, vector<240x400xf32>, vector<128x400xf32> -> vector<128x400xf32>
    %43 = arith.addf %36, %42 : vector<128x400xf32>
    %c0_45 = arith.constant 0 : index
    %c0_46 = arith.constant 0 : index
    %44 = vector.load %arg7[%c0_45, %c0_46] : memref<1x400xf32, #tpu.memory_space<vmem>>, vector<1x400xf32>
    %45 = vector.broadcast %44 : vector<1x400xf32> to vector<128x400xf32>
    %46 = arith.addf %43, %45 : vector<128x400xf32>
    %cst_47 = arith.constant 0.000000e+00 : f32
    %47 = vector.broadcast %cst_47 : f32 to vector<128x400xf32>
    %48 = arith.maximumf %46, %47 : vector<128x400xf32>
    %c0_48 = arith.constant 0 : index
    %c0_49 = arith.constant 0 : index
    %49 = vector.load %arg8[%c0_48, %c0_49] : memref<400x200xf32, #tpu.memory_space<vmem>>, vector<400x200xf32>
    %cst_50 = arith.constant dense<0.000000e+00> : vector<128x200xf32>
    %50 = tpu.matmul %48, %49, %cst_50 {dimension_numbers = #tpu.dot_dimension_numbers<[1], [0], [0], [1], [0, 0, 1, 1], [], []>} : vector<128x400xf32>, vector<400x200xf32>, vector<128x200xf32> -> vector<128x200xf32>
    %c0_51 = arith.constant 0 : index
    %c0_52 = arith.constant 0 : index
    %c0_53 = arith.constant 0 : index
    %51 = vector.load %arg9[%c0_51, %c0_52, %c0_53] : memref<4x16x128xf32, #tpu.memory_space<vmem>>, vector<1x16x128xf32>
    %52 = vector.shape_cast %51 : vector<1x16x128xf32> to vector<16x128xf32>
    %cst_54 = arith.constant dense<0.000000e+00> : vector<16x200xf32>
    %53 = tpu.matmul %52, %50, %cst_54 {dimension_numbers = #tpu.dot_dimension_numbers<[1], [0], [0], [1], [0, 0, 1, 1], [], []>} : vector<16x128xf32>, vector<128x200xf32>, vector<16x200xf32> -> vector<16x200xf32>
    %c0_55 = arith.constant 0 : index
    %c0_56 = arith.constant 0 : index
    %c0_57 = arith.constant 0 : index
    %54 = vector.load %arg10[%c0_55, %c0_56, %c0_57] : memref<4x200x500xf32, #tpu.memory_space<vmem>>, vector<1x200x500xf32>
    %55 = vector.shape_cast %54 : vector<1x200x500xf32> to vector<200x500xf32>
    %cst_58 = arith.constant dense<0.000000e+00> : vector<16x500xf32>
    %56 = tpu.matmul %53, %55, %cst_58 {dimension_numbers = #tpu.dot_dimension_numbers<[1], [0], [0], [1], [0, 0, 1, 1], [], []>} : vector<16x200xf32>, vector<200x500xf32>, vector<16x500xf32> -> vector<16x500xf32>
    %c1_59 = arith.constant 1 : index
    %c0_60 = arith.constant 0 : index
    %c0_61 = arith.constant 0 : index
    %57 = vector.load %arg9[%c1_59, %c0_60, %c0_61] : memref<4x16x128xf32, #tpu.memory_space<vmem>>, vector<1x16x128xf32>
    %58 = vector.shape_cast %57 : vector<1x16x128xf32> to vector<16x128xf32>
    %cst_62 = arith.constant dense<0.000000e+00> : vector<16x200xf32>
    %59 = tpu.matmul %58, %50, %cst_62 {dimension_numbers = #tpu.dot_dimension_numbers<[1], [0], [0], [1], [0, 0, 1, 1], [], []>} : vector<16x128xf32>, vector<128x200xf32>, vector<16x200xf32> -> vector<16x200xf32>
    %c1_63 = arith.constant 1 : index
    %c0_64 = arith.constant 0 : index
    %c0_65 = arith.constant 0 : index
    %60 = vector.load %arg10[%c1_63, %c0_64, %c0_65] : memref<4x200x500xf32, #tpu.memory_space<vmem>>, vector<1x200x500xf32>
    %61 = vector.shape_cast %60 : vector<1x200x500xf32> to vector<200x500xf32>
    %cst_66 = arith.constant dense<0.000000e+00> : vector<16x500xf32>
    %62 = tpu.matmul %59, %61, %cst_66 {dimension_numbers = #tpu.dot_dimension_numbers<[1], [0], [0], [1], [0, 0, 1, 1], [], []>} : vector<16x200xf32>, vector<200x500xf32>, vector<16x500xf32> -> vector<16x500xf32>
    %63 = arith.addf %56, %62 : vector<16x500xf32>
    %c2_67 = arith.constant 2 : index
    %c0_68 = arith.constant 0 : index
    %c0_69 = arith.constant 0 : index
    %64 = vector.load %arg9[%c2_67, %c0_68, %c0_69] : memref<4x16x128xf32, #tpu.memory_space<vmem>>, vector<1x16x128xf32>
    %65 = vector.shape_cast %64 : vector<1x16x128xf32> to vector<16x128xf32>
    %cst_70 = arith.constant dense<0.000000e+00> : vector<16x200xf32>
    %66 = tpu.matmul %65, %50, %cst_70 {dimension_numbers = #tpu.dot_dimension_numbers<[1], [0], [0], [1], [0, 0, 1, 1], [], []>} : vector<16x128xf32>, vector<128x200xf32>, vector<16x200xf32> -> vector<16x200xf32>
    %c2_71 = arith.constant 2 : index
    %c0_72 = arith.constant 0 : index
    %c0_73 = arith.constant 0 : index
    %67 = vector.load %arg10[%c2_71, %c0_72, %c0_73] : memref<4x200x500xf32, #tpu.memory_space<vmem>>, vector<1x200x500xf32>
    %68 = vector.shape_cast %67 : vector<1x200x500xf32> to vector<200x500xf32>
    %cst_74 = arith.constant dense<0.000000e+00> : vector<16x500xf32>
    %69 = tpu.matmul %66, %68, %cst_74 {dimension_numbers = #tpu.dot_dimension_numbers<[1], [0], [0], [1], [0, 0, 1, 1], [], []>} : vector<16x200xf32>, vector<200x500xf32>, vector<16x500xf32> -> vector<16x500xf32>
    %70 = arith.addf %63, %69 : vector<16x500xf32>
    %c3_75 = arith.constant 3 : index
    %c0_76 = arith.constant 0 : index
    %c0_77 = arith.constant 0 : index
    %71 = vector.load %arg9[%c3_75, %c0_76, %c0_77] : memref<4x16x128xf32, #tpu.memory_space<vmem>>, vector<1x16x128xf32>
    %72 = vector.shape_cast %71 : vector<1x16x128xf32> to vector<16x128xf32>
    %cst_78 = arith.constant dense<0.000000e+00> : vector<16x200xf32>
    %73 = tpu.matmul %72, %50, %cst_78 {dimension_numbers = #tpu.dot_dimension_numbers<[1], [0], [0], [1], [0, 0, 1, 1], [], []>} : vector<16x128xf32>, vector<128x200xf32>, vector<16x200xf32> -> vector<16x200xf32>
    %c3_79 = arith.constant 3 : index
    %c0_80 = arith.constant 0 : index
    %c0_81 = arith.constant 0 : index
    %74 = vector.load %arg10[%c3_79, %c0_80, %c0_81] : memref<4x200x500xf32, #tpu.memory_space<vmem>>, vector<1x200x500xf32>
    %75 = vector.shape_cast %74 : vector<1x200x500xf32> to vector<200x500xf32>
    %cst_82 = arith.constant dense<0.000000e+00> : vector<16x500xf32>
    %76 = tpu.matmul %73, %75, %cst_82 {dimension_numbers = #tpu.dot_dimension_numbers<[1], [0], [0], [1], [0, 0, 1, 1], [], []>} : vector<16x200xf32>, vector<200x500xf32>, vector<16x500xf32> -> vector<16x500xf32>
    %77 = arith.addf %70, %76 : vector<16x500xf32>
    %c0_83 = arith.constant 0 : index
    %c0_84 = arith.constant 0 : index
    %78 = vector.load %arg11[%c0_83, %c0_84] : memref<1x500xf32, #tpu.memory_space<vmem>>, vector<1x500xf32>
    %79 = vector.broadcast %78 : vector<1x500xf32> to vector<16x500xf32>
    %80 = arith.addf %77, %79 : vector<16x500xf32>
    %cst_85 = arith.constant 0.000000e+00 : f32
    %81 = vector.broadcast %cst_85 : f32 to vector<16x500xf32>
    %82 = arith.maximumf %80, %81 : vector<16x500xf32>
    %c0_86 = arith.constant 0 : index
    %c0_87 = arith.constant 0 : index
    %83 = vector.load %arg12[%c0_86, %c0_87] : memref<500x10xf32, #tpu.memory_space<vmem>>, vector<500x10xf32>
    %cst_88 = arith.constant dense<0.000000e+00> : vector<16x10xf32>
    %84 = tpu.matmul %82, %83, %cst_88 {dimension_numbers = #tpu.dot_dimension_numbers<[1], [0], [0], [1], [0, 0, 1, 1], [], []>} : vector<16x500xf32>, vector<500x10xf32>, vector<16x10xf32> -> vector<16x10xf32>
    %c0_89 = arith.constant 0 : index
    %c0_90 = arith.constant 0 : index
    %85 = vector.load %arg13[%c0_89, %c0_90] : memref<1x10xf32, #tpu.memory_space<vmem>>, vector<1x10xf32>
    %86 = vector.broadcast %85 : vector<1x10xf32> to vector<16x10xf32>
    %87 = arith.addf %84, %86 : vector<16x10xf32>
    %cst_91 = arith.constant dense<0xFF800000> : vector<16xf32>
    %88 = vector.multi_reduction <maximumf>, %87, %cst_91 [1] : vector<16x10xf32> to vector<16xf32>
    %89 = vector.shape_cast %88 : vector<16xf32> to vector<16x1xf32>
    %90 = vector.broadcast %89 : vector<16x1xf32> to vector<16x10xf32>
    %91 = arith.subf %87, %90 : vector<16x10xf32>
    %92 = math.exp %91 : vector<16x10xf32>
    %cst_92 = arith.constant dense<0.000000e+00> : vector<16xf32>
    %93 = vector.multi_reduction <add>, %92, %cst_92 [1] : vector<16x10xf32> to vector<16xf32>
    %94 = vector.shape_cast %93 : vector<16xf32> to vector<16x1xf32>
    %95 = math.log %94 : vector<16x1xf32>
    %96 = arith.addf %89, %95 : vector<16x1xf32>
    %97 = vector.broadcast %96 : vector<16x1xf32> to vector<16x10xf32>
    %98 = arith.subf %87, %97 : vector<16x10xf32>
    %c0_93 = arith.constant 0 : index
    %c0_94 = arith.constant 0 : index
    %99 = vector.load %arg14[%c0_93, %c0_94] : memref<16x10xf32, #tpu.memory_space<vmem>>, vector<16x10xf32>
    tpu.vector_store %arg14[%c0_93, %c0_94], %98 {strides = array<i32>} : memref<16x10xf32, #tpu.memory_space<vmem>>, vector<16x10xf32>,
    return
  }
  func.func @transform_0(%arg0: i32) -> (i32, i32) {
    %c0_i32 = arith.constant 0 : i32
    %c0_i32_0 = arith.constant 0 : i32
    return %arg0, %c0_i32 : i32, i32
  }
  func.func @transform_1(%arg0: i32) -> (i32, i32) {
    %c0_i32 = arith.constant 0 : i32
    %c0_i32_0 = arith.constant 0 : i32
    %c0_i32_1 = arith.constant 0 : i32
    return %c0_i32, %c0_i32_0 : i32, i32
  }
  func.func @transform_2(%arg0: i32) -> (i32, i32) {
    %c0_i32 = arith.constant 0 : i32
    %c0_i32_0 = arith.constant 0 : i32
    %c0_i32_1 = arith.constant 0 : i32
    return %c0_i32, %c0_i32_0 : i32, i32
  }
  func.func @transform_3(%arg0: i32) -> (i32, i32) {
    %c0_i32 = arith.constant 0 : i32
    %c0_i32_0 = arith.constant 0 : i32
    %c0_i32_1 = arith.constant 0 : i32
    return %c0_i32, %c0_i32_0 : i32, i32
  }
  func.func @transform_4(%arg0: i32) -> (i32, i32, i32) {
    %c0_i32 = arith.constant 0 : i32
    %c0_i32_0 = arith.constant 0 : i32
    %c0_i32_1 = arith.constant 0 : i32
    %c0_i32_2 = arith.constant 0 : i32
    return %c0_i32, %c0_i32_0, %c0_i32_1 : i32, i32, i32
  }
  func.func @transform_5(%arg0: i32) -> (i32, i32, i32) {
    %c0_i32 = arith.constant 0 : i32
    %c0_i32_0 = arith.constant 0 : i32
    %c0_i32_1 = arith.constant 0 : i32
    %c0_i32_2 = arith.constant 0 : i32
    return %c0_i32, %c0_i32_0, %c0_i32_1 : i32, i32, i32
  }
  func.func @transform_6(%arg0: i32) -> (i32, i32) {
    %c0_i32 = arith.constant 0 : i32
    %c0_i32_0 = arith.constant 0 : i32
    %c0_i32_1 = arith.constant 0 : i32
    return %c0_i32, %c0_i32_0 : i32, i32
  }
  func.func @transform_7(%arg0: i32) -> (i32, i32) {
    %c0_i32 = arith.constant 0 : i32
    %c0_i32_0 = arith.constant 0 : i32
    %c0_i32_1 = arith.constant 0 : i32
    return %c0_i32, %c0_i32_0 : i32, i32
  }
  func.func @transform_8(%arg0: i32) -> (i32, i32, i32) {
    %c0_i32 = arith.constant 0 : i32
    %c0_i32_0 = arith.constant 0 : i32
    %c0_i32_1 = arith.constant 0 : i32
    %c0_i32_2 = arith.constant 0 : i32
    return %c0_i32, %c0_i32_0, %c0_i32_1 : i32, i32, i32
  }
  func.func @transform_9(%arg0: i32) -> (i32, i32, i32) {
    %c0_i32 = arith.constant 0 : i32
    %c0_i32_0 = arith.constant 0 : i32
    %c0_i32_1 = arith.constant 0 : i32
    %c0_i32_2 = arith.constant 0 : i32
    return %c0_i32, %c0_i32_0, %c0_i32_1 : i32, i32, i32
  }
  func.func @transform_10(%arg0: i32) -> (i32, i32) {
    %c0_i32 = arith.constant 0 : i32
    %c0_i32_0 = arith.constant 0 : i32
    %c0_i32_1 = arith.constant 0 : i32
    return %c0_i32, %c0_i32_0 : i32, i32
  }
  func.func @transform_11(%arg0: i32) -> (i32, i32) {
    %c0_i32 = arith.constant 0 : i32
    %c0_i32_0 = arith.constant 0 : i32
    %c0_i32_1 = arith.constant 0 : i32
    return %c0_i32, %c0_i32_0 : i32, i32
  }
  func.func @transform_12(%arg0: i32) -> (i32, i32) {
    %c0_i32 = arith.constant 0 : i32
    %c0_i32_0 = arith.constant 0 : i32
    %c0_i32_1 = arith.constant 0 : i32
    return %c0_i32, %c0_i32_0 : i32, i32
  }
  func.func @transform_13(%arg0: i32) -> (i32, i32) {
    %c0_i32 = arith.constant 0 : i32
    %c0_i32_0 = arith.constant 0 : i32
    return %arg0, %c0_i32 : i32, i32
  }
}

</mosaic_0001>

<bundles_post_ra>
// kernel: tpu_custom_call.1
= control target key start
LH: loop header
LB: loop body
LE: loop exit
PB: predicated region body
PF: predicated region fallthrough
CT: control target
= control target key end

     0   :  { %vm235_vm0 = vcmask 97280   ;;  %vm380_vm1 = vcmask 1043456   ;;  %vm13008_vm2 = vmmov 1   ;;  %s20726_s0 = inlined_call_operand.vmem [shape: f32[384,140], index: 0, kind: input, shape index: {}]   ;;  %s20727_s1 = inlined_call_operand.vmem [shape: f32[140,480], index: 1, kind: input, shape index: {}]   ;;  %s20728_s2 = inlined_call_operand.vmem [shape: f32[1,480], index: 2, kind: input, shape index: {}]   ;;  %s20729_s3 = inlined_call_operand.vmem [shape: f32[480,240], index: 3, kind: input, shape index: {}]   ;;  %s20730_s4 = inlined_call_operand.vmem [shape: f32[5,128,384], index: 4, kind: input, shape index: {}]   ;;  %s20731_s5 = inlined_call_operand.vmem [shape: f32[5,240,400], index: 5, kind: input, shape index: {}]   ;;  %s20732_s6 = inlined_call_operand.vmem [shape: f32[1,400], index: 6, kind: input, shape index: {}]   ;;  %s20733_s7 = inlined_call_operand.vmem [shape: f32[400,200], index: 7, kind: input, shape index: {}]   ;;  %s20734_s8 = inlined_call_operand.vmem [shape: f32[4,16,128], index: 8, kind: input, shape index: {}]   ;;  %s20735_s9 = inlined_call_operand.vmem [shape: f32[4,200,500], index: 9, kind: input, shape index: {}]   ;;  %s20736_s10 = inlined_call_operand.vmem [shape: f32[1,500], index: 10, kind: input, shape index: {}]   ;;  %s20737_s11 = inlined_call_operand.vmem [shape: f32[500,10], index: 11, kind: input, shape index: {}]   ;;  %s20738_s12 = inlined_call_operand.vmem [shape: f32[1,10], index: 12, kind: input, shape index: {}]   ;;  %s20739_s13 = inlined_call_operand.hbm [shape: f32[16,10], index: 13, kind: output, shape index: {}]  }
   0x1   :  { %v142_v0 = vld [vmem:[%s20727_s1 + $0x8] sm:$0xff]  ;;  %v141_v2 = vld [vmem:[%s20727_s1] sm:$0xff]  ;;  %vm13198_vm3 = vmpackc.low %vm380_vm1, %vm13008_vm2 }
   0x2   :  { %v146_v1 = vld [vmem:[%s20727_s1 + $0x28] sm:$0xff]  ;;  %v145_v4 = vld [vmem:[%s20727_s1 + $0x20] sm:$0xff]  ;;  %v1294_v56 = vld [vmem:[%s20729_s3 + $0x18] sm:$0xff] }
   0x3   :  { %v10436_v3 = vpack.c.bf16 %v146_v1, %v142_v0  ;;  %v150_v5 = vld [vmem:[%s20727_s1 + $0x48] sm:$0xff]  ;;  %v10438_v7 = vpack.c.bf16 %v145_v4, %v141_v2  ;;  %v149_v9 = vld [vmem:[%s20727_s1 + $0x40] sm:$0xff]  ;;  %v1293_v60 = vld [vmem:[%s20729_s3 + $0x10] sm:$0xff] }
   0x4   :  { %v154_v6 = vld [vmem:[%s20727_s1 + $0x68] sm:$0xff]  ;;  %v153_v10 = vld [vmem:[%s20727_s1 + $0x60] sm:$0xff]  ;;  %v1298_v62 = vld [vmem:[%s20729_s3 + $0x38] sm:$0xff] }
   0x5   :  { %v10440_v8 = vpack.c.bf16 %v154_v6, %v150_v5  ;;  %v158_v11 = vld [vmem:[%s20727_s1 + $0x88] sm:$0xff]  ;;  %10437 = vmatprep.subr.bf16.mxu0 %v10436_v3  ;;  %v10442_v13 = vpack.c.bf16 %v153_v10, %v149_v9  ;;  %v157_v15 = vld [vmem:[%s20727_s1 + $0x80] sm:$0xff]  ;;  %v13232_v1 = vld [vmem:[%s20726_s0 + $0x18] sm:$0xff] }
   0x6   :  { %v162_v12 = vld [vmem:[%s20727_s1 + $0xa8] sm:$0xff]  ;;  %10439 = vmatpush1.bf16.msra.mxu0 %v10438_v7  ;;  %v161_v16 = vld [vmem:[%s20727_s1 + $0xa0] sm:$0xff]  ;;  %v1297_v4 = vld [vmem:[%s20729_s3 + $0x30] sm:$0xff] }
   0x7   :  { %10441 = vmatprep.subr.bf16.mxu0 %v10440_v8  ;;  %v10444_v14 = vpack.c.bf16 %v162_v12, %v158_v11  ;;  %v166_v17 = vld [vmem:[%s20727_s1 + $0xc8] sm:$0xff]  ;;  %v10446_v19 = vpack.c.bf16 %v161_v16, %v157_v15  ;;  %v165_v21 = vld [vmem:[%s20727_s1 + $0xc0] sm:$0xff]  ;;  %v1302_v6 = vld [vmem:[%s20729_s3 + $0x58] sm:$0xff] }
   0x8   :  { %v170_v18 = vld [vmem:[%s20727_s1 + $0xe8] sm:$0xff]  ;;  %v169_v22 = vld [vmem:[%s20727_s1 + $0xe0] sm:$0xff] }
   0x9   :  { %v10448_v20 = vpack.c.bf16 %v170_v18, %v166_v17  ;;  %v174_v23 = vld [vmem:[%s20727_s1 + $0x108] sm:$0xff]  ;;  %v10450_v25 = vpack.c.bf16 %v169_v22, %v165_v21  ;;  %v173_v28 = vld [vmem:[%s20727_s1 + $0x100] sm:$0xff] }
   0xa   :  { %10443 = vmatpush1.bf16.msra.mxu0 %v10442_v13  ;;  %v178_v24 = vld [vmem:[%s20727_s1 + $0x128] sm:$0xff]  ;;  %v177_v29 = vld [vmem:[%s20727_s1 + $0x120] sm:$0xff] }
   0xb   :  { %10445 = vmatprep.subr.bf16.mxu0 %v10444_v14  ;;  %v46_v26 = vld [vmem:[%s20726_s0 + $0x8] sm:$0xff]  ;;  %v10452_v27 = vpack.c.bf16 %v178_v24, %v174_v23  ;;  %v10454_v32 = vpack.c.bf16 %v177_v29, %v173_v28  ;;  %v181_v34 = vld [vmem:[%s20727_s1 + $0x140] sm:$0xff] }
   0xc   :  { %9078 = vmatprep.mubr.msk.f32.mxu0 %vm235_vm0, %v46_v26  ;;  %v182_v30 = vld [vmem:[%s20727_s1 + $0x148] sm:$0xff]  ;;  %9128 = vmatprep.mubr.msk.f32.mxu1 %vm235_vm0, %v46_v26  ;;  %v185_v35 = vld [vmem:[%s20727_s1 + $0x160] sm:$0xff] }
   0xd   :  { %v186_v31 = vld [vmem:[%s20727_s1 + $0x168] sm:$0xff]  ;;  %v10458_v38 = vpack.c.bf16 %v185_v35, %v181_v34  ;;  %v189_v40 = vld [vmem:[%s20727_s1 + $0x180] sm:$0xff] }
   0xe   :  { %10447 = vmatpush1.bf16.msra.mxu0 %v10446_v19  ;;  %v10456_v33 = vpack.c.bf16 %v186_v31, %v182_v30  ;;  %v190_v36 = vld [vmem:[%s20727_s1 + $0x188] sm:$0xff]  ;;  %v193_v41 = vld [vmem:[%s20727_s1 + $0x1a0] sm:$0xff] }
   0xf   :  { %10449 = vmatprep.subr.bf16.mxu0 %v10448_v20  ;;  %v194_v37 = vld [vmem:[%s20727_s1 + $0x1a8] sm:$0xff]  ;;  %v10462_v44 = vpack.c.bf16 %v193_v41, %v189_v40  ;;  %v197_v46 = vld [vmem:[%s20727_s1 + $0x1c0] sm:$0xff] }
  0x10   :  { %v10460_v39 = vpack.c.bf16 %v194_v37, %v190_v36  ;;  %v198_v42 = vld [vmem:[%s20727_s1 + $0x1c8] sm:$0xff]  ;;  %v201_v47 = vld [vmem:[%s20727_s1 + $0x1e0] sm:$0xff] }
  0x11   :  { %v202_v43 = vld [vmem:[%s20727_s1 + $0x1e8] sm:$0xff]  ;;  %v10466_v50 = vpack.c.bf16 %v201_v47, %v197_v46  ;;  %v205_v52 = vld [vmem:[%s20727_s1 + $0x200] sm:$0xff] }
  0x12   :  { %10451 = vmatpush1.bf16.msra.mxu0 %v10450_v25  ;;  %v10464_v45 = vpack.c.bf16 %v202_v43, %v198_v42  ;;  %v206_v48 = vld [vmem:[%s20727_s1 + $0x208] sm:$0xff]  ;;  %v209_v53 = vld [vmem:[%s20727_s1 + $0x220] sm:$0xf] }
  0x13   :  { %10453 = vmatprep.subr.bf16.mxu0 %v10452_v27  ;;  %v210_v49 = vld [vmem:[%s20727_s1 + $0x228] sm:$0xf]  ;;  %v10471_v57 = vpack.c.bf16 %v209_v53, %v205_v52  ;;  %v1291_v59 = vld [vmem:[%s20729_s3] sm:$0xff] }
  0x14   :  { %v10468_v51 = vpack.c.bf16 %v210_v49, %v206_v48  ;;  %v1292_v55 = vld [vmem:[%s20729_s3 + $0x8] sm:$0xff]  ;;  %v13227_v63 = vld [vmem:[%s20726_s0] sm:$0xff]  ;;  %v10514_v0 = vpack.c.bf16 %v1293_v60, %v1291_v59 }
  0x15   :  { %v10512_v58 = vpack.c.bf16 %v1294_v56, %v1292_v55  ;;  %v1296_v61 = vld [vmem:[%s20729_s3 + $0x28] sm:$0xff]  ;;  %v1295_v3 = vld [vmem:[%s20729_s3 + $0x20] sm:$0xff] }
  0x16   :  { %10455 = vmatpush1.bf16.msra.mxu0 %v10454_v32  ;;  %v10516_v2 = vpack.c.bf16 %v1298_v62, %v1296_v61  ;;  %v1300_v5 = vld [vmem:[%s20729_s3 + $0x48] sm:$0xff] }
  0x17   :  { %10457 = vmatprep.subr.bf16.mxu0 %v10456_v33 }
  0x1a   :  { %10459 = vmatpush1.bf16.msra.mxu0 %v10458_v38 }
  0x1b   :  { %10461 = vmatprep.subr.bf16.mxu0 %v10460_v39 }
  0x1e   :  { %10463 = vmatpush1.bf16.msra.mxu0 %v10462_v44 }
  0x1f   :  { %10465 = vmatprep.subr.bf16.mxu0 %v10464_v45 }
  0x22   :  { %10467 = vmatpush1.bf16.msra.mxu0 %v10466_v50 }
  0x23   :  { %10470 = vmatprep.subr.msk.bf16.mxu0 %vm13198_vm3, %v10468_v51 }
  0x26   :  { %10473 = vmatpush1.bf16.msk.msra.mxu0 %vm13198_vm3, %v10471_v57 }
  0x27   :  { %10513 = vmatprep.subr.bf16.mxu0 %v10512_v58 }
  0x28   :  { %18 = vsyncpa [#allocation3], 0  ;;  %v13252_v7 = vld [vmem:[%s20726_s0 + $0x10] sm:$0xff]  ;;  %v10518_v8 = vpack.c.bf16 %v1297_v4, %v1295_v3  ;;  %v13257_v9 = vld [vmem:[%s20726_s0 + $0x28] sm:$0xff]  ;;  %v10520_v10 = vpack.c.bf16 %v1302_v6, %v1300_v5  ;;  %vm1411_vm4 = vcmask 785408   ;;  %vm3244_vm5 = vcmask 916480  }
  0x29   :  { %458 = vmatmul.mubr.f32.vlgmr.msra.gmra.mrb[0].mxu0 %v13227_v63  ;;  %v1299_v11 = vld [vmem:[%s20729_s3 + $0x40] sm:$0xff]  ;;  %v1301_v12 = vld [vmem:[%s20729_s3 + $0x50] sm:$0xff]  ;;  %v1304_v13 = vld [vmem:[%s20729_s3 + $0x68] sm:$0xff]  ;;  %vm7013_vm6 = vcmask 130048   ;;  %vm7744_vm7 = vcmask 588800   ;;  %vm8871_vm8 = vcmask 949248  }
  0x2a   :  { %9079 = vmatprep.mubr.msk.f32.mxu0 %vm235_vm0, %v13232_v1  ;;  %10515 = vmatpush1.bf16.msra.mxu0 %v10514_v0  ;;  %v1306_v14 = vld [vmem:[%s20729_s3 + $0x78] sm:$0xff]  ;;  %v13277_v15 = vld [vmem:[%s20726_s0 + $0x20] sm:$0xff]  ;;  %v10522_v16 = vpack.c.bf16 %v1301_v12, %v1299_v11  ;;  %v1305_v20 = vld [vmem:[%s20729_s3 + $0x70] sm:$0xff]  ;;  %vm9031_vm9 = vcmask 80896  }
  0x2b   :  { %10517 = vmatprep.subr.bf16.mxu0 %v10516_v2  ;;  %v13282_v17 = vld [vmem:[%s20726_s0 + $0x38] sm:$0xff]  ;;  %v10524_v18 = vpack.c.bf16 %v1306_v14, %v1304_v13  ;;  %v1303_v19 = vld [vmem:[%s20729_s3 + $0x60] sm:$0xff]  ;;  %v13296_v21 = vld [vmem:[%s20726_s0 + $0x30] sm:$0xff] }
  0x2c   :  { %v10526_v22 = vpack.c.bf16 %v1305_v20, %v1303_v19  ;;  %v13301_v23 = vld [vmem:[%s20726_s0 + $0x48] sm:$0xff]  ;;  %v1310_v25 = vld [vmem:[%s20729_s3 + $0x98] sm:$0xff]  ;;  %v13315_v26 = vld [vmem:[%s20726_s0 + $0x40] sm:$0xff] }
  0x2d   :  { %464 = vmatmul.mubr.f32.gmra.mrb[2].mxu0 %v13252_v7  ;;  %v1308_v24 = vld [vmem:[%s20729_s3 + $0x88] sm:$0xff]  ;;  %v1307_v28 = vld [vmem:[%s20729_s3 + $0x80] sm:$0xff]  ;;  %v1309_v29 = vld [vmem:[%s20729_s3 + $0x90] sm:$0xff] }
  0x2e   :  { %9080 = vmatprep.mubr.msk.f32.mxu0 %vm235_vm0, %v13257_v9  ;;  %10519 = vmatpush1.bf16.msra.mxu0 %v10518_v8  ;;  %v10528_v27 = vpack.c.bf16 %v1310_v25, %v1308_v24  ;;  %v13326_v30 = vld [vmem:[%s20726_s0 + $0x58] sm:$0xff]  ;;  %v10530_v31 = vpack.c.bf16 %v1309_v29, %v1307_v28  ;;  %v13334_v32 = vld [vmem:[%s20726_s0 + $0x50] sm:$0xff]  ;;  %v13339_v33 = vld [vmem:[%s20726_s0 + $0x68] sm:$0xff] }
  0x2f   :  { %10521 = vmatprep.subr.bf16.mxu0 %v10520_v10  ;;  %v13347_v34 = vld [vmem:[%s20726_s0 + $0x60] sm:$0xff]  ;;  %v13352_v35 = vld [vmem:[%s20726_s0 + $0x78] sm:$0xff]  ;;  %v13358_v36 = vld [vmem:[%s20726_s0 + $0x70] sm:$0xff] }
  0x30   :  { %v1312_v37 = vld [vmem:[%s20729_s3 + $0xa8] sm:$0xff]  ;;  %v1314_v38 = vld [vmem:[%s20729_s3 + $0xb8] sm:$0xff]  ;;  %v1311_v42 = vld [vmem:[%s20729_s3 + $0xa0] sm:$0xff] }
  0x31   :  { %470 = vmatmul.mubr.f32.gmra.mrb[4].mxu0 %v13277_v15  ;;  %v10532_v39 = vpack.c.bf16 %v1314_v38, %v1312_v37  ;;  %v144_v40 = vld [vmem:[%s20727_s1 + $0x18] sm:$0xff]  ;;  %v13380_v43 = vld [vmem:[%s20726_s0 + $0x88] sm:$0xff]  ;;  %v1313_v45 = vld [vmem:[%s20729_s3 + $0xb0] sm:$0xff] }
  0x32   :  { %9081 = vmatprep.mubr.msk.f32.mxu0 %vm235_vm0, %v13282_v17  ;;  %10523 = vmatpush1.bf16.msra.mxu0 %v10522_v16  ;;  %v148_v41 = vld [vmem:[%s20727_s1 + $0x38] sm:$0xff]  ;;  %v143_v46 = vld [vmem:[%s20727_s1 + $0x10] sm:$0xff]  ;;  %v10534_v47 = vpack.c.bf16 %v1313_v45, %v1311_v42  ;;  %v13403_v52 = vld [vmem:[%s20726_s0 + $0x80] sm:$0xff] }
  0x33   :  { %10525 = vmatprep.subr.bf16.mxu0 %v10524_v18  ;;  %v10474_v44 = vpack.c.bf16 %v148_v41, %v144_v40  ;;  %v147_v48 = vld [vmem:[%s20727_s1 + $0x30] sm:$0xff]  ;;  %v152_v50 = vld [vmem:[%s20727_s1 + $0x58] sm:$0xff]  ;;  %v13439_v3 = vld [vmem:[%s20726_s0 + $0xa8] sm:$0xff] }
  0x34   :  { %v10476_v49 = vpack.c.bf16 %v147_v48, %v143_v46  ;;  %v156_v51 = vld [vmem:[%s20727_s1 + $0x78] sm:$0xff]  ;;  %v151_v55 = vld [vmem:[%s20727_s1 + $0x50] sm:$0xff]  ;;  %v13445_v5 = vld [vmem:[%s20726_s0 + $0xa0] sm:$0xff] }
  0x35   :  { %476 = vmatmul.mubr.f32.gmra.mrb[6].mxu0 %v13296_v21  ;;  %10475 = vmatprep.subr.bf16.mxu1 %v10474_v44  ;;  %v10478_v53 = vpack.c.bf16 %v156_v51, %v152_v50  ;;  %v155_v56 = vld [vmem:[%s20727_s1 + $0x70] sm:$0xff]  ;;  %v13414_v57 = vld [vmem:[%s20726_s0 + $0x98] sm:$0xff]  ;;  %v1316_v6 = vld [vmem:[%s20729_s3 + $0xc8] sm:$0xff] }
  0x36   :  { %9082 = vmatprep.mubr.msk.f32.mxu0 %vm235_vm0, %v13301_v23  ;;  %10527 = vmatpush1.bf16.msra.mxu0 %v10526_v22  ;;  %v10480_v58 = vpack.c.bf16 %v155_v56, %v151_v55  ;;  %v160_v59 = vld [vmem:[%s20727_s1 + $0x98] sm:$0xff]  ;;  %v13428_v61 = vld [vmem:[%s20726_s0 + $0x90] sm:$0xff]  ;;  %v1315_v13 = vld [vmem:[%s20729_s3 + $0xc0] sm:$0xff] }
  0x37   :  { %10529 = vmatprep.subr.bf16.mxu0 %v10528_v27  ;;  %10477 = vmatpush1.bf16.msra.mxu1 %v10476_v49  ;;  %v164_v60 = vld [vmem:[%s20727_s1 + $0xb8] sm:$0xff]  ;;  %v159_v0 = vld [vmem:[%s20727_s1 + $0x90] sm:$0xff]  ;;  %v13501_v38 = vld [vmem:[%s20726_s0 + $0xc8] sm:$0xff] }
  0x38   :  { %10479 = vmatprep.subr.bf16.mxu1 %v10478_v53  ;;  %v10482_v62 = vpack.c.bf16 %v164_v60, %v160_v59  ;;  %v163_v2 = vld [vmem:[%s20727_s1 + $0xb0] sm:$0xff]  ;;  %v1318_v8 = vld [vmem:[%s20729_s3 + $0xd8] sm:$0xff]  ;;  %v13515_v42 = vld [vmem:[%s20726_s0 + $0xc0] sm:$0xff] }
  0x39   :  { %482 = vmatmul.mubr.f32.gmra.mrb[8].mxu0 %v13315_v26  ;;  %v10484_v4 = vpack.c.bf16 %v163_v2, %v159_v0  ;;  %v10536_v10 = vpack.c.bf16 %v1318_v8, %v1316_v6  ;;  %v168_v11 = vld [vmem:[%s20727_s1 + $0xd8] sm:$0xff]  ;;  %v1317_v18 = vld [vmem:[%s20729_s3 + $0xd0] sm:$0xff]  ;;  %v1320_v50 = vld [vmem:[%s20729_s3 + $0xe8] sm:$0xff] }
  0x3a   :  { %9083 = vmatprep.mubr.msk.f32.mxu0 %vm235_vm0, %v13326_v30  ;;  %10531 = vmatpush1.bf16.msra.mxu0 %v10530_v31  ;;  %v172_v12 = vld [vmem:[%s20727_s1 + $0xf8] sm:$0xff]  ;;  %v167_v19 = vld [vmem:[%s20727_s1 + $0xd0] sm:$0xff]  ;;  %v10538_v20 = vpack.c.bf16 %v1317_v18, %v1315_v13  ;;  %v13554_v59 = vld [vmem:[%s20726_s0 + $0xe8] sm:$0xff] }
  0x3b   :  { %10533 = vmatprep.subr.bf16.mxu0 %v10532_v39  ;;  %10481 = vmatpush1.bf16.msra.mxu1 %v10480_v58  ;;  %v13467_v14 = vld [vmem:[%s20726_s0 + $0xb8] sm:$0xff]  ;;  %v10486_v16 = vpack.c.bf16 %v172_v12, %v168_v11  ;;  %v171_v22 = vld [vmem:[%s20727_s1 + $0xf0] sm:$0xff]  ;;  %v1319_v58 = vld [vmem:[%s20729_s3 + $0xe0] sm:$0xff] }
  0x3c   :  { %10483 = vmatprep.subr.bf16.mxu1 %v10482_v62  ;;  %v10488_v24 = vpack.c.bf16 %v171_v22, %v167_v19  ;;  %v176_v25 = vld [vmem:[%s20727_s1 + $0x118] sm:$0xff]  ;;  %v13490_v28 = vld [vmem:[%s20726_s0 + $0xb0] sm:$0xff]  ;;  %v13577_v11 = vld [vmem:[%s20726_s0 + $0xe0] sm:$0xff] }
  0x3d   :  { %488 = vmatmul.mubr.f32.gmra.mrb[10].mxu0 %v13334_v32  ;;  %v180_v27 = vld [vmem:[%s20727_s1 + $0x138] sm:$0xff]  ;;  %v175_v31 = vld [vmem:[%s20727_s1 + $0x110] sm:$0xff] }
  0x3e   :  { %9084 = vmatprep.mubr.msk.f32.mxu0 %vm235_vm0, %v13339_v33  ;;  %10535 = vmatpush1.bf16.msra.mxu0 %v10534_v47  ;;  %v10490_v29 = vpack.c.bf16 %v180_v27, %v176_v25  ;;  %v179_v37 = vld [vmem:[%s20727_s1 + $0x130] sm:$0xff]  ;;  %v184_v40 = vld [vmem:[%s20727_s1 + $0x158] sm:$0xff] }
  0x3f   :  { %10485 = vmatpush1.bf16.msra.mxu1 %v10484_v4  ;;  %10537 = vmatprep.subr.bf16.mxu0 %v10536_v10  ;;  %v10492_v39 = vpack.c.bf16 %v179_v37, %v175_v31  ;;  %v188_v41 = vld [vmem:[%s20727_s1 + $0x178] sm:$0xff]  ;;  %v183_v45 = vld [vmem:[%s20727_s1 + $0x150] sm:$0xff]  ;;  %v1323_v37 = vld [vmem:[%s20729_s3 + $0x100] sm:$0xff] }
  0x40   :  { %10487 = vmatprep.subr.bf16.mxu1 %v10486_v16  ;;  %v10494_v44 = vpack.c.bf16 %v188_v41, %v184_v40  ;;  %v187_v46 = vld [vmem:[%s20727_s1 + $0x170] sm:$0xff]  ;;  %v13526_v47 = vld [vmem:[%s20726_s0 + $0xd8] sm:$0xff]  ;;  %v13619_v40 = vld [vmem:[%s20726_s0 + $0x108] sm:$0xff] }
  0x41   :  { %494 = vmatmul.mubr.f32.gmra.mrb[12].mxu0 %v13347_v34  ;;  %v10496_v48 = vpack.c.bf16 %v187_v46, %v183_v45  ;;  %v13532_v49 = vld [vmem:[%s20726_s0 + $0xd0] sm:$0xff]  ;;  %v1322_v51 = vld [vmem:[%s20729_s3 + $0xf8] sm:$0xff] }
  0x42   :  { %9085 = vmatprep.mubr.msk.f32.mxu0 %vm235_vm0, %v13352_v35  ;;  %10539 = vmatpush1.bf16.msra.mxu0 %v10538_v20  ;;  %v10540_v53 = vpack.c.bf16 %v1322_v51, %v1320_v50  ;;  %v192_v55 = vld [vmem:[%s20727_s1 + $0x198] sm:$0xff]  ;;  %v1321_v62 = vld [vmem:[%s20729_s3 + $0xf0] sm:$0xff]  ;;  %v1324_v20 = vld [vmem:[%s20729_s3 + $0x108] sm:$0xff] }
  0x43   :  { %10489 = vmatpush1.bf16.msra.mxu1 %v10488_v24  ;;  %v196_v56 = vld [vmem:[%s20727_s1 + $0x1b8] sm:$0xff]  ;;  %v191_v0 = vld [vmem:[%s20727_s1 + $0x190] sm:$0xff]  ;;  %v10542_v2 = vpack.c.bf16 %v1321_v62, %v1319_v58  ;;  %v13650_v58 = vld [vmem:[%s20726_s0 + $0x100] sm:$0xff] }
  0x44   :  { %10491 = vmatprep.subr.bf16.mxu1 %v10490_v29  ;;  %v10498_v60 = vpack.c.bf16 %v196_v56, %v192_v55  ;;  %10541 = vmatprep.subr.bf16.mxu0 %v10540_v53  ;;  %v195_v4 = vld [vmem:[%s20727_s1 + $0x1b0] sm:$0xff]  ;;  %v200_v8 = vld [vmem:[%s20727_s1 + $0x1d8] sm:$0xff]  ;;  %v1327_v53 = vld [vmem:[%s20729_s3 + $0x120] sm:$0xff] }
  0x45   :  { %500 = vmatmul.mubr.f32.gmra.mrb[14].mxu0 %v13358_v36  ;;  %v10500_v6 = vpack.c.bf16 %v195_v4, %v191_v0  ;;  %v204_v10 = vld [vmem:[%s20727_s1 + $0x1f8] sm:$0xff]  ;;  %v199_v13 = vld [vmem:[%s20727_s1 + $0x1d0] sm:$0xff]  ;;  %v1332_v56 = vld [vmem:[%s20729_s3 + $0x148] sm:$0xff] }
  0x46   :  { %9086 = vmatprep.mubr.msk.f32.mxu0 %vm235_vm0, %v13380_v43  ;;  %10543 = vmatpush1.bf16.msra.mxu0 %v10542_v2  ;;  %v10502_v12 = vpack.c.bf16 %v204_v10, %v200_v8  ;;  %v203_v16 = vld [vmem:[%s20727_s1 + $0x1f0] sm:$0xff]  ;;  %v13588_v18 = vld [vmem:[%s20726_s0 + $0xf8] sm:$0xff]  ;;  %v1331_v4 = vld [vmem:[%s20729_s3 + $0x140] sm:$0xff] }
  0x47   :  { %10493 = vmatpush1.bf16.msra.mxu1 %v10492_v39  ;;  %v10504_v19 = vpack.c.bf16 %v203_v16, %v199_v13  ;;  %v1326_v22 = vld [vmem:[%s20729_s3 + $0x118] sm:$0xff]  ;;  %v13608_v29 = vld [vmem:[%s20726_s0 + $0xf0] sm:$0xff]  ;;  %v1336_v8 = vld [vmem:[%s20729_s3 + $0x168] sm:$0xff] }
  0x48   :  { %10495 = vmatprep.subr.bf16.mxu1 %v10494_v44  ;;  %v10544_v24 = vpack.c.bf16 %v1326_v22, %v1324_v20  ;;  %v208_v25 = vld [vmem:[%s20727_s1 + $0x218] sm:$0xff]  ;;  %v1325_v39 = vld [vmem:[%s20729_s3 + $0x110] sm:$0xff]  ;;  %v1340_v20 = vld [vmem:[%s20729_s3 + $0x188] sm:$0xff] }
  0x49   :  { %506 = vmatmul.mubr.f32.gmra.mrb[16].mxu0 %v13403_v52  ;;  %v212_v27 = vld [vmem:[%s20727_s1 + $0x238] sm:$0xf]  ;;  %v10546_v41 = vpack.c.bf16 %v1325_v39, %v1323_v37  ;;  %v207_v44 = vld [vmem:[%s20727_s1 + $0x210] sm:$0xff]  ;;  %v13708_v22 = vld [vmem:[%s20726_s0 + $0x120] sm:$0xff] }
  0x4a   :  { %9087 = vmatprep.mubr.msk.f32.mxu0 %vm235_vm0, %v13414_v57  ;;  %v10506_v31 = vpack.c.bf16 %v212_v27, %v208_v25  ;;  %10545 = vmatprep.subr.bf16.mxu0 %v10544_v24  ;;  %v211_v45 = vld [vmem:[%s20727_s1 + $0x230] sm:$0xf]  ;;  %v1330_v50 = vld [vmem:[%s20729_s3 + $0x138] sm:$0xff]  ;;  %v1344_v37 = vld [vmem:[%s20729_s3 + $0x1a8] sm:$0xff] }
  0x4b   :  { %10497 = vmatpush1.bf16.msra.mxu1 %v10496_v48  ;;  %v10509_v46 = vpack.c.bf16 %v211_v45, %v207_v44  ;;  %v1328_v48 = vld [vmem:[%s20729_s3 + $0x128] sm:$0xff]  ;;  %v1329_v55 = vld [vmem:[%s20729_s3 + $0x130] sm:$0xff]  ;;  %10547 = vmatpush1.bf16.msra.mxu0 %v10546_v41  ;;  %v13658_v62 = vld [vmem:[%s20726_s0 + $0x118] sm:$0xff] }
  0x4c   :  { %10499 = vmatprep.subr.bf16.mxu1 %v10498_v60  ;;  %v10548_v51 = vpack.c.bf16 %v1330_v50, %v1328_v48  ;;  %v1334_v60 = vld [vmem:[%s20729_s3 + $0x158] sm:$0xff]  ;;  %v10550_v0 = vpack.c.bf16 %v1329_v55, %v1327_v53  ;;  %v13680_v10 = vld [vmem:[%s20726_s0 + $0x110] sm:$0xff]  ;;  %v13742_v41 = vld [vmem:[%s20726_s0 + $0x148] sm:$0xff] }
  0x4d   :  { %512 = vmatmul.mubr.f32.gmra.mrb[18].mxu0 %v13428_v61  ;;  %v10552_v2 = vpack.c.bf16 %v1334_v60, %v1332_v56  ;;  %v1338_v54 = vld [vmem:[%s20729_s3 + $0x178] sm:$0xff]  ;;  %v13736_v39 = vld [vmem:[%s20726_s0 + $0x130] sm:$0xff]  ;;  %v1348_v48 = vld [vmem:[%s20729_s3 + $0x1c8] sm:$0xff] }
  0x4e   :  { %9088 = vmatprep.mubr.msk.f32.mxu0 %vm235_vm0, %v13439_v3  ;;  %10549 = vmatprep.subr.bf16.mxu0 %v10548_v51  ;;  %v10556_v16 = vpack.c.bf16 %v1338_v54, %v1336_v8  ;;  %v13714_v24 = vld [vmem:[%s20726_s0 + $0x138] sm:$0xff]  ;;  %v13764_v50 = vld [vmem:[%s20726_s0 + $0x140] sm:$0xff]  ;;  %v13792_v60 = vld [vmem:[%s20726_s0 + $0x168] sm:$0xff] }
  0x4f   :  { %10501 = vmatpush1.bf16.msra.mxu1 %v10500_v6  ;;  %v1333_v6 = vld [vmem:[%s20729_s3 + $0x150] sm:$0xff]  ;;  %10551 = vmatpush1.bf16.msra.mxu0 %v10550_v0  ;;  %v13770_v51 = vld [vmem:[%s20726_s0 + $0x158] sm:$0xff]  ;;  %v1347_v56 = vld [vmem:[%s20729_s3 + $0x1c0] sm:$0xff] }
  0x50   :  { %10503 = vmatprep.subr.bf16.mxu1 %v10502_v12  ;;  %v13686_v12 = vld [vmem:[%s20726_s0 + $0x128] sm:$0xff]  ;;  %v10554_v13 = vpack.c.bf16 %v1333_v6, %v1331_v4  ;;  %10553 = vmatprep.subr.bf16.mxu0 %v10552_v2  ;;  %v1354_v4 = vld [vmem:[%s20729_s3 + $0x1f8] sm:$0xff]  ;;  %v1351_v6 = vld [vmem:[%s20729_s3 + $0x1e0] sm:$0xff] }
  0x51   :  { %518 = vmatmul.mubr.f32.gmra.mrb[20].mxu0 %v13445_v5  ;;  %v1352_v2 = vld [vmem:[%s20729_s3 + $0x1e8] sm:$0xff]  ;;  %v13814_v8 = vld [vmem:[%s20726_s0 + $0x160] sm:$0xff]  ;;  %v13820_v54 = vld [vmem:[%s20726_s0 + $0x178] sm:$0xff] }
  0x52   :  { %9089 = vmatprep.mubr.msk.f32.mxu0 %vm235_vm0, %v13467_v14 }
  0x53   :  { %10505 = vmatpush1.bf16.msra.mxu1 %v10504_v19  ;;  %v1335_v19 = vld [vmem:[%s20729_s3 + $0x160] sm:$0xff]  ;;  %10555 = vmatpush1.bf16.msra.mxu0 %v10554_v13 }
  0x54   :  { %10508 = vmatprep.subr.msk.bf16.mxu1 %vm13198_vm3, %v10506_v31  ;;  %10557 = vmatprep.subr.bf16.mxu0 %v10556_v16  ;;  %v1339_v31 = vld [vmem:[%s20729_s3 + $0x180] sm:$0xff]  ;;  %v13836_v16 = vld [vmem:[%s20726_s0 + $0x188] sm:$0xff] }
  0x55   :  { %524 = vmatmul.mubr.f32.gmra.mrb[22].mxu0 %v13490_v28 }
  0x56   :  { %9090 = vmatprep.mubr.msk.f32.mxu0 %vm235_vm0, %v13501_v38 }
  0x57   :  { %10511 = vmatpush1.bf16.msk.msra.mxu1 %vm13198_vm3, %v10509_v46  ;;  %v1343_v46 = vld [vmem:[%s20729_s3 + $0x1a0] sm:$0xff] }
  0x59   :  { %530 = vmatmul.mubr.f32.gmra.mrb[24].mxu0 %v13515_v42 }
  0x5a   :  { %9091 = vmatprep.mubr.msk.f32.mxu0 %vm235_vm0, %v13526_v47  ;;  %811 = vmatmul.mubr.f32.vlgmr.msra.gmra.mrb[0].mxu1 %v13227_v63  ;;  %v1337_v63 = vld [vmem:[%s20729_s3 + $0x170] sm:$0xff] }
  0x5b   :  { %9129 = vmatprep.mubr.msk.f32.mxu1 %vm235_vm0, %v13232_v1  ;;  %v1342_v1 = vld [vmem:[%s20729_s3 + $0x198] sm:$0xff]  ;;  %v10558_v25 = vpack.c.bf16 %v1337_v63, %v1335_v19  ;;  %v14054_v63 = vld [vmem:[%s20726_s0 + $0x250] sm:$0xff] }
  0x5c   :  { %v10560_v27 = vpack.c.bf16 %v1342_v1, %v1340_v20  ;;  %v14044_v19 = vld [vmem:[%s20726_s0 + $0x258] sm:$0xff]  ;;  %v14060_v20 = vld [vmem:[%s20726_s0 + $0x268] sm:$0xff]  ;;  %v14070_v1 = vld [vmem:[%s20726_s0 + $0x260] sm:$0xff] }
  0x5d   :  { %536 = vmatmul.mubr.f32.gmra.mrb[26].mxu0 %v13532_v49 }
  0x5e   :  { %9092 = vmatprep.mubr.msk.f32.mxu0 %vm235_vm0, %v13554_v59  ;;  %817 = vmatmul.mubr.f32.gmra.mrb[2].mxu1 %v13252_v7  ;;  %v1341_v7 = vld [vmem:[%s20729_s3 + $0x190] sm:$0xff] }
  0x5f   :  { %9130 = vmatprep.mubr.msk.f32.mxu1 %vm235_vm0, %v13257_v9  ;;  %v1346_v9 = vld [vmem:[%s20729_s3 + $0x1b8] sm:$0xff]  ;;  %10559 = vmatpush1.bf16.msra.mxu0 %v10558_v25  ;;  %v10562_v44 = vpack.c.bf16 %v1341_v7, %v1339_v31  ;;  %v14092_v25 = vld [vmem:[%s20726_s0 + $0x288] sm:$0xff] }
  0x60   :  { %10561 = vmatprep.subr.bf16.mxu0 %v10560_v27  ;;  %v10564_v45 = vpack.c.bf16 %v1346_v9, %v1344_v37  ;;  %v14102_v27 = vld [vmem:[%s20726_s0 + $0x280] sm:$0xff]  ;;  %v14108_v31 = vld [vmem:[%s20726_s0 + $0x298] sm:$0xff]  ;;  %v1356_v7 = vld [vmem:[%s20729_s3 + $0x208] sm:$0xff] }
  0x61   :  { %542 = vmatmul.mubr.f32.gmra.mrb[28].mxu0 %v13577_v11  ;;  %v1358_v37 = vld [vmem:[%s20729_s3 + $0x218] sm:$0xff] }
  0x62   :  { %9093 = vmatprep.mubr.msk.f32.mxu0 %vm235_vm0, %v13588_v18  ;;  %823 = vmatmul.mubr.f32.gmra.mrb[4].mxu1 %v13277_v15  ;;  %v1345_v15 = vld [vmem:[%s20729_s3 + $0x1b0] sm:$0xff]  ;;  %v10576_v9 = vpack.c.bf16 %v1358_v37, %v1356_v7 }
  0x63   :  { %9131 = vmatprep.mubr.msk.f32.mxu1 %vm235_vm0, %v13282_v17  ;;  %v1350_v17 = vld [vmem:[%s20729_s3 + $0x1d8] sm:$0xff]  ;;  %10563 = vmatpush1.bf16.msra.mxu0 %v10562_v44  ;;  %v10566_v53 = vpack.c.bf16 %v1345_v15, %v1343_v46  ;;  %v14140_v44 = vld [vmem:[%s20726_s0 + $0x2a0] sm:$0xff]  ;;  %v14156_v46 = vld [vmem:[%s20726_s0 + $0x2b0] sm:$0xff] }
  0x64   :  { %10565 = vmatprep.subr.bf16.mxu0 %v10564_v45  ;;  %v10568_v55 = vpack.c.bf16 %v1350_v17, %v1348_v48  ;;  %v14145_v45 = vld [vmem:[%s20726_s0 + $0x2b8] sm:$0xff]  ;;  %v14161_v15 = vld [vmem:[%s20726_s0 + $0x2c8] sm:$0xff]  ;;  %v14172_v48 = vld [vmem:[%s20726_s0 + $0x2c0] sm:$0xff] }
  0x65   :  { %548 = vmatmul.mubr.f32.gmra.mrb[30].mxu0 %v13608_v29  ;;  %v14177_v17 = vld [vmem:[%s20726_s0 + $0x2d8] sm:$0xff] }
  0x66   :  { %9094 = vmatprep.mubr.msk.f32.mxu0 %vm235_vm0, %v13619_v40  ;;  %829 = vmatmul.mubr.f32.gmra.mrb[6].mxu1 %v13296_v21  ;;  %v1349_v21 = vld [vmem:[%s20729_s3 + $0x1d0] sm:$0xff] }
  0x67   :  { %9132 = vmatprep.mubr.msk.f32.mxu1 %vm235_vm0, %v13301_v23  ;;  %v13786_v23 = vld [vmem:[%s20726_s0 + $0x150] sm:$0xff]  ;;  %10567 = vmatpush1.bf16.msra.mxu0 %v10566_v53  ;;  %v10570_v0 = vpack.c.bf16 %v1349_v21, %v1347_v56  ;;  %v14204_v53 = vld [vmem:[%s20726_s0 + $0x2e0] sm:$0xff]  ;;  %v215_v21 = vlaneseq }
  0x68   :  { %10569 = vmatprep.subr.bf16.mxu0 %v10568_v55  ;;  %v14209_v55 = vld [vmem:[%s20726_s0 + $0x2f8] sm:$0xff]  ;;  %v14220_v56 = vld [vmem:[%s20726_s0 + $0x2f0] sm:$0xff] }
  0x69   :  { %554 = vmatmul.mubr.f32.gmra.mrb[32].mxu0 %v13650_v58 }
  0x6a   :  { %9095 = vmatprep.mubr.msk.f32.mxu0 %vm235_vm0, %v13658_v62  ;;  %835 = vmatmul.mubr.f32.gmra.mrb[8].mxu1 %v13315_v26  ;;  %v10572_v26 = vpack.c.bf16 %v1354_v4, %v1352_v2 }
  0x6b   :  { %9133 = vmatprep.mubr.msk.f32.mxu1 %vm235_vm0, %v13326_v30  ;;  %v1353_v30 = vld [vmem:[%s20729_s3 + $0x1f0] sm:$0xff]  ;;  %10571 = vmatpush1.bf16.msra.mxu0 %v10570_v0  ;;  %v213_v0 = vld [vmem:[%s20728_s2] sm:$0xf] }
  0x6c   :  { %v10574_v13 = vpack.c.bf16 %v1353_v30, %v1351_v6  ;;  %10573 = vmatprep.subr.bf16.mxu0 %v10572_v26 }
  0x6d   :  { %560 = vmatmul.mubr.f32.gmra.mrb[34].mxu0 %v13680_v10 }
  0x6e   :  { %9096 = vmatprep.mubr.msk.f32.mxu0 %vm235_vm0, %v13686_v12  ;;  %841 = vmatmul.mubr.f32.gmra.mrb[10].mxu1 %v13334_v32  ;;  %v13830_v32 = vld [vmem:[%s20726_s0 + $0x170] sm:$0xff] }
  0x6f   :  { %9134 = vmatprep.mubr.msk.f32.mxu1 %vm235_vm0, %v13339_v33  ;;  %10575 = vmatpush1.bf16.msra.mxu0 %v10574_v13  ;;  %v13846_v33 = vld [vmem:[%s20726_s0 + $0x180] sm:$0xff]  ;;  %v1357_v13 = vld [vmem:[%s20729_s3 + $0x210] sm:$0xff] }
  0x70   :  { %10577 = vmatprep.subr.bf16.mxu0 %v10576_v9  ;;  %v1367_v9 = vld [vmem:[%s20729_s3 + $0x260] sm:$0xff] }
  0x71   :  { %566 = vmatmul.mubr.f32.gmra.mrb[36].mxu0 %v13708_v22 }
  0x72   :  { %9097 = vmatprep.mubr.msk.f32.mxu0 %vm235_vm0, %v13714_v24  ;;  %847 = vmatmul.mubr.f32.gmra.mrb[12].mxu1 %v13347_v34  ;;  %v13852_v34 = vld [vmem:[%s20726_s0 + $0x198] sm:$0xff] }
  0x73   :  { %9135 = vmatprep.mubr.msk.f32.mxu1 %vm235_vm0, %v13352_v35  ;;  %v13862_v35 = vld [vmem:[%s20726_s0 + $0x190] sm:$0xff] }
  0x75   :  { %572 = vmatmul.mubr.f32.gmra.mrb[38].mxu0 %v13736_v39 }
  0x76   :  { %9098 = vmatprep.mubr.msk.f32.mxu0 %vm235_vm0, %v13742_v41  ;;  %853 = vmatmul.mubr.f32.gmra.mrb[14].mxu1 %v13358_v36  ;;  %v13868_v36 = vld [vmem:[%s20726_s0 + $0x1a8] sm:$0xff] }
  0x77   :  { %9136 = vmatprep.mubr.msk.f32.mxu1 %vm235_vm0, %v13380_v43  ;;  %v13878_v43 = vld [vmem:[%s20726_s0 + $0x1a0] sm:$0xff] }
  0x79   :  { %578 = vmatmul.mubr.f32.gmra.mrb[40].mxu0 %v13764_v50 }
  0x7a   :  { %9099 = vmatprep.mubr.msk.f32.mxu0 %vm235_vm0, %v13770_v51  ;;  %859 = vmatmul.mubr.f32.gmra.mrb[16].mxu1 %v13403_v52  ;;  %v13884_v52 = vld [vmem:[%s20726_s0 + $0x1b8] sm:$0xff] }
  0x7b   :  { %9137 = vmatprep.mubr.msk.f32.mxu1 %vm235_vm0, %v13414_v57  ;;  %v13894_v57 = vld [vmem:[%s20726_s0 + $0x1b0] sm:$0xff] }
  0x7d   :  { %584 = vmatmul.mubr.f32.gmra.mrb[42].mxu0 %v13786_v23 }
  0x7e   :  { %9100 = vmatprep.mubr.msk.f32.mxu0 %vm235_vm0, %v13792_v60  ;;  %865 = vmatmul.mubr.f32.gmra.mrb[18].mxu1 %v13428_v61  ;;  %v13900_v61 = vld [vmem:[%s20726_s0 + $0x1c8] sm:$0xff] }
  0x7f   :  { %9138 = vmatprep.mubr.msk.f32.mxu1 %vm235_vm0, %v13439_v3  ;;  %v13910_v3 = vld [vmem:[%s20726_s0 + $0x1c0] sm:$0xff] }
  0x81   :  { %590 = vmatmul.mubr.f32.gmra.mrb[44].mxu0 %v13814_v8 }
  0x82   :  { %9101 = vmatprep.mubr.msk.f32.mxu0 %vm235_vm0, %v13820_v54  ;;  %871 = vmatmul.mubr.f32.gmra.mrb[20].mxu1 %v13445_v5  ;;  %v13916_v5 = vld [vmem:[%s20726_s0 + $0x1d8] sm:$0xff] }
  0x83   :  { %9139 = vmatprep.mubr.msk.f32.mxu1 %vm235_vm0, %v13467_v14  ;;  %v13926_v14 = vld [vmem:[%s20726_s0 + $0x1d0] sm:$0xff] }
  0x85   :  { %596 = vmatmul.mubr.f32.gmra.mrb[46].mxu0 %v13830_v32 }
  0x86   :  { %9102 = vmatprep.mubr.msk.f32.mxu0 %vm235_vm0, %v13836_v16  ;;  %877 = vmatmul.mubr.f32.gmra.mrb[22].mxu1 %v13490_v28  ;;  %v13932_v28 = vld [vmem:[%s20726_s0 + $0x1e8] sm:$0xff] }
  0x87   :  { %9140 = vmatprep.mubr.msk.f32.mxu1 %vm235_vm0, %v13501_v38  ;;  %v13942_v38 = vld [vmem:[%s20726_s0 + $0x1e0] sm:$0xff] }
  0x89   :  { %602 = vmatmul.mubr.f32.gmra.mrb[48].mxu0 %v13846_v33 }
  0x8a   :  { %9103 = vmatprep.mubr.msk.f32.mxu0 %vm235_vm0, %v13852_v34  ;;  %883 = vmatmul.mubr.f32.gmra.mrb[24].mxu1 %v13515_v42  ;;  %v13948_v42 = vld [vmem:[%s20726_s0 + $0x1f8] sm:$0xff] }
  0x8b   :  { %9141 = vmatprep.mubr.msk.f32.mxu1 %vm235_vm0, %v13526_v47  ;;  %v13958_v47 = vld [vmem:[%s20726_s0 + $0x1f0] sm:$0xff] }
  0x8d   :  { %608 = vmatmul.mubr.f32.gmra.mrb[50].mxu0 %v13862_v35 }
  0x8e   :  { %9104 = vmatprep.mubr.msk.f32.mxu0 %vm235_vm0, %v13868_v36  ;;  %889 = vmatmul.mubr.f32.gmra.mrb[26].mxu1 %v13532_v49  ;;  %v13964_v49 = vld [vmem:[%s20726_s0 + $0x208] sm:$0xff] }
  0x8f   :  { %9142 = vmatprep.mubr.msk.f32.mxu1 %vm235_vm0, %v13554_v59  ;;  %v13974_v59 = vld [vmem:[%s20726_s0 + $0x200] sm:$0xff] }
  0x91   :  { %614 = vmatmul.mubr.f32.gmra.mrb[52].mxu0 %v13878_v43 }
  0x92   :  { %9105 = vmatprep.mubr.msk.f32.mxu0 %vm235_vm0, %v13884_v52  ;;  %895 = vmatmul.mubr.f32.gmra.mrb[28].mxu1 %v13577_v11  ;;  %v13980_v11 = vld [vmem:[%s20726_s0 + $0x218] sm:$0xff] }
  0x93   :  { %9143 = vmatprep.mubr.msk.f32.mxu1 %vm235_vm0, %v13588_v18  ;;  %v13990_v18 = vld [vmem:[%s20726_s0 + $0x210] sm:$0xff] }
  0x95   :  { %620 = vmatmul.mubr.f32.gmra.mrb[54].mxu0 %v13894_v57 }
  0x96   :  { %9106 = vmatprep.mubr.msk.f32.mxu0 %vm235_vm0, %v13900_v61  ;;  %901 = vmatmul.mubr.f32.gmra.mrb[30].mxu1 %v13608_v29  ;;  %v13996_v29 = vld [vmem:[%s20726_s0 + $0x228] sm:$0xff] }
  0x97   :  { %9144 = vmatprep.mubr.msk.f32.mxu1 %vm235_vm0, %v13619_v40  ;;  %v14006_v40 = vld [vmem:[%s20726_s0 + $0x220] sm:$0xff] }
  0x99   :  { %626 = vmatmul.mubr.f32.gmra.mrb[56].mxu0 %v13910_v3 }
  0x9a   :  { %9107 = vmatprep.mubr.msk.f32.mxu0 %vm235_vm0, %v13916_v5  ;;  %907 = vmatmul.mubr.f32.gmra.mrb[32].mxu1 %v13650_v58  ;;  %v14012_v58 = vld [vmem:[%s20726_s0 + $0x238] sm:$0xff] }
  0x9b   :  { %9145 = vmatprep.mubr.msk.f32.mxu1 %vm235_vm0, %v13658_v62  ;;  %v14022_v62 = vld [vmem:[%s20726_s0 + $0x230] sm:$0xff] }
  0x9d   :  { %632 = vmatmul.mubr.f32.gmra.mrb[58].mxu0 %v13926_v14 }
  0x9e   :  { %9108 = vmatprep.mubr.msk.f32.mxu0 %vm235_vm0, %v13932_v28  ;;  %913 = vmatmul.mubr.f32.gmra.mrb[34].mxu1 %v13680_v10  ;;  %v14028_v10 = vld [vmem:[%s20726_s0 + $0x248] sm:$0xff] }
  0x9f   :  { %9146 = vmatprep.mubr.msk.f32.mxu1 %vm235_vm0, %v13686_v12  ;;  %v14038_v12 = vld [vmem:[%s20726_s0 + $0x240] sm:$0xff] }
  0xa1   :  { %638 = vmatmul.mubr.f32.gmra.mrb[60].mxu0 %v13942_v38 }
  0xa2   :  { %9109 = vmatprep.mubr.msk.f32.mxu0 %vm235_vm0, %v13948_v42  ;;  %919 = vmatmul.mubr.f32.gmra.mrb[36].mxu1 %v13708_v22  ;;  %v14076_v22 = vld [vmem:[%s20726_s0 + $0x278] sm:$0xff] }
  0xa3   :  { %9147 = vmatprep.mubr.msk.f32.mxu1 %vm235_vm0, %v13714_v24  ;;  %v14086_v24 = vld [vmem:[%s20726_s0 + $0x270] sm:$0xff] }
  0xa5   :  { %644 = vmatmul.mubr.f32.gmra.mrb[62].mxu0 %v13958_v47 }
  0xa6   :  { %9110 = vmatprep.mubr.msk.f32.mxu0 %vm235_vm0, %v13964_v49  ;;  %925 = vmatmul.mubr.f32.gmra.mrb[38].mxu1 %v13736_v39  ;;  %v14124_v39 = vld [vmem:[%s20726_s0 + $0x290] sm:$0xff] }
  0xa7   :  { %9148 = vmatprep.mubr.msk.f32.mxu1 %vm235_vm0, %v13742_v41  ;;  %v14129_v41 = vld [vmem:[%s20726_s0 + $0x2a8] sm:$0xff] }
  0xa9   :  { %650 = vmatmul.mubr.f32.gmra.mrb[64].mxu0 %v13974_v59 }
  0xaa   :  { %9111 = vmatprep.mubr.msk.f32.mxu0 %vm235_vm0, %v13980_v11  ;;  %931 = vmatmul.mubr.f32.gmra.mrb[40].mxu1 %v13764_v50  ;;  %v14188_v50 = vld [vmem:[%s20726_s0 + $0x2d0] sm:$0xff] }
  0xab   :  { %9149 = vmatprep.mubr.msk.f32.mxu1 %vm235_vm0, %v13770_v51  ;;  %v14193_v51 = vld [vmem:[%s20726_s0 + $0x2e8] sm:$0xff] }
  0xad   :  { %656 = vmatmul.mubr.f32.gmra.mrb[66].mxu0 %v13990_v18 }
  0xae   :  { %9112 = vmatprep.mubr.msk.f32.mxu0 %vm235_vm0, %v13996_v29  ;;  %937 = vmatmul.mubr.f32.gmra.mrb[42].mxu1 %v13786_v23  ;;  %v14235_v23 = vshrl.u32 %v215_v21, 7 }
  0xaf   :  { %9150 = vmatprep.mubr.msk.f32.mxu1 %vm235_vm0, %v13792_v60 }
  0xb0   :  { %v14241_v60 = vsub.s32 0, %v14235_v23  ;;  %v14247_v2 = vsub.s32 1, %v14235_v23 }
  0xb1   :  { %662 = vmatmul.mubr.f32.gmra.mrb[68].mxu0 %v14006_v40 }
  0xb2   :  { %9113 = vmatprep.mubr.msk.f32.mxu0 %vm235_vm0, %v14012_v58  ;;  %943 = vmatmul.mubr.f32.gmra.mrb[44].mxu1 %v13814_v8  ;;  %20797 = vst [vmem:[#allocation5_spill] sm:$0xff] %v14241_v60  ;;  %20798 = vst [vmem:[#allocation6_spill] sm:$0xff] %v14247_v2  ;;  %v14253_v4 = vrot.slane %v213_v0, %v14241_v60  ;;  %v14256_v26 = vrot.slane %v213_v0, %v14247_v2  ;;  %v1374_v0 = vld [vmem:[%s20729_s3 + $0x298] sm:$0xff] }
  0xb3   :  { %9151 = vmatprep.mubr.msk.f32.mxu1 %vm235_vm0, %v13820_v54  ;;  %v1355_v54 = vld [vmem:[%s20729_s3 + $0x200] sm:$0xff] }
  0xb5   :  { %668 = vmatmul.mubr.f32.gmra.mrb[70].mxu0 %v14022_v62 }
  0xb6   :  { %9114 = vmatprep.mubr.msk.f32.mxu0 %vm235_vm0, %v14028_v10  ;;  %949 = vmatmul.mubr.f32.gmra.mrb[46].mxu1 %v13830_v32 }
  0xb7   :  { %9152 = vmatprep.mubr.msk.f32.mxu1 %vm235_vm0, %v13836_v16  ;;  %v1360_v16 = vld [vmem:[%s20729_s3 + $0x228] sm:$0xff] }
  0xb9   :  { %674 = vmatmul.mubr.f32.gmra.mrb[72].mxu0 %v14038_v12 }
  0xba   :  { %9115 = vmatprep.mubr.msk.f32.mxu0 %vm235_vm0, %v14044_v19  ;;  %955 = vmatmul.mubr.f32.gmra.mrb[48].mxu1 %v13846_v33  ;;  %v1362_v33 = vld [vmem:[%s20729_s3 + $0x238] sm:$0xff] }
  0xbb   :  { %9153 = vmatprep.mubr.msk.f32.mxu1 %vm235_vm0, %v13852_v34 }
  0xbd   :  { %680 = vmatmul.mubr.f32.gmra.mrb[74].mxu0 %v14054_v63 }
  0xbe   :  { %9116 = vmatprep.mubr.msk.f32.mxu0 %vm235_vm0, %v14060_v20  ;;  %961 = vmatmul.mubr.f32.gmra.mrb[50].mxu1 %v13862_v35 }
  0xbf   :  { %9154 = vmatprep.mubr.msk.f32.mxu1 %vm235_vm0, %v13868_v36  ;;  %v10578_v36 = vpack.c.bf16 %v1357_v13, %v1355_v54 }
  0xc1   :  { %686 = vmatmul.mubr.f32.gmra.mrb[76].mxu0 %v14070_v1 }
  0xc2   :  { %9117 = vmatprep.mubr.msk.f32.mxu0 %vm235_vm0, %v14076_v22  ;;  %967 = vmatmul.mubr.f32.gmra.mrb[52].mxu1 %v13878_v43 }
  0xc3   :  { %9155 = vmatprep.mubr.msk.f32.mxu1 %vm235_vm0, %v13884_v52 }
  0xc5   :  { %692 = vmatmul.mubr.f32.gmra.mrb[78].mxu0 %v14086_v24 }
  0xc6   :  { %9118 = vmatprep.mubr.msk.f32.mxu0 %vm235_vm0, %v14092_v25  ;;  %973 = vmatmul.mubr.f32.gmra.mrb[54].mxu1 %v13894_v57 }
  0xc7   :  { %9156 = vmatprep.mubr.msk.f32.mxu1 %vm235_vm0, %v13900_v61  ;;  %v10580_v61 = vpack.c.bf16 %v1362_v33, %v1360_v16  ;;  %v1371_v33 = vld [vmem:[%s20729_s3 + $0x280] sm:$0xff] }
  0xc9   :  { %698 = vmatmul.mubr.f32.gmra.mrb[80].mxu0 %v14102_v27 }
  0xca   :  { %9119 = vmatprep.mubr.msk.f32.mxu0 %vm235_vm0, %v14108_v31  ;;  %979 = vmatmul.mubr.f32.gmra.mrb[56].mxu1 %v13910_v3  ;;  %v1359_v3 = vld [vmem:[%s20729_s3 + $0x220] sm:$0xff] }
  0xcb   :  { %9157 = vmatprep.mubr.msk.f32.mxu1 %vm235_vm0, %v13916_v5  ;;  %v1361_v5 = vld [vmem:[%s20729_s3 + $0x230] sm:$0xff] }
  0xcd   :  { %704 = vmatmul.mubr.f32.gmra.mrb[82].mxu0 %v14124_v39 }
  0xce   :  { %9120 = vmatprep.mubr.msk.f32.mxu0 %vm235_vm0, %v14129_v41  ;;  %985 = vmatmul.mubr.f32.gmra.mrb[58].mxu1 %v13926_v14 }
  0xcf   :  { %9158 = vmatprep.mubr.msk.f32.mxu1 %vm235_vm0, %v13932_v28  ;;  %v1364_v28 = vld [vmem:[%s20729_s3 + $0x248] sm:$0xff] }
  0xd1   :  { %710 = vmatmul.mubr.f32.gmra.mrb[84].mxu0 %v14140_v44 }
  0xd2   :  { %9121 = vmatprep.mubr.msk.f32.mxu0 %vm235_vm0, %v14145_v45  ;;  %991 = vmatmul.mubr.f32.gmra.mrb[60].mxu1 %v13942_v38  ;;  %v1366_v38 = vld [vmem:[%s20729_s3 + $0x258] sm:$0xff] }
  0xd3   :  { %9159 = vmatprep.mubr.msk.f32.mxu1 %vm235_vm0, %v13948_v42 }
  0xd5   :  { %716 = vmatmul.mubr.f32.gmra.mrb[86].mxu0 %v14156_v46 }
  0xd6   :  { %9122 = vmatprep.mubr.msk.f32.mxu0 %vm235_vm0, %v14161_v15  ;;  %997 = vmatmul.mubr.f32.gmra.mrb[62].mxu1 %v13958_v47 }
  0xd7   :  { %9160 = vmatprep.mubr.msk.f32.mxu1 %vm235_vm0, %v13964_v49  ;;  %v10582_v49 = vpack.c.bf16 %v1361_v5, %v1359_v3 }
  0xd9   :  { %722 = vmatmul.mubr.f32.gmra.mrb[88].mxu0 %v14172_v48 }
  0xda   :  { %9123 = vmatprep.mubr.msk.f32.mxu0 %vm235_vm0, %v14177_v17  ;;  %1003 = vmatmul.mubr.f32.gmra.mrb[64].mxu1 %v13974_v59 }
  0xdb   :  { %9161 = vmatprep.mubr.msk.f32.mxu1 %vm235_vm0, %v13980_v11 }
  0xdd   :  { %728 = vmatmul.mubr.f32.gmra.mrb[90].mxu0 %v14188_v50 }
  0xde   :  { %9124 = vmatprep.mubr.msk.f32.mxu0 %vm235_vm0, %v14193_v51  ;;  %1009 = vmatmul.mubr.f32.gmra.mrb[66].mxu1 %v13990_v18 }
  0xdf   :  { %9162 = vmatprep.mubr.msk.f32.mxu1 %vm235_vm0, %v13996_v29  ;;  %v10584_v29 = vpack.c.bf16 %v1366_v38, %v1364_v28 }
  0xe1   :  { %734 = vmatmul.mubr.f32.gmra.mrb[92].mxu0 %v14204_v53 }
  0xe2   :  { %9125 = vmatprep.mubr.msk.f32.mxu0 %vm235_vm0, %v14209_v55  ;;  %1015 = vmatmul.mubr.f32.gmra.mrb[68].mxu1 %v14006_v40  ;;  %v1363_v40 = vld [vmem:[%s20729_s3 + $0x240] sm:$0xff] }
  0xe3   :  { %9163 = vmatprep.mubr.msk.f32.mxu1 %vm235_vm0, %v14012_v58  ;;  %v1365_v58 = vld [vmem:[%s20729_s3 + $0x250] sm:$0xff] }
  0xe5   :  { %740 = vmatmul.mubr.f32.gmra.mrb[94].mxu0 %v14220_v56 }
  0xe6   :  { %1021 = vmatmul.mubr.f32.gmra.mrb[70].mxu1 %v14022_v62 }
  0xe7   :  { %9164 = vmatprep.mubr.msk.f32.mxu1 %vm235_vm0, %v14028_v10  ;;  %v1368_v10 = vld [vmem:[%s20729_s3 + $0x268] sm:$0xff] }
  0xea   :  { %1027 = vmatmul.mubr.f32.gmra.mrb[72].mxu1 %v14038_v12  ;;  %v1370_v12 = vld [vmem:[%s20729_s3 + $0x278] sm:$0xff] }
  0xeb   :  { %9165 = vmatprep.mubr.msk.f32.mxu1 %vm235_vm0, %v14044_v19  ;;  %v10588_v37 = vpack.c.bf16 %v1370_v12, %v1368_v10  ;;  %v1381_v12 = vld [vmem:[%s20729_s3 + $0x2d0] sm:$0xff] }
  0xee   :  { %1033 = vmatmul.mubr.f32.gmra.mrb[74].mxu1 %v14054_v63 }
  0xef   :  { %9166 = vmatprep.mubr.msk.f32.mxu1 %vm235_vm0, %v14060_v20  ;;  %v10586_v20 = vpack.c.bf16 %v1365_v58, %v1363_v40 }
  0xf2   :  { %1039 = vmatmul.mubr.f32.gmra.mrb[76].mxu1 %v14070_v1 }
  0xf3   :  { %9167 = vmatprep.mubr.msk.f32.mxu1 %vm235_vm0, %v14076_v22 }
  0xf6   :  { %1045 = vmatmul.mubr.f32.gmra.mrb[78].mxu1 %v14086_v24  ;;  %v1369_v24 = vld [vmem:[%s20729_s3 + $0x270] sm:$0xff] }
  0xf7   :  { %9168 = vmatprep.mubr.msk.f32.mxu1 %vm235_vm0, %v14092_v25  ;;  %v1372_v25 = vld [vmem:[%s20729_s3 + $0x288] sm:$0xff] }
  0xf8   :  { %v10592_v16 = vpack.c.bf16 %v1374_v0, %v1372_v25 }
  0xfa   :  { %1051 = vmatmul.mubr.f32.gmra.mrb[80].mxu1 %v14102_v27  ;;  %v1373_v27 = vld [vmem:[%s20729_s3 + $0x290] sm:$0xff] }
  0xfb   :  { %9169 = vmatprep.mubr.msk.f32.mxu1 %vm235_vm0, %v14108_v31  ;;  %v1376_v31 = vld [vmem:[%s20729_s3 + $0x2a8] sm:$0xff] }
  0xfc   :  { %v459_v6 = vpop.f32.mrb[0].mxu0 }
  0xfd   :  { %v460_v30 = vadd.f32 %v459_v6, %v14253_v4  ;;  %v461_v8 = vpop.f32.mrb[1].mxu0 }
  0xfe   :  { %v462_v32 = vadd.f32 %v461_v8, %v14256_v26  ;;  %v10590_v8 = vpack.c.bf16 %v1369_v24, %v1367_v9  ;;  %1057 = vmatmul.mubr.f32.gmra.mrb[82].mxu1 %v14124_v39  ;;  %v1377_v39 = vld [vmem:[%s20729_s3 + $0x2b0] sm:$0xff] }
  0xff   :  { %v1099_v43 = vmax.f32 %v460_v30, 0.0  ;;  %9170 = vmatprep.mubr.msk.f32.mxu1 %vm235_vm0, %v14129_v41 }
 0x100   :  { %v465_v34 = vpop.f32.mrb[2].mxu0  ;;  %v1100_v35 = vmax.f32 %v462_v32, 0.0 }
 0x101   :  { %v467_v52 = vpop.f32.mrb[3].mxu0  ;;  %v466_v57 = vadd.f32 %v465_v34, %v14253_v4 }
 0x102   :  { %1620 = vmatprep.mubr.f32.mxu0 %v1100_v35  ;;  %v468_v14 = vadd.f32 %v467_v52, %v14256_v26  ;;  %v1378_v35 = vld [vmem:[%s20729_s3 + $0x2b8] sm:$0xff]  ;;  %v10594_v52 = vpack.c.bf16 %v1373_v27, %v1371_v33  ;;  %1063 = vmatmul.mubr.f32.gmra.mrb[84].mxu1 %v14140_v44 }
 0x103   :  { %1621 = vmatmul.mubr.f32.vlgmr.msra.gmra.mrb[96].mxu0 %v1099_v43  ;;  %v1103_v11 = vmax.f32 %v466_v57, 0.0  ;;  %v10596_v5 = vpack.c.bf16 %v1378_v35, %v1376_v31  ;;  %9171 = vmatprep.mubr.msk.f32.mxu1 %vm235_vm0, %v14145_v45  ;;  %v1390_v31 = vld [vmem:[%s20729_s3 + $0x318] sm:$0xff] }
 0x104   :  { %v471_v42 = vpop.f32.mrb[4].mxu0  ;;  %v1104_v47 = vmax.f32 %v468_v14, 0.0  ;;  %10579 = vmatpush1.bf16.msra.mxu0 %v10578_v36  ;;  %v1375_v14 = vld [vmem:[%s20729_s3 + $0x2a0] sm:$0xff] }
 0x105   :  { %v473_v59 = vpop.f32.mrb[5].mxu0  ;;  %v472_v18 = vadd.f32 %v471_v42, %v14253_v4  ;;  %10581 = vmatprep.subr.bf16.mxu0 %v10580_v61  ;;  %v10598_v42 = vpack.c.bf16 %v1377_v39, %v1375_v14  ;;  %v1392_v39 = vld [vmem:[%s20729_s3 + $0x328] sm:$0xff] }
 0x106   :  { %1626 = vmatprep.mubr.f32.mxu0 %v1104_v47  ;;  %v474_v62 = vadd.f32 %v473_v59, %v14256_v26  ;;  %1069 = vmatmul.mubr.f32.gmra.mrb[86].mxu1 %v14156_v46  ;;  %v1382_v46 = vld [vmem:[%s20729_s3 + $0x2d8] sm:$0xff] }
 0x107   :  { %1627 = vmatmul.mubr.f32.gmra.mrb[98].mxu0 %v1103_v11  ;;  %v1107_v22 = vmax.f32 %v472_v18, 0.0  ;;  %9172 = vmatprep.mubr.msk.f32.mxu1 %vm235_vm0, %v14161_v15  ;;  %v1379_v15 = vld [vmem:[%s20729_s3 + $0x2c0] sm:$0xff] }
 0x108   :  { %v477_v19 = vpop.f32.mrb[6].mxu0  ;;  %v1108_v63 = vmax.f32 %v474_v62, 0.0  ;;  %10583 = vmatpush1.bf16.msra.mxu0 %v10582_v49  ;;  %v1380_v62 = vld [vmem:[%s20729_s3 + $0x2c8] sm:$0xff] }
 0x109   :  { %v479_v1 = vpop.f32.mrb[7].mxu0  ;;  %v478_v7 = vadd.f32 %v477_v19, %v14253_v4  ;;  %10585 = vmatprep.subr.bf16.mxu0 %v10584_v29  ;;  %v10600_v10 = vpack.c.bf16 %v1382_v46, %v1380_v62 }
 0x10a   :  { %1632 = vmatprep.mubr.f32.mxu0 %v1108_v63  ;;  %v480_v21 = vadd.f32 %v479_v1, %v14256_v26  ;;  %1075 = vmatmul.mubr.f32.gmra.mrb[88].mxu1 %v14172_v48 }
 0x10b   :  { %1633 = vmatmul.mubr.f32.gmra.mrb[100].mxu0 %v1107_v22  ;;  %v1111_v13 = vmax.f32 %v478_v7, 0.0  ;;  %9173 = vmatprep.mubr.msk.f32.mxu1 %vm235_vm0, %v14177_v17 }
 0x10c   :  { %v483_v6 = vpop.f32.mrb[8].mxu0  ;;  %v1112_v30 = vmax.f32 %v480_v21, 0.0  ;;  %10587 = vmatpush1.bf16.msra.mxu0 %v10586_v20  ;;  %v10602_v20 = vpack.c.bf16 %v1381_v12, %v1379_v15  ;;  %v1395_v15 = vld [vmem:[%s20729_s3 + $0x340] sm:$0xff]  ;;  %v1397_v12 = vld [vmem:[%s20729_s3 + $0x350] sm:$0xff] }
 0x10d   :  { %v485_v54 = vpop.f32.mrb[9].mxu0  ;;  %v484_v32 = vadd.f32 %v483_v6, %v14253_v4  ;;  %10589 = vmatprep.subr.bf16.mxu0 %v10588_v37 }
 0x10e   :  { %1638 = vmatprep.mubr.f32.mxu0 %v1112_v30  ;;  %v486_v34 = vadd.f32 %v485_v54, %v14256_v26  ;;  %1081 = vmatmul.mubr.f32.gmra.mrb[90].mxu1 %v14188_v50  ;;  %v1384_v50 = vld [vmem:[%s20729_s3 + $0x2e8] sm:$0xff] }
 0x10f   :  { %1639 = vmatmul.mubr.f32.gmra.mrb[102].mxu0 %v1111_v13  ;;  %v1115_v61 = vmax.f32 %v484_v32, 0.0  ;;  %9174 = vmatprep.mubr.msk.f32.mxu1 %vm235_vm0, %v14193_v51  ;;  %v1386_v51 = vld [vmem:[%s20729_s3 + $0x2f8] sm:$0xff] }
 0x110   :  { %v489_v36 = vpop.f32.mrb[10].mxu0  ;;  %v1116_v43 = vmax.f32 %v486_v34, 0.0  ;;  %10591 = vmatpush1.bf16.msra.mxu0 %v10590_v8  ;;  %v10604_v13 = vpack.c.bf16 %v1386_v51, %v1384_v50  ;;  %v1388_v34 = vld [vmem:[%s20729_s3 + $0x308] sm:$0xff] }
 0x111   :  { %v491_v57 = vpop.f32.mrb[11].mxu0  ;;  %v490_v3 = vadd.f32 %v489_v36, %v14253_v4  ;;  %10593 = vmatprep.subr.bf16.mxu0 %v10592_v16  ;;  %v1404_v51 = vld [vmem:[%s20729_s3 + $0x388] sm:$0xff] }
 0x112   :  { %1644 = vmatprep.mubr.f32.mxu0 %v1116_v43  ;;  %v492_v28 = vadd.f32 %v491_v57, %v14256_v26  ;;  %1087 = vmatmul.mubr.f32.gmra.mrb[92].mxu1 %v14204_v53  ;;  %v1383_v53 = vld [vmem:[%s20729_s3 + $0x2e0] sm:$0xff]  ;;  %v1389_v57 = vld [vmem:[%s20729_s3 + $0x310] sm:$0xff] }
 0x113   :  { %1645 = vmatmul.mubr.f32.gmra.mrb[104].mxu0 %v1115_v61  ;;  %v1119_v49 = vmax.f32 %v490_v3, 0.0  ;;  %9175 = vmatprep.mubr.msk.f32.mxu1 %vm235_vm0, %v14209_v55  ;;  %v1385_v55 = vld [vmem:[%s20729_s3 + $0x2f0] sm:$0xff] }
 0x114   :  { %v495_v41 = vpop.f32.mrb[12].mxu0  ;;  %v1120_v38 = vmax.f32 %v492_v28, 0.0  ;;  %10595 = vmatpush1.bf16.msra.mxu0 %v10594_v52  ;;  %v10606_v16 = vpack.c.bf16 %v1385_v55, %v1383_v53  ;;  %v10608_v52 = vpack.c.bf16 %v1390_v31, %v1388_v34  ;;  %v1394_v28 = vld [vmem:[%s20729_s3 + $0x338] sm:$0xff]  ;;  %v1403_v55 = vld [vmem:[%s20729_s3 + $0x380] sm:$0xff]  ;;  %v1408_v31 = vld [vmem:[%s20729_s3 + $0x3a8] sm:$0xff] }
 0x115   :  { %v497_v47 = vpop.f32.mrb[13].mxu0  ;;  %v496_v59 = vadd.f32 %v495_v41, %v14253_v4  ;;  %10597 = vmatprep.subr.bf16.mxu0 %v10596_v5 }
 0x116   :  { %1650 = vmatprep.mubr.f32.mxu0 %v1120_v38  ;;  %v498_v11 = vadd.f32 %v497_v47, %v14256_v26  ;;  %1093 = vmatmul.mubr.f32.gmra.mrb[94].mxu1 %v14220_v56  ;;  %v1387_v56 = vld [vmem:[%s20729_s3 + $0x300] sm:$0xff]  ;;  %v10612_v47 = vpack.c.bf16 %v1394_v28, %v1392_v39 }
 0x117   :  { %1651 = vmatmul.mubr.f32.gmra.mrb[106].mxu0 %v1119_v49  ;;  %v1123_v40 = vmax.f32 %v496_v59, 0.0  ;;  %v10610_v3 = vpack.c.bf16 %v1389_v57, %v1387_v56  ;;  %v1391_v49 = vld [vmem:[%s20729_s3 + $0x320] sm:$0xff]  ;;  %v1393_v59 = vld [vmem:[%s20729_s3 + $0x330] sm:$0xff] }
 0x118   :  { %v501_v18 = vpop.f32.mrb[14].mxu0  ;;  %v1124_v44 = vmax.f32 %v498_v11, 0.0  ;;  %10599 = vmatpush1.bf16.msra.mxu0 %v10598_v42 }
 0x119   :  { %v503_v29 = vpop.f32.mrb[15].mxu0  ;;  %v502_v45 = vadd.f32 %v501_v18, %v14253_v4  ;;  %10601 = vmatprep.subr.bf16.mxu0 %v10600_v10  ;;  %v10614_v18 = vpack.c.bf16 %v1393_v59, %v1391_v49 }
 0x11a   :  { %1656 = vmatprep.mubr.f32.mxu0 %v1124_v44  ;;  %v504_v58 = vadd.f32 %v503_v29, %v14256_v26 }
 0x11b   :  { %1657 = vmatmul.mubr.f32.gmra.mrb[108].mxu0 %v1123_v40  ;;  %v1127_v22 = vmax.f32 %v502_v45, 0.0  ;;  %v1396_v40 = vld [vmem:[%s20729_s3 + $0x348] sm:$0xff]  ;;  %v1398_v45 = vld [vmem:[%s20729_s3 + $0x358] sm:$0xff] }
 0x11c   :  { %v507_v19 = vpop.f32.mrb[16].mxu0  ;;  %v1128_v63 = vmax.f32 %v504_v58, 0.0  ;;  %10603 = vmatpush1.bf16.msra.mxu0 %v10602_v20  ;;  %v10616_v10 = vpack.c.bf16 %v1398_v45, %v1396_v40 }
 0x11d   :  { %v509_v1 = vpop.f32.mrb[17].mxu0  ;;  %v508_v7 = vadd.f32 %v507_v19, %v14253_v4  ;;  %10605 = vmatprep.subr.bf16.mxu0 %v10604_v13 }
 0x11e   :  { %1662 = vmatprep.mubr.f32.mxu0 %v1128_v63  ;;  %v510_v48 = vadd.f32 %v509_v1, %v14256_v26  ;;  %v10618_v63 = vpack.c.bf16 %v1397_v12, %v1395_v15 }
 0x11f   :  { %1663 = vmatmul.mubr.f32.gmra.mrb[110].mxu0 %v1127_v22  ;;  %v1131_v21 = vmax.f32 %v508_v7, 0.0  ;;  %v1400_v22 = vld [vmem:[%s20729_s3 + $0x368] sm:$0xff]  ;;  %v1402_v7 = vld [vmem:[%s20729_s3 + $0x378] sm:$0xff] }
 0x120   :  { %v513_v37 = vpop.f32.mrb[18].mxu0  ;;  %v1132_v9 = vmax.f32 %v510_v48, 0.0  ;;  %10607 = vmatpush1.bf16.msra.mxu0 %v10606_v16 }
 0x121   :  { %v515_v24 = vpop.f32.mrb[19].mxu0  ;;  %v514_v17 = vadd.f32 %v513_v37, %v14253_v4  ;;  %10609 = vmatprep.subr.bf16.mxu0 %v10608_v52 }
 0x122   :  { %1668 = vmatprep.mubr.f32.mxu0 %v1132_v9  ;;  %v516_v25 = vadd.f32 %v515_v24, %v14256_v26  ;;  %v10620_v24 = vpack.c.bf16 %v1402_v7, %v1400_v22 }
 0x123   :  { %1669 = vmatmul.mubr.f32.gmra.mrb[112].mxu0 %v1131_v21  ;;  %v1135_v8 = vmax.f32 %v514_v17, 0.0  ;;  %v1399_v21 = vld [vmem:[%s20729_s3 + $0x360] sm:$0xff]  ;;  %v1401_v17 = vld [vmem:[%s20729_s3 + $0x370] sm:$0xff] }
 0x124   :  { %v519_v0 = vpop.f32.mrb[20].mxu0  ;;  %v1136_v6 = vmax.f32 %v516_v25, 0.0  ;;  %10611 = vmatpush1.bf16.msra.mxu0 %v10610_v3  ;;  %v1409_v3 = vld [vmem:[%s20729_s3 + $0x3b0] sm:$0xff] }
 0x125   :  { %v521_v30 = vpop.f32.mrb[21].mxu0  ;;  %v520_v54 = vadd.f32 %v519_v0, %v14253_v4  ;;  %10613 = vmatprep.subr.bf16.mxu0 %v10612_v47  ;;  %v10622_v0 = vpack.c.bf16 %v1401_v17, %v1399_v21 }
 0x126   :  { %1674 = vmatprep.mubr.f32.mxu0 %v1136_v6  ;;  %v522_v32 = vadd.f32 %v521_v30, %v14256_v26  ;;  %v1406_v30 = vld [vmem:[%s20729_s3 + $0x398] sm:$0xff] }
 0x127   :  { %1675 = vmatmul.mubr.f32.gmra.mrb[114].mxu0 %v1135_v8  ;;  %v1139_v36 = vmax.f32 %v520_v54, 0.0  ;;  %v10624_v53 = vpack.c.bf16 %v1406_v30, %v1404_v51 }
 0x128   :  { %v525_v33 = vpop.f32.mrb[22].mxu0  ;;  %v1140_v27 = vmax.f32 %v522_v32, 0.0  ;;  %10615 = vmatpush1.bf16.msra.mxu0 %v10614_v18  ;;  %v1405_v32 = vld [vmem:[%s20729_s3 + $0x390] sm:$0xff] }
 0x129   :  { %v527_v35 = vpop.f32.mrb[23].mxu0  ;;  %v526_v43 = vadd.f32 %v525_v33, %v14253_v4  ;;  %10617 = vmatprep.subr.bf16.mxu0 %v10616_v10  ;;  %v10626_v33 = vpack.c.bf16 %v1405_v32, %v1403_v55 }
 0x12a   :  { %1680 = vmatprep.mubr.f32.mxu0 %v1140_v27  ;;  %v528_v61 = vadd.f32 %v527_v35, %v14256_v26  ;;  %v1410_v35 = vld [vmem:[%s20729_s3 + $0x3b8] sm:$0xff] }
 0x12b   :  { %1681 = vmatmul.mubr.f32.gmra.mrb[116].mxu0 %v1139_v36  ;;  %v1143_v38 = vmax.f32 %v526_v43, 0.0  ;;  %v10628_v57 = vpack.c.bf16 %v1410_v35, %v1408_v31 }
 0x12c   :  { %v531_v5 = vpop.f32.mrb[24].mxu0  ;;  %v1144_v14 = vmax.f32 %v528_v61, 0.0  ;;  %10619 = vmatpush1.bf16.msra.mxu0 %v10618_v63  ;;  %v1407_v61 = vld [vmem:[%s20729_s3 + $0x3a0] sm:$0xff] }
 0x12d   :  { %v533_v41 = vpop.f32.mrb[25].mxu0  ;;  %v532_v42 = vadd.f32 %v531_v5, %v14253_v4  ;;  %10621 = vmatprep.subr.bf16.mxu0 %v10620_v24  ;;  %v14481_v56 = vpop.f32.mrb[0].mxu1  ;;  %v10630_v39 = vpack.c.bf16 %v1409_v3, %v1407_v61 }
 0x12e   :  { %1686 = vmatprep.mubr.f32.mxu0 %v1144_v14  ;;  %v534_v11 = vadd.f32 %v533_v41, %v14256_v26  ;;  %v14490_v14 = vpop.f32.mrb[1].mxu1 }
 0x12f   :  { %1687 = vmatmul.mubr.f32.gmra.mrb[118].mxu0 %v1143_v38  ;;  %v1147_v62 = vmax.f32 %v532_v42, 0.0 }
 0x130   :  { %v537_v44 = vpop.f32.mrb[26].mxu0  ;;  %v1148_v29 = vmax.f32 %v534_v11, 0.0  ;;  %10623 = vmatpush1.bf16.msra.mxu0 %v10622_v0 }
 0x131   :  { %v539_v58 = vpop.f32.mrb[27].mxu0  ;;  %v538_v46 = vadd.f32 %v537_v44, %v14253_v4  ;;  %10625 = vmatprep.subr.bf16.mxu0 %v10624_v53  ;;  %v14493_v49 = vpop.f32.mrb[2].mxu1 }
 0x132   :  { %1692 = vmatprep.mubr.f32.mxu0 %v1148_v29  ;;  %v540_v19 = vadd.f32 %v539_v58, %v14256_v26  ;;  %v14496_v11 = vpop.f32.mrb[3].mxu1 }
 0x133   :  { %1693 = vmatmul.mubr.f32.gmra.mrb[120].mxu0 %v1147_v62  ;;  %v1151_v37 = vmax.f32 %v538_v46, 0.0 }
 0x134   :  { %v543_v20 = vpop.f32.mrb[28].mxu0  ;;  %v1152_v1 = vmax.f32 %v540_v19, 0.0  ;;  %10627 = vmatpush1.bf16.msra.mxu0 %v10626_v33 }
 0x135   :  { %v545_v48 = vpop.f32.mrb[29].mxu0  ;;  %v544_v9 = vadd.f32 %v543_v20, %v14253_v4  ;;  %10629 = vmatprep.subr.bf16.mxu0 %v10628_v57  ;;  %v14499_v58 = vpop.f32.mrb[4].mxu1 }
 0x136   :  { %1698 = vmatprep.mubr.f32.mxu0 %v1152_v1  ;;  %v546_v25 = vadd.f32 %v545_v48, %v14256_v26  ;;  %v14502_v46 = vpop.f32.mrb[5].mxu1 }
 0x137   :  { %1699 = vmatmul.mubr.f32.gmra.mrb[122].mxu0 %v1151_v37  ;;  %v1155_v54 = vmax.f32 %v544_v9, 0.0 }
 0x138   :  { %v549_v6 = vpop.f32.mrb[30].mxu0  ;;  %v1156_v50 = vmax.f32 %v546_v25, 0.0  ;;  %10631 = vmatpush1.bf16.msra.mxu0 %v10630_v39 }
 0x139   :  { %v551_v8 = vpop.f32.mrb[31].mxu0  ;;  %v550_v13 = vadd.f32 %v549_v6, %v14253_v4  ;;  %v14505_v20 = vpop.f32.mrb[6].mxu1 }
 0x13a   :  { %1704 = vmatprep.mubr.f32.mxu0 %v1156_v50  ;;  %v552_v16 = vadd.f32 %v551_v8, %v14256_v26  ;;  %v14508_v22 = vpop.f32.mrb[7].mxu1 }
 0x13b   :  { %1705 = vmatmul.mubr.f32.gmra.mrb[124].mxu0 %v1155_v54  ;;  %v1159_v43 = vmax.f32 %v550_v13, 0.0 }
 0x13c   :  { %v555_v27 = vpop.f32.mrb[32].mxu0  ;;  %v1160_v34 = vmax.f32 %v552_v16, 0.0 }
 0x13d   :  { %v557_v36 = vpop.f32.mrb[33].mxu0  ;;  %v556_v52 = vadd.f32 %v555_v27, %v14253_v4  ;;  %v14511_v21 = vpop.f32.mrb[8].mxu1 }
 0x13e   :  { %1710 = vmatprep.mubr.f32.mxu0 %v1160_v34  ;;  %v558_v5 = vadd.f32 %v557_v36, %v14256_v26  ;;  %v14514_v25 = vpop.f32.mrb[9].mxu1 }
 0x13f   :  { %1711 = vmatmul.mubr.f32.gmra.mrb[126].mxu0 %v1159_v43  ;;  %v1163_v42 = vmax.f32 %v556_v52, 0.0 }
 0x140   :  { %v561_v28 = vpop.f32.mrb[34].mxu0  ;;  %v1164_v41 = vmax.f32 %v558_v5, 0.0 }
 0x141   :  { %v563_v38 = vpop.f32.mrb[35].mxu0  ;;  %v562_v47 = vadd.f32 %v561_v28, %v14253_v4  ;;  %v14517_v8 = vpop.f32.mrb[10].mxu1 }
 0x142   :  { %1716 = vmatprep.mubr.f32.mxu0 %v1164_v41  ;;  %v564_v59 = vadd.f32 %v563_v38, %v14256_v26  ;;  %v14520_v13 = vpop.f32.mrb[11].mxu1 }
 0x143   :  { %1717 = vmatmul.mubr.f32.gmra.mrb[128].mxu0 %v1163_v42  ;;  %v1167_v40 = vmax.f32 %v562_v47, 0.0 }
 0x144   :  { %v567_v18 = vpop.f32.mrb[36].mxu0  ;;  %v1168_v44 = vmax.f32 %v564_v59, 0.0 }
 0x145   :  { %v569_v29 = vpop.f32.mrb[37].mxu0  ;;  %v568_v45 = vadd.f32 %v567_v18, %v14253_v4  ;;  %v14523_v27 = vpop.f32.mrb[12].mxu1 }
 0x146   :  { %1722 = vmatprep.mubr.f32.mxu0 %v1168_v44  ;;  %v570_v62 = vadd.f32 %v569_v29, %v14256_v26  ;;  %v14526_v31 = vpop.f32.mrb[13].mxu1 }
 0x147   :  { %1723 = vmatmul.mubr.f32.gmra.mrb[130].mxu0 %v1167_v40  ;;  %v1171_v19 = vmax.f32 %v568_v45, 0.0 }
 0x148   :  { %v573_v10 = vpop.f32.mrb[38].mxu0  ;;  %v1172_v15 = vmax.f32 %v570_v62, 0.0 }
 0x149   :  { %v575_v12 = vpop.f32.mrb[39].mxu0  ;;  %v574_v63 = vadd.f32 %v573_v10, %v14253_v4  ;;  %v14529_v61 = vpop.f32.mrb[14].mxu1 }
 0x14a   :  { %1728 = vmatprep.mubr.f32.mxu0 %v1172_v15  ;;  %v576_v1 = vadd.f32 %v575_v12, %v14256_v26  ;;  %v14532_v5 = vpop.f32.mrb[15].mxu1 }
 0x14b   :  { %1729 = vmatmul.mubr.f32.gmra.mrb[132].mxu0 %v1171_v19  ;;  %v1175_v9 = vmax.f32 %v574_v63, 0.0 }
 0x14c   :  { %v579_v7 = vpop.f32.mrb[40].mxu0  ;;  %v1176_v48 = vmax.f32 %v576_v1, 0.0 }
 0x14d   :  { %v581_v37 = vpop.f32.mrb[41].mxu0  ;;  %v580_v24 = vadd.f32 %v579_v7, %v14253_v4  ;;  %v14535_v47 = vpop.f32.mrb[16].mxu1 }
 0x14e   :  { %1734 = vmatprep.mubr.f32.mxu0 %v1176_v48  ;;  %v582_v17 = vadd.f32 %v581_v37, %v14256_v26  ;;  %v14538_v18 = vpop.f32.mrb[17].mxu1 }
 0x14f   :  { %1735 = vmatmul.mubr.f32.gmra.mrb[134].mxu0 %v1175_v9  ;;  %v1179_v51 = vmax.f32 %v580_v24, 0.0 }
 0x150   :  { %v585_v0 = vpop.f32.mrb[42].mxu0  ;;  %v1180_v6 = vmax.f32 %v582_v17, 0.0 }
 0x151   :  { %v587_v50 = vpop.f32.mrb[43].mxu0  ;;  %v586_v30 = vadd.f32 %v585_v0, %v14253_v4  ;;  %v14541_v10 = vpop.f32.mrb[18].mxu1 }
 0x152   :  { %1740 = vmatprep.mubr.f32.mxu0 %v1180_v6  ;;  %v588_v54 = vadd.f32 %v587_v50, %v14256_v26  ;;  %v14544_v12 = vpop.f32.mrb[19].mxu1 }
 0x153   :  { %1741 = vmatmul.mubr.f32.gmra.mrb[136].mxu0 %v1179_v51  ;;  %v1183_v16 = vmax.f32 %v586_v30, 0.0 }
 0x154   :  { %v591_v53 = vpop.f32.mrb[44].mxu0  ;;  %v1184_v55 = vmax.f32 %v588_v54, 0.0 }
 0x155   :  { %v593_v32 = vpop.f32.mrb[45].mxu0  ;;  %v592_v33 = vadd.f32 %v591_v53, %v14253_v4  ;;  %v14547_v37 = vpop.f32.mrb[20].mxu1 }
 0x156   :  { %1746 = vmatprep.mubr.f32.mxu0 %v1184_v55  ;;  %v594_v34 = vadd.f32 %v593_v32, %v14256_v26  ;;  %v14550_v24 = vpop.f32.mrb[21].mxu1 }
 0x157   :  { %1747 = vmatmul.mubr.f32.gmra.mrb[138].mxu0 %v1183_v16  ;;  %v1187_v52 = vmax.f32 %v592_v33, 0.0 }
 0x158   :  { %v597_v35 = vpop.f32.mrb[46].mxu0  ;;  %v1188_v36 = vmax.f32 %v594_v34, 0.0 }
 0x159   :  { %v599_v43 = vpop.f32.mrb[47].mxu0  ;;  %v598_v57 = vadd.f32 %v597_v35, %v14253_v4  ;;  %v14553_v30 = vpop.f32.mrb[22].mxu1 }
 0x15a   :  { %1752 = vmatprep.mubr.f32.mxu0 %v1188_v36  ;;  %v600_v3 = vadd.f32 %v599_v43, %v14256_v26  ;;  %v14556_v53 = vpop.f32.mrb[23].mxu1 }
 0x15b   :  { %1753 = vmatmul.mubr.f32.gmra.mrb[140].mxu0 %v1187_v52  ;;  %v1191_v38 = vmax.f32 %v598_v57, 0.0 }
 0x15c   :  { %v603_v39 = vpop.f32.mrb[48].mxu0  ;;  %v1192_v28 = vmax.f32 %v600_v3, 0.0 }
 0x15d   :  { %v605_v41 = vpop.f32.mrb[49].mxu0  ;;  %v604_v42 = vadd.f32 %v603_v39, %v14253_v4  ;;  %v14559_v35 = vpop.f32.mrb[24].mxu1 }
 0x15e   :  { %1758 = vmatprep.mubr.f32.mxu0 %v1192_v28  ;;  %v606_v59 = vadd.f32 %v605_v41, %v14256_v26  ;;  %v14562_v43 = vpop.f32.mrb[25].mxu1 }
 0x15f   :  { %1759 = vmatmul.mubr.f32.gmra.mrb[142].mxu0 %v1191_v38  ;;  %v1195_v45 = vmax.f32 %v604_v42, 0.0 }
 0x160   :  { %v609_v44 = vpop.f32.mrb[50].mxu0  ;;  %v1196_v29 = vmax.f32 %v606_v59, 0.0 }
 0x161   :  { %v611_v40 = vpop.f32.mrb[51].mxu0  ;;  %v610_v62 = vadd.f32 %v609_v44, %v14253_v4  ;;  %v14565_v41 = vpop.f32.mrb[26].mxu1 }
 0x162   :  { %1764 = vmatprep.mubr.f32.mxu0 %v1196_v29  ;;  %v612_v15 = vadd.f32 %v611_v40, %v14256_v26  ;;  %v14568_v42 = vpop.f32.mrb[27].mxu1 }
 0x163   :  { %1765 = vmatmul.mubr.f32.gmra.mrb[144].mxu0 %v1195_v45  ;;  %v1199_v7 = vmax.f32 %v610_v62, 0.0 }
 0x164   :  { %v615_v19 = vpop.f32.mrb[52].mxu0  ;;  %v1200_v63 = vmax.f32 %v612_v15, 0.0 }
 0x165   :  { %v617_v1 = vpop.f32.mrb[53].mxu0  ;;  %v616_v48 = vadd.f32 %v615_v19, %v14253_v4  ;;  %v14571_v62 = vpop.f32.mrb[28].mxu1 }
 0x166   :  { %1770 = vmatprep.mubr.f32.mxu0 %v1200_v63  ;;  %v618_v9 = vadd.f32 %v617_v1, %v14256_v26  ;;  %v14574_v19 = vpop.f32.mrb[29].mxu1 }
 0x167   :  { %1771 = vmatmul.mubr.f32.gmra.mrb[146].mxu0 %v1199_v7  ;;  %v1203_v50 = vmax.f32 %v616_v48, 0.0 }
 0x168   :  { %v621_v17 = vpop.f32.mrb[54].mxu0  ;;  %v1204_v0 = vmax.f32 %v618_v9, 0.0 }
 0x169   :  { %v623_v6 = vpop.f32.mrb[55].mxu0  ;;  %v622_v51 = vadd.f32 %v621_v17, %v14253_v4  ;;  %v14577_v17 = vpop.f32.mrb[30].mxu1 }
 0x16a   :  { %1776 = vmatprep.mubr.f32.mxu0 %v1204_v0  ;;  %v624_v54 = vadd.f32 %v623_v6, %v14256_v26  ;;  %v14580_v6 = vpop.f32.mrb[31].mxu1 }
 0x16b   :  { %1777 = vmatmul.mubr.f32.gmra.mrb[148].mxu0 %v1203_v50  ;;  %v1207_v33 = vmax.f32 %v622_v51, 0.0 }
 0x16c   :  { %v627_v55 = vpop.f32.mrb[56].mxu0  ;;  %v1208_v32 = vmax.f32 %v624_v54, 0.0 }
 0x16d   :  { %v629_v16 = vpop.f32.mrb[57].mxu0  ;;  %v628_v34 = vadd.f32 %v627_v55, %v14253_v4 }
 0x16e   :  { %1782 = vmatprep.mubr.f32.mxu0 %v1208_v32  ;;  %v630_v36 = vadd.f32 %v629_v16, %v14256_v26  ;;  %v14583_v16 = vpop.f32.mrb[32].mxu1 }
 0x16f   :  { %1783 = vmatmul.mubr.f32.gmra.mrb[150].mxu0 %v1207_v33  ;;  %v1211_v39 = vmax.f32 %v628_v34, 0.0  ;;  %v14586_v34 = vpop.f32.mrb[33].mxu1 }
 0x170   :  { %v633_v52 = vpop.f32.mrb[58].mxu0  ;;  %v1212_v57 = vmax.f32 %v630_v36, 0.0 }
 0x171   :  { %v635_v3 = vpop.f32.mrb[59].mxu0  ;;  %v634_v28 = vadd.f32 %v633_v52, %v14253_v4 }
 0x172   :  { %1788 = vmatprep.mubr.f32.mxu0 %v1212_v57  ;;  %v636_v38 = vadd.f32 %v635_v3, %v14256_v26 }
 0x173   :  { %1789 = vmatmul.mubr.f32.gmra.mrb[152].mxu0 %v1211_v39  ;;  %v1215_v40 = vmax.f32 %v634_v28, 0.0  ;;  %v14589_v28 = vpop.f32.mrb[34].mxu1 }
 0x174   :  { %v639_v59 = vpop.f32.mrb[60].mxu0  ;;  %v1216_v44 = vmax.f32 %v636_v38, 0.0 }
 0x175   :  { %v641_v29 = vpop.f32.mrb[61].mxu0  ;;  %v640_v45 = vadd.f32 %v639_v59, %v14253_v4  ;;  %v14592_v59 = vpop.f32.mrb[35].mxu1 }
 0x176   :  { %1794 = vmatprep.mubr.f32.mxu0 %v1216_v44  ;;  %v642_v15 = vadd.f32 %v641_v29, %v14256_v26 }
 0x177   :  { %1795 = vmatmul.mubr.f32.gmra.mrb[154].mxu0 %v1215_v40  ;;  %v1219_v48 = vmax.f32 %v640_v45, 0.0 }
 0x178   :  { %v645_v63 = vpop.f32.mrb[62].mxu0  ;;  %v1220_v1 = vmax.f32 %v642_v15, 0.0 }
 0x179   :  { %v647_v7 = vpop.f32.mrb[63].mxu0  ;;  %v646_v9 = vadd.f32 %v645_v63, %v14253_v4  ;;  %v14595_v63 = vpop.f32.mrb[36].mxu1 }
 0x17a   :  { %1800 = vmatprep.mubr.f32.mxu0 %v1220_v1  ;;  %v648_v0 = vadd.f32 %v647_v7, %v14256_v26  ;;  %v14598_v7 = vpop.f32.mrb[37].mxu1 }
 0x17b   :  { %1801 = vmatmul.mubr.f32.gmra.mrb[156].mxu0 %v1219_v48  ;;  %v1223_v32 = vmax.f32 %v646_v9, 0.0 }
 0x17c   :  { %v651_v50 = vpop.f32.mrb[64].mxu0  ;;  %v1224_v51 = vmax.f32 %v648_v0, 0.0 }
 0x17d   :  { %v652_v54 = vadd.f32 %v651_v50, %v14253_v4  ;;  %v653_v55 = vpop.f32.mrb[65].mxu0 }
 0x17e   :  { %v654_v33 = vadd.f32 %v653_v55, %v14256_v26  ;;  %1806 = vmatprep.mubr.f32.mxu0 %v1224_v51 }
 0x17f   :  { %1807 = vmatmul.mubr.f32.gmra.mrb[158].mxu0 %v1223_v32  ;;  %v1227_v39 = vmax.f32 %v652_v54, 0.0  ;;  %v14601_v54 = vpop.f32.mrb[38].mxu1 }
 0x180   :  { %v657_v36 = vpop.f32.mrb[66].mxu0  ;;  %v1228_v52 = vmax.f32 %v654_v33, 0.0  ;;  %v14604_v32 = vpop.f32.mrb[39].mxu1 }
 0x181   :  { %v658_v57 = vadd.f32 %v657_v36, %v14253_v4  ;;  %v659_v3 = vpop.f32.mrb[67].mxu0 }
 0x182   :  { %v660_v38 = vadd.f32 %v659_v3, %v14256_v26  ;;  %1812 = vmatprep.mubr.f32.mxu0 %v1228_v52 }
 0x183   :  { %1813 = vmatmul.mubr.f32.gmra.mrb[160].mxu0 %v1227_v39  ;;  %v1231_v45 = vmax.f32 %v658_v57, 0.0  ;;  %v14607_v39 = vpop.f32.mrb[40].mxu1 }
 0x184   :  { %v663_v44 = vpop.f32.mrb[68].mxu0  ;;  %v1232_v29 = vmax.f32 %v660_v38, 0.0 }
 0x185   :  { %v665_v40 = vpop.f32.mrb[69].mxu0  ;;  %v664_v15 = vadd.f32 %v663_v44, %v14253_v4  ;;  %v14610_v44 = vpop.f32.mrb[41].mxu1 }
 0x186   :  { %1818 = vmatprep.mubr.f32.mxu0 %v1232_v29  ;;  %v666_v1 = vadd.f32 %v665_v40, %v14256_v26 }
 0x187   :  { %1819 = vmatmul.mubr.f32.gmra.mrb[162].mxu0 %v1231_v45  ;;  %v1235_v50 = vmax.f32 %v664_v15, 0.0 }
 0x188   :  { %v669_v48 = vpop.f32.mrb[70].mxu0  ;;  %v1236_v9 = vmax.f32 %v666_v1, 0.0 }
 0x189   :  { %v671_v0 = vpop.f32.mrb[71].mxu0  ;;  %v670_v51 = vadd.f32 %v669_v48, %v14253_v4  ;;  %v14613_v48 = vpop.f32.mrb[42].mxu1 }
 0x18a   :  { %1824 = vmatprep.mubr.f32.mxu0 %v1236_v9  ;;  %v672_v55 = vadd.f32 %v671_v0, %v14256_v26  ;;  %v14616_v0 = vpop.f32.mrb[43].mxu1 }
 0x18b   :  { %1825 = vmatmul.mubr.f32.gmra.mrb[164].mxu0 %v1235_v50  ;;  %v1239_v3 = vmax.f32 %v670_v51, 0.0 }
 0x18c   :  { %v675_v33 = vpop.f32.mrb[72].mxu0  ;;  %v1240_v36 = vmax.f32 %v672_v55, 0.0 }
 0x18d   :  { %v676_v52 = vadd.f32 %v675_v33, %v14253_v4  ;;  %v677_v57 = vpop.f32.mrb[73].mxu0 }
 0x18e   :  { %v678_v38 = vadd.f32 %v677_v57, %v14256_v26  ;;  %1830 = vmatprep.mubr.f32.mxu0 %v1240_v36  ;;  %v14619_v57 = vpop.f32.mrb[44].mxu1 }
 0x18f   :  { %1831 = vmatmul.mubr.f32.gmra.mrb[166].mxu0 %v1239_v3  ;;  %v1243_v1 = vmax.f32 %v676_v52, 0.0  ;;  %20799 = vst [vmem:[#allocation7_spill] sm:$0xff] %v14619_v57  ;;  %v14622_v52 = vpop.f32.mrb[45].mxu1 }
 0x190   :  { %v681_v29 = vpop.f32.mrb[74].mxu0  ;;  %v1244_v40 = vmax.f32 %v678_v38, 0.0  ;;  %v14625_v2 = vpop.f32.mrb[46].mxu1 }
 0x191   :  { %v682_v45 = vadd.f32 %v681_v29, %v14253_v4  ;;  %v683_v15 = vpop.f32.mrb[75].mxu0  ;;  %20800 = vst [vmem:[#allocation8_spill] sm:$0xff] %v14625_v2 }
 0x192   :  { %v684_v9 = vadd.f32 %v683_v15, %v14256_v26  ;;  %1836 = vmatprep.mubr.f32.mxu0 %v1244_v40 }
 0x193   :  { %1837 = vmatmul.mubr.f32.gmra.mrb[168].mxu0 %v1243_v1  ;;  %v1247_v36 = vmax.f32 %v682_v45, 0.0  ;;  %v14628_v45 = vpop.f32.mrb[47].mxu1 }
 0x194   :  { %v687_v50 = vpop.f32.mrb[76].mxu0  ;;  %v1248_v51 = vmax.f32 %v684_v9, 0.0  ;;  %20801 = vst [vmem:[#allocation9_spill] sm:$0xff] %v14628_v45 }
 0x195   :  { %v688_v55 = vadd.f32 %v687_v50, %v14253_v4  ;;  %v689_v33 = vpop.f32.mrb[77].mxu0 }
 0x196   :  { %v690_v3 = vadd.f32 %v689_v33, %v14256_v26  ;;  %1842 = vmatprep.mubr.f32.mxu0 %v1248_v51 }
 0x197   :  { %1843 = vmatmul.mubr.f32.gmra.mrb[170].mxu0 %v1247_v36  ;;  %v1251_v1 = vmax.f32 %v688_v55, 0.0 }
 0x198   :  { %v693_v38 = vpop.f32.mrb[78].mxu0  ;;  %v1252_v29 = vmax.f32 %v690_v3, 0.0 }
 0x199   :  { %v694_v40 = vadd.f32 %v693_v38, %v14253_v4  ;;  %v695_v15 = vpop.f32.mrb[79].mxu0  ;;  %v14632_v38 = vpop.f32.mrb[48].mxu1 }
 0x19a   :  { %v696_v9 = vadd.f32 %v695_v15, %v14256_v26  ;;  %1848 = vmatprep.mubr.f32.mxu0 %v1252_v29  ;;  %20802 = vst [vmem:[#allocation10_spill] sm:$0xff] %v14632_v38  ;;  %v14634_v55 = vpop.f32.mrb[49].mxu1 }
 0x19b   :  { %1849 = vmatmul.mubr.f32.gmra.mrb[172].mxu0 %v1251_v1  ;;  %v1255_v36 = vmax.f32 %v694_v40, 0.0  ;;  %20803 = vst [vmem:[#allocation11_spill] sm:$0xff] %v14634_v55 }
 0x19c   :  { %v699_v50 = vpop.f32.mrb[80].mxu0  ;;  %v1256_v33 = vmax.f32 %v696_v9, 0.0 }
 0x19d   :  { %v700_v51 = vadd.f32 %v699_v50, %v14253_v4  ;;  %v701_v60 = vpop.f32.mrb[81].mxu0  ;;  %v14638_v50 = vpop.f32.mrb[50].mxu1 }
 0x19e   :  { %v702_v3 = vadd.f32 %v701_v60, %v14256_v26  ;;  %1854 = vmatprep.mubr.f32.mxu0 %v1256_v33  ;;  %20804 = vst [vmem:[#allocation12_spill] sm:$0xff] %v14638_v50  ;;  %v14640_v40 = vpop.f32.mrb[51].mxu1 }
 0x19f   :  { %1855 = vmatmul.mubr.f32.gmra.mrb[174].mxu0 %v1255_v36  ;;  %v1259_v29 = vmax.f32 %v700_v51, 0.0  ;;  %20805 = vst [vmem:[#allocation13_spill] sm:$0xff] %v14640_v40  ;;  %v14644_v51 = vpop.f32.mrb[52].mxu1 }
 0x1a0   :  { %v1260_v2 = vmax.f32 %v702_v3, 0.0  ;;  %v705_v15 = vpop.f32.mrb[82].mxu0  ;;  %20806 = vst [vmem:[#allocation14_spill] sm:$0xff] %v14644_v51 }
 0x1a1   :  { %v706_v57 = vadd.f32 %v705_v15, %v14253_v4  ;;  %v707_v1 = vpop.f32.mrb[83].mxu0  ;;  %v14646_v15 = vpop.f32.mrb[53].mxu1 }
 0x1a2   :  { %v708_v9 = vadd.f32 %v707_v1, %v14256_v26  ;;  %1860 = vmatprep.mubr.f32.mxu0 %v1260_v2  ;;  %20807 = vst [vmem:[#allocation15_spill] sm:$0xff] %v14646_v15 }
 0x1a3   :  { %1861 = vmatmul.mubr.f32.gmra.mrb[176].mxu0 %v1259_v29  ;;  %v1263_v38 = vmax.f32 %v706_v57, 0.0  ;;  %v14650_v57 = vpop.f32.mrb[54].mxu1 }
 0x1a4   :  { %v1264_v60 = vmax.f32 %v708_v9, 0.0  ;;  %v711_v33 = vpop.f32.mrb[84].mxu0  ;;  %20808 = vst [vmem:[#allocation16_spill] sm:$0xff] %v14650_v57 }
 0x1a5   :  { %v712_v36 = vadd.f32 %v711_v33, %v14253_v4  ;;  %v713_v55 = vpop.f32.mrb[85].mxu0  ;;  %v14652_v33 = vpop.f32.mrb[55].mxu1 }
 0x1a6   :  { %v714_v3 = vadd.f32 %v713_v55, %v14256_v26  ;;  %1866 = vmatprep.mubr.f32.mxu0 %v1264_v60  ;;  %20809 = vst [vmem:[#allocation17_spill] sm:$0xff] %v14652_v33 }
 0x1a7   :  { %1867 = vmatmul.mubr.f32.gmra.mrb[178].mxu0 %v1263_v38  ;;  %v1267_v50 = vmax.f32 %v712_v36, 0.0  ;;  %v14656_v36 = vpop.f32.mrb[56].mxu1 }
 0x1a8   :  { %v1268_v2 = vmax.f32 %v714_v3, 0.0  ;;  %v717_v1 = vpop.f32.mrb[86].mxu0  ;;  %20810 = vst [vmem:[#allocation18_spill] sm:$0xff] %v14656_v36 }
 0x1a9   :  { %v718_v29 = vadd.f32 %v717_v1, %v14253_v4  ;;  %v719_v40 = vpop.f32.mrb[87].mxu0  ;;  %v14658_v1 = vpop.f32.mrb[57].mxu1 }
 0x1aa   :  { %v720_v9 = vadd.f32 %v719_v40, %v14256_v26  ;;  %1872 = vmatprep.mubr.f32.mxu0 %v1268_v2  ;;  %20811 = vst [vmem:[#allocation19_spill] sm:$0xff] %v14658_v1  ;;  %v14665_v33 = vpop.f32.mrb[58].mxu1 }
 0x1ab   :  { %1873 = vmatmul.mubr.f32.gmra.mrb[180].mxu0 %v1267_v50  ;;  %v1271_v51 = vmax.f32 %v718_v29, 0.0  ;;  %v14661_v50 = vsub.s32 3, %v14235_v23  ;;  %20813 = vst [vmem:[#allocation21_spill] sm:$0xff] %v14665_v33 }
 0x1ac   :  { %v1272_v55 = vmax.f32 %v720_v9, 0.0  ;;  %v723_v60 = vpop.f32.mrb[88].mxu0 }
 0x1ad   :  { %v724_v38 = vadd.f32 %v723_v60, %v14253_v4  ;;  %v725_v15 = vpop.f32.mrb[89].mxu0  ;;  %20812 = vst [vmem:[#allocation20_spill] sm:$0xff] %v14661_v50 }
 0x1ae   :  { %v726_v3 = vadd.f32 %v725_v15, %v14256_v26  ;;  %1878 = vmatprep.mubr.f32.mxu0 %v1272_v55  ;;  %v14667_v15 = vpop.f32.mrb[59].mxu1 }
 0x1af   :  { %1879 = vmatmul.mubr.f32.gmra.mrb[182].mxu0 %v1271_v51  ;;  %v1275_v57 = vmax.f32 %v724_v38, 0.0  ;;  %20814 = vst [vmem:[#allocation22_spill] sm:$0xff] %v14667_v15 }
 0x1b0   :  { %v1276_v40 = vmax.f32 %v726_v3, 0.0  ;;  %v729_v2 = vpop.f32.mrb[90].mxu0  ;;  %v12983_v3 = vld [vmem:[%s20728_s2] sm:$0xf] }
 0x1b1   :  { %v730_v9 = vadd.f32 %v729_v2, %v14253_v4  ;;  %v731_v29 = vpop.f32.mrb[91].mxu0  ;;  %v14673_v36 = vrot.slane %v12983_v3, %v14661_v50 }
 0x1b2   :  { %v732_v60 = vadd.f32 %v731_v29, %v14256_v26  ;;  %1884 = vmatprep.mubr.f32.mxu0 %v1276_v40  ;;  %v14677_v40 = vsub.s32 2, %v14235_v23  ;;  %v14680_v29 = vpop.f32.mrb[60].mxu1 }
 0x1b3   :  { %1885 = vmatmul.mubr.f32.gmra.mrb[184].mxu0 %v1275_v57  ;;  %v1279_v38 = vmax.f32 %v730_v9, 0.0  ;;  %20816 = vst [vmem:[#allocation24_spill] sm:$0xff] %v14680_v29  ;;  %v815_v50 = vadd.f32 %v14490_v14, %v14673_v36  ;;  %v821_v14 = vadd.f32 %v14496_v11, %v14673_v36 }
 0x1b4   :  { %v1280_v51 = vmax.f32 %v732_v60, 0.0  ;;  %v735_v55 = vpop.f32.mrb[92].mxu0  ;;  %20815 = vst [vmem:[#allocation23_spill] sm:$0xff] %v14677_v40  ;;  %v14682_v60 = vpop.f32.mrb[61].mxu1  ;;  %v14688_v23 = vrot.slane %v12983_v3, %v14677_v40  ;;  %v9366_v40 = vld [vmem:[%s20731_s5 + $0x6b0] sm:$0xff] }
 0x1b5   :  { %v736_v2 = vadd.f32 %v735_v55, %v14253_v4  ;;  %v737_v1 = vpop.f32.mrb[93].mxu0  ;;  %v1102_v29 = vmax.f32 %v815_v50, 0.0 }
 0x1b6   :  { %v738_v57 = vadd.f32 %v737_v1, %v14256_v26  ;;  %1890 = vmatprep.mubr.f32.mxu0 %v1280_v51  ;;  %v14691_v51 = vpop.f32.mrb[62].mxu1  ;;  %v819_v11 = vadd.f32 %v14493_v49, %v14688_v23 }
 0x1b7   :  { %1891 = vmatmul.mubr.f32.gmra.mrb[186].mxu0 %v1279_v38  ;;  %v1283_v9 = vmax.f32 %v736_v2, 0.0  ;;  %v14693_v38 = vpop.f32.mrb[63].mxu1 }
 0x1b8   :  { %v1284_v33 = vmax.f32 %v738_v57, 0.0  ;;  %v741_v15 = vpop.f32.mrb[94].mxu0 }
 0x1b9   :  { %v742_v55 = vadd.f32 %v741_v15, %v14253_v4  ;;  %v743_v45 = vpop.f32.mrb[95].mxu0  ;;  %v813_v4 = vadd.f32 %v14481_v56, %v14688_v23  ;;  %v14699_v15 = vpop.f32.mrb[64].mxu1 }
 0x1ba   :  { %v744_v1 = vadd.f32 %v743_v45, %v14256_v26  ;;  %1896 = vmatprep.mubr.f32.mxu0 %v1284_v33  ;;  %v14701_v26 = vpop.f32.mrb[65].mxu1  ;;  %v1106_v45 = vmax.f32 %v821_v14, 0.0  ;;  %v827_v33 = vadd.f32 %v14502_v46, %v14673_v36  ;;  %v839_v14 = vadd.f32 %v14514_v25, %v14673_v36 }
 0x1bb   :  { %1897 = vmatmul.mubr.f32.gmra.mrb[188].mxu0 %v1283_v9  ;;  %v1287_v2 = vmax.f32 %v742_v55, 0.0  ;;  %v1101_v50 = vmax.f32 %v813_v4, 0.0  ;;  %v14708_v3 = vpop.f32.mrb[66].mxu1  ;;  %v833_v55 = vadd.f32 %v14508_v22, %v14673_v36  ;;  %v831_v4 = vadd.f32 %v14505_v20, %v14688_v23 }
 0x1bc   :  { %v1288_v57 = vmax.f32 %v744_v1, 0.0  ;;  %v14710_v56 = vpop.f32.mrb[67].mxu1  ;;  %v1110_v9 = vmax.f32 %v827_v33, 0.0  ;;  %v1105_v1 = vmax.f32 %v819_v11, 0.0  ;;  %v845_v33 = vadd.f32 %v14520_v13, %v14673_v36 }
 0x1bd   :  { %v14717_v46 = vpop.f32.mrb[68].mxu1  ;;  %v1114_v49 = vmax.f32 %v833_v55, 0.0  ;;  %v837_v11 = vadd.f32 %v14511_v21, %v14688_v23  ;;  %v851_v55 = vadd.f32 %v14526_v31, %v14673_v36 }
 0x1be   :  { %1902 = vmatprep.mubr.f32.mxu0 %v1288_v57  ;;  %v14719_v57 = vpop.f32.mrb[69].mxu1  ;;  %v1122_v20 = vmax.f32 %v845_v33, 0.0  ;;  %v863_v33 = vadd.f32 %v14538_v18, %v14673_v36 }
 0x1bf   :  { %1903 = vmatmul.mubr.f32.gmra.mrb[190].mxu0 %v1287_v2  ;;  %v14726_v22 = vpop.f32.mrb[70].mxu1  ;;  %v1126_v21 = vmax.f32 %v851_v55, 0.0  ;;  %v869_v55 = vadd.f32 %v14544_v12, %v14673_v36 }
 0x1c0   :  { %9176 = vmatprep.mubr.msk.f32.mxu0 %vm1411_vm4, %v1102_v29  ;;  %v825_v29 = vadd.f32 %v14499_v58, %v14688_v23  ;;  %v1118_v58 = vmax.f32 %v839_v14, 0.0  ;;  %v857_v14 = vadd.f32 %v14532_v5, %v14673_v36 }
 0x1c2   :  { %v1109_v2 = vmax.f32 %v825_v29, 0.0  ;;  %v843_v29 = vadd.f32 %v14517_v8, %v14688_v23  ;;  %v1130_v8 = vmax.f32 %v857_v14, 0.0  ;;  %v875_v14 = vadd.f32 %v14550_v24, %v14673_v36 }
 0x1c3   :  { %1974 = vmatmul.mubr.f32.vlgmr.msra.gmra.mrb[96].mxu0 %v1101_v50  ;;  %v1113_v50 = vmax.f32 %v831_v4, 0.0  ;;  %v849_v4 = vadd.f32 %v14523_v27, %v14688_v23  ;;  %v1134_v27 = vmax.f32 %v863_v33, 0.0  ;;  %v881_v33 = vadd.f32 %v14556_v53, %v14673_v36 }
 0x1c4   :  { %9177 = vmatprep.mubr.msk.f32.mxu0 %vm1411_vm4, %v1106_v45  ;;  %v14728_v45 = vpop.f32.mrb[71].mxu1 }
 0x1c5   :  { %v14735_v25 = vpop.f32.mrb[72].mxu1 }
 0x1c7   :  { %1980 = vmatmul.mubr.f32.gmra.mrb[98].mxu0 %v1105_v1  ;;  %v1117_v1 = vmax.f32 %v837_v11, 0.0  ;;  %v855_v11 = vadd.f32 %v14529_v61, %v14688_v23  ;;  %v1138_v61 = vmax.f32 %v869_v55, 0.0  ;;  %v887_v55 = vadd.f32 %v14562_v43, %v14673_v36 }
 0x1c8   :  { %9178 = vmatprep.mubr.msk.f32.mxu0 %vm1411_vm4, %v1110_v9  ;;  %v14737_v9 = vpop.f32.mrb[73].mxu1 }
 0x1c9   :  { %v14744_v13 = vpop.f32.mrb[74].mxu1 }
 0x1cb   :  { %1986 = vmatmul.mubr.f32.gmra.mrb[100].mxu0 %v1109_v2  ;;  %v1121_v2 = vmax.f32 %v843_v29, 0.0  ;;  %v861_v29 = vadd.f32 %v14535_v47, %v14688_v23  ;;  %v1142_v47 = vmax.f32 %v875_v14, 0.0  ;;  %v893_v14 = vadd.f32 %v14568_v42, %v14673_v36 }
 0x1cc   :  { %9179 = vmatprep.mubr.msk.f32.mxu0 %vm1411_vm4, %v1114_v49  ;;  %v14746_v49 = vpop.f32.mrb[75].mxu1 }
 0x1cd   :  { %v14753_v31 = vpop.f32.mrb[76].mxu1 }
 0x1cf   :  { %1992 = vmatmul.mubr.f32.gmra.mrb[102].mxu0 %v1113_v50  ;;  %v1125_v50 = vmax.f32 %v849_v4, 0.0  ;;  %v867_v4 = vadd.f32 %v14541_v10, %v14688_v23  ;;  %v1146_v10 = vmax.f32 %v881_v33, 0.0  ;;  %v899_v33 = vadd.f32 %v14574_v19, %v14673_v36 }
 0x1d0   :  { %9180 = vmatprep.mubr.msk.f32.mxu0 %vm1411_vm4, %v1118_v58  ;;  %v14755_v58 = vpop.f32.mrb[77].mxu1 }
 0x1d1   :  { %v14762_v5 = vpop.f32.mrb[78].mxu1 }
 0x1d3   :  { %1998 = vmatmul.mubr.f32.gmra.mrb[104].mxu0 %v1117_v1  ;;  %v1129_v1 = vmax.f32 %v855_v11, 0.0  ;;  %v873_v11 = vadd.f32 %v14547_v37, %v14688_v23  ;;  %v1150_v37 = vmax.f32 %v887_v55, 0.0  ;;  %v905_v55 = vadd.f32 %v14580_v6, %v14673_v36 }
 0x1d4   :  { %9181 = vmatprep.mubr.msk.f32.mxu0 %vm1411_vm4, %v1122_v20  ;;  %v14764_v20 = vpop.f32.mrb[79].mxu1 }
 0x1d5   :  { %v14771_v18 = vpop.f32.mrb[80].mxu1 }
 0x1d7   :  { %2004 = vmatmul.mubr.f32.gmra.mrb[106].mxu0 %v1121_v2  ;;  %v1133_v2 = vmax.f32 %v861_v29, 0.0  ;;  %v879_v29 = vadd.f32 %v14553_v30, %v14688_v23  ;;  %v1154_v30 = vmax.f32 %v893_v14, 0.0  ;;  %v911_v14 = vadd.f32 %v14586_v34, %v14673_v36 }
 0x1d8   :  { %9182 = vmatprep.mubr.msk.f32.mxu0 %vm1411_vm4, %v1126_v21  ;;  %v14773_v21 = vpop.f32.mrb[81].mxu1 }
 0x1d9   :  { %v14780_v12 = vpop.f32.mrb[82].mxu1 }
 0x1db   :  { %2010 = vmatmul.mubr.f32.gmra.mrb[108].mxu0 %v1125_v50  ;;  %v1137_v50 = vmax.f32 %v867_v4, 0.0  ;;  %v885_v4 = vadd.f32 %v14559_v35, %v14688_v23  ;;  %v1158_v35 = vmax.f32 %v899_v33, 0.0  ;;  %v917_v33 = vadd.f32 %v14592_v59, %v14673_v36 }
 0x1dc   :  { %9183 = vmatprep.mubr.msk.f32.mxu0 %vm1411_vm4, %v1130_v8  ;;  %v14782_v8 = vpop.f32.mrb[83].mxu1  ;;  %v929_v59 = vadd.f32 %v14604_v32, %v14673_v36  ;;  %v941_v32 = vadd.f32 %v14616_v0, %v14673_v36  ;;  %v20817_v0 = vld [vmem:[#allocation9_spill] sm:$0xff] }
 0x1dd   :  { %v14789_v24 = vpop.f32.mrb[84].mxu1  ;;  %v1170_v34 = vmax.f32 %v917_v33, 0.0 }
 0x1df   :  { %2016 = vmatmul.mubr.f32.gmra.mrb[110].mxu0 %v1129_v1  ;;  %v1141_v1 = vmax.f32 %v873_v11, 0.0  ;;  %v891_v11 = vadd.f32 %v14565_v41, %v14688_v23  ;;  %v1162_v41 = vmax.f32 %v905_v55, 0.0  ;;  %v915_v55 = vadd.f32 %v14589_v28, %v14688_v23 }
 0x1e0   :  { %9184 = vmatprep.mubr.msk.f32.mxu0 %vm1411_vm4, %v1134_v27  ;;  %v14791_v27 = vpop.f32.mrb[85].mxu1  ;;  %v927_v28 = vadd.f32 %v14601_v54, %v14688_v23  ;;  %v939_v54 = vadd.f32 %v14613_v48, %v14688_v23  ;;  %v20820_v48 = vld [vmem:[#allocation8_spill] sm:$0xff] }
 0x1e1   :  { %v14798_v53 = vpop.f32.mrb[86].mxu1 }
 0x1e3   :  { %2022 = vmatmul.mubr.f32.gmra.mrb[112].mxu0 %v1133_v2  ;;  %v1145_v2 = vmax.f32 %v879_v29, 0.0  ;;  %v897_v29 = vadd.f32 %v14571_v62, %v14688_v23  ;;  %v1166_v62 = vmax.f32 %v911_v14, 0.0 }
 0x1e4   :  { %9185 = vmatprep.mubr.msk.f32.mxu0 %vm1411_vm4, %v1138_v61  ;;  %v14800_v61 = vpop.f32.mrb[87].mxu1 }
 0x1e5   :  { %v14807_v43 = vpop.f32.mrb[88].mxu1 }
 0x1e7   :  { %2028 = vmatmul.mubr.f32.gmra.mrb[114].mxu0 %v1137_v50  ;;  %v1149_v50 = vmax.f32 %v885_v4, 0.0  ;;  %v903_v4 = vadd.f32 %v14577_v17, %v14688_v23  ;;  %v923_v17 = vadd.f32 %v14598_v7, %v14673_v36  ;;  %v935_v7 = vadd.f32 %v14610_v44, %v14673_v36 }
 0x1e8   :  { %9186 = vmatprep.mubr.msk.f32.mxu0 %vm1411_vm4, %v1142_v47  ;;  %v14809_v47 = vpop.f32.mrb[89].mxu1  ;;  %v947_v44 = vadd.f32 %v14622_v52, %v14673_v36  ;;  %v20819_v52 = vld [vmem:[#allocation11_spill] sm:$0xff] }
 0x1e9   :  { %v14816_v42 = vpop.f32.mrb[90].mxu1 }
 0x1eb   :  { %2034 = vmatmul.mubr.f32.gmra.mrb[116].mxu0 %v1141_v1  ;;  %v1153_v1 = vmax.f32 %v891_v11, 0.0  ;;  %v909_v11 = vadd.f32 %v14583_v16, %v14688_v23  ;;  %v921_v16 = vadd.f32 %v14595_v63, %v14688_v23  ;;  %v933_v63 = vadd.f32 %v14607_v39, %v14688_v23  ;;  %v20818_v39 = vld [vmem:[#allocation7_spill] sm:$0xff] }
 0x1ec   :  { %9187 = vmatprep.mubr.msk.f32.mxu0 %vm1411_vm4, %v1146_v10  ;;  %v14818_v10 = vpop.f32.mrb[91].mxu1 }
 0x1ed   :  { %v14825_v19 = vpop.f32.mrb[92].mxu1  ;;  %v1173_v14 = vmax.f32 %v921_v16, 0.0  ;;  %v1181_v33 = vmax.f32 %v933_v63, 0.0  ;;  %v20821_v16 = vld [vmem:[#allocation13_spill] sm:$0xff] }
 0x1ef   :  { %2040 = vmatmul.mubr.f32.gmra.mrb[118].mxu0 %v1145_v2  ;;  %v1157_v2 = vmax.f32 %v897_v29, 0.0  ;;  %v1169_v29 = vmax.f32 %v915_v55, 0.0  ;;  %v959_v55 = vadd.f32 %v20819_v52, %v14673_v36 }
 0x1f0   :  { %9188 = vmatprep.mubr.msk.f32.mxu0 %vm1411_vm4, %v1150_v37  ;;  %v14827_v37 = vpop.f32.mrb[93].mxu1 }
 0x1f1   :  { %v14834_v6 = vpop.f32.mrb[94].mxu1 }
 0x1f3   :  { %2046 = vmatmul.mubr.f32.gmra.mrb[120].mxu0 %v1149_v50  ;;  %v1161_v50 = vmax.f32 %v903_v4, 0.0  ;;  %v1177_v4 = vmax.f32 %v927_v28, 0.0 }
 0x1f4   :  { %9189 = vmatprep.mubr.msk.f32.mxu0 %vm1411_vm4, %v1154_v30  ;;  %v14836_v30 = vpop.f32.mrb[95].mxu1 }
 0x1f7   :  { %2052 = vmatmul.mubr.f32.gmra.mrb[122].mxu0 %v1153_v1  ;;  %v1174_v1 = vmax.f32 %v923_v17, 0.0  ;;  %v945_v17 = vadd.f32 %v20818_v39, %v14688_v23 }
 0x1f8   :  { %9190 = vmatprep.mubr.msk.f32.mxu0 %vm1411_vm4, %v1158_v35  ;;  %v1165_v35 = vmax.f32 %v909_v11, 0.0  ;;  %v953_v11 = vadd.f32 %v20817_v0, %v14673_v36 }
 0x1fb   :  { %2058 = vmatmul.mubr.f32.gmra.mrb[124].mxu0 %v1157_v2  ;;  %v1182_v2 = vmax.f32 %v935_v7, 0.0 }
 0x1fc   :  { %9191 = vmatprep.mubr.msk.f32.mxu0 %vm1411_vm4, %v1162_v41  ;;  %v1178_v41 = vmax.f32 %v929_v59, 0.0  ;;  %v951_v59 = vadd.f32 %v20820_v48, %v14688_v23 }
 0x1fe   :  { %v1193_v7 = vmax.f32 %v951_v59, 0.0  ;;  %v20829_v59 = vld [vmem:[#allocation22_spill] sm:$0xff] }
 0x1ff   :  { %2064 = vmatmul.mubr.f32.gmra.mrb[126].mxu0 %v1161_v50  ;;  %v1190_v50 = vmax.f32 %v947_v44, 0.0 }
 0x200   :  { %9192 = vmatprep.mubr.msk.f32.mxu0 %vm1411_vm4, %v1166_v62  ;;  %v1186_v62 = vmax.f32 %v941_v32, 0.0  ;;  %v20823_v32 = vld [vmem:[#allocation15_spill] sm:$0xff] }
 0x203   :  { %2070 = vmatmul.mubr.f32.gmra.mrb[128].mxu0 %v1165_v35  ;;  %v1194_v35 = vmax.f32 %v953_v11, 0.0  ;;  %v20826_v11 = vld [vmem:[#allocation14_spill] sm:$0xff] }
 0x204   :  { %9193 = vmatprep.mubr.msk.f32.mxu0 %vm1411_vm4, %v1170_v34  ;;  %v1185_v34 = vmax.f32 %v939_v54, 0.0  ;;  %v20825_v54 = vld [vmem:[#allocation17_spill] sm:$0xff] }
 0x207   :  { %2076 = vmatmul.mubr.f32.gmra.mrb[130].mxu0 %v1169_v29  ;;  %v1198_v29 = vmax.f32 %v959_v55, 0.0  ;;  %v20828_v55 = vld [vmem:[#allocation16_spill] sm:$0xff] }
 0x208   :  { %9194 = vmatprep.mubr.msk.f32.mxu0 %vm1411_vm4, %v1174_v1  ;;  %v1189_v1 = vmax.f32 %v945_v17, 0.0  ;;  %v20827_v17 = vld [vmem:[#allocation19_spill] sm:$0xff] }
 0x20b   :  { %2082 = vmatmul.mubr.f32.gmra.mrb[132].mxu0 %v1173_v14  ;;  %v20822_v14 = vld [vmem:[#allocation10_spill] sm:$0xff] }
 0x20c   :  { %9195 = vmatprep.mubr.msk.f32.mxu0 %vm1411_vm4, %v1178_v41  ;;  %v965_v41 = vadd.f32 %v20821_v16, %v14673_v36  ;;  %v957_v28 = vadd.f32 %v20822_v14, %v14688_v23 }
 0x20e   :  { %v1197_v63 = vmax.f32 %v957_v28, 0.0  ;;  %v995_v28 = vadd.f32 %v14682_v60, %v14673_v36  ;;  %v1007_v60 = vadd.f32 %v14701_v26, %v14673_v36  ;;  %v1019_v26 = vadd.f32 %v14719_v57, %v14673_v36 }
 0x20f   :  { %2088 = vmatmul.mubr.f32.gmra.mrb[134].mxu0 %v1177_v4  ;;  %v971_v4 = vadd.f32 %v20823_v32, %v14673_v36  ;;  %v20831_v32 = vld [vmem:[#allocation21_spill] sm:$0xff]  ;;  %v1031_v57 = vadd.f32 %v14737_v9, %v14673_v36  ;;  %v1043_v9 = vadd.f32 %v14755_v58, %v14673_v36  ;;  %v1055_v58 = vadd.f32 %v14773_v21, %v14673_v36 }
 0x210   :  { %9196 = vmatprep.mubr.msk.f32.mxu0 %vm1411_vm4, %v1182_v2  ;;  %v1202_v2 = vmax.f32 %v965_v41, 0.0  ;;  %v20830_v41 = vld [vmem:[#allocation18_spill] sm:$0xff]  ;;  %v1067_v21 = vadd.f32 %v14791_v27, %v14673_v36  ;;  %v1079_v27 = vadd.f32 %v14809_v47, %v14673_v36  ;;  %v1091_v47 = vadd.f32 %v14827_v37, %v14673_v36 }
 0x213   :  { %2094 = vmatmul.mubr.f32.gmra.mrb[136].mxu0 %v1181_v33  ;;  %v1206_v33 = vmax.f32 %v971_v4, 0.0  ;;  %v987_v4 = vadd.f32 %v20831_v32, %v14688_v23 }
 0x214   :  { %9197 = vmatprep.mubr.msk.f32.mxu0 %vm1411_vm4, %v1186_v62  ;;  %v20824_v62 = vld [vmem:[#allocation12_spill] sm:$0xff] }
 0x215   :  { %v963_v44 = vadd.f32 %v20824_v62, %v14688_v23  ;;  %v1001_v62 = vadd.f32 %v14693_v38, %v14673_v36  ;;  %v1013_v38 = vadd.f32 %v14710_v56, %v14673_v36  ;;  %v1025_v56 = vadd.f32 %v14728_v45, %v14673_v36 }
 0x216   :  { %v1037_v45 = vadd.f32 %v14746_v49, %v14673_v36  ;;  %v1049_v49 = vadd.f32 %v14764_v20, %v14673_v36  ;;  %v1061_v20 = vadd.f32 %v14782_v8, %v14673_v36  ;;  %v1073_v8 = vadd.f32 %v14800_v61, %v14673_v36 }
 0x217   :  { %2100 = vmatmul.mubr.f32.gmra.mrb[138].mxu0 %v1185_v34  ;;  %v1201_v0 = vmax.f32 %v963_v44, 0.0  ;;  %v969_v34 = vadd.f32 %v20826_v11, %v14688_v23  ;;  %v1217_v44 = vmax.f32 %v987_v4, 0.0  ;;  %v999_v11 = vadd.f32 %v14691_v51, %v14688_v23 }
 0x218   :  { %9198 = vmatprep.mubr.msk.f32.mxu0 %vm1411_vm4, %v1190_v50  ;;  %v977_v50 = vadd.f32 %v20825_v54, %v14673_v36  ;;  %v1011_v51 = vadd.f32 %v14708_v3, %v14688_v23  ;;  %v1023_v3 = vadd.f32 %v14726_v22, %v14688_v23  ;;  %v1035_v22 = vadd.f32 %v14744_v13, %v14688_v23 }
 0x219   :  { %v1205_v52 = vmax.f32 %v969_v34, 0.0  ;;  %v1230_v34 = vmax.f32 %v1007_v60, 0.0  ;;  %v1047_v13 = vadd.f32 %v14762_v5, %v14688_v23  ;;  %v1262_v4 = vmax.f32 %v1055_v58, 0.0 }
 0x21a   :  { %v1210_v39 = vmax.f32 %v977_v50, 0.0  ;;  %v1226_v50 = vmax.f32 %v1001_v62, 0.0  ;;  %v1266_v62 = vmax.f32 %v1061_v20, 0.0  ;;  %v1059_v5 = vadd.f32 %v14780_v12, %v14688_v23 }
 0x21b   :  { %2106 = vmatmul.mubr.f32.gmra.mrb[140].mxu0 %v1189_v1  ;;  %v975_v1 = vadd.f32 %v20828_v55, %v14688_v23  ;;  %v1238_v55 = vmax.f32 %v1019_v26, 0.0  ;;  %v1071_v12 = vadd.f32 %v14798_v53, %v14688_v23  ;;  %v1085_v61 = vadd.f32 %v14818_v10, %v14673_v36 }
 0x21c   :  { %9199 = vmatprep.mubr.msk.f32.mxu0 %vm1411_vm4, %v1194_v35  ;;  %v983_v35 = vadd.f32 %v20827_v17, %v14673_v36  ;;  %v1005_v17 = vadd.f32 %v14699_v15, %v14688_v23  ;;  %v1017_v15 = vadd.f32 %v14717_v46, %v14688_v23  ;;  %v1029_v46 = vadd.f32 %v14735_v25, %v14688_v23 }
 0x21d   :  { %v1209_v16 = vmax.f32 %v975_v1, 0.0  ;;  %v1233_v1 = vmax.f32 %v1011_v51, 0.0  ;;  %v1041_v25 = vadd.f32 %v14753_v31, %v14688_v23  ;;  %v1053_v31 = vadd.f32 %v14771_v18, %v14688_v23 }
 0x21e   :  { %v1214_v48 = vmax.f32 %v983_v35, 0.0  ;;  %v1234_v35 = vmax.f32 %v1013_v38, 0.0  ;;  %v1065_v18 = vadd.f32 %v14789_v24, %v14688_v23  ;;  %v1077_v24 = vadd.f32 %v14807_v43, %v14688_v23 }
 0x21f   :  { %2112 = vmatmul.mubr.f32.gmra.mrb[142].mxu0 %v1193_v7  ;;  %v981_v7 = vadd.f32 %v20830_v41, %v14688_v23  ;;  %v1250_v41 = vmax.f32 %v1037_v45, 0.0  ;;  %v1253_v32 = vmax.f32 %v1041_v25, 0.0  ;;  %v1083_v53 = vadd.f32 %v14816_v42, %v14688_v23 }
 0x220   :  { %9200 = vmatprep.mubr.msk.f32.mxu0 %vm1411_vm4, %v1198_v29  ;;  %v989_v29 = vadd.f32 %v20829_v59, %v14673_v36  ;;  %v1237_v59 = vmax.f32 %v1017_v15, 0.0  ;;  %v1269_v60 = vmax.f32 %v1065_v18, 0.0  ;;  %v1277_v38 = vmax.f32 %v1077_v24, 0.0 }
 0x221   :  { %v1097_v10 = vadd.f32 %v14836_v30, %v14673_v36  ;;  %v1089_v43 = vadd.f32 %v14825_v19, %v14688_v23  ;;  %v1095_v26 = vadd.f32 %v14834_v6, %v14688_v23  ;;  %v2263_v36 = vld [vmem:[%s20730_s4 + $0x8] sm:$0xff] }
 0x222   :  { %v1218_v14 = vmax.f32 %v989_v29, 0.0  ;;  %v1246_v29 = vmax.f32 %v1031_v57, 0.0  ;;  %v9457_v19 = vld [vmem:[%s20730_s4 + $0x308] sm:$0xff]  ;;  %2374 = vmatprep.mubr.f32.mxu1 %v2263_v36 }
 0x223   :  { %2118 = vmatmul.mubr.f32.gmra.mrb[144].mxu0 %v1197_v63  ;;  %v1222_v63 = vmax.f32 %v995_v28, 0.0  ;;  %v1249_v28 = vmax.f32 %v1035_v22, 0.0  ;;  %v1285_v37 = vmax.f32 %v1089_v43, 0.0  ;;  %v1289_v42 = vmax.f32 %v1095_v26, 0.0 }
 0x224   :  { %9201 = vmatprep.mubr.msk.f32.mxu0 %vm1411_vm4, %v1202_v2  ;;  %v1213_v2 = vmax.f32 %v981_v7, 0.0  ;;  %v1245_v7 = vmax.f32 %v1029_v46, 0.0 }
 0x227   :  { %2124 = vmatmul.mubr.f32.gmra.mrb[146].mxu0 %v1201_v0 }
 0x228   :  { %9202 = vmatprep.mubr.msk.f32.mxu0 %vm1411_vm4, %v1206_v33  ;;  %v20832_v33 = vld [vmem:[#allocation24_spill] sm:$0xff] }
 0x229   :  { %v993_v54 = vadd.f32 %v20832_v33, %v14688_v23  ;;  %v1270_v33 = vmax.f32 %v1067_v21, 0.0 }
 0x22b   :  { %2130 = vmatmul.mubr.f32.gmra.mrb[148].mxu0 %v1205_v52  ;;  %v1221_v0 = vmax.f32 %v993_v54, 0.0  ;;  %v1229_v52 = vmax.f32 %v1005_v17, 0.0  ;;  %v1265_v54 = vmax.f32 %v1059_v5, 0.0  ;;  %v1281_v17 = vmax.f32 %v1083_v53, 0.0 }
 0x22c   :  { %9203 = vmatprep.mubr.msk.f32.mxu0 %vm1411_vm4, %v1210_v39  ;;  %v1225_v39 = vmax.f32 %v999_v11, 0.0  ;;  %v1273_v11 = vmax.f32 %v1071_v12, 0.0 }
 0x22f   :  { %2136 = vmatmul.mubr.f32.gmra.mrb[150].mxu0 %v1209_v16  ;;  %v1241_v16 = vmax.f32 %v1023_v3, 0.0 }
 0x230   :  { %9204 = vmatprep.mubr.msk.f32.mxu0 %vm1411_vm4, %v1214_v48  ;;  %v1242_v48 = vmax.f32 %v1025_v56, 0.0 }
 0x233   :  { %2142 = vmatmul.mubr.f32.gmra.mrb[152].mxu0 %v1213_v2  ;;  %v1258_v2 = vmax.f32 %v1049_v49, 0.0 }
 0x234   :  { %9205 = vmatprep.mubr.msk.f32.mxu0 %vm1411_vm4, %v1218_v14  ;;  %v1254_v14 = vmax.f32 %v1043_v9, 0.0 }
 0x237   :  { %2148 = vmatmul.mubr.f32.gmra.mrb[154].mxu0 %v1217_v44  ;;  %v1261_v44 = vmax.f32 %v1053_v31, 0.0 }
 0x238   :  { %9206 = vmatprep.mubr.msk.f32.mxu0 %vm1411_vm4, %v1222_v63  ;;  %v1257_v63 = vmax.f32 %v1047_v13, 0.0 }
 0x23b   :  { %2154 = vmatmul.mubr.f32.gmra.mrb[156].mxu0 %v1221_v0  ;;  %v1278_v0 = vmax.f32 %v1079_v27, 0.0 }
 0x23c   :  { %9207 = vmatprep.mubr.msk.f32.mxu0 %vm1411_vm4, %v1226_v50  ;;  %v1274_v50 = vmax.f32 %v1073_v8, 0.0 }
 0x23f   :  { %2160 = vmatmul.mubr.f32.gmra.mrb[158].mxu0 %v1225_v39  ;;  %v1286_v39 = vmax.f32 %v1091_v47, 0.0 }
 0x240   :  { %9208 = vmatprep.mubr.msk.f32.mxu0 %vm1411_vm4, %v1230_v34  ;;  %v1282_v34 = vmax.f32 %v1085_v61, 0.0 }
 0x243   :  { %2166 = vmatmul.mubr.f32.gmra.mrb[160].mxu0 %v1229_v52 }
 0x244   :  { %9209 = vmatprep.mubr.msk.f32.mxu0 %vm1411_vm4, %v1234_v35  ;;  %v1290_v35 = vmax.f32 %v1097_v10, 0.0 }
 0x247   :  { %2172 = vmatmul.mubr.f32.gmra.mrb[162].mxu0 %v1233_v1 }
 0x248   :  { %9210 = vmatprep.mubr.msk.f32.mxu0 %vm1411_vm4, %v1238_v55 }
 0x24b   :  { %2178 = vmatmul.mubr.f32.gmra.mrb[164].mxu0 %v1237_v59 }
 0x24c   :  { %9211 = vmatprep.mubr.msk.f32.mxu0 %vm1411_vm4, %v1242_v48 }
 0x24f   :  { %2184 = vmatmul.mubr.f32.gmra.mrb[166].mxu0 %v1241_v16 }
 0x250   :  { %9212 = vmatprep.mubr.msk.f32.mxu0 %vm1411_vm4, %v1246_v29 }
 0x253   :  { %2190 = vmatmul.mubr.f32.gmra.mrb[168].mxu0 %v1245_v7 }
 0x254   :  { %9213 = vmatprep.mubr.msk.f32.mxu0 %vm1411_vm4, %v1250_v41 }
 0x257   :  { %2196 = vmatmul.mubr.f32.gmra.mrb[170].mxu0 %v1249_v28 }
 0x258   :  { %9214 = vmatprep.mubr.msk.f32.mxu0 %vm1411_vm4, %v1254_v14 }
 0x25b   :  { %2202 = vmatmul.mubr.f32.gmra.mrb[172].mxu0 %v1253_v32 }
 0x25c   :  { %9215 = vmatprep.mubr.msk.f32.mxu0 %vm1411_vm4, %v1258_v2 }
 0x25f   :  { %2208 = vmatmul.mubr.f32.gmra.mrb[174].mxu0 %v1257_v63 }
 0x260   :  { %9216 = vmatprep.mubr.msk.f32.mxu0 %vm1411_vm4, %v1262_v4 }
 0x263   :  { %2214 = vmatmul.mubr.f32.gmra.mrb[176].mxu0 %v1261_v44 }
 0x264   :  { %9217 = vmatprep.mubr.msk.f32.mxu0 %vm1411_vm4, %v1266_v62 }
 0x267   :  { %2220 = vmatmul.mubr.f32.gmra.mrb[178].mxu0 %v1265_v54 }
 0x268   :  { %9218 = vmatprep.mubr.msk.f32.mxu0 %vm1411_vm4, %v1270_v33 }
 0x26b   :  { %2226 = vmatmul.mubr.f32.gmra.mrb[180].mxu0 %v1269_v60 }
 0x26c   :  { %9219 = vmatprep.mubr.msk.f32.mxu0 %vm1411_vm4, %v1274_v50 }
 0x26f   :  { %2232 = vmatmul.mubr.f32.gmra.mrb[182].mxu0 %v1273_v11 }
 0x270   :  { %9220 = vmatprep.mubr.msk.f32.mxu0 %vm1411_vm4, %v1278_v0 }
 0x273   :  { %2238 = vmatmul.mubr.f32.gmra.mrb[184].mxu0 %v1277_v38 }
 0x274   :  { %9221 = vmatprep.mubr.msk.f32.mxu0 %vm1411_vm4, %v1282_v34 }
 0x277   :  { %2244 = vmatmul.mubr.f32.gmra.mrb[186].mxu0 %v1281_v17 }
 0x278   :  { %9222 = vmatprep.mubr.msk.f32.mxu0 %vm1411_vm4, %v1286_v39 }
 0x27b   :  { %2250 = vmatmul.mubr.f32.gmra.mrb[188].mxu0 %v1285_v37 }
 0x27c   :  { %9223 = vmatprep.mubr.msk.f32.mxu0 %vm1411_vm4, %v1290_v35 }
 0x27f   :  { %2256 = vmatmul.mubr.f32.gmra.mrb[190].mxu0 %v1289_v42 }
 0x280   :  { %4098 = vmatprep.mubr.f32.mxu0 %v9457_v19 }
 0x296   :  { %v1975_v52 = vpop.f32.mrb[96].mxu0 }
 0x297   :  { %v1977_v51 = vpop.f32.mrb[97].mxu0 }
 0x29a   :  { %v1981_v30 = vpop.f32.mrb[98].mxu0 }
 0x29b   :  { %v15003_v55 = vpack.c.bf16 %v1981_v30, %v1975_v52  ;;  %v1983_v23 = vpop.f32.mrb[99].mxu0 }
 0x29c   :  { %v15005_v6 = vpack.c.bf16 %v1983_v23, %v1977_v51 }
 0x29e   :  { %v1987_v56 = vpop.f32.mrb[100].mxu0  ;;  %10633 = vmatprep.subr.bf16.mxu1 %v15005_v6  ;;  %11065 = vmatprep.subr.bf16.mxu0 %v15005_v6 }
 0x29f   :  { %v1989_v1 = vpop.f32.mrb[101].mxu0  ;;  %10635 = vmatpush1.bf16.msra.mxu1 %v15003_v55  ;;  %11067 = vmatpush1.bf16.msra.mxu0 %v15003_v55 }
 0x2a2   :  { %v1993_v15 = vpop.f32.mrb[102].mxu0 }
 0x2a3   :  { %v15011_v48 = vpack.c.bf16 %v1993_v15, %v1987_v56  ;;  %v1995_v57 = vpop.f32.mrb[103].mxu0 }
 0x2a4   :  { %v15013_v59 = vpack.c.bf16 %v1995_v57, %v1989_v1 }
 0x2a6   :  { %v1999_v3 = vpop.f32.mrb[104].mxu0  ;;  %10637 = vmatprep.subr.bf16.mxu1 %v15013_v59  ;;  %11069 = vmatprep.subr.bf16.mxu0 %v15013_v59 }
 0x2a7   :  { %v2001_v29 = vpop.f32.mrb[105].mxu0  ;;  %10639 = vmatpush1.bf16.msra.mxu1 %v15011_v48  ;;  %11071 = vmatpush1.bf16.msra.mxu0 %v15011_v48 }
 0x2aa   :  { %v2005_v45 = vpop.f32.mrb[106].mxu0 }
 0x2ab   :  { %v15019_v16 = vpack.c.bf16 %v2005_v45, %v1999_v3  ;;  %v2007_v46 = vpop.f32.mrb[107].mxu0 }
 0x2ac   :  { %v15021_v41 = vpack.c.bf16 %v2007_v46, %v2001_v29 }
 0x2ae   :  { %v2011_v9 = vpop.f32.mrb[108].mxu0  ;;  %10641 = vmatprep.subr.bf16.mxu1 %v15021_v41  ;;  %11073 = vmatprep.subr.bf16.mxu0 %v15021_v41 }
 0x2af   :  { %v2013_v7 = vpop.f32.mrb[109].mxu0  ;;  %10643 = vmatpush1.bf16.msra.mxu1 %v15019_v16  ;;  %11075 = vmatpush1.bf16.msra.mxu0 %v15019_v16 }
 0x2b2   :  { %v2017_v22 = vpop.f32.mrb[110].mxu0 }
 0x2b3   :  { %v15027_v14 = vpack.c.bf16 %v2017_v22, %v2011_v9  ;;  %v2019_v49 = vpop.f32.mrb[111].mxu0 }
 0x2b4   :  { %v15029_v28 = vpack.c.bf16 %v2019_v49, %v2013_v7 }
 0x2b6   :  { %v2023_v25 = vpop.f32.mrb[112].mxu0  ;;  %10645 = vmatprep.subr.bf16.mxu1 %v15029_v28  ;;  %11077 = vmatprep.subr.bf16.mxu0 %v15029_v28 }
 0x2b7   :  { %v2025_v2 = vpop.f32.mrb[113].mxu0  ;;  %10647 = vmatpush1.bf16.msra.mxu1 %v15027_v14  ;;  %11079 = vmatpush1.bf16.msra.mxu0 %v15027_v14 }
 0x2ba   :  { %v2029_v58 = vpop.f32.mrb[114].mxu0 }
 0x2bb   :  { %v15035_v32 = vpack.c.bf16 %v2029_v58, %v2023_v25  ;;  %v2031_v13 = vpop.f32.mrb[115].mxu0 }
 0x2bc   :  { %v15037_v4 = vpack.c.bf16 %v2031_v13, %v2025_v2 }
 0x2be   :  { %v2035_v20 = vpop.f32.mrb[116].mxu0  ;;  %10649 = vmatprep.subr.bf16.mxu1 %v15037_v4  ;;  %11081 = vmatprep.subr.bf16.mxu0 %v15037_v4 }
 0x2bf   :  { %v2037_v63 = vpop.f32.mrb[117].mxu0  ;;  %10651 = vmatpush1.bf16.msra.mxu1 %v15035_v32  ;;  %11083 = vmatpush1.bf16.msra.mxu0 %v15035_v32 }
 0x2c2   :  { %v2041_v31 = vpop.f32.mrb[118].mxu0 }
 0x2c3   :  { %v15043_v62 = vpack.c.bf16 %v2041_v31, %v2035_v20  ;;  %v2043_v21 = vpop.f32.mrb[119].mxu0 }
 0x2c4   :  { %v15045_v44 = vpack.c.bf16 %v2043_v21, %v2037_v63 }
 0x2c6   :  { %v2047_v5 = vpop.f32.mrb[120].mxu0  ;;  %10653 = vmatprep.subr.bf16.mxu1 %v15045_v44  ;;  %11085 = vmatprep.subr.bf16.mxu0 %v15045_v44 }
 0x2c7   :  { %v2049_v33 = vpop.f32.mrb[121].mxu0  ;;  %10655 = vmatpush1.bf16.msra.mxu1 %v15043_v62  ;;  %11087 = vmatpush1.bf16.msra.mxu0 %v15043_v62 }
 0x2ca   :  { %v2053_v8 = vpop.f32.mrb[122].mxu0 }
 0x2cb   :  { %v15051_v54 = vpack.c.bf16 %v2053_v8, %v2047_v5  ;;  %v2055_v18 = vpop.f32.mrb[123].mxu0 }
 0x2cc   :  { %v15053_v50 = vpack.c.bf16 %v2055_v18, %v2049_v33 }
 0x2ce   :  { %v2059_v27 = vpop.f32.mrb[124].mxu0  ;;  %10657 = vmatprep.subr.bf16.mxu1 %v15053_v50  ;;  %11089 = vmatprep.subr.bf16.mxu0 %v15053_v50 }
 0x2cf   :  { %v2061_v60 = vpop.f32.mrb[125].mxu0  ;;  %10659 = vmatpush1.bf16.msra.mxu1 %v15051_v54  ;;  %11091 = vmatpush1.bf16.msra.mxu0 %v15051_v54 }
 0x2d2   :  { %v2065_v12 = vpop.f32.mrb[126].mxu0 }
 0x2d3   :  { %v15059_v0 = vpack.c.bf16 %v2065_v12, %v2059_v27  ;;  %v2067_v61 = vpop.f32.mrb[127].mxu0 }
 0x2d4   :  { %v15061_v11 = vpack.c.bf16 %v2067_v61, %v2061_v60 }
 0x2d6   :  { %v2071_v24 = vpop.f32.mrb[128].mxu0  ;;  %10661 = vmatprep.subr.bf16.mxu1 %v15061_v11  ;;  %11093 = vmatprep.subr.bf16.mxu0 %v15061_v11 }
 0x2d7   :  { %v2073_v34 = vpop.f32.mrb[129].mxu0  ;;  %10663 = vmatpush1.bf16.msra.mxu1 %v15059_v0  ;;  %11095 = vmatpush1.bf16.msra.mxu0 %v15059_v0 }
 0x2da   :  { %v2077_v47 = vpop.f32.mrb[130].mxu0 }
 0x2db   :  { %v15067_v38 = vpack.c.bf16 %v2077_v47, %v2071_v24  ;;  %v2079_v53 = vpop.f32.mrb[131].mxu0 }
 0x2dc   :  { %v15069_v39 = vpack.c.bf16 %v2079_v53, %v2073_v34  ;;  %v2262_v53 = vld [vmem:[%s20730_s4] sm:$0xff] }
 0x2de   :  { %v2083_v10 = vpop.f32.mrb[132].mxu0  ;;  %10665 = vmatprep.subr.bf16.mxu1 %v15069_v39  ;;  %11097 = vmatprep.subr.bf16.mxu0 %v15069_v39 }
 0x2df   :  { %v2085_v17 = vpop.f32.mrb[133].mxu0  ;;  %10667 = vmatpush1.bf16.msra.mxu1 %v15067_v38  ;;  %11099 = vmatpush1.bf16.msra.mxu0 %v15067_v38 }
 0x2e2   :  { %v2089_v43 = vpop.f32.mrb[134].mxu0 }
 0x2e3   :  { %v15075_v35 = vpack.c.bf16 %v2089_v43, %v2083_v10  ;;  %v2091_v37 = vpop.f32.mrb[135].mxu0  ;;  %v9456_v10 = vld [vmem:[%s20730_s4 + $0x300] sm:$0xff] }
 0x2e4   :  { %v15077_v26 = vpack.c.bf16 %v2091_v37, %v2085_v17  ;;  %v2266_v17 = vld [vmem:[%s20730_s4 + $0x20] sm:$0xff] }
 0x2e5   :  { %v9460_v43 = vld [vmem:[%s20730_s4 + $0x320] sm:$0xff] }
 0x2e6   :  { %v2095_v42 = vpop.f32.mrb[136].mxu0  ;;  %10669 = vmatprep.subr.bf16.mxu1 %v15077_v26  ;;  %11101 = vmatprep.subr.bf16.mxu0 %v15077_v26 }
 0x2e7   :  { %v2097_v52 = vpop.f32.mrb[137].mxu0  ;;  %10671 = vmatpush1.bf16.msra.mxu1 %v15075_v35  ;;  %11103 = vmatpush1.bf16.msra.mxu0 %v15075_v35 }
 0x2ea   :  { %v2101_v51 = vpop.f32.mrb[138].mxu0 }
 0x2eb   :  { %v15083_v36 = vpack.c.bf16 %v2101_v51, %v2095_v42  ;;  %v2103_v19 = vpop.f32.mrb[139].mxu0  ;;  %v2265_v51 = vld [vmem:[%s20730_s4 + $0x18] sm:$0xff] }
 0x2ec   :  { %v15085_v30 = vpack.c.bf16 %v2103_v19, %v2097_v52 }
 0x2ee   :  { %v2107_v23 = vpop.f32.mrb[140].mxu0  ;;  %10673 = vmatprep.subr.bf16.mxu1 %v15085_v30  ;;  %11105 = vmatprep.subr.bf16.mxu0 %v15085_v30 }
 0x2ef   :  { %v2109_v56 = vpop.f32.mrb[141].mxu0  ;;  %10675 = vmatpush1.bf16.msra.mxu1 %v15083_v36  ;;  %11107 = vmatpush1.bf16.msra.mxu0 %v15083_v36 }
 0x2f2   :  { %v2113_v1 = vpop.f32.mrb[142].mxu0 }
 0x2f3   :  { %v15091_v15 = vpack.c.bf16 %v2113_v1, %v2107_v23  ;;  %v2115_v57 = vpop.f32.mrb[143].mxu0  ;;  %v9459_v23 = vld [vmem:[%s20730_s4 + $0x318] sm:$0xff] }
 0x2f4   :  { %v15093_v3 = vpack.c.bf16 %v2115_v57, %v2109_v56  ;;  %v2269_v1 = vld [vmem:[%s20730_s4 + $0x38] sm:$0xff] }
 0x2f5   :  { %v9463_v57 = vld [vmem:[%s20730_s4 + $0x338] sm:$0xff] }
 0x2f6   :  { %v2119_v29 = vpop.f32.mrb[144].mxu0  ;;  %10677 = vmatprep.subr.bf16.mxu1 %v15093_v3  ;;  %11109 = vmatprep.subr.bf16.mxu0 %v15093_v3 }
 0x2f7   :  { %v2121_v45 = vpop.f32.mrb[145].mxu0  ;;  %10679 = vmatpush1.bf16.msra.mxu1 %v15091_v15  ;;  %11111 = vmatpush1.bf16.msra.mxu0 %v15091_v15 }
 0x2fa   :  { %v2125_v46 = vpop.f32.mrb[146].mxu0 }
 0x2fb   :  { %v15099_v9 = vpack.c.bf16 %v2125_v46, %v2119_v29  ;;  %v2127_v7 = vpop.f32.mrb[147].mxu0  ;;  %v9462_v46 = vld [vmem:[%s20730_s4 + $0x330] sm:$0xff] }
 0x2fc   :  { %v15101_v22 = vpack.c.bf16 %v2127_v7, %v2121_v45  ;;  %v2268_v45 = vld [vmem:[%s20730_s4 + $0x30] sm:$0xff] }
 0x2fd   :  { %v2272_v7 = vld [vmem:[%s20730_s4 + $0x50] sm:$0xff] }
 0x2fe   :  { %v2131_v49 = vpop.f32.mrb[148].mxu0  ;;  %10681 = vmatprep.subr.bf16.mxu1 %v15101_v22  ;;  %11113 = vmatprep.subr.bf16.mxu0 %v15101_v22 }
 0x2ff   :  { %v2133_v25 = vpop.f32.mrb[149].mxu0  ;;  %10683 = vmatpush1.bf16.msra.mxu1 %v15099_v9  ;;  %11115 = vmatpush1.bf16.msra.mxu0 %v15099_v9 }
 0x302   :  { %v2137_v2 = vpop.f32.mrb[150].mxu0 }
 0x303   :  { %v15107_v58 = vpack.c.bf16 %v2137_v2, %v2131_v49  ;;  %v2139_v13 = vpop.f32.mrb[151].mxu0  ;;  %v9466_v49 = vld [vmem:[%s20730_s4 + $0x350] sm:$0xff] }
 0x304   :  { %v15109_v20 = vpack.c.bf16 %v2139_v13, %v2133_v25 }
 0x306   :  { %v2143_v63 = vpop.f32.mrb[152].mxu0  ;;  %10685 = vmatprep.subr.bf16.mxu1 %v15109_v20  ;;  %11117 = vmatprep.subr.bf16.mxu0 %v15109_v20 }
 0x307   :  { %v2145_v31 = vpop.f32.mrb[153].mxu0  ;;  %10687 = vmatpush1.bf16.msra.mxu1 %v15107_v58  ;;  %11119 = vmatpush1.bf16.msra.mxu0 %v15107_v58 }
 0x30a   :  { %v2149_v21 = vpop.f32.mrb[154].mxu0 }
 0x30b   :  { %v15115_v5 = vpack.c.bf16 %v2149_v21, %v2143_v63  ;;  %v2151_v33 = vpop.f32.mrb[155].mxu0  ;;  %v2271_v63 = vld [vmem:[%s20730_s4 + $0x48] sm:$0xff] }
 0x30c   :  { %v15117_v8 = vpack.c.bf16 %v2151_v33, %v2145_v31  ;;  %v9465_v21 = vld [vmem:[%s20730_s4 + $0x348] sm:$0xff] }
 0x30e   :  { %v2155_v18 = vpop.f32.mrb[156].mxu0  ;;  %10689 = vmatprep.subr.bf16.mxu1 %v15117_v8  ;;  %11121 = vmatprep.subr.bf16.mxu0 %v15117_v8 }
 0x30f   :  { %v2157_v27 = vpop.f32.mrb[157].mxu0  ;;  %10691 = vmatpush1.bf16.msra.mxu1 %v15115_v5  ;;  %11123 = vmatpush1.bf16.msra.mxu0 %v15115_v5 }
 0x312   :  { %v2161_v60 = vpop.f32.mrb[158].mxu0 }
 0x313   :  { %v15123_v12 = vpack.c.bf16 %v2161_v60, %v2155_v18  ;;  %v2163_v61 = vpop.f32.mrb[159].mxu0  ;;  %v2275_v18 = vld [vmem:[%s20730_s4 + $0x68] sm:$0xff] }
 0x314   :  { %v15125_v24 = vpack.c.bf16 %v2163_v61, %v2157_v27  ;;  %v9469_v27 = vld [vmem:[%s20730_s4 + $0x368] sm:$0xff]  ;;  %v2274_v61 = vld [vmem:[%s20730_s4 + $0x60] sm:$0xff] }
 0x316   :  { %v2167_v34 = vpop.f32.mrb[160].mxu0  ;;  %10693 = vmatprep.subr.bf16.mxu1 %v15125_v24  ;;  %11125 = vmatprep.subr.bf16.mxu0 %v15125_v24 }
 0x317   :  { %v2169_v47 = vpop.f32.mrb[161].mxu0  ;;  %10695 = vmatpush1.bf16.msra.mxu1 %v15123_v12  ;;  %11127 = vmatpush1.bf16.msra.mxu0 %v15123_v12 }
 0x31a   :  { %v2173_v37 = vpop.f32.mrb[162].mxu0  ;;  %2375 = vmatmul.mubr.f32.vlgmr.msra.gmra.mrb[96].mxu1 %v2262_v53  ;;  %4099 = vmatmul.mubr.f32.vlgmr.msra.gmra.mrb[192].mxu0 %v9456_v10  ;;  %v9472_v53 = vld [vmem:[%s20730_s4 + $0x380] sm:$0xff] }
 0x31b   :  { %v15143_v42 = vpack.c.bf16 %v2173_v37, %v2167_v34  ;;  %v2175_v52 = vpop.f32.mrb[163].mxu0  ;;  %2380 = vmatprep.mubr.f32.mxu1 %v2266_v17  ;;  %4104 = vmatprep.mubr.f32.mxu0 %v9460_v43  ;;  %v9468_v34 = vld [vmem:[%s20730_s4 + $0x360] sm:$0xff]  ;;  %v2277_v37 = vld [vmem:[%s20730_s4 + $0x78] sm:$0xff] }
 0x31c   :  { %v15148_v19 = vpack.c.bf16 %v2175_v52, %v2169_v47  ;;  %v2278_v47 = vld [vmem:[%s20730_s4 + $0x80] sm:$0xff] }
 0x31e   :  { %v2179_v56 = vpop.f32.mrb[164].mxu0  ;;  %2381 = vmatmul.mubr.f32.gmra.mrb[98].mxu1 %v2265_v51  ;;  %10697 = vmatprep.subr.bf16.mxu1 %v15148_v19  ;;  %v9471_v51 = vld [vmem:[%s20730_s4 + $0x378] sm:$0xff] }
 0x31f   :  { %4105 = vmatmul.mubr.f32.gmra.mrb[194].mxu0 %v9459_v23  ;;  %11129 = vmatprep.subr.bf16.mxu0 %v15148_v19  ;;  %v2181_v29 = vpop.f32.mrb[165].mxu0 }
 0x320   :  { %10699 = vmatpush1.bf16.msra.mxu1 %v15143_v42  ;;  %11131 = vmatpush1.bf16.msra.mxu0 %v15143_v42 }
 0x321   :  { %2386 = vmatprep.mubr.f32.mxu1 %v2269_v1  ;;  %4110 = vmatprep.mubr.f32.mxu0 %v9463_v57  ;;  %v9475_v1 = vld [vmem:[%s20730_s4 + $0x398] sm:$0xff] }
 0x322   :  { %v2185_v25 = vpop.f32.mrb[166].mxu0  ;;  %2387 = vmatmul.mubr.f32.gmra.mrb[100].mxu1 %v2268_v45  ;;  %v9474_v45 = vld [vmem:[%s20730_s4 + $0x390] sm:$0xff] }
 0x323   :  { %v15175_v2 = vpack.c.bf16 %v2185_v25, %v2179_v56  ;;  %4111 = vmatmul.mubr.f32.gmra.mrb[196].mxu0 %v9462_v46  ;;  %v2187_v13 = vpop.f32.mrb[167].mxu0  ;;  %2392 = vmatprep.mubr.f32.mxu1 %v2272_v7  ;;  %v2281_v56 = vld [vmem:[%s20730_s4 + $0x98] sm:$0xff]  ;;  %v2284_v46 = vld [vmem:[%s20730_s4 + $0xb0] sm:$0xff] }
 0x324   :  { %v15180_v31 = vpack.c.bf16 %v2187_v13, %v2181_v29  ;;  %4116 = vmatprep.mubr.f32.mxu0 %v9466_v49  ;;  %v2280_v29 = vld [vmem:[%s20730_s4 + $0x90] sm:$0xff] }
 0x325   :  { %v9478_v7 = vld [vmem:[%s20730_s4 + $0x3b0] sm:$0xff] }
 0x326   :  { %v2191_v33 = vpop.f32.mrb[168].mxu0  ;;  %2393 = vmatmul.mubr.f32.gmra.mrb[102].mxu1 %v2271_v63  ;;  %10701 = vmatprep.subr.bf16.mxu1 %v15180_v31  ;;  %v2283_v63 = vld [vmem:[%s20730_s4 + $0xa8] sm:$0xff] }
 0x327   :  { %4117 = vmatmul.mubr.f32.gmra.mrb[198].mxu0 %v9465_v21  ;;  %11133 = vmatprep.subr.bf16.mxu0 %v15180_v31  ;;  %v2193_v60 = vpop.f32.mrb[169].mxu0 }
 0x328   :  { %10703 = vmatpush1.bf16.msra.mxu1 %v15175_v2  ;;  %11135 = vmatpush1.bf16.msra.mxu0 %v15175_v2 }
 0x329   :  { %2398 = vmatprep.mubr.f32.mxu1 %v2275_v18  ;;  %4122 = vmatprep.mubr.f32.mxu0 %v9469_v27  ;;  %v2287_v27 = vld [vmem:[%s20730_s4 + $0xc8] sm:$0xff] }
 0x32a   :  { %v2197_v10 = vpop.f32.mrb[170].mxu0  ;;  %2399 = vmatmul.mubr.f32.gmra.mrb[104].mxu1 %v2274_v61 }
 0x32b   :  { %v15207_v17 = vpack.c.bf16 %v2197_v10, %v2191_v33  ;;  %4123 = vmatmul.mubr.f32.gmra.mrb[200].mxu0 %v9468_v34  ;;  %v2199_v43 = vpop.f32.mrb[171].mxu0  ;;  %2404 = vmatprep.mubr.f32.mxu1 %v2278_v47  ;;  %v9477_v33 = vld [vmem:[%s20730_s4 + $0x3a8] sm:$0xff]  ;;  %v2286_v34 = vld [vmem:[%s20730_s4 + $0xc0] sm:$0xff] }
 0x32c   :  { %v15212_v52 = vpack.c.bf16 %v2199_v43, %v2193_v60  ;;  %4128 = vmatprep.mubr.f32.mxu0 %v9472_v53  ;;  %v9481_v60 = vld [vmem:[%s20730_s4 + $0x3c8] sm:$0xff]  ;;  %v9480_v47 = vld [vmem:[%s20730_s4 + $0x3c0] sm:$0xff] }
 0x32d   :  { %v2290_v53 = vld [vmem:[%s20730_s4 + $0xe0] sm:$0xff] }
 0x32e   :  { %v2203_v23 = vpop.f32.mrb[172].mxu0  ;;  %2405 = vmatmul.mubr.f32.gmra.mrb[106].mxu1 %v2277_v37  ;;  %10705 = vmatprep.subr.bf16.mxu1 %v15212_v52  ;;  %v9484_v10 = vld [vmem:[%s20730_s4 + $0x3e0] sm:$0xff] }
 0x32f   :  { %4129 = vmatmul.mubr.f32.gmra.mrb[202].mxu0 %v9471_v51  ;;  %11137 = vmatprep.subr.bf16.mxu0 %v15212_v52  ;;  %v2205_v57 = vpop.f32.mrb[173].mxu0 }
 0x330   :  { %10707 = vmatpush1.bf16.msra.mxu1 %v15207_v17  ;;  %11139 = vmatpush1.bf16.msra.mxu0 %v15207_v17 }
 0x331   :  { %2410 = vmatprep.mubr.f32.mxu1 %v2281_v56  ;;  %4134 = vmatprep.mubr.f32.mxu0 %v9475_v1  ;;  %v9483_v1 = vld [vmem:[%s20730_s4 + $0x3d8] sm:$0xff] }
 0x332   :  { %v2209_v49 = vpop.f32.mrb[174].mxu0  ;;  %2411 = vmatmul.mubr.f32.gmra.mrb[108].mxu1 %v2280_v29  ;;  %v2293_v29 = vld [vmem:[%s20730_s4 + $0xf8] sm:$0xff] }
 0x333   :  { %v15239_v25 = vpack.c.bf16 %v2209_v49, %v2203_v23  ;;  %4135 = vmatmul.mubr.f32.gmra.mrb[204].mxu0 %v9474_v45  ;;  %v2211_v13 = vpop.f32.mrb[175].mxu0  ;;  %2416 = vmatprep.mubr.f32.mxu1 %v2284_v46  ;;  %v2289_v23 = vld [vmem:[%s20730_s4 + $0xd8] sm:$0xff]  ;;  %v9486_v49 = vld [vmem:[%s20730_s4 + $0x3f0] sm:$0xff] }
 0x334   :  { %v15244_v21 = vpack.c.bf16 %v2211_v13, %v2205_v57  ;;  %4140 = vmatprep.mubr.f32.mxu0 %v9478_v7  ;;  %v9487_v45 = vld [vmem:[%s20730_s4 + $0x3f8] sm:$0xff]  ;;  %v2292_v7 = vld [vmem:[%s20730_s4 + $0xf0] sm:$0xff] }
 0x335   :  { %v2296_v13 = vld [vmem:[%s20730_s4 + $0x110] sm:$0xff] }
 0x336   :  { %v2215_v18 = vpop.f32.mrb[176].mxu0  ;;  %2417 = vmatmul.mubr.f32.gmra.mrb[110].mxu1 %v2283_v63  ;;  %10709 = vmatprep.subr.bf16.mxu1 %v15244_v21  ;;  %v9490_v63 = vld [vmem:[%s20730_s4 + $0x410] sm:$0xff] }
 0x337   :  { %4141 = vmatmul.mubr.f32.gmra.mrb[206].mxu0 %v9477_v33  ;;  %11141 = vmatprep.subr.bf16.mxu0 %v15244_v21  ;;  %v2217_v61 = vpop.f32.mrb[177].mxu0 }
 0x338   :  { %10711 = vmatpush1.bf16.msra.mxu1 %v15239_v25  ;;  %11143 = vmatpush1.bf16.msra.mxu0 %v15239_v25 }
 0x339   :  { %2422 = vmatprep.mubr.f32.mxu1 %v2287_v27  ;;  %4146 = vmatprep.mubr.f32.mxu0 %v9481_v60  ;;  %v2295_v60 = vld [vmem:[%s20730_s4 + $0x108] sm:$0xff] }
 0x33a   :  { %v2221_v43 = vpop.f32.mrb[178].mxu0  ;;  %2423 = vmatmul.mubr.f32.gmra.mrb[112].mxu1 %v2286_v34  ;;  %v9489_v34 = vld [vmem:[%s20730_s4 + $0x408] sm:$0xff] }
 0x33b   :  { %v15271_v37 = vpack.c.bf16 %v2221_v43, %v2215_v18  ;;  %4147 = vmatmul.mubr.f32.gmra.mrb[208].mxu0 %v9480_v47  ;;  %v2223_v51 = vpop.f32.mrb[179].mxu0  ;;  %2428 = vmatprep.mubr.f32.mxu1 %v2290_v53  ;;  %v2299_v53 = vld [vmem:[%s20730_s4 + $0x128] sm:$0xff] }
 0x33c   :  { %v15276_v56 = vpack.c.bf16 %v2223_v51, %v2217_v61  ;;  %4152 = vmatprep.mubr.f32.mxu0 %v9484_v10  ;;  %v9493_v10 = vld [vmem:[%s20730_s4 + $0x428] sm:$0xff]  ;;  %v2298_v51 = vld [vmem:[%s20730_s4 + $0x120] sm:$0xff] }
 0x33e   :  { %v2227_v57 = vpop.f32.mrb[180].mxu0  ;;  %2429 = vmatmul.mubr.f32.gmra.mrb[114].mxu1 %v2289_v23  ;;  %10713 = vmatprep.subr.bf16.mxu1 %v15276_v56  ;;  %v9492_v23 = vld [vmem:[%s20730_s4 + $0x420] sm:$0xff] }
 0x33f   :  { %4153 = vmatmul.mubr.f32.gmra.mrb[210].mxu0 %v9483_v1  ;;  %11145 = vmatprep.subr.bf16.mxu0 %v15276_v56  ;;  %v2229_v46 = vpop.f32.mrb[181].mxu0  ;;  %v2302_v1 = vld [vmem:[%s20730_s4 + $0x140] sm:$0xff] }
 0x340   :  { %10715 = vmatpush1.bf16.msra.mxu1 %v15271_v37  ;;  %11147 = vmatpush1.bf16.msra.mxu0 %v15271_v37 }
 0x341   :  { %2434 = vmatprep.mubr.f32.mxu1 %v2293_v29  ;;  %4158 = vmatprep.mubr.f32.mxu0 %v9487_v45 }
 0x342   :  { %v2233_v33 = vpop.f32.mrb[182].mxu0  ;;  %2435 = vmatmul.mubr.f32.gmra.mrb[116].mxu1 %v2292_v7  ;;  %v2301_v7 = vld [vmem:[%s20730_s4 + $0x138] sm:$0xff] }
 0x343   :  { %v15303_v18 = vpack.c.bf16 %v2233_v33, %v2227_v57  ;;  %4159 = vmatmul.mubr.f32.gmra.mrb[212].mxu0 %v9486_v49  ;;  %v2235_v27 = vpop.f32.mrb[183].mxu0  ;;  %2440 = vmatprep.mubr.f32.mxu1 %v2296_v13  ;;  %v9496_v57 = vld [vmem:[%s20730_s4 + $0x440] sm:$0xff]  ;;  %v9495_v13 = vld [vmem:[%s20730_s4 + $0x438] sm:$0xff] }
 0x344   :  { %v15308_v61 = vpack.c.bf16 %v2235_v27, %v2229_v46  ;;  %4164 = vmatprep.mubr.f32.mxu0 %v9490_v63  ;;  %v2305_v33 = vld [vmem:[%s20730_s4 + $0x158] sm:$0xff] }
 0x345   :  { %v9499_v27 = vld [vmem:[%s20730_s4 + $0x458] sm:$0xff] }
 0x346   :  { %v2239_v47 = vpop.f32.mrb[184].mxu0  ;;  %2441 = vmatmul.mubr.f32.gmra.mrb[118].mxu1 %v2295_v60  ;;  %10717 = vmatprep.subr.bf16.mxu1 %v15308_v61 }
 0x347   :  { %4165 = vmatmul.mubr.f32.gmra.mrb[214].mxu0 %v9489_v34  ;;  %11149 = vmatprep.subr.bf16.mxu0 %v15308_v61  ;;  %v2241_v43 = vpop.f32.mrb[185].mxu0  ;;  %v2304_v34 = vld [vmem:[%s20730_s4 + $0x150] sm:$0xff] }
 0x348   :  { %10719 = vmatpush1.bf16.msra.mxu1 %v15303_v18  ;;  %11151 = vmatpush1.bf16.msra.mxu0 %v15303_v18 }
 0x349   :  { %2446 = vmatprep.mubr.f32.mxu1 %v2299_v53  ;;  %4170 = vmatprep.mubr.f32.mxu0 %v9493_v10  ;;  %v2308_v53 = vld [vmem:[%s20730_s4 + $0x170] sm:$0xff] }
 0x34a   :  { %v2245_v29 = vpop.f32.mrb[186].mxu0  ;;  %2447 = vmatmul.mubr.f32.gmra.mrb[120].mxu1 %v2298_v51  ;;  %v9502_v10 = vld [vmem:[%s20730_s4 + $0x470] sm:$0xff] }
 0x34b   :  { %v15335_v45 = vpack.c.bf16 %v2245_v29, %v2239_v47  ;;  %4171 = vmatmul.mubr.f32.gmra.mrb[216].mxu0 %v9492_v23  ;;  %v2247_v46 = vpop.f32.mrb[187].mxu0  ;;  %2452 = vmatprep.mubr.f32.mxu1 %v2302_v1  ;;  %v9498_v47 = vld [vmem:[%s20730_s4 + $0x450] sm:$0xff]  ;;  %v2307_v1 = vld [vmem:[%s20730_s4 + $0x168] sm:$0xff] }
 0x34c   :  { %v15340_v49 = vpack.c.bf16 %v2247_v46, %v2241_v43  ;;  %4176 = vmatprep.mubr.f32.mxu0 %v9496_v57  ;;  %v9501_v29 = vld [vmem:[%s20730_s4 + $0x468] sm:$0xff]  ;;  %v2264_v46 = vld [vmem:[%s20730_s4 + $0x10] sm:$0xff] }
 0x34e   :  { %v2251_v63 = vpop.f32.mrb[188].mxu0  ;;  %2453 = vmatmul.mubr.f32.gmra.mrb[122].mxu1 %v2301_v7  ;;  %10721 = vmatprep.subr.bf16.mxu1 %v15340_v49  ;;  %v9458_v7 = vld [vmem:[%s20730_s4 + $0x310] sm:$0xff] }
 0x34f   :  { %4177 = vmatmul.mubr.f32.gmra.mrb[218].mxu0 %v9495_v13  ;;  %11153 = vmatprep.subr.bf16.mxu0 %v15340_v49  ;;  %v2253_v60 = vpop.f32.mrb[189].mxu0  ;;  %v20746_v13 = vmov 0.0  }
 0x350   :  { %10723 = vmatpush1.bf16.msra.mxu1 %v15335_v45  ;;  %11155 = vmatpush1.bf16.msra.mxu0 %v15335_v45 }
 0x351   :  { %2458 = vmatprep.mubr.f32.mxu1 %v2305_v33  ;;  %4182 = vmatprep.mubr.f32.mxu0 %v9499_v27  ;;  %v9461_v33 = vld [vmem:[%s20730_s4 + $0x328] sm:$0xff]  ;;  %v2270_v27 = vld [vmem:[%s20730_s4 + $0x40] sm:$0xff] }
 0x352   :  { %v2257_v43 = vpop.f32.mrb[190].mxu0  ;;  %2459 = vmatmul.mubr.f32.gmra.mrb[124].mxu1 %v2304_v34  ;;  %v2273_v34 = vld [vmem:[%s20730_s4 + $0x58] sm:$0xff] }
 0x353   :  { %v15367_v51 = vpack.c.bf16 %v2257_v43, %v2251_v63  ;;  %4183 = vmatmul.mubr.f32.gmra.mrb[220].mxu0 %v9498_v47  ;;  %v2259_v23 = vpop.f32.mrb[191].mxu0  ;;  %2464 = vmatprep.mubr.f32.mxu1 %v2308_v53  ;;  %v2267_v63 = vld [vmem:[%s20730_s4 + $0x28] sm:$0xff]  ;;  %v9467_v47 = vld [vmem:[%s20730_s4 + $0x358] sm:$0xff]  ;;  %v2276_v53 = vld [vmem:[%s20730_s4 + $0x70] sm:$0xff] }
 0x354   :  { %v15372_v57 = vpack.c.bf16 %v2259_v23, %v2253_v60  ;;  %4188 = vmatprep.mubr.f32.mxu0 %v9502_v10  ;;  %v9464_v60 = vld [vmem:[%s20730_s4 + $0x340] sm:$0xff]  ;;  %v9470_v10 = vld [vmem:[%s20730_s4 + $0x370] sm:$0xff]  ;;  %v2279_v43 = vld [vmem:[%s20730_s4 + $0x88] sm:$0xff] }
 0x355   :  { %v9473_v23 = vld [vmem:[%s20730_s4 + $0x388] sm:$0xff] }
 0x356   :  { %2465 = vmatmul.mubr.f32.gmra.mrb[126].mxu1 %v2307_v1  ;;  %10725 = vmatprep.subr.bf16.mxu1 %v15372_v57  ;;  %v2282_v1 = vld [vmem:[%s20730_s4 + $0xa0] sm:$0xff] }
 0x357   :  { %4189 = vmatmul.mubr.f32.gmra.mrb[222].mxu0 %v9501_v29  ;;  %11157 = vmatprep.subr.bf16.mxu0 %v15372_v57  ;;  %v9476_v29 = vld [vmem:[%s20730_s4 + $0x3a0] sm:$0xff] }
 0x358   :  { %10727 = vmatpush1.bf16.msra.mxu1 %v15367_v51  ;;  %11159 = vmatpush1.bf16.msra.mxu0 %v15367_v51 }
 0x359   :  { %10729 = vmatprep.subr.bf16.mxu1 %v15005_v6  ;;  %11281 = vmatprep.subr.bf16.mxu0 %v15005_v6 }
 0x35a   :  { %2535 = vmatprep.mubr.f32.mxu1 %v20746_v13  ;;  %4259 = vmatprep.mubr.f32.mxu0 %v20746_v13 }
 0x35b   :  { %2536 = vmatmul.mubr.f32.vlgmr.msra.gmra.mrb[96].mxu1 %v2264_v46  ;;  %4260 = vmatmul.mubr.f32.vlgmr.msra.gmra.mrb[192].mxu0 %v9458_v7  ;;  %v2285_v46 = vld [vmem:[%s20730_s4 + $0xb8] sm:$0xff] }
 0x35c   :  { %10731 = vmatpush1.bf16.msra.mxu1 %v15003_v55  ;;  %11283 = vmatpush1.bf16.msra.mxu0 %v15003_v55  ;;  %v9479_v7 = vld [vmem:[%s20730_s4 + $0x3b8] sm:$0xff] }
 0x35d   :  { %10733 = vmatprep.subr.bf16.mxu1 %v15013_v59  ;;  %11285 = vmatprep.subr.bf16.mxu0 %v15013_v59 }
 0x35e   :  { %2541 = vmatprep.mubr.f32.mxu1 %v20746_v13  ;;  %4265 = vmatprep.mubr.f32.mxu0 %v20746_v13 }
 0x35f   :  { %2542 = vmatmul.mubr.f32.gmra.mrb[98].mxu1 %v2267_v63  ;;  %4266 = vmatmul.mubr.f32.gmra.mrb[194].mxu0 %v9461_v33  ;;  %v2288_v63 = vld [vmem:[%s20730_s4 + $0xd0] sm:$0xff] }
 0x360   :  { %10735 = vmatpush1.bf16.msra.mxu1 %v15011_v48  ;;  %11287 = vmatpush1.bf16.msra.mxu0 %v15011_v48  ;;  %v9482_v33 = vld [vmem:[%s20730_s4 + $0x3d0] sm:$0xff] }
 0x361   :  { %10737 = vmatprep.subr.bf16.mxu1 %v15021_v41  ;;  %11289 = vmatprep.subr.bf16.mxu0 %v15021_v41 }
 0x362   :  { %2547 = vmatprep.mubr.f32.mxu1 %v20746_v13  ;;  %4271 = vmatprep.mubr.f32.mxu0 %v20746_v13 }
 0x363   :  { %2548 = vmatmul.mubr.f32.gmra.mrb[100].mxu1 %v2270_v27  ;;  %4272 = vmatmul.mubr.f32.gmra.mrb[196].mxu0 %v9464_v60  ;;  %v2291_v27 = vld [vmem:[%s20730_s4 + $0xe8] sm:$0xff] }
 0x364   :  { %10739 = vmatpush1.bf16.msra.mxu1 %v15019_v16  ;;  %11291 = vmatpush1.bf16.msra.mxu0 %v15019_v16  ;;  %v9485_v60 = vld [vmem:[%s20730_s4 + $0x3e8] sm:$0xff] }
 0x365   :  { %10741 = vmatprep.subr.bf16.mxu1 %v15029_v28  ;;  %11293 = vmatprep.subr.bf16.mxu0 %v15029_v28 }
 0x366   :  { %2553 = vmatprep.mubr.f32.mxu1 %v20746_v13  ;;  %4277 = vmatprep.mubr.f32.mxu0 %v20746_v13 }
 0x367   :  { %2554 = vmatmul.mubr.f32.gmra.mrb[102].mxu1 %v2273_v34  ;;  %4278 = vmatmul.mubr.f32.gmra.mrb[198].mxu0 %v9467_v47  ;;  %v2294_v34 = vld [vmem:[%s20730_s4 + $0x100] sm:$0xff] }
 0x368   :  { %10743 = vmatpush1.bf16.msra.mxu1 %v15027_v14  ;;  %11295 = vmatpush1.bf16.msra.mxu0 %v15027_v14  ;;  %v9488_v47 = vld [vmem:[%s20730_s4 + $0x400] sm:$0xff] }
 0x369   :  { %10745 = vmatprep.subr.bf16.mxu1 %v15037_v4  ;;  %11297 = vmatprep.subr.bf16.mxu0 %v15037_v4 }
 0x36a   :  { %2559 = vmatprep.mubr.f32.mxu1 %v20746_v13  ;;  %4283 = vmatprep.mubr.f32.mxu0 %v20746_v13 }
 0x36b   :  { %2560 = vmatmul.mubr.f32.gmra.mrb[104].mxu1 %v2276_v53  ;;  %4284 = vmatmul.mubr.f32.gmra.mrb[200].mxu0 %v9470_v10  ;;  %v2297_v53 = vld [vmem:[%s20730_s4 + $0x118] sm:$0xff] }
 0x36c   :  { %10747 = vmatpush1.bf16.msra.mxu1 %v15035_v32  ;;  %11299 = vmatpush1.bf16.msra.mxu0 %v15035_v32  ;;  %v9491_v10 = vld [vmem:[%s20730_s4 + $0x418] sm:$0xff] }
 0x36d   :  { %10749 = vmatprep.subr.bf16.mxu1 %v15045_v44  ;;  %11301 = vmatprep.subr.bf16.mxu0 %v15045_v44 }
 0x36e   :  { %2565 = vmatprep.mubr.f32.mxu1 %v20746_v13  ;;  %4289 = vmatprep.mubr.f32.mxu0 %v20746_v13 }
 0x36f   :  { %2566 = vmatmul.mubr.f32.gmra.mrb[106].mxu1 %v2279_v43  ;;  %4290 = vmatmul.mubr.f32.gmra.mrb[202].mxu0 %v9473_v23  ;;  %v2300_v43 = vld [vmem:[%s20730_s4 + $0x130] sm:$0xff] }
 0x370   :  { %10751 = vmatpush1.bf16.msra.mxu1 %v15043_v62  ;;  %11303 = vmatpush1.bf16.msra.mxu0 %v15043_v62  ;;  %v9494_v23 = vld [vmem:[%s20730_s4 + $0x430] sm:$0xff] }
 0x371   :  { %10753 = vmatprep.subr.bf16.mxu1 %v15053_v50  ;;  %11305 = vmatprep.subr.bf16.mxu0 %v15053_v50 }
 0x372   :  { %2571 = vmatprep.mubr.f32.mxu1 %v20746_v13  ;;  %4295 = vmatprep.mubr.f32.mxu0 %v20746_v13 }
 0x373   :  { %2572 = vmatmul.mubr.f32.gmra.mrb[108].mxu1 %v2282_v1  ;;  %4296 = vmatmul.mubr.f32.gmra.mrb[204].mxu0 %v9476_v29  ;;  %v2303_v1 = vld [vmem:[%s20730_s4 + $0x148] sm:$0xff] }
 0x374   :  { %10755 = vmatpush1.bf16.msra.mxu1 %v15051_v54  ;;  %11307 = vmatpush1.bf16.msra.mxu0 %v15051_v54  ;;  %v9497_v29 = vld [vmem:[%s20730_s4 + $0x448] sm:$0xff] }
 0x375   :  { %10757 = vmatprep.subr.bf16.mxu1 %v15061_v11  ;;  %11309 = vmatprep.subr.bf16.mxu0 %v15061_v11 }
 0x376   :  { %2577 = vmatprep.mubr.f32.mxu1 %v20746_v13  ;;  %4301 = vmatprep.mubr.f32.mxu0 %v20746_v13 }
 0x377   :  { %2578 = vmatmul.mubr.f32.gmra.mrb[110].mxu1 %v2285_v46  ;;  %4302 = vmatmul.mubr.f32.gmra.mrb[206].mxu0 %v9479_v7  ;;  %v2306_v46 = vld [vmem:[%s20730_s4 + $0x160] sm:$0xff] }
 0x378   :  { %10759 = vmatpush1.bf16.msra.mxu1 %v15059_v0  ;;  %11311 = vmatpush1.bf16.msra.mxu0 %v15059_v0  ;;  %v9500_v7 = vld [vmem:[%s20730_s4 + $0x460] sm:$0xff] }
 0x379   :  { %10761 = vmatprep.subr.bf16.mxu1 %v15069_v39  ;;  %11313 = vmatprep.subr.bf16.mxu0 %v15069_v39 }
 0x37a   :  { %2583 = vmatprep.mubr.f32.mxu1 %v20746_v13  ;;  %4307 = vmatprep.mubr.f32.mxu0 %v20746_v13 }
 0x37b   :  { %2584 = vmatmul.mubr.f32.gmra.mrb[112].mxu1 %v2288_v63  ;;  %4308 = vmatmul.mubr.f32.gmra.mrb[208].mxu0 %v9482_v33  ;;  %v2309_v63 = vld [vmem:[%s20730_s4 + $0x178] sm:$0xff] }
 0x37c   :  { %10763 = vmatpush1.bf16.msra.mxu1 %v15067_v38  ;;  %11315 = vmatpush1.bf16.msra.mxu0 %v15067_v38  ;;  %v9503_v33 = vld [vmem:[%s20730_s4 + $0x478] sm:$0xff] }
 0x37d   :  { %10765 = vmatprep.subr.bf16.mxu1 %v15077_v26  ;;  %11317 = vmatprep.subr.bf16.mxu0 %v15077_v26 }
 0x37e   :  { %2589 = vmatprep.mubr.f32.mxu1 %v20746_v13  ;;  %4313 = vmatprep.mubr.f32.mxu0 %v20746_v13 }
 0x37f   :  { %2590 = vmatmul.mubr.f32.gmra.mrb[114].mxu1 %v2291_v27  ;;  %4314 = vmatmul.mubr.f32.gmra.mrb[210].mxu0 %v9485_v60  ;;  %v9225_v27 = vld [vmem:[%s20730_s4 + $0x188] sm:$0xff] }
 0x380   :  { %10767 = vmatpush1.bf16.msra.mxu1 %v15075_v35  ;;  %11319 = vmatpush1.bf16.msra.mxu0 %v15075_v35  ;;  %v9657_v60 = vld [vmem:[%s20730_s4 + $0x488] sm:$0xff] }
 0x381   :  { %10769 = vmatprep.subr.bf16.mxu1 %v15085_v30  ;;  %11321 = vmatprep.subr.bf16.mxu0 %v15085_v30 }
 0x382   :  { %2595 = vmatprep.mubr.f32.mxu1 %v20746_v13  ;;  %4319 = vmatprep.mubr.f32.mxu0 %v20746_v13 }
 0x383   :  { %2596 = vmatmul.mubr.f32.gmra.mrb[116].mxu1 %v2294_v34  ;;  %4320 = vmatmul.mubr.f32.gmra.mrb[212].mxu0 %v9488_v47  ;;  %v9224_v34 = vld [vmem:[%s20730_s4 + $0x180] sm:$0xff] }
 0x384   :  { %10771 = vmatpush1.bf16.msra.mxu1 %v15083_v36  ;;  %11323 = vmatpush1.bf16.msra.mxu0 %v15083_v36  ;;  %v9656_v47 = vld [vmem:[%s20730_s4 + $0x480] sm:$0xff] }
 0x385   :  { %10773 = vmatprep.subr.bf16.mxu1 %v15093_v3  ;;  %11325 = vmatprep.subr.bf16.mxu0 %v15093_v3 }
 0x386   :  { %2601 = vmatprep.mubr.f32.mxu1 %v20746_v13  ;;  %4325 = vmatprep.mubr.f32.mxu0 %v20746_v13 }
 0x387   :  { %2602 = vmatmul.mubr.f32.gmra.mrb[118].mxu1 %v2297_v53  ;;  %4326 = vmatmul.mubr.f32.gmra.mrb[214].mxu0 %v9491_v10  ;;  %v9228_v53 = vld [vmem:[%s20730_s4 + $0x1a0] sm:$0xff] }
 0x388   :  { %10775 = vmatpush1.bf16.msra.mxu1 %v15091_v15  ;;  %11327 = vmatpush1.bf16.msra.mxu0 %v15091_v15  ;;  %v9660_v10 = vld [vmem:[%s20730_s4 + $0x4a0] sm:$0xff] }
 0x389   :  { %10777 = vmatprep.subr.bf16.mxu1 %v15101_v22  ;;  %11329 = vmatprep.subr.bf16.mxu0 %v15101_v22 }
 0x38a   :  { %2607 = vmatprep.mubr.f32.mxu1 %v20746_v13  ;;  %4331 = vmatprep.mubr.f32.mxu0 %v20746_v13 }
 0x38b   :  { %2608 = vmatmul.mubr.f32.gmra.mrb[120].mxu1 %v2300_v43  ;;  %4332 = vmatmul.mubr.f32.gmra.mrb[216].mxu0 %v9494_v23  ;;  %v9227_v43 = vld [vmem:[%s20730_s4 + $0x198] sm:$0xff] }
 0x38c   :  { %10779 = vmatpush1.bf16.msra.mxu1 %v15099_v9  ;;  %11331 = vmatpush1.bf16.msra.mxu0 %v15099_v9  ;;  %v9659_v23 = vld [vmem:[%s20730_s4 + $0x498] sm:$0xff] }
 0x38d   :  { %10781 = vmatprep.subr.bf16.mxu1 %v15109_v20  ;;  %11333 = vmatprep.subr.bf16.mxu0 %v15109_v20 }
 0x38e   :  { %2613 = vmatprep.mubr.f32.mxu1 %v20746_v13  ;;  %4337 = vmatprep.mubr.f32.mxu0 %v20746_v13 }
 0x38f   :  { %2614 = vmatmul.mubr.f32.gmra.mrb[122].mxu1 %v2303_v1  ;;  %4338 = vmatmul.mubr.f32.gmra.mrb[218].mxu0 %v9497_v29  ;;  %v9231_v1 = vld [vmem:[%s20730_s4 + $0x1b8] sm:$0xff] }
 0x390   :  { %10783 = vmatpush1.bf16.msra.mxu1 %v15107_v58  ;;  %11335 = vmatpush1.bf16.msra.mxu0 %v15107_v58  ;;  %v9663_v29 = vld [vmem:[%s20730_s4 + $0x4b8] sm:$0xff] }
 0x391   :  { %10785 = vmatprep.subr.bf16.mxu1 %v15117_v8  ;;  %11337 = vmatprep.subr.bf16.mxu0 %v15117_v8 }
 0x392   :  { %2619 = vmatprep.mubr.f32.mxu1 %v20746_v13  ;;  %4343 = vmatprep.mubr.f32.mxu0 %v20746_v13 }
 0x393   :  { %2620 = vmatmul.mubr.f32.gmra.mrb[124].mxu1 %v2306_v46  ;;  %4344 = vmatmul.mubr.f32.gmra.mrb[220].mxu0 %v9500_v7  ;;  %v9230_v46 = vld [vmem:[%s20730_s4 + $0x1b0] sm:$0xff] }
 0x394   :  { %10787 = vmatpush1.bf16.msra.mxu1 %v15115_v5  ;;  %11339 = vmatpush1.bf16.msra.mxu0 %v15115_v5  ;;  %v9662_v7 = vld [vmem:[%s20730_s4 + $0x4b0] sm:$0xff] }
 0x395   :  { %10789 = vmatprep.subr.bf16.mxu1 %v15125_v24  ;;  %11341 = vmatprep.subr.bf16.mxu0 %v15125_v24 }
 0x396   :  { %2625 = vmatprep.mubr.f32.mxu1 %v20746_v13  ;;  %4349 = vmatprep.mubr.f32.mxu0 %v20746_v13 }
 0x397   :  { %2626 = vmatmul.mubr.f32.gmra.mrb[126].mxu1 %v2309_v63  ;;  %4350 = vmatmul.mubr.f32.gmra.mrb[222].mxu0 %v9503_v33  ;;  %v9234_v63 = vld [vmem:[%s20730_s4 + $0x1d0] sm:$0xff] }
 0x398   :  { %10791 = vmatpush1.bf16.msra.mxu1 %v15123_v12  ;;  %11343 = vmatpush1.bf16.msra.mxu0 %v15123_v12  ;;  %v9666_v33 = vld [vmem:[%s20730_s4 + $0x4d0] sm:$0xff] }
 0x399   :  { %10793 = vmatprep.subr.bf16.mxu1 %v15148_v19  ;;  %11345 = vmatprep.subr.bf16.mxu0 %v15148_v19 }
 0x39a   :  { %2865 = vmatprep.mubr.f32.mxu1 %v9225_v27  ;;  %5024 = vmatprep.mubr.f32.mxu0 %v9657_v60  ;;  %v9233_v27 = vld [vmem:[%s20730_s4 + $0x1c8] sm:$0xff] }
 0x39b   :  { %2866 = vmatmul.mubr.f32.vlgmr.msra.gmra.mrb[128].mxu1 %v9224_v34  ;;  %5025 = vmatmul.mubr.f32.vlgmr.msra.gmra.mrb[224].mxu0 %v9656_v47  ;;  %v9665_v60 = vld [vmem:[%s20730_s4 + $0x4c8] sm:$0xff] }
 0x39c   :  { %10795 = vmatpush1.bf16.msra.mxu1 %v15143_v42  ;;  %11347 = vmatpush1.bf16.msra.mxu0 %v15143_v42  ;;  %v9237_v34 = vld [vmem:[%s20730_s4 + $0x1e8] sm:$0xff] }
 0x39d   :  { %10797 = vmatprep.subr.bf16.mxu1 %v15180_v31  ;;  %11349 = vmatprep.subr.bf16.mxu0 %v15180_v31  ;;  %v9669_v47 = vld [vmem:[%s20730_s4 + $0x4e8] sm:$0xff] }
 0x39e   :  { %2871 = vmatprep.mubr.f32.mxu1 %v9228_v53  ;;  %5030 = vmatprep.mubr.f32.mxu0 %v9660_v10  ;;  %v9236_v53 = vld [vmem:[%s20730_s4 + $0x1e0] sm:$0xff] }
 0x39f   :  { %2872 = vmatmul.mubr.f32.gmra.mrb[130].mxu1 %v9227_v43  ;;  %5031 = vmatmul.mubr.f32.gmra.mrb[226].mxu0 %v9659_v23  ;;  %v9668_v10 = vld [vmem:[%s20730_s4 + $0x4e0] sm:$0xff] }
 0x3a0   :  { %10799 = vmatpush1.bf16.msra.mxu1 %v15175_v2  ;;  %11351 = vmatpush1.bf16.msra.mxu0 %v15175_v2  ;;  %v9240_v43 = vld [vmem:[%s20730_s4 + $0x200] sm:$0xff] }
 0x3a1   :  { %10801 = vmatprep.subr.bf16.mxu1 %v15212_v52  ;;  %11353 = vmatprep.subr.bf16.mxu0 %v15212_v52  ;;  %v9672_v23 = vld [vmem:[%s20730_s4 + $0x500] sm:$0xff] }
 0x3a2   :  { %2877 = vmatprep.mubr.f32.mxu1 %v9231_v1  ;;  %5036 = vmatprep.mubr.f32.mxu0 %v9663_v29  ;;  %v9239_v1 = vld [vmem:[%s20730_s4 + $0x1f8] sm:$0xff] }
 0x3a3   :  { %2878 = vmatmul.mubr.f32.gmra.mrb[132].mxu1 %v9230_v46  ;;  %5037 = vmatmul.mubr.f32.gmra.mrb[228].mxu0 %v9662_v7  ;;  %v9671_v29 = vld [vmem:[%s20730_s4 + $0x4f8] sm:$0xff] }
 0x3a4   :  { %10803 = vmatpush1.bf16.msra.mxu1 %v15207_v17  ;;  %11355 = vmatpush1.bf16.msra.mxu0 %v15207_v17  ;;  %v9243_v46 = vld [vmem:[%s20730_s4 + $0x218] sm:$0xff] }
 0x3a5   :  { %10805 = vmatprep.subr.bf16.mxu1 %v15244_v21  ;;  %11357 = vmatprep.subr.bf16.mxu0 %v15244_v21  ;;  %v9675_v7 = vld [vmem:[%s20730_s4 + $0x518] sm:$0xff] }
 0x3a6   :  { %2883 = vmatprep.mubr.f32.mxu1 %v9234_v63  ;;  %5042 = vmatprep.mubr.f32.mxu0 %v9666_v33  ;;  %v9242_v63 = vld [vmem:[%s20730_s4 + $0x210] sm:$0xff] }
 0x3a7   :  { %2884 = vmatmul.mubr.f32.gmra.mrb[134].mxu1 %v9233_v27  ;;  %5043 = vmatmul.mubr.f32.gmra.mrb[230].mxu0 %v9665_v60  ;;  %v9674_v33 = vld [vmem:[%s20730_s4 + $0x510] sm:$0xff] }
 0x3a8   :  { %10807 = vmatpush1.bf16.msra.mxu1 %v15239_v25  ;;  %11359 = vmatpush1.bf16.msra.mxu0 %v15239_v25  ;;  %v9246_v27 = vld [vmem:[%s20730_s4 + $0x230] sm:$0xff] }
 0x3a9   :  { %10809 = vmatprep.subr.bf16.mxu1 %v15276_v56  ;;  %11361 = vmatprep.subr.bf16.mxu0 %v15276_v56  ;;  %v9678_v60 = vld [vmem:[%s20730_s4 + $0x530] sm:$0xff] }
 0x3aa   :  { %2889 = vmatprep.mubr.f32.mxu1 %v9237_v34  ;;  %5048 = vmatprep.mubr.f32.mxu0 %v9669_v47  ;;  %v9245_v34 = vld [vmem:[%s20730_s4 + $0x228] sm:$0xff] }
 0x3ab   :  { %2890 = vmatmul.mubr.f32.gmra.mrb[136].mxu1 %v9236_v53  ;;  %5049 = vmatmul.mubr.f32.gmra.mrb[232].mxu0 %v9668_v10  ;;  %v9677_v47 = vld [vmem:[%s20730_s4 + $0x528] sm:$0xff] }
 0x3ac   :  { %10811 = vmatpush1.bf16.msra.mxu1 %v15271_v37  ;;  %11363 = vmatpush1.bf16.msra.mxu0 %v15271_v37  ;;  %v9249_v53 = vld [vmem:[%s20730_s4 + $0x248] sm:$0xff] }
 0x3ad   :  { %10813 = vmatprep.subr.bf16.mxu1 %v15308_v61  ;;  %11365 = vmatprep.subr.bf16.mxu0 %v15308_v61  ;;  %v9681_v10 = vld [vmem:[%s20730_s4 + $0x548] sm:$0xff] }
 0x3ae   :  { %2895 = vmatprep.mubr.f32.mxu1 %v9240_v43  ;;  %5054 = vmatprep.mubr.f32.mxu0 %v9672_v23  ;;  %v9248_v43 = vld [vmem:[%s20730_s4 + $0x240] sm:$0xff] }
 0x3af   :  { %2896 = vmatmul.mubr.f32.gmra.mrb[138].mxu1 %v9239_v1  ;;  %5055 = vmatmul.mubr.f32.gmra.mrb[234].mxu0 %v9671_v29  ;;  %v9680_v23 = vld [vmem:[%s20730_s4 + $0x540] sm:$0xff] }
 0x3b0   :  { %10815 = vmatpush1.bf16.msra.mxu1 %v15303_v18  ;;  %11367 = vmatpush1.bf16.msra.mxu0 %v15303_v18  ;;  %v9252_v1 = vld [vmem:[%s20730_s4 + $0x260] sm:$0xff] }
 0x3b1   :  { %10817 = vmatprep.subr.bf16.mxu1 %v15340_v49  ;;  %11369 = vmatprep.subr.bf16.mxu0 %v15340_v49  ;;  %v9684_v29 = vld [vmem:[%s20730_s4 + $0x560] sm:$0xff] }
 0x3b2   :  { %2901 = vmatprep.mubr.f32.mxu1 %v9243_v46  ;;  %5060 = vmatprep.mubr.f32.mxu0 %v9675_v7  ;;  %v9251_v46 = vld [vmem:[%s20730_s4 + $0x258] sm:$0xff] }
 0x3b3   :  { %2902 = vmatmul.mubr.f32.gmra.mrb[140].mxu1 %v9242_v63  ;;  %5061 = vmatmul.mubr.f32.gmra.mrb[236].mxu0 %v9674_v33  ;;  %v9255_v7 = vld [vmem:[%s20730_s4 + $0x278] sm:$0xff]  ;;  %v9254_v33 = vld [vmem:[%s20730_s4 + $0x270] sm:$0xff] }
 0x3b4   :  { %10819 = vmatpush1.bf16.msra.mxu1 %v15335_v45  ;;  %11371 = vmatpush1.bf16.msra.mxu0 %v15335_v45  ;;  %v9687_v63 = vld [vmem:[%s20730_s4 + $0x578] sm:$0xff] }
 0x3b5   :  { %10821 = vmatprep.subr.bf16.mxu1 %v15372_v57  ;;  %11373 = vmatprep.subr.bf16.mxu0 %v15372_v57 }
 0x3b6   :  { %2907 = vmatprep.mubr.f32.mxu1 %v9246_v27  ;;  %5066 = vmatprep.mubr.f32.mxu0 %v9678_v60  ;;  %v9686_v27 = vld [vmem:[%s20730_s4 + $0x570] sm:$0xff] }
 0x3b7   :  { %2908 = vmatmul.mubr.f32.gmra.mrb[142].mxu1 %v9245_v34  ;;  %5067 = vmatmul.mubr.f32.gmra.mrb[238].mxu0 %v9677_v47  ;;  %v9258_v60 = vld [vmem:[%s20730_s4 + $0x290] sm:$0xff]  ;;  %v9257_v47 = vld [vmem:[%s20730_s4 + $0x288] sm:$0xff] }
 0x3b8   :  { %10823 = vmatpush1.bf16.msra.mxu1 %v15367_v51  ;;  %11375 = vmatpush1.bf16.msra.mxu0 %v15367_v51  ;;  %v9690_v34 = vld [vmem:[%s20730_s4 + $0x590] sm:$0xff] }
 0x3b9   :  { %11497 = vmatprep.subr.bf16.mxu0 %v15005_v6  ;;  %2913 = vmatprep.mubr.f32.mxu1 %v9249_v53  ;;  %v9683_v6 = vld [vmem:[%s20730_s4 + $0x558] sm:$0xff]  ;;  %v9689_v53 = vld [vmem:[%s20730_s4 + $0x588] sm:$0xff] }
 0x3ba   :  { %5072 = vmatprep.mubr.f32.mxu0 %v9681_v10  ;;  %v9261_v10 = vld [vmem:[%s20730_s4 + $0x2a8] sm:$0xff] }
 0x3bb   :  { %2914 = vmatmul.mubr.f32.gmra.mrb[144].mxu1 %v9248_v43  ;;  %5073 = vmatmul.mubr.f32.gmra.mrb[240].mxu0 %v9680_v23  ;;  %v9693_v43 = vld [vmem:[%s20730_s4 + $0x5a8] sm:$0xff]  ;;  %v9260_v23 = vld [vmem:[%s20730_s4 + $0x2a0] sm:$0xff] }
 0x3bc   :  { %2919 = vmatprep.mubr.f32.mxu1 %v9252_v1  ;;  %5078 = vmatprep.mubr.f32.mxu0 %v9684_v29  ;;  %v9692_v1 = vld [vmem:[%s20730_s4 + $0x5a0] sm:$0xff] }
 0x3bd   :  { %v9264_v29 = vld [vmem:[%s20730_s4 + $0x2c0] sm:$0xff] }
 0x3bf   :  { %2920 = vmatmul.mubr.f32.gmra.mrb[146].mxu1 %v9251_v46  ;;  %5079 = vmatmul.mubr.f32.gmra.mrb[242].mxu0 %v9683_v6  ;;  %v9696_v46 = vld [vmem:[%s20730_s4 + $0x5c0] sm:$0xff]  ;;  %v9263_v6 = vld [vmem:[%s20730_s4 + $0x2b8] sm:$0xff] }
 0x3c0   :  { %2925 = vmatprep.mubr.f32.mxu1 %v9255_v7  ;;  %5084 = vmatprep.mubr.f32.mxu0 %v9687_v63  ;;  %v9695_v7 = vld [vmem:[%s20730_s4 + $0x5b8] sm:$0xff] }
 0x3c1   :  { %v9267_v63 = vld [vmem:[%s20730_s4 + $0x2d8] sm:$0xff] }
 0x3c3   :  { %2926 = vmatmul.mubr.f32.gmra.mrb[148].mxu1 %v9254_v33  ;;  %5085 = vmatmul.mubr.f32.gmra.mrb[244].mxu0 %v9686_v27  ;;  %v9699_v33 = vld [vmem:[%s20730_s4 + $0x5d8] sm:$0xff]  ;;  %v9266_v27 = vld [vmem:[%s20730_s4 + $0x2d0] sm:$0xff] }
 0x3c4   :  { %2931 = vmatprep.mubr.f32.mxu1 %v9258_v60  ;;  %5090 = vmatprep.mubr.f32.mxu0 %v9690_v34  ;;  %v9698_v60 = vld [vmem:[%s20730_s4 + $0x5d0] sm:$0xff] }
 0x3c5   :  { %v9270_v34 = vld [vmem:[%s20730_s4 + $0x2f0] sm:$0xff] }
 0x3c7   :  { %2932 = vmatmul.mubr.f32.gmra.mrb[150].mxu1 %v9257_v47  ;;  %5091 = vmatmul.mubr.f32.gmra.mrb[246].mxu0 %v9689_v53  ;;  %v9702_v47 = vld [vmem:[%s20730_s4 + $0x5f0] sm:$0xff]  ;;  %v9269_v53 = vld [vmem:[%s20730_s4 + $0x2e8] sm:$0xff] }
 0x3c8   :  { %2937 = vmatprep.mubr.f32.mxu1 %v9261_v10  ;;  %5096 = vmatprep.mubr.f32.mxu0 %v9693_v43  ;;  %v9701_v10 = vld [vmem:[%s20730_s4 + $0x5e8] sm:$0xff]  ;;  %v9226_v43 = vld [vmem:[%s20730_s4 + $0x190] sm:$0xff] }
 0x3cb   :  { %2938 = vmatmul.mubr.f32.gmra.mrb[152].mxu1 %v9260_v23  ;;  %5097 = vmatmul.mubr.f32.gmra.mrb[248].mxu0 %v9692_v1  ;;  %v9658_v23 = vld [vmem:[%s20730_s4 + $0x490] sm:$0xff]  ;;  %v9229_v1 = vld [vmem:[%s20730_s4 + $0x1a8] sm:$0xff] }
 0x3cc   :  { %2943 = vmatprep.mubr.f32.mxu1 %v9264_v29  ;;  %5102 = vmatprep.mubr.f32.mxu0 %v9696_v46  ;;  %v9661_v29 = vld [vmem:[%s20730_s4 + $0x4a8] sm:$0xff]  ;;  %v9664_v46 = vld [vmem:[%s20730_s4 + $0x4c0] sm:$0xff] }
 0x3cf   :  { %2944 = vmatmul.mubr.f32.gmra.mrb[154].mxu1 %v9263_v6  ;;  %5103 = vmatmul.mubr.f32.gmra.mrb[250].mxu0 %v9695_v7  ;;  %v9272_v6 = vld [vmem:[%s20731_s5 + $0x3c0] sm:$0xff]  ;;  %v9673_v7 = vld [vmem:[%s20730_s4 + $0x508] sm:$0xff] }
 0x3d0   :  { %2949 = vmatprep.mubr.f32.mxu1 %v9267_v63  ;;  %5108 = vmatprep.mubr.f32.mxu0 %v9699_v33  ;;  %v9276_v33 = vld [vmem:[%s20731_s5 + $0x3e0] sm:$0xff] }
 0x3d3   :  { %2950 = vmatmul.mubr.f32.gmra.mrb[156].mxu1 %v9266_v27  ;;  %5109 = vmatmul.mubr.f32.gmra.mrb[252].mxu0 %v9698_v60  ;;  %v9281_v27 = vld [vmem:[%s20731_s5 + $0x408] sm:$0xff] }
 0x3d4   :  { %2955 = vmatprep.mubr.f32.mxu1 %v9270_v34  ;;  %5114 = vmatprep.mubr.f32.mxu0 %v9702_v47  ;;  %v9285_v60 = vld [vmem:[%s20731_s5 + $0x428] sm:$0xff]  ;;  %v9676_v34 = vld [vmem:[%s20730_s4 + $0x520] sm:$0xff] }
 0x3d5   :  { %v10828_v47 = vpack.c.bf16 %v9285_v60, %v9281_v27  ;;  %v9317_v60 = vld [vmem:[%s20731_s5 + $0x528] sm:$0xff] }
 0x3d7   :  { %2956 = vmatmul.mubr.f32.gmra.mrb[158].mxu1 %v9269_v53  ;;  %5115 = vmatmul.mubr.f32.gmra.mrb[254].mxu0 %v9701_v10  ;;  %v9284_v53 = vld [vmem:[%s20731_s5 + $0x420] sm:$0xff]  ;;  %v9679_v10 = vld [vmem:[%s20730_s4 + $0x538] sm:$0xff] }
 0x3d8   :  { %3026 = vmatprep.mubr.f32.mxu1 %v20746_v13  ;;  %5185 = vmatprep.mubr.f32.mxu0 %v20746_v13 }
 0x3db   :  { %3027 = vmatmul.mubr.f32.vlgmr.msra.gmra.mrb[128].mxu1 %v9226_v43  ;;  %5186 = vmatmul.mubr.f32.vlgmr.msra.gmra.mrb[224].mxu0 %v9658_v23  ;;  %v9293_v23 = vld [vmem:[%s20731_s5 + $0x468] sm:$0xff] }
 0x3dc   :  { %11499 = vmatpush1.bf16.msra.mxu0 %v15003_v55  ;;  %3032 = vmatprep.mubr.f32.mxu1 %v20746_v13  ;;  %v9232_v55 = vld [vmem:[%s20730_s4 + $0x1c0] sm:$0xff] }
 0x3dd   :  { %11501 = vmatprep.subr.bf16.mxu0 %v15013_v59  ;;  %5191 = vmatprep.mubr.f32.mxu0 %v20746_v13  ;;  %v9667_v59 = vld [vmem:[%s20730_s4 + $0x4d8] sm:$0xff] }
 0x3df   :  { %3033 = vmatmul.mubr.f32.gmra.mrb[130].mxu1 %v9229_v1  ;;  %5192 = vmatmul.mubr.f32.gmra.mrb[226].mxu0 %v9661_v29  ;;  %v9682_v1 = vld [vmem:[%s20730_s4 + $0x550] sm:$0xff] }
 0x3e0   :  { %11503 = vmatpush1.bf16.msra.mxu0 %v15011_v48  ;;  %3038 = vmatprep.mubr.f32.mxu1 %v20746_v13  ;;  %v9235_v48 = vld [vmem:[%s20730_s4 + $0x1d8] sm:$0xff] }
 0x3e1   :  { %11505 = vmatprep.subr.bf16.mxu0 %v15021_v41  ;;  %5197 = vmatprep.mubr.f32.mxu0 %v20746_v13  ;;  %v9670_v41 = vld [vmem:[%s20730_s4 + $0x4f0] sm:$0xff] }
 0x3e3   :  { %3039 = vmatmul.mubr.f32.gmra.mrb[132].mxu1 %v9232_v55  ;;  %5198 = vmatmul.mubr.f32.gmra.mrb[228].mxu0 %v9664_v46  ;;  %v9292_v55 = vld [vmem:[%s20731_s5 + $0x460] sm:$0xff]  ;;  %v9685_v46 = vld [vmem:[%s20730_s4 + $0x568] sm:$0xff] }
 0x3e4   :  { %11507 = vmatpush1.bf16.msra.mxu0 %v15019_v16  ;;  %3044 = vmatprep.mubr.f32.mxu1 %v20746_v13  ;;  %v9238_v16 = vld [vmem:[%s20730_s4 + $0x1f0] sm:$0xff] }
 0x3e5   :  { %11509 = vmatprep.subr.bf16.mxu0 %v15029_v28  ;;  %5203 = vmatprep.mubr.f32.mxu0 %v20746_v13  ;;  %v9277_v28 = vld [vmem:[%s20731_s5 + $0x3e8] sm:$0xff] }
 0x3e7   :  { %3045 = vmatmul.mubr.f32.gmra.mrb[134].mxu1 %v9235_v48  ;;  %5204 = vmatmul.mubr.f32.gmra.mrb[230].mxu0 %v9667_v59  ;;  %v9301_v59 = vld [vmem:[%s20731_s5 + $0x4a8] sm:$0xff] }
 0x3e8   :  { %11511 = vmatpush1.bf16.msra.mxu0 %v15027_v14  ;;  %3050 = vmatprep.mubr.f32.mxu1 %v20746_v13  ;;  %v9273_v14 = vld [vmem:[%s20731_s5 + $0x3c8] sm:$0xff] }
 0x3e9   :  { %11513 = vmatprep.subr.bf16.mxu0 %v15037_v4  ;;  %5209 = vmatprep.mubr.f32.mxu0 %v20746_v13  ;;  %v9241_v4 = vld [vmem:[%s20730_s4 + $0x208] sm:$0xff]  ;;  %v10824_v63 = vpack.c.bf16 %v9277_v28, %v9273_v14  ;;  %v9300_v14 = vld [vmem:[%s20731_s5 + $0x4a0] sm:$0xff]  ;;  %v9691_v28 = vld [vmem:[%s20730_s4 + $0x598] sm:$0xff] }
 0x3eb   :  { %3051 = vmatmul.mubr.f32.gmra.mrb[136].mxu1 %v9238_v16  ;;  %5210 = vmatmul.mubr.f32.gmra.mrb[232].mxu0 %v9670_v41  ;;  %v9688_v16 = vld [vmem:[%s20730_s4 + $0x580] sm:$0xff] }
 0x3ec   :  { %11515 = vmatpush1.bf16.msra.mxu0 %v15035_v32  ;;  %3056 = vmatprep.mubr.f32.mxu1 %v20746_v13  ;;  %v10826_v32 = vpack.c.bf16 %v9276_v33, %v9272_v6  ;;  %v9308_v33 = vld [vmem:[%s20731_s5 + $0x4e0] sm:$0xff] }
 0x3ed   :  { %11517 = vmatprep.subr.bf16.mxu0 %v15045_v44  ;;  %5215 = vmatprep.mubr.f32.mxu0 %v20746_v13  ;;  %v9244_v44 = vld [vmem:[%s20730_s4 + $0x220] sm:$0xff] }
 0x3ee   :  { %10825 = vmatprep.subr.bf16.mxu1 %v10824_v63 }
 0x3ef   :  { %3057 = vmatmul.mubr.f32.gmra.mrb[138].mxu1 %v9241_v4  ;;  %5216 = vmatmul.mubr.f32.gmra.mrb[234].mxu0 %v9673_v7  ;;  %v9309_v4 = vld [vmem:[%s20731_s5 + $0x4e8] sm:$0xff]  ;;  %v9694_v7 = vld [vmem:[%s20730_s4 + $0x5b0] sm:$0xff] }
 0x3f0   :  { %11519 = vmatpush1.bf16.msra.mxu0 %v15043_v62  ;;  %3062 = vmatprep.mubr.f32.mxu1 %v20746_v13  ;;  %v9280_v62 = vld [vmem:[%s20731_s5 + $0x400] sm:$0xff] }
 0x3f1   :  { %11521 = vmatprep.subr.bf16.mxu0 %v15053_v50  ;;  %5221 = vmatprep.mubr.f32.mxu0 %v20746_v13  ;;  %v9247_v50 = vld [vmem:[%s20730_s4 + $0x238] sm:$0xff]  ;;  %v10830_v43 = vpack.c.bf16 %v9284_v53, %v9280_v62  ;;  %v9321_v62 = vld [vmem:[%s20731_s5 + $0x548] sm:$0xff] }
 0x3f2   :  { %10827 = vmatpush1.bf16.msra.mxu1 %v10826_v32  ;;  %v9697_v32 = vld [vmem:[%s20730_s4 + $0x5c8] sm:$0xff]  ;;  %v9271_v53 = vld [vmem:[%s20730_s4 + $0x2f8] sm:$0xff] }
 0x3f3   :  { %3063 = vmatmul.mubr.f32.gmra.mrb[140].mxu1 %v9244_v44  ;;  %5222 = vmatmul.mubr.f32.gmra.mrb[236].mxu0 %v9676_v34  ;;  %v9700_v44 = vld [vmem:[%s20730_s4 + $0x5e0] sm:$0xff] }
 0x3f4   :  { %11523 = vmatpush1.bf16.msra.mxu0 %v15051_v54  ;;  %3068 = vmatprep.mubr.f32.mxu1 %v20746_v13  ;;  %v9289_v54 = vld [vmem:[%s20731_s5 + $0x448] sm:$0xff] }
 0x3f5   :  { %11525 = vmatprep.subr.bf16.mxu0 %v15061_v11  ;;  %5227 = vmatprep.mubr.f32.mxu0 %v20746_v13  ;;  %v9250_v11 = vld [vmem:[%s20730_s4 + $0x250] sm:$0xff]  ;;  %v10832_v29 = vpack.c.bf16 %v9293_v23, %v9289_v54  ;;  %v9320_v54 = vld [vmem:[%s20731_s5 + $0x540] sm:$0xff] }
 0x3f6   :  { %10829 = vmatprep.subr.bf16.mxu1 %v10828_v47  ;;  %v9316_v47 = vld [vmem:[%s20731_s5 + $0x520] sm:$0xff] }
 0x3f7   :  { %3069 = vmatmul.mubr.f32.gmra.mrb[142].mxu1 %v9247_v50  ;;  %5228 = vmatmul.mubr.f32.gmra.mrb[238].mxu0 %v9679_v10  ;;  %v9703_v50 = vld [vmem:[%s20730_s4 + $0x5f8] sm:$0xff]  ;;  %v9857_v10 = vld [vmem:[%s20730_s4 + $0x608] sm:$0xff]  ;;  %v9324_v23 = vld [vmem:[%s20731_s5 + $0x560] sm:$0xff] }
 0x3f8   :  { %11527 = vmatpush1.bf16.msra.mxu0 %v15059_v0  ;;  %3074 = vmatprep.mubr.f32.mxu1 %v20746_v13  ;;  %v9288_v0 = vld [vmem:[%s20731_s5 + $0x440] sm:$0xff] }
 0x3f9   :  { %11529 = vmatprep.subr.bf16.mxu0 %v15069_v39  ;;  %5233 = vmatprep.mubr.f32.mxu0 %v20746_v13  ;;  %v9253_v39 = vld [vmem:[%s20730_s4 + $0x268] sm:$0xff]  ;;  %v10834_v48 = vpack.c.bf16 %v9292_v55, %v9288_v0  ;;  %v9328_v55 = vld [vmem:[%s20731_s5 + $0x580] sm:$0xff] }
 0x3fa   :  { %10831 = vmatpush1.bf16.msra.mxu1 %v10830_v43 }
 0x3fb   :  { %3075 = vmatmul.mubr.f32.gmra.mrb[144].mxu1 %v9250_v11  ;;  %5234 = vmatmul.mubr.f32.gmra.mrb[240].mxu0 %v9682_v1  ;;  %v9333_v11 = vld [vmem:[%s20731_s5 + $0x5a8] sm:$0xff]  ;;  %v9856_v1 = vld [vmem:[%s20730_s4 + $0x600] sm:$0xff] }
 0x3fc   :  { %11531 = vmatpush1.bf16.msra.mxu0 %v15067_v38  ;;  %3080 = vmatprep.mubr.f32.mxu1 %v20746_v13  ;;  %v9297_v38 = vld [vmem:[%s20731_s5 + $0x488] sm:$0xff] }
 0x3fd   :  { %11533 = vmatprep.subr.bf16.mxu0 %v15077_v26  ;;  %5239 = vmatprep.mubr.f32.mxu0 %v20746_v13  ;;  %v9256_v26 = vld [vmem:[%s20730_s4 + $0x280] sm:$0xff]  ;;  %v10836_v41 = vpack.c.bf16 %v9301_v59, %v9297_v38 }
 0x3fe   :  { %10833 = vmatprep.subr.bf16.mxu1 %v10832_v29  ;;  %v10850_v29 = vpack.c.bf16 %v9324_v23, %v9320_v54  ;;  %v9336_v38 = vld [vmem:[%s20731_s5 + $0x5c0] sm:$0xff] }
 0x3ff   :  { %3081 = vmatmul.mubr.f32.gmra.mrb[146].mxu1 %v9253_v39  ;;  %5240 = vmatmul.mubr.f32.gmra.mrb[242].mxu0 %v9685_v46  ;;  %v9332_v39 = vld [vmem:[%s20731_s5 + $0x5a0] sm:$0xff] }
 0x400   :  { %11535 = vmatpush1.bf16.msra.mxu0 %v15075_v35  ;;  %3086 = vmatprep.mubr.f32.mxu1 %v20746_v13  ;;  %v9296_v35 = vld [vmem:[%s20731_s5 + $0x480] sm:$0xff]  ;;  %v10854_v46 = vpack.c.bf16 %v9332_v39, %v9328_v55 }
 0x401   :  { %11537 = vmatprep.subr.bf16.mxu0 %v15085_v30  ;;  %5245 = vmatprep.mubr.f32.mxu0 %v20746_v13  ;;  %v9259_v30 = vld [vmem:[%s20730_s4 + $0x298] sm:$0xff]  ;;  %v10838_v6 = vpack.c.bf16 %v9300_v14, %v9296_v35  ;;  %v9340_v59 = vld [vmem:[%s20731_s5 + $0x5e0] sm:$0xff]  ;;  %v9353_v14 = vld [vmem:[%s20731_s5 + $0x648] sm:$0xff] }
 0x402   :  { %10835 = vmatpush1.bf16.msra.mxu1 %v10834_v48  ;;  %v9348_v35 = vld [vmem:[%s20731_s5 + $0x620] sm:$0xff] }
 0x403   :  { %3087 = vmatmul.mubr.f32.gmra.mrb[148].mxu1 %v9256_v26  ;;  %5246 = vmatmul.mubr.f32.gmra.mrb[244].mxu0 %v9688_v16  ;;  %v9345_v26 = vld [vmem:[%s20731_s5 + $0x608] sm:$0xff] }
 0x404   :  { %11539 = vmatpush1.bf16.msra.mxu0 %v15083_v36  ;;  %3092 = vmatprep.mubr.f32.mxu1 %v20746_v13  ;;  %v9305_v36 = vld [vmem:[%s20731_s5 + $0x4c8] sm:$0xff] }
 0x405   :  { %11541 = vmatprep.subr.bf16.mxu0 %v15093_v3  ;;  %5251 = vmatprep.mubr.f32.mxu0 %v20746_v13  ;;  %v9262_v3 = vld [vmem:[%s20730_s4 + $0x2b0] sm:$0xff]  ;;  %v10840_v63 = vpack.c.bf16 %v9309_v4, %v9305_v36  ;;  %v9361_v36 = vld [vmem:[%s20731_s5 + $0x688] sm:$0xff] }
 0x406   :  { %10837 = vmatprep.subr.bf16.mxu1 %v10836_v41  ;;  %v9344_v41 = vld [vmem:[%s20731_s5 + $0x600] sm:$0xff] }
 0x407   :  { %3093 = vmatmul.mubr.f32.gmra.mrb[150].mxu1 %v9259_v30  ;;  %5252 = vmatmul.mubr.f32.gmra.mrb[246].mxu0 %v9691_v28  ;;  %v9352_v28 = vld [vmem:[%s20731_s5 + $0x640] sm:$0xff] }
 0x408   :  { %11543 = vmatpush1.bf16.msra.mxu0 %v15091_v15  ;;  %3098 = vmatprep.mubr.f32.mxu1 %v20746_v13  ;;  %v9304_v15 = vld [vmem:[%s20731_s5 + $0x4c0] sm:$0xff] }
 0x409   :  { %11545 = vmatprep.subr.bf16.mxu0 %v15101_v22  ;;  %5257 = vmatprep.mubr.f32.mxu0 %v20746_v13  ;;  %v9265_v22 = vld [vmem:[%s20730_s4 + $0x2c8] sm:$0xff]  ;;  %v10842_v27 = vpack.c.bf16 %v9308_v33, %v9304_v15 }
 0x40a   :  { %10839 = vmatpush1.bf16.msra.mxu1 %v10838_v6  ;;  %v9356_v6 = vld [vmem:[%s20731_s5 + $0x660] sm:$0xff] }
 0x40b   :  { %3099 = vmatmul.mubr.f32.gmra.mrb[152].mxu1 %v9262_v3  ;;  %5258 = vmatmul.mubr.f32.gmra.mrb[248].mxu0 %v9694_v7  ;;  %v9360_v3 = vld [vmem:[%s20731_s5 + $0x680] sm:$0xff] }
 0x40c   :  { %11547 = vmatpush1.bf16.msra.mxu0 %v15099_v9  ;;  %3104 = vmatprep.mubr.f32.mxu1 %v20746_v13  ;;  %v9313_v9 = vld [vmem:[%s20731_s5 + $0x508] sm:$0xff]  ;;  %v9364_v7 = vld [vmem:[%s20731_s5 + $0x6a0] sm:$0xff] }
 0x40d   :  { %11549 = vmatprep.subr.bf16.mxu0 %v15109_v20  ;;  %5263 = vmatprep.mubr.f32.mxu0 %v20746_v13  ;;  %v9268_v20 = vld [vmem:[%s20730_s4 + $0x2e0] sm:$0xff]  ;;  %v10844_v34 = vpack.c.bf16 %v9317_v60, %v9313_v9 }
 0x40e   :  { %10841 = vmatprep.subr.bf16.mxu1 %v10840_v63  ;;  %v9369_v63 = vld [vmem:[%s20731_s5 + $0x6c8] sm:$0xff] }
 0x40f   :  { %3105 = vmatmul.mubr.f32.gmra.mrb[154].mxu1 %v9265_v22  ;;  %5264 = vmatmul.mubr.f32.gmra.mrb[250].mxu0 %v9697_v32  ;;  %v9368_v22 = vld [vmem:[%s20731_s5 + $0x6c0] sm:$0xff] }
 0x410   :  { %11551 = vmatpush1.bf16.msra.mxu0 %v15107_v58  ;;  %3110 = vmatprep.mubr.f32.mxu1 %v20746_v13  ;;  %v9312_v58 = vld [vmem:[%s20731_s5 + $0x500] sm:$0xff] }
 0x411   :  { %11553 = vmatprep.subr.bf16.mxu0 %v15117_v8  ;;  %5269 = vmatprep.mubr.f32.mxu0 %v20746_v13  ;;  %v9325_v8 = vld [vmem:[%s20731_s5 + $0x568] sm:$0xff]  ;;  %v10846_v43 = vpack.c.bf16 %v9316_v47, %v9312_v58  ;;  %v9372_v32 = vld [vmem:[%s20731_s5 + $0x6e0] sm:$0xff] }
 0x412   :  { %10843 = vmatpush1.bf16.msra.mxu1 %v10842_v27  ;;  %v10874_v9 = vpack.c.bf16 %v9372_v32, %v9368_v22 }
 0x413   :  { %3111 = vmatmul.mubr.f32.gmra.mrb[156].mxu1 %v9268_v20  ;;  %5270 = vmatmul.mubr.f32.gmra.mrb[252].mxu0 %v9700_v44  ;;  %v9376_v44 = vld [vmem:[%s20731_s5 + $0x700] sm:$0xff] }
 0x414   :  { %11555 = vmatpush1.bf16.msra.mxu0 %v15115_v5  ;;  %3116 = vmatprep.mubr.f32.mxu1 %v20746_v13  ;;  %v10848_v5 = vpack.c.bf16 %v9325_v8, %v9321_v62 }
 0x415   :  { %11557 = vmatprep.subr.bf16.mxu0 %v15125_v24  ;;  %5275 = vmatprep.mubr.f32.mxu0 %v20746_v13  ;;  %v9329_v24 = vld [vmem:[%s20731_s5 + $0x588] sm:$0xff]  ;;  %v9362_v13 = vld [vmem:[%s20731_s5 + $0x690] sm:$0xff] }
 0x416   :  { %10845 = vmatprep.subr.bf16.mxu1 %v10844_v34  ;;  %v10852_v0 = vpack.c.bf16 %v9333_v11, %v9329_v24  ;;  %v9380_v34 = vld [vmem:[%s20731_s5 + $0x720] sm:$0xff] }
 0x417   :  { %3117 = vmatmul.mubr.f32.gmra.mrb[158].mxu1 %v9271_v53  ;;  %5276 = vmatmul.mubr.f32.gmra.mrb[254].mxu0 %v9703_v50  ;;  %v10878_v47 = vpack.c.bf16 %v9380_v34, %v9376_v44  ;;  %v9384_v53 = vld [vmem:[%s20731_s5 + $0x740] sm:$0xff]  ;;  %v9299_v44 = vld [vmem:[%s20731_s5 + $0x498] sm:$0xff] }
 0x418   :  { %11559 = vmatpush1.bf16.msra.mxu0 %v15123_v12  ;;  %5950 = vmatprep.mubr.f32.mxu0 %v9857_v10  ;;  %v9337_v12 = vld [vmem:[%s20731_s5 + $0x5c8] sm:$0xff]  ;;  %v9388_v50 = vld [vmem:[%s20731_s5 + $0x760] sm:$0xff]  ;;  %v9303_v34 = vld [vmem:[%s20731_s5 + $0x4b8] sm:$0xff] }
 0x419   :  { %11561 = vmatprep.subr.bf16.mxu0 %v15148_v19  ;;  %10847 = vmatpush1.bf16.msra.mxu1 %v10846_v43  ;;  %v9341_v19 = vld [vmem:[%s20731_s5 + $0x5e8] sm:$0xff]  ;;  %v10882_v43 = vpack.c.bf16 %v9388_v50, %v9384_v53  ;;  %v9298_v53 = vld [vmem:[%s20731_s5 + $0x490] sm:$0xff] }
 0x41a   :  { %10849 = vmatprep.subr.bf16.mxu1 %v10848_v5  ;;  %v10856_v48 = vpack.c.bf16 %v9341_v19, %v9337_v12  ;;  %v9302_v50 = vld [vmem:[%s20731_s5 + $0x4b0] sm:$0xff] }
 0x41b   :  { %5951 = vmatmul.mubr.f32.vlgmr.msra.gmra.mrb[0].mxu0 %v9856_v1 }
 0x41c   :  { %11563 = vmatpush1.bf16.msra.mxu0 %v15143_v42  ;;  %v9349_v42 = vld [vmem:[%s20731_s5 + $0x628] sm:$0xff] }
 0x41d   :  { %11565 = vmatprep.subr.bf16.mxu0 %v15180_v31  ;;  %10851 = vmatpush1.bf16.msra.mxu1 %v10850_v29  ;;  %v10858_v31 = vpack.c.bf16 %v9340_v59, %v9336_v38  ;;  %v10860_v16 = vpack.c.bf16 %v9349_v42, %v9345_v26 }
 0x41e   :  { %10853 = vmatprep.subr.bf16.mxu1 %v10852_v0 }
 0x420   :  { %11567 = vmatpush1.bf16.msra.mxu0 %v15175_v2  ;;  %v9357_v2 = vld [vmem:[%s20731_s5 + $0x668] sm:$0xff] }
 0x421   :  { %11569 = vmatprep.subr.bf16.mxu0 %v15212_v52  ;;  %10855 = vmatpush1.bf16.msra.mxu1 %v10854_v46  ;;  %v10862_v52 = vpack.c.bf16 %v9348_v35, %v9344_v41  ;;  %v10864_v30 = vpack.c.bf16 %v9357_v2, %v9353_v14 }
 0x422   :  { %10857 = vmatprep.subr.bf16.mxu1 %v10856_v48 }
 0x424   :  { %11571 = vmatpush1.bf16.msra.mxu0 %v15207_v17  ;;  %v9365_v17 = vld [vmem:[%s20731_s5 + $0x6a8] sm:$0xff] }
 0x425   :  { %11573 = vmatprep.subr.bf16.mxu0 %v15244_v21  ;;  %10859 = vmatpush1.bf16.msra.mxu1 %v10858_v31  ;;  %v10866_v21 = vpack.c.bf16 %v9356_v6, %v9352_v28  ;;  %v10868_v4 = vpack.c.bf16 %v9365_v17, %v9361_v36  ;;  %v9274_v28 = vld [vmem:[%s20731_s5 + $0x3d0] sm:$0xff]  ;;  %v9283_v36 = vld [vmem:[%s20731_s5 + $0x418] sm:$0xff] }
 0x426   :  { %10861 = vmatprep.subr.bf16.mxu1 %v10860_v16  ;;  %v9278_v6 = vld [vmem:[%s20731_s5 + $0x3f0] sm:$0xff]  ;;  %v9287_v17 = vld [vmem:[%s20731_s5 + $0x438] sm:$0xff] }
 0x428   :  { %11575 = vmatpush1.bf16.msra.mxu0 %v15239_v25  ;;  %v9373_v25 = vld [vmem:[%s20731_s5 + $0x6e8] sm:$0xff] }
 0x429   :  { %11577 = vmatprep.subr.bf16.mxu0 %v15276_v56  ;;  %10863 = vmatpush1.bf16.msra.mxu1 %v10862_v52  ;;  %v10870_v56 = vpack.c.bf16 %v9364_v7, %v9360_v3  ;;  %v10872_v33 = vpack.c.bf16 %v9373_v25, %v9369_v63  ;;  %v10888_v7 = vpack.c.bf16 %v9287_v17, %v9283_v36  ;;  %v9282_v63 = vld [vmem:[%s20731_s5 + $0x410] sm:$0xff] }
 0x42a   :  { %10865 = vmatprep.subr.bf16.mxu1 %v10864_v30  ;;  %v9286_v25 = vld [vmem:[%s20731_s5 + $0x430] sm:$0xff] }
 0x42b   :  { %v10890_v32 = vpack.c.bf16 %v9286_v25, %v9282_v63  ;;  %v9306_v36 = vld [vmem:[%s20731_s5 + $0x4d0] sm:$0xff] }
 0x42c   :  { %11579 = vmatpush1.bf16.msra.mxu0 %v15271_v37  ;;  %v9377_v37 = vld [vmem:[%s20731_s5 + $0x708] sm:$0xff]  ;;  %v9310_v17 = vld [vmem:[%s20731_s5 + $0x4f0] sm:$0xff] }
 0x42d   :  { %11581 = vmatprep.subr.bf16.mxu0 %v15308_v61  ;;  %10867 = vmatpush1.bf16.msra.mxu1 %v10866_v21  ;;  %v9381_v61 = vld [vmem:[%s20731_s5 + $0x728] sm:$0xff]  ;;  %v10902_v25 = vpack.c.bf16 %v9310_v17, %v9306_v36 }
 0x42e   :  { %v16124_v15 = vpop.f32.mrb[96].mxu1  ;;  %10869 = vmatprep.subr.bf16.mxu1 %v10868_v4  ;;  %v10876_v20 = vpack.c.bf16 %v9381_v61, %v9377_v37  ;;  %v10886_v4 = vpack.c.bf16 %v9278_v6, %v9274_v28 }
 0x42f   :  { %v16132_v27 = vpop.f32.mrb[97].mxu1 }
 0x430   :  { %11583 = vmatpush1.bf16.msra.mxu0 %v15303_v18  ;;  %v9385_v18 = vld [vmem:[%s20731_s5 + $0x748] sm:$0xff] }
 0x431   :  { %11585 = vmatprep.subr.bf16.mxu0 %v15340_v49  ;;  %10871 = vmatpush1.bf16.msra.mxu1 %v10870_v56  ;;  %v9389_v49 = vld [vmem:[%s20731_s5 + $0x768] sm:$0xff]  ;;  %v9291_v56 = vld [vmem:[%s20731_s5 + $0x458] sm:$0xff] }
 0x432   :  { %v16142_v60 = vpop.f32.mrb[98].mxu1  ;;  %10873 = vmatprep.subr.bf16.mxu1 %v10872_v33  ;;  %v10880_v8 = vpack.c.bf16 %v9389_v49, %v9385_v18  ;;  %v9295_v33 = vld [vmem:[%s20731_s5 + $0x478] sm:$0xff] }
 0x433   :  { %v16150_v58 = vpop.f32.mrb[99].mxu1  ;;  %v10892_v61 = vpack.c.bf16 %v9295_v33, %v9291_v56 }
 0x434   :  { %11587 = vmatpush1.bf16.msra.mxu0 %v15335_v45  ;;  %v9275_v45 = vld [vmem:[%s20731_s5 + $0x3d8] sm:$0xff] }
 0x435   :  { %11589 = vmatprep.subr.bf16.mxu0 %v15372_v57  ;;  %10875 = vmatpush1.bf16.msra.mxu1 %v10874_v9  ;;  %v9279_v57 = vld [vmem:[%s20731_s5 + $0x3f8] sm:$0xff]  ;;  %v9290_v9 = vld [vmem:[%s20731_s5 + $0x450] sm:$0xff] }
 0x436   :  { %v16160_v62 = vpop.f32.mrb[100].mxu1  ;;  %10877 = vmatprep.subr.bf16.mxu1 %v10876_v20  ;;  %v10884_v54 = vpack.c.bf16 %v9279_v57, %v9275_v45  ;;  %v9294_v20 = vld [vmem:[%s20731_s5 + $0x470] sm:$0xff]  ;;  %v9307_v45 = vld [vmem:[%s20731_s5 + $0x4d8] sm:$0xff] }
 0x437   :  { %v16168_v10 = vpop.f32.mrb[101].mxu1  ;;  %v10894_v49 = vpack.c.bf16 %v9294_v20, %v9290_v9  ;;  %v9311_v57 = vld [vmem:[%s20731_s5 + $0x4f8] sm:$0xff] }
 0x438   :  { %11591 = vmatpush1.bf16.msra.mxu0 %v15367_v51  ;;  %v10900_v6 = vpack.c.bf16 %v9311_v57, %v9307_v45  ;;  %v9323_v9 = vld [vmem:[%s20731_s5 + $0x558] sm:$0xff] }
 0x439   :  { %10879 = vmatpush1.bf16.msra.mxu1 %v10878_v47  ;;  %v9327_v20 = vld [vmem:[%s20731_s5 + $0x578] sm:$0xff] }
 0x43a   :  { %v16177_v5 = vpop.f32.mrb[102].mxu1  ;;  %10881 = vmatprep.subr.bf16.mxu1 %v10880_v8  ;;  %v10896_v8 = vpack.c.bf16 %v9303_v34, %v9299_v44  ;;  %v9331_v45 = vld [vmem:[%s20731_s5 + $0x598] sm:$0xff] }
 0x43b   :  { %v16179_v23 = vpop.f32.mrb[103].mxu1  ;;  %v9335_v57 = vld [vmem:[%s20731_s5 + $0x5b8] sm:$0xff] }
 0x43c   :  { %v10912_v17 = vpack.c.bf16 %v9335_v57, %v9331_v45 }
 0x43d   :  { %10883 = vmatpush1.bf16.msra.mxu1 %v10882_v43 }
 0x43e   :  { %v16181_v24 = vpop.f32.mrb[104].mxu1  ;;  %10885 = vmatprep.subr.bf16.mxu1 %v10884_v54  ;;  %v10898_v54 = vpack.c.bf16 %v9302_v50, %v9298_v53  ;;  %v9322_v53 = vld [vmem:[%s20731_s5 + $0x550] sm:$0xff] }
 0x43f   :  { %v16183_v11 = vpop.f32.mrb[105].mxu1  ;;  %v9326_v50 = vld [vmem:[%s20731_s5 + $0x570] sm:$0xff] }
 0x442   :  { %v16185_v1 = vpop.f32.mrb[106].mxu1 }
 0x443   :  { %v16187_v29 = vpop.f32.mrb[107].mxu1 }
 0x446   :  { %v16189_v0 = vpop.f32.mrb[108].mxu1 }
 0x447   :  { %v16191_v51 = vpop.f32.mrb[109].mxu1 }
 0x44a   :  { %v16193_v55 = vpop.f32.mrb[110].mxu1 }
 0x44b   :  { %v16195_v39 = vpop.f32.mrb[111].mxu1 }
 0x44e   :  { %v16197_v12 = vpop.f32.mrb[112].mxu1 }
 0x44f   :  { %v16199_v19 = vpop.f32.mrb[113].mxu1 }
 0x452   :  { %v16201_v46 = vpop.f32.mrb[114].mxu1 }
 0x453   :  { %v16203_v48 = vpop.f32.mrb[115].mxu1 }
 0x456   :  { %v16205_v38 = vpop.f32.mrb[116].mxu1 }
 0x457   :  { %20833 = vst [vmem:[#allocation9_spill] sm:$0xff] %v16205_v38  ;;  %v16207_v59 = vpop.f32.mrb[117].mxu1  ;;  %v2644_v38 = vld [vmem:[%s20731_s5 + $0x60] sm:$0xff] }
 0x458   :  { %20834 = vst [vmem:[#allocation7_spill] sm:$0xff] %v16207_v59 }
 0x45a   :  { %v16209_v26 = vpop.f32.mrb[118].mxu1 }
 0x45b   :  { %20835 = vst [vmem:[#allocation11_spill] sm:$0xff] %v16209_v26  ;;  %v16211_v42 = vpop.f32.mrb[119].mxu1 }
 0x45c   :  { %20836 = vst [vmem:[#allocation8_spill] sm:$0xff] %v16211_v42  ;;  %v2640_v42 = vld [vmem:[%s20731_s5 + $0x40] sm:$0xff] }
 0x45e   :  { %v16213_v31 = vpop.f32.mrb[120].mxu1 }
 0x45f   :  { %20837 = vst [vmem:[#allocation13_spill] sm:$0xff] %v16213_v31  ;;  %v16215_v16 = vpop.f32.mrb[121].mxu1  ;;  %v9386_v31 = vld [vmem:[%s20731_s5 + $0x750] sm:$0xff] }
 0x460   :  { %20838 = vst [vmem:[#allocation10_spill] sm:$0xff] %v16215_v16  ;;  %v9390_v16 = vld [vmem:[%s20731_s5 + $0x770] sm:$0xff] }
 0x462   :  { %v16217_v41 = vpop.f32.mrb[122].mxu1 }
 0x463   :  { %20839 = vst [vmem:[#allocation15_spill] sm:$0xff] %v16217_v41  ;;  %v16219_v35 = vpop.f32.mrb[123].mxu1  ;;  %v9378_v41 = vld [vmem:[%s20731_s5 + $0x710] sm:$0xff] }
 0x464   :  { %20840 = vst [vmem:[#allocation12_spill] sm:$0xff] %v16219_v35  ;;  %v9382_v35 = vld [vmem:[%s20731_s5 + $0x730] sm:$0xff] }
 0x466   :  { %v16221_v14 = vpop.f32.mrb[124].mxu1 }
 0x467   :  { %20841 = vst [vmem:[#allocation17_spill] sm:$0xff] %v16221_v14  ;;  %v16223_v2 = vpop.f32.mrb[125].mxu1 }
 0x468   :  { %20842 = vst [vmem:[#allocation14_spill] sm:$0xff] %v16223_v2 }
 0x46a   :  { %v16225_v52 = vpop.f32.mrb[126].mxu1 }
 0x46b   :  { %20843 = vst [vmem:[#allocation19_spill] sm:$0xff] %v16225_v52  ;;  %v16227_v30 = vpop.f32.mrb[127].mxu1  ;;  %v9370_v52 = vld [vmem:[%s20731_s5 + $0x6d0] sm:$0xff] }
 0x46c   :  { %20844 = vst [vmem:[#allocation16_spill] sm:$0xff] %v16227_v30  ;;  %v9374_v30 = vld [vmem:[%s20731_s5 + $0x6f0] sm:$0xff] }
 0x4ae   :  { %v16241_v21 = vpop.f32.mrb[128].mxu1 }
 0x4af   :  { %v16243_v3 = vpop.f32.mrb[129].mxu1 }
 0x4b0   :  { %9392 = vmatprep.mubr.msk.f32.mxu1 %vm3244_vm5, %v16243_v3 }
 0x4b1   :  { %3358 = vmatmul.mubr.f32.vlgmr.msra.gmra.mrb[160].mxu1 %v16241_v21 }
 0x4b2   :  { %v16260_v22 = vpop.f32.mrb[130].mxu1  ;;  %10887 = vmatpush1.bf16.msra.mxu1 %v10886_v4  ;;  %v9315_v4 = vld [vmem:[%s20731_s5 + $0x518] sm:$0xff] }
 0x4b3   :  { %v16262_v37 = vpop.f32.mrb[131].mxu1  ;;  %10889 = vmatprep.subr.bf16.mxu1 %v10888_v7  ;;  %v9319_v7 = vld [vmem:[%s20731_s5 + $0x538] sm:$0xff] }
 0x4b4   :  { %9393 = vmatprep.mubr.msk.f32.mxu1 %vm3244_vm5, %v16262_v37  ;;  %v10904_v33 = vpack.c.bf16 %v9319_v7, %v9315_v4  ;;  %v9330_v4 = vld [vmem:[%s20731_s5 + $0x590] sm:$0xff] }
 0x4b5   :  { %3364 = vmatmul.mubr.f32.gmra.mrb[162].mxu1 %v16260_v22  ;;  %v9334_v7 = vld [vmem:[%s20731_s5 + $0x5b0] sm:$0xff] }
 0x4b6   :  { %v16279_v18 = vpop.f32.mrb[132].mxu1  ;;  %10891 = vmatpush1.bf16.msra.mxu1 %v10890_v32  ;;  %v9314_v32 = vld [vmem:[%s20731_s5 + $0x510] sm:$0xff] }
 0x4b7   :  { %v16281_v47 = vpop.f32.mrb[133].mxu1  ;;  %10893 = vmatprep.subr.bf16.mxu1 %v10892_v61  ;;  %v9318_v61 = vld [vmem:[%s20731_s5 + $0x530] sm:$0xff] }
 0x4b8   :  { %9394 = vmatprep.mubr.msk.f32.mxu1 %vm3244_vm5, %v16281_v47  ;;  %v10906_v34 = vpack.c.bf16 %v9318_v61, %v9314_v32  ;;  %v10914_v61 = vpack.c.bf16 %v9334_v7, %v9330_v4  ;;  %v9346_v4 = vld [vmem:[%s20731_s5 + $0x610] sm:$0xff] }
 0x4b9   :  { %3370 = vmatmul.mubr.f32.gmra.mrb[164].mxu1 %v16279_v18  ;;  %v9350_v7 = vld [vmem:[%s20731_s5 + $0x630] sm:$0xff] }
 0x4ba   :  { %v16298_v43 = vpop.f32.mrb[134].mxu1  ;;  %10895 = vmatpush1.bf16.msra.mxu1 %v10894_v49 }
 0x4bb   :  { %v16300_v28 = vpop.f32.mrb[135].mxu1  ;;  %10897 = vmatprep.subr.bf16.mxu1 %v10896_v8  ;;  %v10908_v8 = vpack.c.bf16 %v9327_v20, %v9323_v9 }
 0x4bc   :  { %9395 = vmatprep.mubr.msk.f32.mxu1 %vm3244_vm5, %v16300_v28 }
 0x4bd   :  { %3376 = vmatmul.mubr.f32.gmra.mrb[166].mxu1 %v16298_v43 }
 0x4be   :  { %v16317_v63 = vpop.f32.mrb[136].mxu1  ;;  %10899 = vmatpush1.bf16.msra.mxu1 %v10898_v54 }
 0x4bf   :  { %v16319_v56 = vpop.f32.mrb[137].mxu1  ;;  %10901 = vmatprep.subr.bf16.mxu1 %v10900_v6  ;;  %v10910_v6 = vpack.c.bf16 %v9326_v50, %v9322_v53  ;;  %v9347_v53 = vld [vmem:[%s20731_s5 + $0x618] sm:$0xff] }
 0x4c0   :  { %9396 = vmatprep.mubr.msk.f32.mxu1 %vm3244_vm5, %v16319_v56  ;;  %v9351_v50 = vld [vmem:[%s20731_s5 + $0x638] sm:$0xff] }
 0x4c1   :  { %3382 = vmatmul.mubr.f32.gmra.mrb[168].mxu1 %v16317_v63 }
 0x4c2   :  { %v16336_v44 = vpop.f32.mrb[138].mxu1  ;;  %10903 = vmatpush1.bf16.msra.mxu1 %v10902_v25  ;;  %v9339_v25 = vld [vmem:[%s20731_s5 + $0x5d8] sm:$0xff] }
 0x4c3   :  { %v16338_v49 = vpop.f32.mrb[139].mxu1  ;;  %10905 = vmatprep.subr.bf16.mxu1 %v10904_v33  ;;  %v9343_v33 = vld [vmem:[%s20731_s5 + $0x5f8] sm:$0xff] }
 0x4c4   :  { %9397 = vmatprep.mubr.msk.f32.mxu1 %vm3244_vm5, %v16338_v49  ;;  %v10916_v20 = vpack.c.bf16 %v9343_v33, %v9339_v25  ;;  %v9355_v25 = vld [vmem:[%s20731_s5 + $0x658] sm:$0xff] }
 0x4c5   :  { %3388 = vmatmul.mubr.f32.gmra.mrb[170].mxu1 %v16336_v44  ;;  %v9359_v33 = vld [vmem:[%s20731_s5 + $0x678] sm:$0xff] }
 0x4c6   :  { %v16355_v54 = vpop.f32.mrb[140].mxu1  ;;  %10907 = vmatpush1.bf16.msra.mxu1 %v10906_v34  ;;  %v9338_v34 = vld [vmem:[%s20731_s5 + $0x5d0] sm:$0xff] }
 0x4c7   :  { %v16357_v36 = vpop.f32.mrb[141].mxu1  ;;  %10909 = vmatprep.subr.bf16.mxu1 %v10908_v8  ;;  %v9342_v8 = vld [vmem:[%s20731_s5 + $0x5f0] sm:$0xff] }
 0x4c8   :  { %9398 = vmatprep.mubr.msk.f32.mxu1 %vm3244_vm5, %v16357_v36  ;;  %v10918_v57 = vpack.c.bf16 %v9342_v8, %v9338_v34  ;;  %v10924_v8 = vpack.c.bf16 %v9359_v33, %v9355_v25 }
 0x4c9   :  { %3394 = vmatmul.mubr.f32.gmra.mrb[172].mxu1 %v16355_v54 }
 0x4ca   :  { %v16374_v32 = vpop.f32.mrb[142].mxu1  ;;  %10911 = vmatpush1.bf16.msra.mxu1 %v10910_v6 }
 0x4cb   :  { %v16376_v9 = vpop.f32.mrb[143].mxu1  ;;  %10913 = vmatprep.subr.bf16.mxu1 %v10912_v17  ;;  %v10920_v17 = vpack.c.bf16 %v9351_v50, %v9347_v53  ;;  %v9354_v53 = vld [vmem:[%s20731_s5 + $0x650] sm:$0xff] }
 0x4cc   :  { %9399 = vmatprep.mubr.msk.f32.mxu1 %vm3244_vm5, %v16376_v9  ;;  %v9358_v50 = vld [vmem:[%s20731_s5 + $0x670] sm:$0xff] }
 0x4cd   :  { %3400 = vmatmul.mubr.f32.gmra.mrb[174].mxu1 %v16374_v32 }
 0x4ce   :  { %v16393_v45 = vpop.f32.mrb[144].mxu1  ;;  %10915 = vmatpush1.bf16.msra.mxu1 %v10914_v61 }
 0x4cf   :  { %v16395_v6 = vpop.f32.mrb[145].mxu1  ;;  %10917 = vmatprep.subr.bf16.mxu1 %v10916_v20  ;;  %v10922_v20 = vpack.c.bf16 %v9350_v7, %v9346_v4  ;;  %v10926_v7 = vpack.c.bf16 %v9358_v50, %v9354_v53  ;;  %v10930_v50 = vpack.c.bf16 %v9366_v40, %v9362_v13  ;;  %v9383_v40 = vld [vmem:[%s20731_s5 + $0x738] sm:$0xff]  ;;  %v9860_v13 = vld [vmem:[%s20730_s4 + $0x620] sm:$0xff] }
 0x4d0   :  { %9400 = vmatprep.mubr.msk.f32.mxu1 %vm3244_vm5, %v16395_v6  ;;  %5956 = vmatprep.mubr.f32.mxu0 %v9860_v13 }
 0x4d1   :  { %3406 = vmatmul.mubr.f32.gmra.mrb[176].mxu1 %v16393_v45 }
 0x4d2   :  { %v16412_v61 = vpop.f32.mrb[146].mxu1  ;;  %10919 = vmatpush1.bf16.msra.mxu1 %v10918_v57  ;;  %v9363_v57 = vld [vmem:[%s20731_s5 + $0x698] sm:$0xff] }
 0x4d3   :  { %v16414_v34 = vpop.f32.mrb[147].mxu1  ;;  %10921 = vmatprep.subr.bf16.mxu1 %v10920_v17  ;;  %v9367_v17 = vld [vmem:[%s20731_s5 + $0x6b8] sm:$0xff] }
 0x4d4   :  { %9401 = vmatprep.mubr.msk.f32.mxu1 %vm3244_vm5, %v16414_v34  ;;  %v10928_v33 = vpack.c.bf16 %v9367_v17, %v9363_v57 }
 0x4d5   :  { %3412 = vmatmul.mubr.f32.gmra.mrb[178].mxu1 %v16412_v61 }
 0x4d6   :  { %v16431_v4 = vpop.f32.mrb[148].mxu1  ;;  %10923 = vmatpush1.bf16.msra.mxu1 %v10922_v20  ;;  %v9371_v20 = vld [vmem:[%s20731_s5 + $0x6d8] sm:$0xff] }
 0x4d7   :  { %v16433_v25 = vpop.f32.mrb[149].mxu1  ;;  %10925 = vmatprep.subr.bf16.mxu1 %v10924_v8  ;;  %v9375_v8 = vld [vmem:[%s20731_s5 + $0x6f8] sm:$0xff] }
 0x4d8   :  { %9402 = vmatprep.mubr.msk.f32.mxu1 %vm3244_vm5, %v16433_v25  ;;  %v10932_v17 = vpack.c.bf16 %v9375_v8, %v9371_v20  ;;  %v10934_v20 = vpack.c.bf16 %v9374_v30, %v9370_v52  ;;  %v9859_v8 = vld [vmem:[%s20730_s4 + $0x618] sm:$0xff] }
 0x4d9   :  { %3418 = vmatmul.mubr.f32.gmra.mrb[180].mxu1 %v16431_v4  ;;  %5957 = vmatmul.mubr.f32.gmra.mrb[2].mxu0 %v9859_v8  ;;  %v9387_v52 = vld [vmem:[%s20731_s5 + $0x758] sm:$0xff] }
 0x4da   :  { %v16450_v53 = vpop.f32.mrb[150].mxu1  ;;  %10927 = vmatpush1.bf16.msra.mxu1 %v10926_v7  ;;  %v9379_v7 = vld [vmem:[%s20731_s5 + $0x718] sm:$0xff] }
 0x4db   :  { %v16452_v57 = vpop.f32.mrb[151].mxu1  ;;  %10929 = vmatprep.subr.bf16.mxu1 %v10928_v33  ;;  %v10936_v2 = vpack.c.bf16 %v9383_v40, %v9379_v7  ;;  %v9391_v30 = vld [vmem:[%s20731_s5 + $0x778] sm:$0xff]  ;;  %v10938_v7 = vpack.c.bf16 %v9382_v35, %v9378_v41  ;;  %v9862_v40 = vld [vmem:[%s20730_s4 + $0x630] sm:$0xff]  ;;  %v2633_v41 = vld [vmem:[%s20731_s5 + $0x8] sm:$0xff] }
 0x4dc   :  { %9403 = vmatprep.mubr.msk.f32.mxu1 %vm3244_vm5, %v16452_v57  ;;  %v10940_v8 = vpack.c.bf16 %v9391_v30, %v9387_v52  ;;  %v2637_v35 = vld [vmem:[%s20731_s5 + $0x28] sm:$0xff]  ;;  %v10942_v52 = vpack.c.bf16 %v9390_v16, %v9386_v31  ;;  %v9868_v16 = vld [vmem:[%s20730_s4 + $0x660] sm:$0xff] }
 0x4dd   :  { %3424 = vmatmul.mubr.f32.gmra.mrb[182].mxu1 %v16450_v53  ;;  %v9865_v30 = vld [vmem:[%s20730_s4 + $0x648] sm:$0xff] }
 0x4de   :  { %v16472_v33 = vpop.f32.mrb[152].mxu1  ;;  %10931 = vmatpush1.bf16.msra.mxu1 %v10930_v50  ;;  %v9863_v50 = vld [vmem:[%s20730_s4 + $0x638] sm:$0xff] }
 0x4df   :  { %v16477_v14 = vpop.f32.mrb[153].mxu1  ;;  %10933 = vmatprep.subr.bf16.mxu1 %v10932_v17  ;;  %5962 = vmatprep.mubr.f32.mxu0 %v9863_v50 }
 0x4e0   :  { %9404 = vmatprep.mubr.msk.f32.mxu1 %vm3244_vm5, %v16477_v14  ;;  %5963 = vmatmul.mubr.f32.gmra.mrb[4].mxu0 %v9862_v40  ;;  %v10944_v40 = vpack.c.bf16 %v2637_v35, %v2633_v41  ;;  %v2632_v41 = vld [vmem:[%s20731_s5] sm:$0xff] }
 0x4e1   :  { %3430 = vmatmul.mubr.f32.gmra.mrb[184].mxu1 %v16472_v33  ;;  %v2636_v35 = vld [vmem:[%s20731_s5 + $0x20] sm:$0xff] }
 0x4e2   :  { %v16497_v17 = vpop.f32.mrb[154].mxu1  ;;  %10935 = vmatpush1.bf16.msra.mxu1 %v10934_v20 }
 0x4e3   :  { %v16502_v13 = vpop.f32.mrb[155].mxu1  ;;  %10937 = vmatprep.subr.bf16.mxu1 %v10936_v2  ;;  %v9866_v2 = vld [vmem:[%s20730_s4 + $0x650] sm:$0xff] }
 0x4e4   :  { %9405 = vmatprep.mubr.msk.f32.mxu1 %vm3244_vm5, %v16502_v13  ;;  %5968 = vmatprep.mubr.f32.mxu0 %v9866_v2  ;;  %v2641_v2 = vld [vmem:[%s20731_s5 + $0x48] sm:$0xff] }
 0x4e5   :  { %3436 = vmatmul.mubr.f32.gmra.mrb[186].mxu1 %v16497_v17  ;;  %5969 = vmatmul.mubr.f32.gmra.mrb[6].mxu0 %v9865_v30  ;;  %v9872_v30 = vld [vmem:[%s20730_s4 + $0x680] sm:$0xff] }
 0x4e6   :  { %v16522_v20 = vpop.f32.mrb[156].mxu1  ;;  %10939 = vmatpush1.bf16.msra.mxu1 %v10938_v7  ;;  %v9869_v7 = vld [vmem:[%s20730_s4 + $0x668] sm:$0xff] }
 0x4e7   :  { %v16527_v50 = vpop.f32.mrb[157].mxu1  ;;  %10941 = vmatprep.subr.bf16.mxu1 %v10940_v8  ;;  %5974 = vmatprep.mubr.f32.mxu0 %v9869_v7  ;;  %v16562_v7 = vpop.f32.mrb[192].mxu0 }
 0x4e8   :  { %9406 = vmatprep.mubr.msk.f32.mxu1 %vm3244_vm5, %v16527_v50  ;;  %20845 = vst [vmem:[#allocation22_spill] sm:$0xff] %v16562_v7  ;;  %v16573_v59 = vpop.f32.mrb[193].mxu0  ;;  %v2652_v7 = vld [vmem:[%s20731_s5 + $0xa0] sm:$0xff] }
 0x4e9   :  { %3442 = vmatmul.mubr.f32.gmra.mrb[188].mxu1 %v16522_v20  ;;  %5975 = vmatmul.mubr.f32.gmra.mrb[8].mxu0 %v9868_v16  ;;  %v9871_v16 = vld [vmem:[%s20730_s4 + $0x678] sm:$0xff] }
 0x4ea   :  { %v16535_v31 = vpop.f32.mrb[158].mxu1  ;;  %10943 = vmatpush1.bf16.msra.mxu1 %v10942_v52  ;;  %v2645_v52 = vld [vmem:[%s20731_s5 + $0x68] sm:$0xff]  ;;  %5980 = vmatprep.mubr.f32.mxu0 %v9872_v30  ;;  %v9874_v30 = vld [vmem:[%s20730_s4 + $0x690] sm:$0xff] }
 0x4eb   :  { %v16540_v8 = vpop.f32.mrb[159].mxu1  ;;  %10945 = vmatprep.subr.bf16.mxu1 %v10944_v40  ;;  %v10946_v40 = vpack.c.bf16 %v2636_v35, %v2632_v41  ;;  %v10948_v26 = vpack.c.bf16 %v2645_v52, %v2641_v2  ;;  %v2653_v41 = vld [vmem:[%s20731_s5 + $0xa8] sm:$0xff]  ;;  %v9875_v35 = vld [vmem:[%s20730_s4 + $0x698] sm:$0xff]  ;;  %v10950_v2 = vpack.c.bf16 %v2644_v38, %v2640_v42  ;;  %v16587_v52 = vpop.f32.mrb[194].mxu0  ;;  %v9878_v42 = vld [vmem:[%s20730_s4 + $0x6b0] sm:$0xff] }
 0x4ec   :  { %9407 = vmatprep.mubr.msk.f32.mxu1 %vm3244_vm5, %v16540_v8  ;;  %v2657_v38 = vld [vmem:[%s20731_s5 + $0xc8] sm:$0xff] }
 0x4ed   :  { %3448 = vmatmul.mubr.f32.gmra.mrb[190].mxu1 %v16535_v31  ;;  %5981 = vmatmul.mubr.f32.gmra.mrb[10].mxu0 %v9871_v16 }
 0x4ee   :  { %9408 = vmatprep.mubr.msk.f32.mxu1 %vm3244_vm5, %v16243_v3  ;;  %v2649_v3 = vld [vmem:[%s20731_s5 + $0x88] sm:$0xff]  ;;  %5986 = vmatprep.mubr.f32.mxu0 %v9875_v35 }
 0x4ef   :  { %v10952_v16 = vpack.c.bf16 %v2653_v41, %v2649_v3  ;;  %v9877_v41 = vld [vmem:[%s20730_s4 + $0x6a8] sm:$0xff] }
 0x4f1   :  { %3519 = vmatmul.mubr.f32.vlgmr.msra.gmra.mrb[192].mxu1 %v16241_v21  ;;  %v2648_v21 = vld [vmem:[%s20731_s5 + $0x80] sm:$0xff]  ;;  %5987 = vmatmul.mubr.f32.gmra.mrb[12].mxu0 %v9874_v30 }
 0x4f2   :  { %9409 = vmatprep.mubr.msk.f32.mxu1 %vm3244_vm5, %v16262_v37  ;;  %10947 = vmatpush1.bf16.msra.mxu1 %v10946_v40  ;;  %v16598_v37 = vpop.f32.mrb[195].mxu0  ;;  %v10954_v40 = vpack.c.bf16 %v2652_v7, %v2648_v21  ;;  %v2660_v30 = vld [vmem:[%s20731_s5 + $0xe0] sm:$0xff]  ;;  %v2665_v7 = vld [vmem:[%s20731_s5 + $0x108] sm:$0xff] }
 0x4f3   :  { %10949 = vmatprep.subr.bf16.mxu1 %v10948_v26  ;;  %v2661_v26 = vld [vmem:[%s20731_s5 + $0xe8] sm:$0xff]  ;;  %v16612_v3 = vpop.f32.mrb[196].mxu0  ;;  %5992 = vmatprep.mubr.f32.mxu0 %v9878_v42 }
 0x4f4   :  { %v10956_v35 = vpack.c.bf16 %v2661_v26, %v2657_v38  ;;  %v9880_v26 = vld [vmem:[%s20730_s4 + $0x6c0] sm:$0xff] }
 0x4f5   :  { %3525 = vmatmul.mubr.f32.gmra.mrb[194].mxu1 %v16260_v22  ;;  %v2656_v22 = vld [vmem:[%s20731_s5 + $0xc0] sm:$0xff]  ;;  %5993 = vmatmul.mubr.f32.gmra.mrb[14].mxu0 %v9877_v41 }
 0x4f6   :  { %9410 = vmatprep.mubr.msk.f32.mxu1 %vm3244_vm5, %v16281_v47  ;;  %10951 = vmatpush1.bf16.msra.mxu1 %v10950_v2  ;;  %v16623_v47 = vpop.f32.mrb[197].mxu0  ;;  %v2669_v2 = vld [vmem:[%s20731_s5 + $0x128] sm:$0xff]  ;;  %v10958_v21 = vpack.c.bf16 %v2660_v30, %v2656_v22  ;;  %v2668_v41 = vld [vmem:[%s20731_s5 + $0x120] sm:$0xff] }
 0x4f7   :  { %10953 = vmatprep.subr.bf16.mxu1 %v10952_v16  ;;  %v9881_v16 = vld [vmem:[%s20730_s4 + $0x6c8] sm:$0xff]  ;;  %v16637_v38 = vpop.f32.mrb[198].mxu0  ;;  %v10960_v42 = vpack.c.bf16 %v2669_v2, %v2665_v7  ;;  %v9884_v22 = vld [vmem:[%s20730_s4 + $0x6e0] sm:$0xff]  ;;  %v9883_v2 = vld [vmem:[%s20730_s4 + $0x6d8] sm:$0xff] }
 0x4f8   :  { %5998 = vmatprep.mubr.f32.mxu0 %v9881_v16 }
 0x4f9   :  { %3531 = vmatmul.mubr.f32.gmra.mrb[196].mxu1 %v16279_v18  ;;  %v2664_v18 = vld [vmem:[%s20731_s5 + $0x100] sm:$0xff]  ;;  %5999 = vmatmul.mubr.f32.gmra.mrb[16].mxu0 %v9880_v26 }
 0x4fa   :  { %9411 = vmatprep.mubr.msk.f32.mxu1 %vm3244_vm5, %v16300_v28  ;;  %10955 = vmatpush1.bf16.msra.mxu1 %v10954_v40  ;;  %v16648_v28 = vpop.f32.mrb[199].mxu0  ;;  %v2673_v40 = vld [vmem:[%s20731_s5 + $0x148] sm:$0xff]  ;;  %v10962_v30 = vpack.c.bf16 %v2668_v41, %v2664_v18  ;;  %v2676_v26 = vld [vmem:[%s20731_s5 + $0x160] sm:$0xff]  ;;  %v9887_v18 = vld [vmem:[%s20730_s4 + $0x6f8] sm:$0xff] }
 0x4fb   :  { %10957 = vmatprep.subr.bf16.mxu1 %v10956_v35  ;;  %v2677_v35 = vld [vmem:[%s20731_s5 + $0x168] sm:$0xff]  ;;  %v16662_v7 = vpop.f32.mrb[200].mxu0  ;;  %6004 = vmatprep.mubr.f32.mxu0 %v9884_v22 }
 0x4fc   :  { %v10964_v16 = vpack.c.bf16 %v2677_v35, %v2673_v40  ;;  %v9886_v35 = vld [vmem:[%s20730_s4 + $0x6f0] sm:$0xff] }
 0x4fd   :  { %3537 = vmatmul.mubr.f32.gmra.mrb[198].mxu1 %v16298_v43  ;;  %v2672_v43 = vld [vmem:[%s20731_s5 + $0x140] sm:$0xff]  ;;  %6005 = vmatmul.mubr.f32.gmra.mrb[18].mxu0 %v9883_v2 }
 0x4fe   :  { %9412 = vmatprep.mubr.msk.f32.mxu1 %vm3244_vm5, %v16319_v56  ;;  %10959 = vmatpush1.bf16.msra.mxu1 %v10958_v21  ;;  %v16673_v56 = vpop.f32.mrb[201].mxu0  ;;  %v2681_v21 = vld [vmem:[%s20731_s5 + $0x188] sm:$0xff]  ;;  %v10966_v41 = vpack.c.bf16 %v2676_v26, %v2672_v43  ;;  %v2684_v2 = vld [vmem:[%s20731_s5 + $0x1a0] sm:$0xff]  ;;  %v9890_v43 = vld [vmem:[%s20730_s4 + $0x710] sm:$0xff] }
 0x4ff   :  { %10961 = vmatprep.subr.bf16.mxu1 %v10960_v42  ;;  %v2685_v42 = vld [vmem:[%s20731_s5 + $0x1a8] sm:$0xff]  ;;  %v16687_v40 = vpop.f32.mrb[202].mxu0  ;;  %6010 = vmatprep.mubr.f32.mxu0 %v9887_v18 }
 0x500   :  { %v10968_v22 = vpack.c.bf16 %v2685_v42, %v2681_v21  ;;  %v9889_v42 = vld [vmem:[%s20730_s4 + $0x708] sm:$0xff] }
 0x501   :  { %3543 = vmatmul.mubr.f32.gmra.mrb[200].mxu1 %v16317_v63  ;;  %v2680_v63 = vld [vmem:[%s20731_s5 + $0x180] sm:$0xff]  ;;  %6011 = vmatmul.mubr.f32.gmra.mrb[20].mxu0 %v9886_v35 }
 0x502   :  { %9413 = vmatprep.mubr.msk.f32.mxu1 %vm3244_vm5, %v16338_v49  ;;  %10963 = vmatpush1.bf16.msra.mxu1 %v10962_v30  ;;  %v16698_v49 = vpop.f32.mrb[203].mxu0  ;;  %v2689_v30 = vld [vmem:[%s20731_s5 + $0x1c8] sm:$0xff]  ;;  %v10970_v26 = vpack.c.bf16 %v2684_v2, %v2680_v63  ;;  %v2692_v35 = vld [vmem:[%s20731_s5 + $0x1e0] sm:$0xff] }
 0x503   :  { %10965 = vmatprep.subr.bf16.mxu1 %v10964_v16  ;;  %v2693_v16 = vld [vmem:[%s20731_s5 + $0x1e8] sm:$0xff]  ;;  %v16712_v21 = vpop.f32.mrb[204].mxu0  ;;  %6016 = vmatprep.mubr.f32.mxu0 %v9890_v43 }
 0x504   :  { %v10972_v18 = vpack.c.bf16 %v2693_v16, %v2689_v30  ;;  %v9893_v63 = vld [vmem:[%s20730_s4 + $0x728] sm:$0xff]  ;;  %v9892_v16 = vld [vmem:[%s20730_s4 + $0x720] sm:$0xff] }
 0x505   :  { %3549 = vmatmul.mubr.f32.gmra.mrb[202].mxu1 %v16336_v44  ;;  %v2688_v44 = vld [vmem:[%s20731_s5 + $0x1c0] sm:$0xff]  ;;  %6017 = vmatmul.mubr.f32.gmra.mrb[22].mxu0 %v9889_v42 }
 0x506   :  { %9414 = vmatprep.mubr.msk.f32.mxu1 %vm3244_vm5, %v16357_v36  ;;  %10967 = vmatpush1.bf16.msra.mxu1 %v10966_v41  ;;  %v16723_v36 = vpop.f32.mrb[205].mxu0  ;;  %v2697_v41 = vld [vmem:[%s20731_s5 + $0x208] sm:$0xff]  ;;  %v10974_v2 = vpack.c.bf16 %v2692_v35, %v2688_v44  ;;  %v2700_v42 = vld [vmem:[%s20731_s5 + $0x220] sm:$0xff] }
 0x507   :  { %10969 = vmatprep.subr.bf16.mxu1 %v10968_v22  ;;  %v2701_v22 = vld [vmem:[%s20731_s5 + $0x228] sm:$0xff]  ;;  %v16737_v30 = vpop.f32.mrb[206].mxu0  ;;  %6022 = vmatprep.mubr.f32.mxu0 %v9893_v63  ;;  %v9896_v44 = vld [vmem:[%s20730_s4 + $0x740] sm:$0xff] }
 0x508   :  { %v10976_v43 = vpack.c.bf16 %v2701_v22, %v2697_v41  ;;  %v9895_v22 = vld [vmem:[%s20730_s4 + $0x738] sm:$0xff] }
 0x509   :  { %3555 = vmatmul.mubr.f32.gmra.mrb[204].mxu1 %v16355_v54  ;;  %v2696_v54 = vld [vmem:[%s20731_s5 + $0x200] sm:$0xff]  ;;  %6023 = vmatmul.mubr.f32.gmra.mrb[24].mxu0 %v9892_v16 }
 0x50a   :  { %9415 = vmatprep.mubr.msk.f32.mxu1 %vm3244_vm5, %v16376_v9  ;;  %10971 = vmatpush1.bf16.msra.mxu1 %v10970_v26  ;;  %v16748_v9 = vpop.f32.mrb[207].mxu0  ;;  %v2705_v26 = vld [vmem:[%s20731_s5 + $0x248] sm:$0xff]  ;;  %v10978_v35 = vpack.c.bf16 %v2700_v42, %v2696_v54  ;;  %v2708_v16 = vld [vmem:[%s20731_s5 + $0x260] sm:$0xff]  ;;  %v9899_v54 = vld [vmem:[%s20730_s4 + $0x758] sm:$0xff] }
 0x50b   :  { %10973 = vmatprep.subr.bf16.mxu1 %v10972_v18  ;;  %v2709_v18 = vld [vmem:[%s20731_s5 + $0x268] sm:$0xff]  ;;  %v16762_v41 = vpop.f32.mrb[208].mxu0  ;;  %6028 = vmatprep.mubr.f32.mxu0 %v9896_v44 }
 0x50c   :  { %v10980_v63 = vpack.c.bf16 %v2709_v18, %v2705_v26  ;;  %v9898_v18 = vld [vmem:[%s20730_s4 + $0x750] sm:$0xff] }
 0x50d   :  { %3561 = vmatmul.mubr.f32.gmra.mrb[206].mxu1 %v16374_v32  ;;  %v2704_v32 = vld [vmem:[%s20731_s5 + $0x240] sm:$0xff]  ;;  %6029 = vmatmul.mubr.f32.gmra.mrb[26].mxu0 %v9895_v22 }
 0x50e   :  { %9416 = vmatprep.mubr.msk.f32.mxu1 %vm3244_vm5, %v16395_v6  ;;  %10975 = vmatpush1.bf16.msra.mxu1 %v10974_v2  ;;  %v16773_v6 = vpop.f32.mrb[209].mxu0  ;;  %v2713_v2 = vld [vmem:[%s20731_s5 + $0x288] sm:$0xff]  ;;  %v10982_v42 = vpack.c.bf16 %v2708_v16, %v2704_v32  ;;  %v2716_v22 = vld [vmem:[%s20731_s5 + $0x2a0] sm:$0xff]  ;;  %v9902_v32 = vld [vmem:[%s20730_s4 + $0x770] sm:$0xff] }
 0x50f   :  { %10977 = vmatprep.subr.bf16.mxu1 %v10976_v43  ;;  %v2717_v43 = vld [vmem:[%s20731_s5 + $0x2a8] sm:$0xff]  ;;  %v16787_v26 = vpop.f32.mrb[210].mxu0  ;;  %6034 = vmatprep.mubr.f32.mxu0 %v9899_v54 }
 0x510   :  { %v10984_v44 = vpack.c.bf16 %v2717_v43, %v2713_v2  ;;  %v9901_v43 = vld [vmem:[%s20730_s4 + $0x768] sm:$0xff] }
 0x511   :  { %3567 = vmatmul.mubr.f32.gmra.mrb[208].mxu1 %v16393_v45  ;;  %v2712_v45 = vld [vmem:[%s20731_s5 + $0x280] sm:$0xff]  ;;  %6035 = vmatmul.mubr.f32.gmra.mrb[28].mxu0 %v9898_v18 }
 0x512   :  { %9417 = vmatprep.mubr.msk.f32.mxu1 %vm3244_vm5, %v16414_v34  ;;  %10979 = vmatpush1.bf16.msra.mxu1 %v10978_v35  ;;  %v16798_v34 = vpop.f32.mrb[211].mxu0  ;;  %v2721_v35 = vld [vmem:[%s20731_s5 + $0x2c8] sm:$0xff]  ;;  %v10986_v16 = vpack.c.bf16 %v2716_v22, %v2712_v45  ;;  %v2724_v18 = vld [vmem:[%s20731_s5 + $0x2e0] sm:$0xff]  ;;  %v20847_v45 = vmov 0.0  }
 0x513   :  { %10981 = vmatprep.subr.bf16.mxu1 %v10980_v63  ;;  %v2725_v63 = vld [vmem:[%s20731_s5 + $0x2e8] sm:$0xff]  ;;  %v16812_v2 = vpop.f32.mrb[212].mxu0  ;;  %6040 = vmatprep.mubr.f32.mxu0 %v9902_v32 }
 0x514   :  { %20846 = vst [vmem:[#allocation18_spill] sm:$0xff] %v16812_v2  ;;  %v10988_v54 = vpack.c.bf16 %v2725_v63, %v2721_v35  ;;  %v9858_v63 = vld [vmem:[%s20730_s4 + $0x610] sm:$0xff] }
 0x515   :  { %3573 = vmatmul.mubr.f32.gmra.mrb[210].mxu1 %v16412_v61  ;;  %v2720_v61 = vld [vmem:[%s20731_s5 + $0x2c0] sm:$0xff]  ;;  %6041 = vmatmul.mubr.f32.gmra.mrb[30].mxu0 %v9901_v43 }
 0x516   :  { %9418 = vmatprep.mubr.msk.f32.mxu1 %vm3244_vm5, %v16433_v25  ;;  %10983 = vmatpush1.bf16.msra.mxu1 %v10982_v42  ;;  %v16823_v25 = vpop.f32.mrb[213].mxu0  ;;  %v2729_v42 = vld [vmem:[%s20731_s5 + $0x308] sm:$0xff]  ;;  %v10990_v22 = vpack.c.bf16 %v2724_v18, %v2720_v61  ;;  %v2728_v43 = vld [vmem:[%s20731_s5 + $0x300] sm:$0xff] }
 0x517   :  { %10985 = vmatprep.subr.bf16.mxu1 %v10984_v44  ;;  %v2733_v44 = vld [vmem:[%s20731_s5 + $0x328] sm:$0xff]  ;;  %6111 = vmatprep.mubr.f32.mxu0 %v20847_v45  ;;  %v16835_v35 = vpop.f32.mrb[214].mxu0 }
 0x518   :  { %20848 = vst [vmem:[#allocation21_spill] sm:$0xff] %v16835_v35  ;;  %v10992_v32 = vpack.c.bf16 %v2733_v44, %v2729_v42  ;;  %v16846_v2 = vpop.f32.mrb[215].mxu0  ;;  %v9861_v18 = vld [vmem:[%s20730_s4 + $0x628] sm:$0xff]  ;;  %v2736_v44 = vld [vmem:[%s20731_s5 + $0x340] sm:$0xff] }
 0x519   :  { %3579 = vmatmul.mubr.f32.gmra.mrb[212].mxu1 %v16431_v4  ;;  %v2732_v4 = vld [vmem:[%s20731_s5 + $0x320] sm:$0xff]  ;;  %6112 = vmatmul.mubr.f32.vlgmr.msra.gmra.mrb[0].mxu0 %v9858_v63  ;;  %v16858_v61 = vpop.f32.mrb[216].mxu0  ;;  %v9521_v35 = vld [vmem:[%s20731_s5 + $0x808] sm:$0xff] }
 0x51a   :  { %9419 = vmatprep.mubr.msk.f32.mxu1 %vm3244_vm5, %v16452_v57  ;;  %10987 = vmatpush1.bf16.msra.mxu1 %v10986_v16  ;;  %v2737_v57 = vld [vmem:[%s20731_s5 + $0x348] sm:$0xff]  ;;  %20849 = vst [vmem:[#allocation24_spill] sm:$0xff] %v16858_v61  ;;  %v16869_v63 = vpop.f32.mrb[217].mxu0  ;;  %v9508_v61 = vld [vmem:[%s20731_s5 + $0x7a0] sm:$0xff] }
 0x51b   :  { %10989 = vmatprep.subr.bf16.mxu1 %v10988_v54  ;;  %v2741_v16 = vld [vmem:[%s20731_s5 + $0x368] sm:$0xff]  ;;  %6117 = vmatprep.mubr.f32.mxu0 %v20847_v45  ;;  %v10994_v54 = vpack.c.bf16 %v2732_v4, %v2728_v43  ;;  %20850 = vst [vmem:[#allocation25_spill] sm:$0xff] %v16869_v63  ;;  %v16881_v43 = vpop.f32.mrb[218].mxu0  ;;  %v9864_v4 = vld [vmem:[%s20730_s4 + $0x640] sm:$0xff] }
 0x51c   :  { %v10996_v42 = vpack.c.bf16 %v2741_v16, %v2737_v57  ;;  %20851 = vst [vmem:[#allocation26_spill] sm:$0xff] %v16881_v43  ;;  %v2744_v16 = vld [vmem:[%s20731_s5 + $0x380] sm:$0xff]  ;;  %v9509_v43 = vld [vmem:[%s20731_s5 + $0x7a8] sm:$0xff] }
 0x51d   :  { %3585 = vmatmul.mubr.f32.gmra.mrb[214].mxu1 %v16450_v53  ;;  %v2740_v53 = vld [vmem:[%s20731_s5 + $0x360] sm:$0xff]  ;;  %6118 = vmatmul.mubr.f32.gmra.mrb[2].mxu0 %v9861_v18  ;;  %v16892_v18 = vpop.f32.mrb[219].mxu0 }
 0x51e   :  { %9420 = vmatprep.mubr.msk.f32.mxu1 %vm3244_vm5, %v16477_v14  ;;  %10991 = vmatpush1.bf16.msra.mxu1 %v10990_v22  ;;  %v2745_v14 = vld [vmem:[%s20731_s5 + $0x388] sm:$0xff]  ;;  %20852 = vst [vmem:[#allocation27_spill] sm:$0xff] %v16892_v18  ;;  %v9504_v18 = vld [vmem:[%s20731_s5 + $0x780] sm:$0xff] }
 0x51f   :  { %10993 = vmatprep.subr.bf16.mxu1 %v10992_v32  ;;  %v2749_v22 = vld [vmem:[%s20731_s5 + $0x3a8] sm:$0xff]  ;;  %6123 = vmatprep.mubr.f32.mxu0 %v20847_v45  ;;  %v10998_v32 = vpack.c.bf16 %v2740_v53, %v2736_v44  ;;  %v16904_v44 = vpop.f32.mrb[220].mxu0  ;;  %v9867_v53 = vld [vmem:[%s20730_s4 + $0x658] sm:$0xff] }
 0x520   :  { %v11000_v57 = vpack.c.bf16 %v2749_v22, %v2745_v14  ;;  %20853 = vst [vmem:[#allocation28_spill] sm:$0xff] %v16904_v44  ;;  %v16909_v22 = vpop.f32.mrb[221].mxu0  ;;  %v2751_v44 = vld [vmem:[%s20731_s5 + $0x3b8] sm:$0xff] }
 0x521   :  { %3591 = vmatmul.mubr.f32.gmra.mrb[216].mxu1 %v16472_v33  ;;  %v2748_v33 = vld [vmem:[%s20731_s5 + $0x3a0] sm:$0xff]  ;;  %6124 = vmatmul.mubr.f32.gmra.mrb[4].mxu0 %v9864_v4  ;;  %20854 = vst [vmem:[#allocation29_spill] sm:$0xff] %v16909_v22  ;;  %v9505_v22 = vld [vmem:[%s20731_s5 + $0x788] sm:$0xff] }
 0x522   :  { %9421 = vmatprep.mubr.msk.f32.mxu1 %vm3244_vm5, %v16502_v13  ;;  %10995 = vmatpush1.bf16.msra.mxu1 %v10994_v54  ;;  %v2635_v13 = vld [vmem:[%s20731_s5 + $0x18] sm:$0xff] }
 0x523   :  { %10997 = vmatprep.subr.bf16.mxu1 %v10996_v42  ;;  %v2639_v54 = vld [vmem:[%s20731_s5 + $0x38] sm:$0xff]  ;;  %6129 = vmatprep.mubr.f32.mxu0 %v20847_v45  ;;  %v11002_v42 = vpack.c.bf16 %v2748_v33, %v2744_v16  ;;  %v9873_v33 = vld [vmem:[%s20730_s4 + $0x688] sm:$0xff] }
 0x524   :  { %v11004_v14 = vpack.c.bf16 %v2639_v54, %v2635_v13  ;;  %v2642_v54 = vld [vmem:[%s20731_s5 + $0x50] sm:$0xff] }
 0x525   :  { %3597 = vmatmul.mubr.f32.gmra.mrb[218].mxu1 %v16497_v17  ;;  %6130 = vmatmul.mubr.f32.gmra.mrb[6].mxu0 %v9867_v53  ;;  %v16915_v17 = vpop.f32.mrb[222].mxu0  ;;  %v2655_v53 = vld [vmem:[%s20731_s5 + $0xb8] sm:$0xff] }
 0x526   :  { %9422 = vmatprep.mubr.msk.f32.mxu1 %vm3244_vm5, %v16527_v50  ;;  %10999 = vmatpush1.bf16.msra.mxu1 %v10998_v32  ;;  %20855 = vst [vmem:[#allocation30_spill] sm:$0xff] %v16915_v17  ;;  %v9870_v50 = vld [vmem:[%s20730_s4 + $0x670] sm:$0xff]  ;;  %v16926_v4 = vpop.f32.mrb[223].mxu0  ;;  %v2743_v17 = vld [vmem:[%s20731_s5 + $0x378] sm:$0xff] }
 0x527   :  { %11001 = vmatprep.subr.bf16.mxu1 %v11000_v57  ;;  %6135 = vmatprep.mubr.f32.mxu0 %v20847_v45  ;;  %v2634_v32 = vld [vmem:[%s20731_s5 + $0x10] sm:$0xff]  ;;  %20856 = vst [vmem:[#allocation31_spill] sm:$0xff] %v16926_v4  ;;  %v2647_v57 = vld [vmem:[%s20731_s5 + $0x78] sm:$0xff] }
 0x528   :  { %v2747_v4 = vld [vmem:[%s20731_s5 + $0x398] sm:$0xff] }
 0x529   :  { %3603 = vmatmul.mubr.f32.gmra.mrb[220].mxu1 %v16522_v20  ;;  %v2638_v20 = vld [vmem:[%s20731_s5 + $0x30] sm:$0xff]  ;;  %6136 = vmatmul.mubr.f32.gmra.mrb[8].mxu0 %v9870_v50  ;;  %v9876_v50 = vld [vmem:[%s20730_s4 + $0x6a0] sm:$0xff] }
 0x52a   :  { %9423 = vmatprep.mubr.msk.f32.mxu1 %vm3244_vm5, %v16540_v8  ;;  %11003 = vmatpush1.bf16.msra.mxu1 %v11002_v42  ;;  %v2643_v8 = vld [vmem:[%s20731_s5 + $0x58] sm:$0xff]  ;;  %v11006_v16 = vpack.c.bf16 %v2638_v20, %v2634_v32  ;;  %v2646_v42 = vld [vmem:[%s20731_s5 + $0x70] sm:$0xff] }
 0x52b   :  { %11005 = vmatprep.subr.bf16.mxu1 %v11004_v14  ;;  %6141 = vmatprep.mubr.f32.mxu0 %v20847_v45  ;;  %v11008_v13 = vpack.c.bf16 %v2647_v57, %v2643_v8  ;;  %v11010_v14 = vpack.c.bf16 %v2646_v42, %v2642_v54  ;;  %v2650_v20 = vld [vmem:[%s20731_s5 + $0x90] sm:$0xff]  ;;  %v2659_v57 = vld [vmem:[%s20731_s5 + $0xd8] sm:$0xff] }
 0x52c   :  { %v2654_v8 = vld [vmem:[%s20731_s5 + $0xb0] sm:$0xff] }
 0x52d   :  { %3609 = vmatmul.mubr.f32.gmra.mrb[222].mxu1 %v16535_v31  ;;  %v2651_v31 = vld [vmem:[%s20731_s5 + $0x98] sm:$0xff]  ;;  %6142 = vmatmul.mubr.f32.gmra.mrb[10].mxu0 %v9873_v33  ;;  %v11014_v33 = vpack.c.bf16 %v2654_v8, %v2650_v20  ;;  %v2658_v42 = vld [vmem:[%s20731_s5 + $0xd0] sm:$0xff] }
 0x52e   :  { %9424 = vmatprep.mubr.msk.f32.mxu1 %vm3244_vm5, %v16132_v27  ;;  %6147 = vmatprep.mubr.f32.mxu0 %v20847_v45  ;;  %v11012_v32 = vpack.c.bf16 %v2655_v53, %v2651_v31  ;;  %v2662_v31 = vld [vmem:[%s20731_s5 + $0xf0] sm:$0xff]  ;;  %v2667_v53 = vld [vmem:[%s20731_s5 + $0x118] sm:$0xff] }
 0x52f   :  { %v2666_v8 = vld [vmem:[%s20731_s5 + $0x110] sm:$0xff] }
 0x531   :  { %3728 = vmatmul.mubr.f32.vlgmr.msra.gmra.mrb[160].mxu1 %v16124_v15  ;;  %6148 = vmatmul.mubr.f32.gmra.mrb[12].mxu0 %v9876_v50  ;;  %v11018_v50 = vpack.c.bf16 %v2662_v31, %v2658_v42  ;;  %v2674_v31 = vld [vmem:[%s20731_s5 + $0x150] sm:$0xff] }
 0x532   :  { %9425 = vmatprep.mubr.msk.f32.mxu1 %vm3244_vm5, %v16150_v58  ;;  %11007 = vmatpush1.bf16.msra.mxu1 %v11006_v16  ;;  %v2663_v16 = vld [vmem:[%s20731_s5 + $0xf8] sm:$0xff] }
 0x533   :  { %11009 = vmatprep.subr.bf16.mxu1 %v11008_v13  ;;  %6153 = vmatprep.mubr.f32.mxu0 %v20847_v45  ;;  %v9879_v13 = vld [vmem:[%s20730_s4 + $0x6b8] sm:$0xff]  ;;  %v11016_v54 = vpack.c.bf16 %v2663_v16, %v2659_v57  ;;  %v2670_v57 = vld [vmem:[%s20731_s5 + $0x130] sm:$0xff] }
 0x534   :  { %v2675_v16 = vld [vmem:[%s20731_s5 + $0x158] sm:$0xff] }
 0x535   :  { %3734 = vmatmul.mubr.f32.gmra.mrb[162].mxu1 %v16142_v60  ;;  %6154 = vmatmul.mubr.f32.gmra.mrb[14].mxu0 %v9879_v13  ;;  %v11022_v13 = vpack.c.bf16 %v2670_v57, %v2666_v8  ;;  %v2682_v57 = vld [vmem:[%s20731_s5 + $0x190] sm:$0xff] }
 0x536   :  { %9426 = vmatprep.mubr.msk.f32.mxu1 %vm3244_vm5, %v16168_v10  ;;  %11011 = vmatpush1.bf16.msra.mxu1 %v11010_v14  ;;  %v2671_v14 = vld [vmem:[%s20731_s5 + $0x138] sm:$0xff] }
 0x537   :  { %11013 = vmatprep.subr.bf16.mxu1 %v11012_v32  ;;  %6159 = vmatprep.mubr.f32.mxu0 %v20847_v45  ;;  %v9882_v32 = vld [vmem:[%s20730_s4 + $0x6d0] sm:$0xff]  ;;  %v11020_v20 = vpack.c.bf16 %v2671_v14, %v2667_v53  ;;  %v2683_v14 = vld [vmem:[%s20731_s5 + $0x198] sm:$0xff] }
 0x538   :  { %v2678_v53 = vld [vmem:[%s20731_s5 + $0x170] sm:$0xff] }
 0x539   :  { %3740 = vmatmul.mubr.f32.gmra.mrb[164].mxu1 %v16160_v62  ;;  %6160 = vmatmul.mubr.f32.gmra.mrb[16].mxu0 %v9882_v32  ;;  %v11026_v32 = vpack.c.bf16 %v2678_v53, %v2674_v31  ;;  %v2690_v53 = vld [vmem:[%s20731_s5 + $0x1d0] sm:$0xff] }
 0x53a   :  { %9427 = vmatprep.mubr.msk.f32.mxu1 %vm3244_vm5, %v16179_v23  ;;  %11015 = vmatpush1.bf16.msra.mxu1 %v11014_v33  ;;  %v2679_v33 = vld [vmem:[%s20731_s5 + $0x178] sm:$0xff] }
 0x53b   :  { %11017 = vmatprep.subr.bf16.mxu1 %v11016_v54  ;;  %6165 = vmatprep.mubr.f32.mxu0 %v20847_v45  ;;  %v9885_v54 = vld [vmem:[%s20730_s4 + $0x6e8] sm:$0xff]  ;;  %v11024_v42 = vpack.c.bf16 %v2679_v33, %v2675_v16  ;;  %v2686_v16 = vld [vmem:[%s20731_s5 + $0x1b0] sm:$0xff]  ;;  %v2691_v33 = vld [vmem:[%s20731_s5 + $0x1d8] sm:$0xff] }
 0x53d   :  { %3746 = vmatmul.mubr.f32.gmra.mrb[166].mxu1 %v16177_v5  ;;  %6166 = vmatmul.mubr.f32.gmra.mrb[18].mxu0 %v9885_v54  ;;  %v11030_v54 = vpack.c.bf16 %v2686_v16, %v2682_v57  ;;  %v2698_v16 = vld [vmem:[%s20731_s5 + $0x210] sm:$0xff] }
 0x53e   :  { %9428 = vmatprep.mubr.msk.f32.mxu1 %vm3244_vm5, %v16183_v11  ;;  %11019 = vmatpush1.bf16.msra.mxu1 %v11018_v50  ;;  %v2687_v50 = vld [vmem:[%s20731_s5 + $0x1b8] sm:$0xff] }
 0x53f   :  { %11021 = vmatprep.subr.bf16.mxu1 %v11020_v20  ;;  %6171 = vmatprep.mubr.f32.mxu0 %v20847_v45  ;;  %v9888_v20 = vld [vmem:[%s20730_s4 + $0x700] sm:$0xff]  ;;  %v11028_v8 = vpack.c.bf16 %v2687_v50, %v2683_v14  ;;  %v2694_v14 = vld [vmem:[%s20731_s5 + $0x1f0] sm:$0xff]  ;;  %v2699_v50 = vld [vmem:[%s20731_s5 + $0x218] sm:$0xff] }
 0x541   :  { %3752 = vmatmul.mubr.f32.gmra.mrb[168].mxu1 %v16181_v24  ;;  %6172 = vmatmul.mubr.f32.gmra.mrb[20].mxu0 %v9888_v20  ;;  %v11034_v20 = vpack.c.bf16 %v2694_v14, %v2690_v53  ;;  %v2706_v14 = vld [vmem:[%s20731_s5 + $0x250] sm:$0xff] }
 0x542   :  { %9429 = vmatprep.mubr.msk.f32.mxu1 %vm3244_vm5, %v16187_v29  ;;  %11023 = vmatpush1.bf16.msra.mxu1 %v11022_v13  ;;  %v2695_v13 = vld [vmem:[%s20731_s5 + $0x1f8] sm:$0xff] }
 0x543   :  { %11025 = vmatprep.subr.bf16.mxu1 %v11024_v42  ;;  %6177 = vmatprep.mubr.f32.mxu0 %v20847_v45  ;;  %v9891_v42 = vld [vmem:[%s20730_s4 + $0x718] sm:$0xff]  ;;  %v11032_v31 = vpack.c.bf16 %v2695_v13, %v2691_v33  ;;  %v2702_v33 = vld [vmem:[%s20731_s5 + $0x230] sm:$0xff] }
 0x544   :  { %v2707_v13 = vld [vmem:[%s20731_s5 + $0x258] sm:$0xff] }
 0x545   :  { %3758 = vmatmul.mubr.f32.gmra.mrb[170].mxu1 %v16185_v1  ;;  %6178 = vmatmul.mubr.f32.gmra.mrb[22].mxu0 %v9891_v42  ;;  %v11038_v42 = vpack.c.bf16 %v2702_v33, %v2698_v16  ;;  %v2714_v33 = vld [vmem:[%s20731_s5 + $0x290] sm:$0xff] }
 0x546   :  { %9430 = vmatprep.mubr.msk.f32.mxu1 %vm3244_vm5, %v16191_v51  ;;  %11027 = vmatpush1.bf16.msra.mxu1 %v11026_v32  ;;  %v2703_v32 = vld [vmem:[%s20731_s5 + $0x238] sm:$0xff] }
 0x547   :  { %11029 = vmatprep.subr.bf16.mxu1 %v11028_v8  ;;  %6183 = vmatprep.mubr.f32.mxu0 %v20847_v45  ;;  %v9894_v8 = vld [vmem:[%s20730_s4 + $0x730] sm:$0xff]  ;;  %v11036_v57 = vpack.c.bf16 %v2703_v32, %v2699_v50  ;;  %v2715_v32 = vld [vmem:[%s20731_s5 + $0x298] sm:$0xff] }
 0x548   :  { %v2710_v50 = vld [vmem:[%s20731_s5 + $0x270] sm:$0xff] }
 0x549   :  { %3764 = vmatmul.mubr.f32.gmra.mrb[172].mxu1 %v16189_v0  ;;  %6184 = vmatmul.mubr.f32.gmra.mrb[24].mxu0 %v9894_v8  ;;  %v11042_v8 = vpack.c.bf16 %v2710_v50, %v2706_v14  ;;  %v9903_v14 = vld [vmem:[%s20730_s4 + $0x778] sm:$0xff] }
 0x54a   :  { %9431 = vmatprep.mubr.msk.f32.mxu1 %vm3244_vm5, %v16195_v39  ;;  %11031 = vmatpush1.bf16.msra.mxu1 %v11030_v54  ;;  %v2711_v54 = vld [vmem:[%s20731_s5 + $0x278] sm:$0xff] }
 0x54b   :  { %11033 = vmatprep.subr.bf16.mxu1 %v11032_v31  ;;  %6189 = vmatprep.mubr.f32.mxu0 %v20847_v45  ;;  %v9897_v31 = vld [vmem:[%s20730_s4 + $0x748] sm:$0xff]  ;;  %v11040_v53 = vpack.c.bf16 %v2711_v54, %v2707_v13  ;;  %v2718_v13 = vld [vmem:[%s20731_s5 + $0x2b0] sm:$0xff]  ;;  %v2723_v54 = vld [vmem:[%s20731_s5 + $0x2d8] sm:$0xff] }
 0x54d   :  { %3770 = vmatmul.mubr.f32.gmra.mrb[174].mxu1 %v16193_v55  ;;  %6190 = vmatmul.mubr.f32.gmra.mrb[26].mxu0 %v9897_v31  ;;  %v20857_v31 = vld [vmem:[#allocation7_spill] sm:$0xff] }
 0x54e   :  { %9432 = vmatprep.mubr.msk.f32.mxu1 %vm3244_vm5, %v16199_v19  ;;  %11035 = vmatpush1.bf16.msra.mxu1 %v11034_v20  ;;  %v2719_v20 = vld [vmem:[%s20731_s5 + $0x2b8] sm:$0xff] }
 0x54f   :  { %11037 = vmatprep.subr.bf16.mxu1 %v11036_v57  ;;  %6195 = vmatprep.mubr.f32.mxu0 %v20847_v45  ;;  %v9900_v57 = vld [vmem:[%s20730_s4 + $0x760] sm:$0xff]  ;;  %v11044_v16 = vpack.c.bf16 %v2719_v20, %v2715_v32  ;;  %v2722_v32 = vld [vmem:[%s20731_s5 + $0x2d0] sm:$0xff] }
 0x550   :  { %v2726_v20 = vld [vmem:[%s20731_s5 + $0x2f0] sm:$0xff] }
 0x551   :  { %3776 = vmatmul.mubr.f32.gmra.mrb[176].mxu1 %v16197_v12  ;;  %6196 = vmatmul.mubr.f32.gmra.mrb[28].mxu0 %v9900_v57  ;;  %v2731_v57 = vld [vmem:[%s20731_s5 + $0x318] sm:$0xff] }
 0x552   :  { %9433 = vmatprep.mubr.msk.f32.mxu1 %vm3244_vm5, %v16203_v48  ;;  %11039 = vmatpush1.bf16.msra.mxu1 %v11038_v42  ;;  %v2727_v42 = vld [vmem:[%s20731_s5 + $0x2f8] sm:$0xff] }
 0x553   :  { %11041 = vmatprep.subr.bf16.mxu1 %v11040_v53  ;;  %6201 = vmatprep.mubr.f32.mxu0 %v20847_v45  ;;  %v11046_v53 = vpack.c.bf16 %v2718_v13, %v2714_v33  ;;  %v11048_v50 = vpack.c.bf16 %v2727_v42, %v2723_v54  ;;  %v20858_v33 = vld [vmem:[#allocation9_spill] sm:$0xff]  ;;  %v11050_v13 = vpack.c.bf16 %v2726_v20, %v2722_v32 }
 0x554   :  { %v2730_v42 = vld [vmem:[%s20731_s5 + $0x310] sm:$0xff] }
 0x555   :  { %3782 = vmatmul.mubr.f32.gmra.mrb[178].mxu1 %v16201_v46  ;;  %6202 = vmatmul.mubr.f32.gmra.mrb[30].mxu0 %v9903_v14  ;;  %v2734_v45 = vld [vmem:[%s20731_s5 + $0x330] sm:$0xff]  ;;  %v2739_v14 = vld [vmem:[%s20731_s5 + $0x358] sm:$0xff] }
 0x556   :  { %9434 = vmatprep.mubr.msk.f32.mxu1 %vm3244_vm5, %v20857_v31  ;;  %11043 = vmatpush1.bf16.msra.mxu1 %v11042_v8  ;;  %v2735_v8 = vld [vmem:[%s20731_s5 + $0x338] sm:$0xff]  ;;  %v11054_v32 = vpack.c.bf16 %v2734_v45, %v2730_v42  ;;  %v11056_v20 = vpack.c.bf16 %v2743_v17, %v2739_v14  ;;  %v20863_v45 = vld [vmem:[#allocation12_spill] sm:$0xff]  ;;  %v2746_v42 = vld [vmem:[%s20731_s5 + $0x390] sm:$0xff] }
 0x557   :  { %11045 = vmatprep.subr.bf16.mxu1 %v11044_v16  ;;  %v20859_v16 = vld [vmem:[#allocation8_spill] sm:$0xff]  ;;  %v11052_v54 = vpack.c.bf16 %v2735_v8, %v2731_v57  ;;  %v2738_v57 = vld [vmem:[%s20731_s5 + $0x350] sm:$0xff] }
 0x558   :  { %v2742_v8 = vld [vmem:[%s20731_s5 + $0x370] sm:$0xff] }
 0x559   :  { %3788 = vmatmul.mubr.f32.gmra.mrb[180].mxu1 %v20858_v33  ;;  %v11058_v17 = vpack.c.bf16 %v2742_v8, %v2738_v57  ;;  %v2750_v14 = vld [vmem:[%s20731_s5 + $0x3b0] sm:$0xff]  ;;  %v20867_v8 = vld [vmem:[#allocation16_spill] sm:$0xff] }
 0x55a   :  { %9435 = vmatprep.mubr.msk.f32.mxu1 %vm3244_vm5, %v20859_v16  ;;  %11047 = vmatpush1.bf16.msra.mxu1 %v11046_v53  ;;  %v20860_v53 = vld [vmem:[#allocation11_spill] sm:$0xff]  ;;  %v20866_v57 = vld [vmem:[#allocation17_spill] sm:$0xff] }
 0x55b   :  { %11049 = vmatprep.subr.bf16.mxu1 %v11048_v50  ;;  %v20861_v50 = vld [vmem:[#allocation10_spill] sm:$0xff] }
 0x55d   :  { %3794 = vmatmul.mubr.f32.gmra.mrb[182].mxu1 %v20860_v53 }
 0x55e   :  { %9436 = vmatprep.mubr.msk.f32.mxu1 %vm3244_vm5, %v20861_v50  ;;  %11051 = vmatpush1.bf16.msra.mxu1 %v11050_v13  ;;  %v20862_v13 = vld [vmem:[#allocation13_spill] sm:$0xff] }
 0x55f   :  { %11053 = vmatprep.subr.bf16.mxu1 %v11052_v54  ;;  %v11060_v54 = vpack.c.bf16 %v2751_v44, %v2747_v4  ;;  %v11062_v44 = vpack.c.bf16 %v2750_v14, %v2746_v42  ;;  %v11160_v4 = vpack.c.bf16 %v9509_v43, %v9505_v22  ;;  %v9517_v43 = vld [vmem:[%s20731_s5 + $0x7e8] sm:$0xff]  ;;  %v20868_v22 = vld [vmem:[#allocation19_spill] sm:$0xff]  ;;  %v17209_v42 = vpop.f32.mrb[224].mxu0 }
 0x560   :  { %20869 = vst [vmem:[#allocation7_spill] sm:$0xff] %v17209_v42  ;;  %v17217_v63 = vpop.f32.mrb[225].mxu0  ;;  %v9524_v42 = vld [vmem:[%s20731_s5 + $0x820] sm:$0xff] }
 0x561   :  { %3800 = vmatmul.mubr.f32.gmra.mrb[184].mxu1 %v20862_v13  ;;  %20870 = vst [vmem:[#allocation9_spill] sm:$0xff] %v17217_v63 }
 0x562   :  { %9437 = vmatprep.mubr.msk.f32.mxu1 %vm3244_vm5, %v20863_v45  ;;  %11055 = vmatpush1.bf16.msra.mxu1 %v11054_v32  ;;  %v20864_v32 = vld [vmem:[#allocation15_spill] sm:$0xff] }
 0x563   :  { %11057 = vmatprep.subr.bf16.mxu1 %v11056_v20  ;;  %v20865_v20 = vld [vmem:[#allocation14_spill] sm:$0xff] }
 0x565   :  { %3806 = vmatmul.mubr.f32.gmra.mrb[186].mxu1 %v20864_v32 }
 0x566   :  { %9438 = vmatprep.mubr.msk.f32.mxu1 %vm3244_vm5, %v20865_v20  ;;  %11059 = vmatpush1.bf16.msra.mxu1 %v11058_v17  ;;  %v9513_v17 = vld [vmem:[%s20731_s5 + $0x7c8] sm:$0xff] }
 0x567   :  { %11061 = vmatprep.subr.bf16.mxu1 %v11060_v54  ;;  %v11162_v54 = vpack.c.bf16 %v9508_v61, %v9504_v18  ;;  %v11164_v14 = vpack.c.bf16 %v9517_v43, %v9513_v17  ;;  %v17228_v18 = vpop.f32.mrb[226].mxu0  ;;  %v9520_v43 = vld [vmem:[%s20731_s5 + $0x800] sm:$0xff] }
 0x568   :  { %v17236_v63 = vpop.f32.mrb[227].mxu0 }
 0x569   :  { %3812 = vmatmul.mubr.f32.gmra.mrb[188].mxu1 %v20866_v57 }
 0x56a   :  { %9439 = vmatprep.mubr.msk.f32.mxu1 %vm3244_vm5, %v20867_v8  ;;  %11063 = vmatpush1.bf16.msra.mxu1 %v11062_v44  ;;  %v9512_v44 = vld [vmem:[%s20731_s5 + $0x7c0] sm:$0xff] }
 0x56b   :  { %11161 = vmatprep.subr.bf16.mxu1 %v11160_v4  ;;  %v9516_v4 = vld [vmem:[%s20731_s5 + $0x7e0] sm:$0xff] }
 0x56c   :  { %v11166_v61 = vpack.c.bf16 %v9516_v4, %v9512_v44  ;;  %v9528_v44 = vld [vmem:[%s20731_s5 + $0x840] sm:$0xff] }
 0x56d   :  { %3818 = vmatmul.mubr.f32.gmra.mrb[190].mxu1 %v20868_v22  ;;  %v9532_v4 = vld [vmem:[%s20731_s5 + $0x860] sm:$0xff] }
 0x56e   :  { %9440 = vmatprep.mubr.msk.f32.mxu1 %vm3244_vm5, %v16132_v27  ;;  %v9525_v27 = vld [vmem:[%s20731_s5 + $0x828] sm:$0xff] }
 0x56f   :  { %v11168_v17 = vpack.c.bf16 %v9525_v27, %v9521_v35  ;;  %v11170_v35 = vpack.c.bf16 %v9524_v42, %v9520_v43  ;;  %v11174_v42 = vpack.c.bf16 %v9532_v4, %v9528_v44  ;;  %v9536_v43 = vld [vmem:[%s20731_s5 + $0x880] sm:$0xff] }
 0x570   :  { %v9544_v4 = vld [vmem:[%s20731_s5 + $0x8c0] sm:$0xff] }
 0x571   :  { %3889 = vmatmul.mubr.f32.vlgmr.msra.gmra.mrb[192].mxu1 %v16124_v15  ;;  %v9529_v15 = vld [vmem:[%s20731_s5 + $0x848] sm:$0xff] }
 0x572   :  { %9441 = vmatprep.mubr.msk.f32.mxu1 %vm3244_vm5, %v16150_v58  ;;  %11163 = vmatpush1.bf16.msra.mxu1 %v11162_v54  ;;  %v9533_v58 = vld [vmem:[%s20731_s5 + $0x868] sm:$0xff]  ;;  %v17247_v54 = vpop.f32.mrb[228].mxu0 }
 0x573   :  { %11165 = vmatprep.subr.bf16.mxu1 %v11164_v14  ;;  %v11172_v14 = vpack.c.bf16 %v9533_v58, %v9529_v15  ;;  %v17255_v27 = vpop.f32.mrb[229].mxu0  ;;  %v9540_v15 = vld [vmem:[%s20731_s5 + $0x8a0] sm:$0xff] }
 0x575   :  { %3895 = vmatmul.mubr.f32.gmra.mrb[194].mxu1 %v16142_v60  ;;  %v9537_v60 = vld [vmem:[%s20731_s5 + $0x888] sm:$0xff] }
 0x576   :  { %9442 = vmatprep.mubr.msk.f32.mxu1 %vm3244_vm5, %v16168_v10  ;;  %11167 = vmatpush1.bf16.msra.mxu1 %v11166_v61  ;;  %v9541_v10 = vld [vmem:[%s20731_s5 + $0x8a8] sm:$0xff]  ;;  %v17266_v61 = vpop.f32.mrb[230].mxu0 }
 0x577   :  { %11169 = vmatprep.subr.bf16.mxu1 %v11168_v17  ;;  %v11176_v17 = vpack.c.bf16 %v9541_v10, %v9537_v60  ;;  %v17274_v58 = vpop.f32.mrb[231].mxu0  ;;  %v9548_v60 = vld [vmem:[%s20731_s5 + $0x8e0] sm:$0xff] }
 0x579   :  { %3901 = vmatmul.mubr.f32.gmra.mrb[196].mxu1 %v16160_v62  ;;  %v9545_v62 = vld [vmem:[%s20731_s5 + $0x8c8] sm:$0xff] }
 0x57a   :  { %9443 = vmatprep.mubr.msk.f32.mxu1 %vm3244_vm5, %v16179_v23  ;;  %11171 = vmatpush1.bf16.msra.mxu1 %v11170_v35  ;;  %v9549_v23 = vld [vmem:[%s20731_s5 + $0x8e8] sm:$0xff]  ;;  %v11178_v35 = vpack.c.bf16 %v9540_v15, %v9536_v43  ;;  %v9552_v15 = vld [vmem:[%s20731_s5 + $0x900] sm:$0xff] }
 0x57b   :  { %11173 = vmatprep.subr.bf16.mxu1 %v11172_v14  ;;  %v17285_v14 = vpop.f32.mrb[232].mxu0  ;;  %v11180_v44 = vpack.c.bf16 %v9549_v23, %v9545_v62  ;;  %v9556_v62 = vld [vmem:[%s20731_s5 + $0x920] sm:$0xff] }
 0x57c   :  { %v17293_v10 = vpop.f32.mrb[233].mxu0 }
 0x57d   :  { %3907 = vmatmul.mubr.f32.gmra.mrb[198].mxu1 %v16177_v5  ;;  %v9553_v5 = vld [vmem:[%s20731_s5 + $0x908] sm:$0xff] }
 0x57e   :  { %9444 = vmatprep.mubr.msk.f32.mxu1 %vm3244_vm5, %v16183_v11  ;;  %11175 = vmatpush1.bf16.msra.mxu1 %v11174_v42  ;;  %v9557_v11 = vld [vmem:[%s20731_s5 + $0x928] sm:$0xff]  ;;  %v11182_v42 = vpack.c.bf16 %v9548_v60, %v9544_v4  ;;  %v9560_v60 = vld [vmem:[%s20731_s5 + $0x940] sm:$0xff] }
 0x57f   :  { %11177 = vmatprep.subr.bf16.mxu1 %v11176_v17  ;;  %v17304_v17 = vpop.f32.mrb[234].mxu0  ;;  %v11184_v43 = vpack.c.bf16 %v9557_v11, %v9553_v5  ;;  %v9564_v5 = vld [vmem:[%s20731_s5 + $0x960] sm:$0xff] }
 0x580   :  { %v17312_v23 = vpop.f32.mrb[235].mxu0 }
 0x581   :  { %3913 = vmatmul.mubr.f32.gmra.mrb[200].mxu1 %v16181_v24  ;;  %v9561_v24 = vld [vmem:[%s20731_s5 + $0x948] sm:$0xff] }
 0x582   :  { %9445 = vmatprep.mubr.msk.f32.mxu1 %vm3244_vm5, %v16187_v29  ;;  %11179 = vmatpush1.bf16.msra.mxu1 %v11178_v35  ;;  %v9565_v29 = vld [vmem:[%s20731_s5 + $0x968] sm:$0xff]  ;;  %v11186_v35 = vpack.c.bf16 %v9556_v62, %v9552_v15  ;;  %v9568_v62 = vld [vmem:[%s20731_s5 + $0x980] sm:$0xff] }
 0x583   :  { %11181 = vmatprep.subr.bf16.mxu1 %v11180_v44  ;;  %v17323_v44 = vpop.f32.mrb[236].mxu0  ;;  %v11188_v4 = vpack.c.bf16 %v9565_v29, %v9561_v24  ;;  %v9572_v24 = vld [vmem:[%s20731_s5 + $0x9a0] sm:$0xff] }
 0x584   :  { %v17331_v11 = vpop.f32.mrb[237].mxu0 }
 0x585   :  { %3919 = vmatmul.mubr.f32.gmra.mrb[202].mxu1 %v16185_v1  ;;  %v9569_v1 = vld [vmem:[%s20731_s5 + $0x988] sm:$0xff] }
 0x586   :  { %9446 = vmatprep.mubr.msk.f32.mxu1 %vm3244_vm5, %v16191_v51  ;;  %11183 = vmatpush1.bf16.msra.mxu1 %v11182_v42  ;;  %v9573_v51 = vld [vmem:[%s20731_s5 + $0x9a8] sm:$0xff]  ;;  %v11190_v42 = vpack.c.bf16 %v9564_v5, %v9560_v60  ;;  %v9576_v5 = vld [vmem:[%s20731_s5 + $0x9c0] sm:$0xff] }
 0x587   :  { %11185 = vmatprep.subr.bf16.mxu1 %v11184_v43  ;;  %v17342_v43 = vpop.f32.mrb[238].mxu0  ;;  %v11192_v15 = vpack.c.bf16 %v9573_v51, %v9569_v1  ;;  %v9580_v1 = vld [vmem:[%s20731_s5 + $0x9e0] sm:$0xff] }
 0x588   :  { %v17350_v29 = vpop.f32.mrb[239].mxu0 }
 0x589   :  { %3925 = vmatmul.mubr.f32.gmra.mrb[204].mxu1 %v16189_v0  ;;  %v9577_v0 = vld [vmem:[%s20731_s5 + $0x9c8] sm:$0xff] }
 0x58a   :  { %9447 = vmatprep.mubr.msk.f32.mxu1 %vm3244_vm5, %v16195_v39  ;;  %11187 = vmatpush1.bf16.msra.mxu1 %v11186_v35  ;;  %v9581_v39 = vld [vmem:[%s20731_s5 + $0x9e8] sm:$0xff]  ;;  %v11194_v35 = vpack.c.bf16 %v9572_v24, %v9568_v62  ;;  %v9584_v24 = vld [vmem:[%s20731_s5 + $0xa00] sm:$0xff] }
 0x58b   :  { %11189 = vmatprep.subr.bf16.mxu1 %v11188_v4  ;;  %v17361_v4 = vpop.f32.mrb[240].mxu0  ;;  %v11196_v60 = vpack.c.bf16 %v9581_v39, %v9577_v0  ;;  %v9588_v0 = vld [vmem:[%s20731_s5 + $0xa20] sm:$0xff] }
 0x58c   :  { %v17369_v51 = vpop.f32.mrb[241].mxu0 }
 0x58d   :  { %3931 = vmatmul.mubr.f32.gmra.mrb[206].mxu1 %v16193_v55  ;;  %v9585_v55 = vld [vmem:[%s20731_s5 + $0xa08] sm:$0xff] }
 0x58e   :  { %9448 = vmatprep.mubr.msk.f32.mxu1 %vm3244_vm5, %v16199_v19  ;;  %11191 = vmatpush1.bf16.msra.mxu1 %v11190_v42  ;;  %v9589_v19 = vld [vmem:[%s20731_s5 + $0xa28] sm:$0xff]  ;;  %v11198_v42 = vpack.c.bf16 %v9580_v1, %v9576_v5  ;;  %v9592_v1 = vld [vmem:[%s20731_s5 + $0xa40] sm:$0xff] }
 0x58f   :  { %11193 = vmatprep.subr.bf16.mxu1 %v11192_v15  ;;  %v17380_v15 = vpop.f32.mrb[242].mxu0  ;;  %v11200_v62 = vpack.c.bf16 %v9589_v19, %v9585_v55  ;;  %v9596_v55 = vld [vmem:[%s20731_s5 + $0xa60] sm:$0xff] }
 0x590   :  { %v17388_v39 = vpop.f32.mrb[243].mxu0 }
 0x591   :  { %3937 = vmatmul.mubr.f32.gmra.mrb[208].mxu1 %v16197_v12  ;;  %v9593_v12 = vld [vmem:[%s20731_s5 + $0xa48] sm:$0xff] }
 0x592   :  { %9449 = vmatprep.mubr.msk.f32.mxu1 %vm3244_vm5, %v16203_v48  ;;  %11195 = vmatpush1.bf16.msra.mxu1 %v11194_v35  ;;  %v9597_v48 = vld [vmem:[%s20731_s5 + $0xa68] sm:$0xff]  ;;  %v11202_v35 = vpack.c.bf16 %v9588_v0, %v9584_v24  ;;  %v9600_v0 = vld [vmem:[%s20731_s5 + $0xa80] sm:$0xff] }
 0x593   :  { %11197 = vmatprep.subr.bf16.mxu1 %v11196_v60  ;;  %v17399_v60 = vpop.f32.mrb[244].mxu0  ;;  %v11204_v5 = vpack.c.bf16 %v9597_v48, %v9593_v12  ;;  %v9604_v12 = vld [vmem:[%s20731_s5 + $0xaa0] sm:$0xff] }
 0x594   :  { %v17407_v19 = vpop.f32.mrb[245].mxu0 }
 0x595   :  { %3943 = vmatmul.mubr.f32.gmra.mrb[210].mxu1 %v16201_v46  ;;  %v9601_v46 = vld [vmem:[%s20731_s5 + $0xa88] sm:$0xff] }
 0x596   :  { %9450 = vmatprep.mubr.msk.f32.mxu1 %vm3244_vm5, %v20857_v31  ;;  %11199 = vmatpush1.bf16.msra.mxu1 %v11198_v42  ;;  %v9605_v31 = vld [vmem:[%s20731_s5 + $0xaa8] sm:$0xff]  ;;  %v11206_v42 = vpack.c.bf16 %v9596_v55, %v9592_v1  ;;  %v9608_v55 = vld [vmem:[%s20731_s5 + $0xac0] sm:$0xff] }
 0x597   :  { %11201 = vmatprep.subr.bf16.mxu1 %v11200_v62  ;;  %v17418_v62 = vpop.f32.mrb[246].mxu0  ;;  %v11208_v24 = vpack.c.bf16 %v9605_v31, %v9601_v46  ;;  %v9612_v46 = vld [vmem:[%s20731_s5 + $0xae0] sm:$0xff] }
 0x598   :  { %20871 = vst [vmem:[#allocation8_spill] sm:$0xff] %v17418_v62  ;;  %v17426_v48 = vpop.f32.mrb[247].mxu0 }
 0x599   :  { %3949 = vmatmul.mubr.f32.gmra.mrb[212].mxu1 %v20858_v33  ;;  %v9609_v33 = vld [vmem:[%s20731_s5 + $0xac8] sm:$0xff] }
 0x59a   :  { %9451 = vmatprep.mubr.msk.f32.mxu1 %vm3244_vm5, %v20859_v16  ;;  %11203 = vmatpush1.bf16.msra.mxu1 %v11202_v35  ;;  %v9613_v16 = vld [vmem:[%s20731_s5 + $0xae8] sm:$0xff]  ;;  %v11210_v35 = vpack.c.bf16 %v9604_v12, %v9600_v0  ;;  %v9616_v12 = vld [vmem:[%s20731_s5 + $0xb00] sm:$0xff] }
 0x59b   :  { %11205 = vmatprep.subr.bf16.mxu1 %v11204_v5  ;;  %v17437_v5 = vpop.f32.mrb[248].mxu0  ;;  %v11212_v1 = vpack.c.bf16 %v9613_v16, %v9609_v33  ;;  %v9620_v33 = vld [vmem:[%s20731_s5 + $0xb20] sm:$0xff] }
 0x59c   :  { %20872 = vst [vmem:[#allocation11_spill] sm:$0xff] %v17437_v5  ;;  %v17445_v31 = vpop.f32.mrb[249].mxu0  ;;  %v9708_v5 = vld [vmem:[%s20731_s5 + $0xb60] sm:$0xff] }
 0x59d   :  { %3955 = vmatmul.mubr.f32.gmra.mrb[214].mxu1 %v20860_v53  ;;  %20873 = vst [vmem:[#allocation10_spill] sm:$0xff] %v17445_v31  ;;  %v9617_v53 = vld [vmem:[%s20731_s5 + $0xb08] sm:$0xff] }
 0x59e   :  { %9452 = vmatprep.mubr.msk.f32.mxu1 %vm3244_vm5, %v20861_v50  ;;  %11207 = vmatpush1.bf16.msra.mxu1 %v11206_v42  ;;  %v9621_v50 = vld [vmem:[%s20731_s5 + $0xb28] sm:$0xff]  ;;  %v11214_v42 = vpack.c.bf16 %v9612_v46, %v9608_v55 }
 0x59f   :  { %11209 = vmatprep.subr.bf16.mxu1 %v11208_v24  ;;  %v17456_v24 = vpop.f32.mrb[250].mxu0  ;;  %v11216_v0 = vpack.c.bf16 %v9621_v50, %v9617_v53  ;;  %v9721_v31 = vld [vmem:[%s20731_s5 + $0xbc8] sm:$0xff] }
 0x5a0   :  { %20874 = vst [vmem:[#allocation13_spill] sm:$0xff] %v17456_v24  ;;  %v17464_v16 = vpop.f32.mrb[251].mxu0  ;;  %v9709_v24 = vld [vmem:[%s20731_s5 + $0xb68] sm:$0xff] }
 0x5a1   :  { %3961 = vmatmul.mubr.f32.gmra.mrb[216].mxu1 %v20862_v13  ;;  %20875 = vst [vmem:[#allocation12_spill] sm:$0xff] %v17464_v16  ;;  %v9507_v13 = vld [vmem:[%s20731_s5 + $0x798] sm:$0xff]  ;;  %v9704_v16 = vld [vmem:[%s20731_s5 + $0xb40] sm:$0xff] }
 0x5a2   :  { %9453 = vmatprep.mubr.msk.f32.mxu1 %vm3244_vm5, %v20863_v45  ;;  %11211 = vmatpush1.bf16.msra.mxu1 %v11210_v35  ;;  %v9511_v45 = vld [vmem:[%s20731_s5 + $0x7b8] sm:$0xff]  ;;  %v11218_v35 = vpack.c.bf16 %v9620_v33, %v9616_v12  ;;  %v9514_v12 = vld [vmem:[%s20731_s5 + $0x7d0] sm:$0xff] }
 0x5a3   :  { %11213 = vmatprep.subr.bf16.mxu1 %v11212_v1  ;;  %v17475_v1 = vpop.f32.mrb[252].mxu0  ;;  %v11220_v55 = vpack.c.bf16 %v9511_v45, %v9507_v13  ;;  %v9518_v33 = vld [vmem:[%s20731_s5 + $0x7f0] sm:$0xff]  ;;  %v9523_v13 = vld [vmem:[%s20731_s5 + $0x818] sm:$0xff] }
 0x5a4   :  { %20876 = vst [vmem:[#allocation15_spill] sm:$0xff] %v17475_v1  ;;  %v17477_v46 = vpop.f32.mrb[253].mxu0  ;;  %v20880_v45 = vld [vmem:[#allocation22_spill] sm:$0xff] }
 0x5a5   :  { %3967 = vmatmul.mubr.f32.gmra.mrb[218].mxu1 %v20864_v32  ;;  %20877 = vst [vmem:[#allocation14_spill] sm:$0xff] %v17477_v46  ;;  %v17482_v53 = vpop.f32.mrb[254].mxu0  ;;  %v9506_v32 = vld [vmem:[%s20731_s5 + $0x790] sm:$0xff]  ;;  %v9623_v1 = vld [vmem:[%s20731_s5 + $0xb38] sm:$0xff]  ;;  %v9705_v46 = vld [vmem:[%s20731_s5 + $0xb48] sm:$0xff] }
 0x5a6   :  { %9454 = vmatprep.mubr.msk.f32.mxu1 %vm3244_vm5, %v20865_v20  ;;  %11215 = vmatpush1.bf16.msra.mxu1 %v11214_v42  ;;  %20878 = vst [vmem:[#allocation17_spill] sm:$0xff] %v17482_v53  ;;  %v9510_v20 = vld [vmem:[%s20731_s5 + $0x7b0] sm:$0xff]  ;;  %v17490_v50 = vpop.f32.mrb[255].mxu0  ;;  %v9615_v53 = vld [vmem:[%s20731_s5 + $0xaf8] sm:$0xff] }
 0x5a7   :  { %11217 = vmatprep.subr.bf16.mxu1 %v11216_v0  ;;  %20879 = vst [vmem:[#allocation16_spill] sm:$0xff] %v17490_v50  ;;  %v11222_v42 = vpack.c.bf16 %v9510_v20, %v9506_v32  ;;  %v9522_v32 = vld [vmem:[%s20731_s5 + $0x810] sm:$0xff]  ;;  %v9619_v50 = vld [vmem:[%s20731_s5 + $0xb18] sm:$0xff] }
 0x5a8   :  { %v9526_v20 = vld [vmem:[%s20731_s5 + $0x830] sm:$0xff] }
 0x5a9   :  { %3973 = vmatmul.mubr.f32.gmra.mrb[220].mxu1 %v20866_v57  ;;  %v9515_v57 = vld [vmem:[%s20731_s5 + $0x7d8] sm:$0xff] }
 0x5aa   :  { %9455 = vmatprep.mubr.msk.f32.mxu1 %vm3244_vm5, %v20867_v8  ;;  %11219 = vmatpush1.bf16.msra.mxu1 %v11218_v35  ;;  %v9519_v8 = vld [vmem:[%s20731_s5 + $0x7f8] sm:$0xff]  ;;  %v11226_v35 = vpack.c.bf16 %v9518_v33, %v9514_v12  ;;  %v9530_v12 = vld [vmem:[%s20731_s5 + $0x850] sm:$0xff] }
 0x5ab   :  { %11221 = vmatprep.subr.bf16.mxu1 %v11220_v55  ;;  %v11224_v0 = vpack.c.bf16 %v9519_v8, %v9515_v57  ;;  %v9531_v57 = vld [vmem:[%s20731_s5 + $0x858] sm:$0xff]  ;;  %v9534_v33 = vld [vmem:[%s20731_s5 + $0x870] sm:$0xff] }
 0x5ac   :  { %v9535_v8 = vld [vmem:[%s20731_s5 + $0x878] sm:$0xff] }
 0x5ad   :  { %3979 = vmatmul.mubr.f32.gmra.mrb[222].mxu1 %v20868_v22  ;;  %v9527_v22 = vld [vmem:[%s20731_s5 + $0x838] sm:$0xff] }
 0x5ae   :  { %9624 = vmatprep.mubr.msk.f32.mxu1 %vm3244_vm5, %v16573_v59  ;;  %v11228_v55 = vpack.c.bf16 %v9527_v22, %v9523_v13  ;;  %v9539_v13 = vld [vmem:[%s20731_s5 + $0x898] sm:$0xff] }
 0x5af   :  { %v9543_v22 = vld [vmem:[%s20731_s5 + $0x8b8] sm:$0xff] }
 0x5b1   :  { %4590 = vmatmul.mubr.f32.vlgmr.msra.gmra.mrb[160].mxu1 %v20880_v45 }
 0x5b2   :  { %9625 = vmatprep.mubr.msk.f32.mxu1 %vm3244_vm5, %v16598_v37  ;;  %11223 = vmatpush1.bf16.msra.mxu1 %v11222_v42  ;;  %v11230_v42 = vpack.c.bf16 %v9526_v20, %v9522_v32  ;;  %v9538_v32 = vld [vmem:[%s20731_s5 + $0x890] sm:$0xff] }
 0x5b3   :  { %11225 = vmatprep.subr.bf16.mxu1 %v11224_v0  ;;  %v11232_v0 = vpack.c.bf16 %v9535_v8, %v9531_v57  ;;  %v9542_v20 = vld [vmem:[%s20731_s5 + $0x8b0] sm:$0xff]  ;;  %v9547_v57 = vld [vmem:[%s20731_s5 + $0x8d8] sm:$0xff] }
 0x5b4   :  { %v9551_v8 = vld [vmem:[%s20731_s5 + $0x8f8] sm:$0xff] }
 0x5b5   :  { %4596 = vmatmul.mubr.f32.gmra.mrb[162].mxu1 %v16587_v52 }
 0x5b6   :  { %9626 = vmatprep.mubr.msk.f32.mxu1 %vm3244_vm5, %v16623_v47  ;;  %11227 = vmatpush1.bf16.msra.mxu1 %v11226_v35  ;;  %v11234_v35 = vpack.c.bf16 %v9534_v33, %v9530_v12  ;;  %v9546_v12 = vld [vmem:[%s20731_s5 + $0x8d0] sm:$0xff] }
 0x5b7   :  { %11229 = vmatprep.subr.bf16.mxu1 %v11228_v55  ;;  %v11236_v55 = vpack.c.bf16 %v9543_v22, %v9539_v13  ;;  %v9550_v33 = vld [vmem:[%s20731_s5 + $0x8f0] sm:$0xff]  ;;  %v9555_v13 = vld [vmem:[%s20731_s5 + $0x918] sm:$0xff] }
 0x5b8   :  { %v9559_v22 = vld [vmem:[%s20731_s5 + $0x938] sm:$0xff] }
 0x5b9   :  { %4602 = vmatmul.mubr.f32.gmra.mrb[164].mxu1 %v16612_v3 }
 0x5ba   :  { %9627 = vmatprep.mubr.msk.f32.mxu1 %vm3244_vm5, %v16648_v28  ;;  %11231 = vmatpush1.bf16.msra.mxu1 %v11230_v42  ;;  %v11238_v42 = vpack.c.bf16 %v9542_v20, %v9538_v32  ;;  %v9554_v32 = vld [vmem:[%s20731_s5 + $0x910] sm:$0xff] }
 0x5bb   :  { %11233 = vmatprep.subr.bf16.mxu1 %v11232_v0  ;;  %v11240_v0 = vpack.c.bf16 %v9551_v8, %v9547_v57  ;;  %v9558_v20 = vld [vmem:[%s20731_s5 + $0x930] sm:$0xff]  ;;  %v9563_v57 = vld [vmem:[%s20731_s5 + $0x958] sm:$0xff] }
 0x5bc   :  { %v9567_v8 = vld [vmem:[%s20731_s5 + $0x978] sm:$0xff] }
 0x5bd   :  { %4608 = vmatmul.mubr.f32.gmra.mrb[166].mxu1 %v16637_v38 }
 0x5be   :  { %9628 = vmatprep.mubr.msk.f32.mxu1 %vm3244_vm5, %v16673_v56  ;;  %11235 = vmatpush1.bf16.msra.mxu1 %v11234_v35  ;;  %v11242_v35 = vpack.c.bf16 %v9550_v33, %v9546_v12  ;;  %v9562_v12 = vld [vmem:[%s20731_s5 + $0x950] sm:$0xff] }
 0x5bf   :  { %11237 = vmatprep.subr.bf16.mxu1 %v11236_v55  ;;  %v11244_v55 = vpack.c.bf16 %v9559_v22, %v9555_v13  ;;  %v9566_v33 = vld [vmem:[%s20731_s5 + $0x970] sm:$0xff]  ;;  %v9571_v13 = vld [vmem:[%s20731_s5 + $0x998] sm:$0xff] }
 0x5c0   :  { %v9575_v22 = vld [vmem:[%s20731_s5 + $0x9b8] sm:$0xff] }
 0x5c1   :  { %4614 = vmatmul.mubr.f32.gmra.mrb[168].mxu1 %v16662_v7 }
 0x5c2   :  { %9629 = vmatprep.mubr.msk.f32.mxu1 %vm3244_vm5, %v16698_v49  ;;  %11239 = vmatpush1.bf16.msra.mxu1 %v11238_v42  ;;  %v11246_v42 = vpack.c.bf16 %v9558_v20, %v9554_v32  ;;  %v9570_v32 = vld [vmem:[%s20731_s5 + $0x990] sm:$0xff] }
 0x5c3   :  { %11241 = vmatprep.subr.bf16.mxu1 %v11240_v0  ;;  %v11248_v0 = vpack.c.bf16 %v9567_v8, %v9563_v57  ;;  %v9574_v20 = vld [vmem:[%s20731_s5 + $0x9b0] sm:$0xff]  ;;  %v9579_v57 = vld [vmem:[%s20731_s5 + $0x9d8] sm:$0xff] }
 0x5c4   :  { %v9583_v8 = vld [vmem:[%s20731_s5 + $0x9f8] sm:$0xff] }
 0x5c5   :  { %4620 = vmatmul.mubr.f32.gmra.mrb[170].mxu1 %v16687_v40 }
 0x5c6   :  { %9630 = vmatprep.mubr.msk.f32.mxu1 %vm3244_vm5, %v16723_v36  ;;  %11243 = vmatpush1.bf16.msra.mxu1 %v11242_v35  ;;  %v11250_v35 = vpack.c.bf16 %v9566_v33, %v9562_v12  ;;  %v9578_v12 = vld [vmem:[%s20731_s5 + $0x9d0] sm:$0xff] }
 0x5c7   :  { %11245 = vmatprep.subr.bf16.mxu1 %v11244_v55  ;;  %v11252_v55 = vpack.c.bf16 %v9575_v22, %v9571_v13  ;;  %v9582_v33 = vld [vmem:[%s20731_s5 + $0x9f0] sm:$0xff]  ;;  %v9587_v13 = vld [vmem:[%s20731_s5 + $0xa18] sm:$0xff] }
 0x5c8   :  { %v9591_v22 = vld [vmem:[%s20731_s5 + $0xa38] sm:$0xff] }
 0x5c9   :  { %4626 = vmatmul.mubr.f32.gmra.mrb[172].mxu1 %v16712_v21 }
 0x5ca   :  { %9631 = vmatprep.mubr.msk.f32.mxu1 %vm3244_vm5, %v16748_v9  ;;  %11247 = vmatpush1.bf16.msra.mxu1 %v11246_v42  ;;  %v11254_v42 = vpack.c.bf16 %v9574_v20, %v9570_v32  ;;  %v9586_v32 = vld [vmem:[%s20731_s5 + $0xa10] sm:$0xff] }
 0x5cb   :  { %11249 = vmatprep.subr.bf16.mxu1 %v11248_v0  ;;  %v11256_v0 = vpack.c.bf16 %v9583_v8, %v9579_v57  ;;  %v9590_v20 = vld [vmem:[%s20731_s5 + $0xa30] sm:$0xff]  ;;  %v9595_v57 = vld [vmem:[%s20731_s5 + $0xa58] sm:$0xff] }
 0x5cc   :  { %v9599_v8 = vld [vmem:[%s20731_s5 + $0xa78] sm:$0xff] }
 0x5cd   :  { %4632 = vmatmul.mubr.f32.gmra.mrb[174].mxu1 %v16737_v30 }
 0x5ce   :  { %9632 = vmatprep.mubr.msk.f32.mxu1 %vm3244_vm5, %v16773_v6  ;;  %11251 = vmatpush1.bf16.msra.mxu1 %v11250_v35  ;;  %v11258_v35 = vpack.c.bf16 %v9582_v33, %v9578_v12  ;;  %v9594_v12 = vld [vmem:[%s20731_s5 + $0xa50] sm:$0xff] }
 0x5cf   :  { %11253 = vmatprep.subr.bf16.mxu1 %v11252_v55  ;;  %v11260_v55 = vpack.c.bf16 %v9591_v22, %v9587_v13  ;;  %v9598_v33 = vld [vmem:[%s20731_s5 + $0xa70] sm:$0xff]  ;;  %v9603_v13 = vld [vmem:[%s20731_s5 + $0xa98] sm:$0xff] }
 0x5d0   :  { %v9607_v22 = vld [vmem:[%s20731_s5 + $0xab8] sm:$0xff] }
 0x5d1   :  { %4638 = vmatmul.mubr.f32.gmra.mrb[176].mxu1 %v16762_v41 }
 0x5d2   :  { %9633 = vmatprep.mubr.msk.f32.mxu1 %vm3244_vm5, %v16798_v34  ;;  %11255 = vmatpush1.bf16.msra.mxu1 %v11254_v42  ;;  %v11262_v42 = vpack.c.bf16 %v9590_v20, %v9586_v32  ;;  %v11268_v32 = vpack.c.bf16 %v9607_v22, %v9603_v13  ;;  %v9602_v20 = vld [vmem:[%s20731_s5 + $0xa90] sm:$0xff] }
 0x5d3   :  { %11257 = vmatprep.subr.bf16.mxu1 %v11256_v0  ;;  %v11264_v0 = vpack.c.bf16 %v9599_v8, %v9595_v57  ;;  %v9606_v57 = vld [vmem:[%s20731_s5 + $0xab0] sm:$0xff]  ;;  %v9611_v8 = vld [vmem:[%s20731_s5 + $0xad8] sm:$0xff] }
 0x5d4   :  { %v9610_v13 = vld [vmem:[%s20731_s5 + $0xad0] sm:$0xff] }
 0x5d5   :  { %4644 = vmatmul.mubr.f32.gmra.mrb[178].mxu1 %v16787_v26  ;;  %v9614_v22 = vld [vmem:[%s20731_s5 + $0xaf0] sm:$0xff] }
 0x5d6   :  { %9634 = vmatprep.mubr.msk.f32.mxu1 %vm3244_vm5, %v16823_v25  ;;  %11259 = vmatpush1.bf16.msra.mxu1 %v11258_v35  ;;  %v20881_v35 = vld [vmem:[#allocation18_spill] sm:$0xff] }
 0x5d7   :  { %11261 = vmatprep.subr.bf16.mxu1 %v11260_v55  ;;  %v11266_v55 = vpack.c.bf16 %v9598_v33, %v9594_v12  ;;  %v11270_v12 = vpack.c.bf16 %v9606_v57, %v9602_v20  ;;  %v11272_v33 = vpack.c.bf16 %v9615_v53, %v9611_v8  ;;  %v11274_v53 = vpack.c.bf16 %v9614_v22, %v9610_v13  ;;  %v9618_v57 = vld [vmem:[%s20731_s5 + $0xb10] sm:$0xff]  ;;  %v20888_v13 = vld [vmem:[#allocation28_spill] sm:$0xff]  ;;  %v20889_v22 = vld [vmem:[#allocation31_spill] sm:$0xff] }
 0x5d8   :  { %v11276_v20 = vpack.c.bf16 %v9623_v1, %v9619_v50  ;;  %v9622_v8 = vld [vmem:[%s20731_s5 + $0xb30] sm:$0xff]  ;;  %v11376_v50 = vpack.c.bf16 %v9709_v24, %v9705_v46  ;;  %v9717_v24 = vld [vmem:[%s20731_s5 + $0xba8] sm:$0xff]  ;;  %v20890_v46 = vld [vmem:[#allocation30_spill] sm:$0xff] }
 0x5d9   :  { %4650 = vmatmul.mubr.f32.gmra.mrb[180].mxu1 %v20881_v35  ;;  %v11278_v1 = vpack.c.bf16 %v9622_v8, %v9618_v57  ;;  %v9712_v8 = vld [vmem:[%s20731_s5 + $0xb80] sm:$0xff] }
 0x5da   :  { %9635 = vmatprep.mubr.msk.f32.mxu1 %vm3244_vm5, %v16846_v2  ;;  %11263 = vmatpush1.bf16.msra.mxu1 %v11262_v42  ;;  %v20882_v42 = vld [vmem:[#allocation21_spill] sm:$0xff] }
 0x5db   :  { %11265 = vmatprep.subr.bf16.mxu1 %v11264_v0  ;;  %v20883_v0 = vld [vmem:[#allocation25_spill] sm:$0xff] }
 0x5dd   :  { %4656 = vmatmul.mubr.f32.gmra.mrb[182].mxu1 %v20882_v42 }
 0x5de   :  { %9636 = vmatprep.mubr.msk.f32.mxu1 %vm3244_vm5, %v20883_v0  ;;  %11267 = vmatpush1.bf16.msra.mxu1 %v11266_v55  ;;  %v20884_v55 = vld [vmem:[#allocation24_spill] sm:$0xff] }
 0x5df   :  { %11269 = vmatprep.subr.bf16.mxu1 %v11268_v32  ;;  %v20885_v32 = vld [vmem:[#allocation27_spill] sm:$0xff] }
 0x5e1   :  { %4662 = vmatmul.mubr.f32.gmra.mrb[184].mxu1 %v20884_v55 }
 0x5e2   :  { %9637 = vmatprep.mubr.msk.f32.mxu1 %vm3244_vm5, %v20885_v32  ;;  %11271 = vmatpush1.bf16.msra.mxu1 %v11270_v12  ;;  %v20886_v12 = vld [vmem:[#allocation26_spill] sm:$0xff] }
 0x5e3   :  { %11273 = vmatprep.subr.bf16.mxu1 %v11272_v33  ;;  %v20887_v33 = vld [vmem:[#allocation29_spill] sm:$0xff] }
 0x5e5   :  { %4668 = vmatmul.mubr.f32.gmra.mrb[186].mxu1 %v20886_v12 }
 0x5e6   :  { %9638 = vmatprep.mubr.msk.f32.mxu1 %vm3244_vm5, %v20887_v33  ;;  %11275 = vmatpush1.bf16.msra.mxu1 %v11274_v53  ;;  %v9713_v53 = vld [vmem:[%s20731_s5 + $0xb88] sm:$0xff] }
 0x5e7   :  { %11277 = vmatprep.subr.bf16.mxu1 %v11276_v20  ;;  %v11378_v20 = vpack.c.bf16 %v9708_v5, %v9704_v16  ;;  %v11380_v57 = vpack.c.bf16 %v9717_v24, %v9713_v53  ;;  %v9720_v24 = vld [vmem:[%s20731_s5 + $0xbc0] sm:$0xff] }
 0x5e9   :  { %4674 = vmatmul.mubr.f32.gmra.mrb[188].mxu1 %v20888_v13 }
 0x5ea   :  { %9639 = vmatprep.mubr.msk.f32.mxu1 %vm3244_vm5, %v20889_v22  ;;  %11279 = vmatpush1.bf16.msra.mxu1 %v11278_v1  ;;  %v9716_v1 = vld [vmem:[%s20731_s5 + $0xba0] sm:$0xff] }
 0x5eb   :  { %11377 = vmatprep.subr.bf16.mxu1 %v11376_v50  ;;  %v11382_v16 = vpack.c.bf16 %v9716_v1, %v9712_v8  ;;  %v9728_v8 = vld [vmem:[%s20731_s5 + $0xc00] sm:$0xff] }
 0x5ec   :  { %v17735_v50 = vpop.f32.mrb[0].mxu0  ;;  %v9732_v1 = vld [vmem:[%s20731_s5 + $0xc20] sm:$0xff] }
 0x5ed   :  { %4680 = vmatmul.mubr.f32.gmra.mrb[190].mxu1 %v20890_v46  ;;  %20891 = vst [vmem:[#allocation19_spill] sm:$0xff] %v17735_v50  ;;  %v17743_v5 = vpop.f32.mrb[1].mxu0  ;;  %v9724_v50 = vld [vmem:[%s20731_s5 + $0xbe0] sm:$0xff] }
 0x5ee   :  { %9640 = vmatprep.mubr.msk.f32.mxu1 %vm3244_vm5, %v16573_v59  ;;  %v9725_v59 = vld [vmem:[%s20731_s5 + $0xbe8] sm:$0xff] }
 0x5ef   :  { %v11384_v53 = vpack.c.bf16 %v9725_v59, %v9721_v31  ;;  %v11386_v31 = vpack.c.bf16 %v9724_v50, %v9720_v24  ;;  %v9736_v24 = vld [vmem:[%s20731_s5 + $0xc40] sm:$0xff] }
 0x5f0   :  { %v17754_v62 = vpop.f32.mrb[2].mxu0 }
 0x5f1   :  { %4751 = vmatmul.mubr.f32.vlgmr.msra.gmra.mrb[192].mxu1 %v20880_v45  ;;  %v9729_v45 = vld [vmem:[%s20731_s5 + $0xc08] sm:$0xff] }
 0x5f2   :  { %9641 = vmatprep.mubr.msk.f32.mxu1 %vm3244_vm5, %v16598_v37  ;;  %11379 = vmatpush1.bf16.msra.mxu1 %v11378_v20  ;;  %v9733_v37 = vld [vmem:[%s20731_s5 + $0xc28] sm:$0xff]  ;;  %v17762_v20 = vpop.f32.mrb[3].mxu0 }
 0x5f3   :  { %11381 = vmatprep.subr.bf16.mxu1 %v11380_v57  ;;  %v11388_v57 = vpack.c.bf16 %v9733_v37, %v9729_v45  ;;  %v9740_v45 = vld [vmem:[%s20731_s5 + $0xc60] sm:$0xff] }
 0x5f4   :  { %v17773_v59 = vpop.f32.mrb[4].mxu0 }
 0x5f5   :  { %4757 = vmatmul.mubr.f32.gmra.mrb[194].mxu1 %v16587_v52  ;;  %v9737_v52 = vld [vmem:[%s20731_s5 + $0xc48] sm:$0xff]  ;;  %v17781_v50 = vpop.f32.mrb[5].mxu0 }
 0x5f6   :  { %9642 = vmatprep.mubr.msk.f32.mxu1 %vm3244_vm5, %v16623_v47  ;;  %11383 = vmatpush1.bf16.msra.mxu1 %v11382_v16  ;;  %v9741_v47 = vld [vmem:[%s20731_s5 + $0xc68] sm:$0xff]  ;;  %v11390_v16 = vpack.c.bf16 %v9732_v1, %v9728_v8  ;;  %v9744_v1 = vld [vmem:[%s20731_s5 + $0xc80] sm:$0xff] }
 0x5f7   :  { %11385 = vmatprep.subr.bf16.mxu1 %v11384_v53  ;;  %v11392_v53 = vpack.c.bf16 %v9741_v47, %v9737_v52  ;;  %v9748_v52 = vld [vmem:[%s20731_s5 + $0xca0] sm:$0xff] }
 0x5f8   :  { %v17792_v37 = vpop.f32.mrb[6].mxu0 }
 0x5f9   :  { %4763 = vmatmul.mubr.f32.gmra.mrb[196].mxu1 %v16612_v3  ;;  %v9745_v3 = vld [vmem:[%s20731_s5 + $0xc88] sm:$0xff] }
 0x5fa   :  { %9643 = vmatprep.mubr.msk.f32.mxu1 %vm3244_vm5, %v16648_v28  ;;  %11387 = vmatpush1.bf16.msra.mxu1 %v11386_v31  ;;  %v9749_v28 = vld [vmem:[%s20731_s5 + $0xca8] sm:$0xff]  ;;  %v17800_v31 = vpop.f32.mrb[7].mxu0 }
 0x5fb   :  { %11389 = vmatprep.subr.bf16.mxu1 %v11388_v57  ;;  %v11394_v57 = vpack.c.bf16 %v9740_v45, %v9736_v24  ;;  %v11396_v8 = vpack.c.bf16 %v9749_v28, %v9745_v3  ;;  %v9752_v45 = vld [vmem:[%s20731_s5 + $0xcc0] sm:$0xff] }
 0x5fc   :  { %v17811_v47 = vpop.f32.mrb[8].mxu0  ;;  %v9756_v3 = vld [vmem:[%s20731_s5 + $0xce0] sm:$0xff] }
 0x5fd   :  { %4769 = vmatmul.mubr.f32.gmra.mrb[198].mxu1 %v16637_v38  ;;  %v9753_v38 = vld [vmem:[%s20731_s5 + $0xcc8] sm:$0xff] }
 0x5fe   :  { %9644 = vmatprep.mubr.msk.f32.mxu1 %vm3244_vm5, %v16673_v56  ;;  %11391 = vmatpush1.bf16.msra.mxu1 %v11390_v16  ;;  %v9757_v56 = vld [vmem:[%s20731_s5 + $0xce8] sm:$0xff]  ;;  %v17819_v16 = vpop.f32.mrb[9].mxu0 }
 0x5ff   :  { %11393 = vmatprep.subr.bf16.mxu1 %v11392_v53  ;;  %v11398_v53 = vpack.c.bf16 %v9748_v52, %v9744_v1  ;;  %v11400_v24 = vpack.c.bf16 %v9757_v56, %v9753_v38  ;;  %v9760_v52 = vld [vmem:[%s20731_s5 + $0xd00] sm:$0xff] }
 0x600   :  { %v17830_v28 = vpop.f32.mrb[10].mxu0  ;;  %v9764_v38 = vld [vmem:[%s20731_s5 + $0xd20] sm:$0xff] }
 0x601   :  { %4775 = vmatmul.mubr.f32.gmra.mrb[200].mxu1 %v16662_v7  ;;  %v9761_v7 = vld [vmem:[%s20731_s5 + $0xd08] sm:$0xff] }
 0x602   :  { %9645 = vmatprep.mubr.msk.f32.mxu1 %vm3244_vm5, %v16698_v49  ;;  %11395 = vmatpush1.bf16.msra.mxu1 %v11394_v57  ;;  %v9765_v49 = vld [vmem:[%s20731_s5 + $0xd28] sm:$0xff]  ;;  %v17838_v57 = vpop.f32.mrb[11].mxu0 }
 0x603   :  { %11397 = vmatprep.subr.bf16.mxu1 %v11396_v8  ;;  %v11402_v8 = vpack.c.bf16 %v9756_v3, %v9752_v45  ;;  %v11404_v1 = vpack.c.bf16 %v9765_v49, %v9761_v7  ;;  %v9768_v3 = vld [vmem:[%s20731_s5 + $0xd40] sm:$0xff] }
 0x604   :  { %v17849_v56 = vpop.f32.mrb[12].mxu0  ;;  %v9772_v7 = vld [vmem:[%s20731_s5 + $0xd60] sm:$0xff] }
 0x605   :  { %4781 = vmatmul.mubr.f32.gmra.mrb[202].mxu1 %v16687_v40  ;;  %v9769_v40 = vld [vmem:[%s20731_s5 + $0xd48] sm:$0xff] }
 0x606   :  { %9646 = vmatprep.mubr.msk.f32.mxu1 %vm3244_vm5, %v16723_v36  ;;  %11399 = vmatpush1.bf16.msra.mxu1 %v11398_v53  ;;  %v9773_v36 = vld [vmem:[%s20731_s5 + $0xd68] sm:$0xff]  ;;  %v17857_v53 = vpop.f32.mrb[13].mxu0 }
 0x607   :  { %11401 = vmatprep.subr.bf16.mxu1 %v11400_v24  ;;  %v11406_v24 = vpack.c.bf16 %v9764_v38, %v9760_v52  ;;  %v11408_v45 = vpack.c.bf16 %v9773_v36, %v9769_v40  ;;  %v9776_v38 = vld [vmem:[%s20731_s5 + $0xd80] sm:$0xff] }
 0x608   :  { %v17868_v49 = vpop.f32.mrb[14].mxu0  ;;  %v9780_v40 = vld [vmem:[%s20731_s5 + $0xda0] sm:$0xff] }
 0x609   :  { %4787 = vmatmul.mubr.f32.gmra.mrb[204].mxu1 %v16712_v21  ;;  %v9777_v21 = vld [vmem:[%s20731_s5 + $0xd88] sm:$0xff] }
 0x60a   :  { %9647 = vmatprep.mubr.msk.f32.mxu1 %vm3244_vm5, %v16748_v9  ;;  %11403 = vmatpush1.bf16.msra.mxu1 %v11402_v8  ;;  %v9781_v9 = vld [vmem:[%s20731_s5 + $0xda8] sm:$0xff]  ;;  %v17876_v8 = vpop.f32.mrb[15].mxu0 }
 0x60b   :  { %11405 = vmatprep.subr.bf16.mxu1 %v11404_v1  ;;  %v11410_v1 = vpack.c.bf16 %v9772_v7, %v9768_v3  ;;  %v11412_v52 = vpack.c.bf16 %v9781_v9, %v9777_v21  ;;  %v9784_v7 = vld [vmem:[%s20731_s5 + $0xdc0] sm:$0xff] }
 0x60c   :  { %v17887_v36 = vpop.f32.mrb[16].mxu0  ;;  %v9788_v21 = vld [vmem:[%s20731_s5 + $0xde0] sm:$0xff] }
 0x60d   :  { %4793 = vmatmul.mubr.f32.gmra.mrb[206].mxu1 %v16737_v30  ;;  %v9785_v30 = vld [vmem:[%s20731_s5 + $0xdc8] sm:$0xff] }
 0x60e   :  { %9648 = vmatprep.mubr.msk.f32.mxu1 %vm3244_vm5, %v16773_v6  ;;  %11407 = vmatpush1.bf16.msra.mxu1 %v11406_v24  ;;  %v9789_v6 = vld [vmem:[%s20731_s5 + $0xde8] sm:$0xff]  ;;  %v17895_v24 = vpop.f32.mrb[17].mxu0 }
 0x60f   :  { %11409 = vmatprep.subr.bf16.mxu1 %v11408_v45  ;;  %v11414_v45 = vpack.c.bf16 %v9780_v40, %v9776_v38  ;;  %v11416_v3 = vpack.c.bf16 %v9789_v6, %v9785_v30  ;;  %v9792_v40 = vld [vmem:[%s20731_s5 + $0xe00] sm:$0xff] }
 0x610   :  { %v17906_v9 = vpop.f32.mrb[18].mxu0  ;;  %v9796_v30 = vld [vmem:[%s20731_s5 + $0xe20] sm:$0xff] }
 0x611   :  { %4799 = vmatmul.mubr.f32.gmra.mrb[208].mxu1 %v16762_v41  ;;  %v9793_v41 = vld [vmem:[%s20731_s5 + $0xe08] sm:$0xff] }
 0x612   :  { %9649 = vmatprep.mubr.msk.f32.mxu1 %vm3244_vm5, %v16798_v34  ;;  %11411 = vmatpush1.bf16.msra.mxu1 %v11410_v1  ;;  %v9797_v34 = vld [vmem:[%s20731_s5 + $0xe28] sm:$0xff]  ;;  %v17914_v1 = vpop.f32.mrb[19].mxu0 }
 0x613   :  { %11413 = vmatprep.subr.bf16.mxu1 %v11412_v52  ;;  %v11418_v52 = vpack.c.bf16 %v9788_v21, %v9784_v7  ;;  %v11420_v38 = vpack.c.bf16 %v9797_v34, %v9793_v41  ;;  %v9800_v21 = vld [vmem:[%s20731_s5 + $0xe40] sm:$0xff] }
 0x614   :  { %v17925_v6 = vpop.f32.mrb[20].mxu0  ;;  %v9804_v41 = vld [vmem:[%s20731_s5 + $0xe60] sm:$0xff] }
 0x615   :  { %4805 = vmatmul.mubr.f32.gmra.mrb[210].mxu1 %v16787_v26  ;;  %v9801_v26 = vld [vmem:[%s20731_s5 + $0xe48] sm:$0xff] }
 0x616   :  { %9650 = vmatprep.mubr.msk.f32.mxu1 %vm3244_vm5, %v16823_v25  ;;  %11415 = vmatpush1.bf16.msra.mxu1 %v11414_v45  ;;  %v9805_v25 = vld [vmem:[%s20731_s5 + $0xe68] sm:$0xff]  ;;  %v17933_v45 = vpop.f32.mrb[21].mxu0 }
 0x617   :  { %11417 = vmatprep.subr.bf16.mxu1 %v11416_v3  ;;  %v11422_v3 = vpack.c.bf16 %v9796_v30, %v9792_v40  ;;  %v11424_v7 = vpack.c.bf16 %v9805_v25, %v9801_v26  ;;  %v9808_v30 = vld [vmem:[%s20731_s5 + $0xe80] sm:$0xff] }
 0x618   :  { %v17944_v34 = vpop.f32.mrb[22].mxu0  ;;  %v9812_v26 = vld [vmem:[%s20731_s5 + $0xea0] sm:$0xff] }
 0x619   :  { %4811 = vmatmul.mubr.f32.gmra.mrb[212].mxu1 %v20881_v35  ;;  %20892 = vst [vmem:[#allocation22_spill] sm:$0xff] %v17944_v34  ;;  %v9809_v35 = vld [vmem:[%s20731_s5 + $0xe88] sm:$0xff] }
 0x61a   :  { %9651 = vmatprep.mubr.msk.f32.mxu1 %vm3244_vm5, %v16846_v2  ;;  %11419 = vmatpush1.bf16.msra.mxu1 %v11418_v52  ;;  %v9813_v2 = vld [vmem:[%s20731_s5 + $0xea8] sm:$0xff]  ;;  %v17952_v52 = vpop.f32.mrb[23].mxu0 }
 0x61b   :  { %11421 = vmatprep.subr.bf16.mxu1 %v11420_v38  ;;  %v11426_v38 = vpack.c.bf16 %v9804_v41, %v9800_v21  ;;  %v11428_v40 = vpack.c.bf16 %v9813_v2, %v9809_v35  ;;  %v9816_v41 = vld [vmem:[%s20731_s5 + $0xec0] sm:$0xff]  ;;  %v9925_v34 = vld [vmem:[%s20731_s5 + $0xfa8] sm:$0xff] }
 0x61c   :  { %v17963_v25 = vpop.f32.mrb[24].mxu0  ;;  %v9820_v35 = vld [vmem:[%s20731_s5 + $0xee0] sm:$0xff] }
 0x61d   :  { %4817 = vmatmul.mubr.f32.gmra.mrb[214].mxu1 %v20882_v42  ;;  %20893 = vst [vmem:[#allocation18_spill] sm:$0xff] %v17963_v25  ;;  %v9817_v42 = vld [vmem:[%s20731_s5 + $0xec8] sm:$0xff]  ;;  %v9904_v25 = vld [vmem:[%s20731_s5 + $0xf00] sm:$0xff] }
 0x61e   :  { %9652 = vmatprep.mubr.msk.f32.mxu1 %vm3244_vm5, %v20883_v0  ;;  %11423 = vmatpush1.bf16.msra.mxu1 %v11422_v3  ;;  %v9821_v0 = vld [vmem:[%s20731_s5 + $0xee8] sm:$0xff]  ;;  %v17971_v3 = vpop.f32.mrb[25].mxu0 }
 0x61f   :  { %11425 = vmatprep.subr.bf16.mxu1 %v11424_v7  ;;  %20894 = vst [vmem:[#allocation21_spill] sm:$0xff] %v17971_v3  ;;  %v11430_v7 = vpack.c.bf16 %v9812_v26, %v9808_v30  ;;  %v11432_v21 = vpack.c.bf16 %v9821_v0, %v9817_v42  ;;  %v9908_v3 = vld [vmem:[%s20731_s5 + $0xf20] sm:$0xff] }
 0x620   :  { %v17982_v2 = vpop.f32.mrb[26].mxu0 }
 0x621   :  { %4823 = vmatmul.mubr.f32.gmra.mrb[216].mxu1 %v20884_v55  ;;  %20895 = vst [vmem:[#allocation25_spill] sm:$0xff] %v17982_v2  ;;  %v9707_v55 = vld [vmem:[%s20731_s5 + $0xb58] sm:$0xff]  ;;  %v9905_v2 = vld [vmem:[%s20731_s5 + $0xf08] sm:$0xff] }
 0x622   :  { %9653 = vmatprep.mubr.msk.f32.mxu1 %vm3244_vm5, %v20885_v32  ;;  %11427 = vmatpush1.bf16.msra.mxu1 %v11426_v38  ;;  %v9711_v32 = vld [vmem:[%s20731_s5 + $0xb78] sm:$0xff]  ;;  %v17990_v38 = vpop.f32.mrb[27].mxu0 }
 0x623   :  { %11429 = vmatprep.subr.bf16.mxu1 %v11428_v40  ;;  %20896 = vst [vmem:[#allocation24_spill] sm:$0xff] %v17990_v38  ;;  %v11434_v40 = vpack.c.bf16 %v9820_v35, %v9816_v41  ;;  %v11436_v30 = vpack.c.bf16 %v9711_v32, %v9707_v55  ;;  %v9714_v55 = vld [vmem:[%s20731_s5 + $0xb90] sm:$0xff]  ;;  %v9909_v38 = vld [vmem:[%s20731_s5 + $0xf28] sm:$0xff] }
 0x624   :  { %v17995_v26 = vpop.f32.mrb[28].mxu0  ;;  %v9718_v32 = vld [vmem:[%s20731_s5 + $0xbb0] sm:$0xff] }
 0x625   :  { %4829 = vmatmul.mubr.f32.gmra.mrb[218].mxu1 %v20886_v12  ;;  %20897 = vst [vmem:[#allocation27_spill] sm:$0xff] %v17995_v26  ;;  %v17997_v42 = vpop.f32.mrb[29].mxu0  ;;  %v9706_v12 = vld [vmem:[%s20731_s5 + $0xb50] sm:$0xff]  ;;  %v9819_v26 = vld [vmem:[%s20731_s5 + $0xed8] sm:$0xff] }
 0x626   :  { %9654 = vmatprep.mubr.msk.f32.mxu1 %vm3244_vm5, %v20887_v33  ;;  %11431 = vmatpush1.bf16.msra.mxu1 %v11430_v7  ;;  %20898 = vst [vmem:[#allocation26_spill] sm:$0xff] %v17997_v42  ;;  %v9710_v33 = vld [vmem:[%s20731_s5 + $0xb70] sm:$0xff]  ;;  %v9715_v7 = vld [vmem:[%s20731_s5 + $0xb98] sm:$0xff] }
 0x627   :  { %11433 = vmatprep.subr.bf16.mxu1 %v11432_v21  ;;  %v20901_v21 = vld [vmem:[#allocation9_spill] sm:$0xff]  ;;  %v11438_v41 = vpack.c.bf16 %v9710_v33, %v9706_v12  ;;  %v11442_v12 = vpack.c.bf16 %v9718_v32, %v9714_v55  ;;  %v9823_v42 = vld [vmem:[%s20731_s5 + $0xef8] sm:$0xff] }
 0x628   :  { %v18008_v0 = vpop.f32.mrb[30].mxu0  ;;  %v9730_v55 = vld [vmem:[%s20731_s5 + $0xc10] sm:$0xff] }
 0x629   :  { %4835 = vmatmul.mubr.f32.gmra.mrb[220].mxu1 %v20888_v13  ;;  %20899 = vst [vmem:[#allocation29_spill] sm:$0xff] %v18008_v0  ;;  %v9719_v13 = vld [vmem:[%s20731_s5 + $0xbb8] sm:$0xff]  ;;  %v9734_v32 = vld [vmem:[%s20731_s5 + $0xc30] sm:$0xff] }
 0x62a   :  { %9655 = vmatprep.mubr.msk.f32.mxu1 %vm3244_vm5, %v20889_v22  ;;  %11435 = vmatpush1.bf16.msra.mxu1 %v11434_v40  ;;  %v18016_v22 = vpop.f32.mrb[31].mxu0  ;;  %v11440_v35 = vpack.c.bf16 %v9719_v13, %v9715_v7  ;;  %v9723_v40 = vld [vmem:[%s20731_s5 + $0xbd8] sm:$0xff]  ;;  %v9722_v7 = vld [vmem:[%s20731_s5 + $0xbd0] sm:$0xff] }
 0x62b   :  { %11437 = vmatprep.subr.bf16.mxu1 %v11436_v30  ;;  %20900 = vst [vmem:[#allocation28_spill] sm:$0xff] %v18016_v22  ;;  %v20902_v30 = vld [vmem:[#allocation7_spill] sm:$0xff]  ;;  %v9726_v13 = vld [vmem:[%s20731_s5 + $0xbf0] sm:$0xff]  ;;  %v9731_v0 = vld [vmem:[%s20731_s5 + $0xc18] sm:$0xff] }
 0x62c   :  { %v9735_v22 = vld [vmem:[%s20731_s5 + $0xc38] sm:$0xff] }
 0x62d   :  { %4841 = vmatmul.mubr.f32.gmra.mrb[222].mxu1 %v20890_v46  ;;  %v9727_v46 = vld [vmem:[%s20731_s5 + $0xbf8] sm:$0xff] }
 0x62e   :  { %9824 = vmatprep.mubr.msk.f32.mxu1 %vm3244_vm5, %v20901_v21  ;;  %v11444_v33 = vpack.c.bf16 %v9727_v46, %v9723_v40  ;;  %v9739_v40 = vld [vmem:[%s20731_s5 + $0xc58] sm:$0xff] }
 0x62f   :  { %v9743_v46 = vld [vmem:[%s20731_s5 + $0xc78] sm:$0xff] }
 0x631   :  { %5516 = vmatmul.mubr.f32.vlgmr.msra.gmra.mrb[160].mxu1 %v20902_v30 }
 0x632   :  { %9825 = vmatprep.mubr.msk.f32.mxu1 %vm3244_vm5, %v17236_v63  ;;  %11439 = vmatpush1.bf16.msra.mxu1 %v11438_v41  ;;  %v11446_v41 = vpack.c.bf16 %v9726_v13, %v9722_v7  ;;  %v9747_v7 = vld [vmem:[%s20731_s5 + $0xc98] sm:$0xff] }
 0x633   :  { %11441 = vmatprep.subr.bf16.mxu1 %v11440_v35  ;;  %v11448_v35 = vpack.c.bf16 %v9735_v22, %v9731_v0  ;;  %v11450_v0 = vpack.c.bf16 %v9734_v32, %v9730_v55  ;;  %v11452_v22 = vpack.c.bf16 %v9743_v46, %v9739_v40  ;;  %v9751_v13 = vld [vmem:[%s20731_s5 + $0xcb8] sm:$0xff]  ;;  %v9746_v55 = vld [vmem:[%s20731_s5 + $0xc90] sm:$0xff] }
 0x634   :  { %v9750_v32 = vld [vmem:[%s20731_s5 + $0xcb0] sm:$0xff]  ;;  %v9755_v40 = vld [vmem:[%s20731_s5 + $0xcd8] sm:$0xff] }
 0x635   :  { %5522 = vmatmul.mubr.f32.gmra.mrb[162].mxu1 %v17228_v18  ;;  %v9759_v46 = vld [vmem:[%s20731_s5 + $0xcf8] sm:$0xff] }
 0x636   :  { %9826 = vmatprep.mubr.msk.f32.mxu1 %vm3244_vm5, %v17255_v27  ;;  %11443 = vmatpush1.bf16.msra.mxu1 %v11442_v12  ;;  %v9738_v12 = vld [vmem:[%s20731_s5 + $0xc50] sm:$0xff] }
 0x637   :  { %11445 = vmatprep.subr.bf16.mxu1 %v11444_v33  ;;  %v9742_v33 = vld [vmem:[%s20731_s5 + $0xc70] sm:$0xff] }
 0x639   :  { %5528 = vmatmul.mubr.f32.gmra.mrb[164].mxu1 %v17247_v54 }
 0x63a   :  { %9827 = vmatprep.mubr.msk.f32.mxu1 %vm3244_vm5, %v17274_v58  ;;  %11447 = vmatpush1.bf16.msra.mxu1 %v11446_v41  ;;  %v11454_v41 = vpack.c.bf16 %v9742_v33, %v9738_v12  ;;  %v9754_v12 = vld [vmem:[%s20731_s5 + $0xcd0] sm:$0xff] }
 0x63b   :  { %11449 = vmatprep.subr.bf16.mxu1 %v11448_v35  ;;  %v11456_v35 = vpack.c.bf16 %v9751_v13, %v9747_v7  ;;  %v9758_v33 = vld [vmem:[%s20731_s5 + $0xcf0] sm:$0xff]  ;;  %v9763_v7 = vld [vmem:[%s20731_s5 + $0xd18] sm:$0xff] }
 0x63c   :  { %v9767_v13 = vld [vmem:[%s20731_s5 + $0xd38] sm:$0xff] }
 0x63d   :  { %5534 = vmatmul.mubr.f32.gmra.mrb[166].mxu1 %v17266_v61 }
 0x63e   :  { %9828 = vmatprep.mubr.msk.f32.mxu1 %vm3244_vm5, %v17293_v10  ;;  %11451 = vmatpush1.bf16.msra.mxu1 %v11450_v0  ;;  %v11458_v0 = vpack.c.bf16 %v9750_v32, %v9746_v55  ;;  %v9762_v55 = vld [vmem:[%s20731_s5 + $0xd10] sm:$0xff] }
 0x63f   :  { %11453 = vmatprep.subr.bf16.mxu1 %v11452_v22  ;;  %v11460_v22 = vpack.c.bf16 %v9759_v46, %v9755_v40  ;;  %v9766_v32 = vld [vmem:[%s20731_s5 + $0xd30] sm:$0xff]  ;;  %v9771_v40 = vld [vmem:[%s20731_s5 + $0xd58] sm:$0xff] }
 0x640   :  { %v9775_v46 = vld [vmem:[%s20731_s5 + $0xd78] sm:$0xff] }
 0x641   :  { %5540 = vmatmul.mubr.f32.gmra.mrb[168].mxu1 %v17285_v14 }
 0x642   :  { %9829 = vmatprep.mubr.msk.f32.mxu1 %vm3244_vm5, %v17312_v23  ;;  %11455 = vmatpush1.bf16.msra.mxu1 %v11454_v41  ;;  %v11462_v41 = vpack.c.bf16 %v9758_v33, %v9754_v12  ;;  %v9770_v12 = vld [vmem:[%s20731_s5 + $0xd50] sm:$0xff] }
 0x643   :  { %11457 = vmatprep.subr.bf16.mxu1 %v11456_v35  ;;  %v11464_v35 = vpack.c.bf16 %v9767_v13, %v9763_v7  ;;  %v9774_v33 = vld [vmem:[%s20731_s5 + $0xd70] sm:$0xff]  ;;  %v9779_v7 = vld [vmem:[%s20731_s5 + $0xd98] sm:$0xff] }
 0x644   :  { %v9783_v13 = vld [vmem:[%s20731_s5 + $0xdb8] sm:$0xff] }
 0x645   :  { %5546 = vmatmul.mubr.f32.gmra.mrb[170].mxu1 %v17304_v17 }
 0x646   :  { %9830 = vmatprep.mubr.msk.f32.mxu1 %vm3244_vm5, %v17331_v11  ;;  %11459 = vmatpush1.bf16.msra.mxu1 %v11458_v0  ;;  %v11466_v0 = vpack.c.bf16 %v9766_v32, %v9762_v55  ;;  %v9778_v55 = vld [vmem:[%s20731_s5 + $0xd90] sm:$0xff] }
 0x647   :  { %11461 = vmatprep.subr.bf16.mxu1 %v11460_v22  ;;  %v11468_v22 = vpack.c.bf16 %v9775_v46, %v9771_v40  ;;  %v9782_v32 = vld [vmem:[%s20731_s5 + $0xdb0] sm:$0xff]  ;;  %v9787_v40 = vld [vmem:[%s20731_s5 + $0xdd8] sm:$0xff] }
 0x648   :  { %v9791_v46 = vld [vmem:[%s20731_s5 + $0xdf8] sm:$0xff] }
 0x649   :  { %5552 = vmatmul.mubr.f32.gmra.mrb[172].mxu1 %v17323_v44 }
 0x64a   :  { %9831 = vmatprep.mubr.msk.f32.mxu1 %vm3244_vm5, %v17350_v29  ;;  %11463 = vmatpush1.bf16.msra.mxu1 %v11462_v41  ;;  %v11470_v41 = vpack.c.bf16 %v9774_v33, %v9770_v12  ;;  %v9786_v12 = vld [vmem:[%s20731_s5 + $0xdd0] sm:$0xff] }
 0x64b   :  { %11465 = vmatprep.subr.bf16.mxu1 %v11464_v35  ;;  %v11472_v35 = vpack.c.bf16 %v9783_v13, %v9779_v7  ;;  %v9790_v33 = vld [vmem:[%s20731_s5 + $0xdf0] sm:$0xff]  ;;  %v9795_v7 = vld [vmem:[%s20731_s5 + $0xe18] sm:$0xff] }
 0x64c   :  { %v9799_v13 = vld [vmem:[%s20731_s5 + $0xe38] sm:$0xff] }
 0x64d   :  { %5558 = vmatmul.mubr.f32.gmra.mrb[174].mxu1 %v17342_v43 }
 0x64e   :  { %9832 = vmatprep.mubr.msk.f32.mxu1 %vm3244_vm5, %v17369_v51  ;;  %11467 = vmatpush1.bf16.msra.mxu1 %v11466_v0  ;;  %v11474_v0 = vpack.c.bf16 %v9782_v32, %v9778_v55  ;;  %v9794_v55 = vld [vmem:[%s20731_s5 + $0xe10] sm:$0xff] }
 0x64f   :  { %11469 = vmatprep.subr.bf16.mxu1 %v11468_v22  ;;  %v11476_v22 = vpack.c.bf16 %v9791_v46, %v9787_v40  ;;  %v9798_v32 = vld [vmem:[%s20731_s5 + $0xe30] sm:$0xff]  ;;  %v9803_v40 = vld [vmem:[%s20731_s5 + $0xe58] sm:$0xff] }
 0x650   :  { %v9807_v46 = vld [vmem:[%s20731_s5 + $0xe78] sm:$0xff] }
 0x651   :  { %5564 = vmatmul.mubr.f32.gmra.mrb[176].mxu1 %v17361_v4 }
 0x652   :  { %9833 = vmatprep.mubr.msk.f32.mxu1 %vm3244_vm5, %v17388_v39  ;;  %11471 = vmatpush1.bf16.msra.mxu1 %v11470_v41  ;;  %v11478_v41 = vpack.c.bf16 %v9790_v33, %v9786_v12  ;;  %v9802_v12 = vld [vmem:[%s20731_s5 + $0xe50] sm:$0xff] }
 0x653   :  { %11473 = vmatprep.subr.bf16.mxu1 %v11472_v35  ;;  %v11480_v35 = vpack.c.bf16 %v9799_v13, %v9795_v7  ;;  %v9806_v33 = vld [vmem:[%s20731_s5 + $0xe70] sm:$0xff]  ;;  %v9811_v7 = vld [vmem:[%s20731_s5 + $0xe98] sm:$0xff] }
 0x654   :  { %v9815_v13 = vld [vmem:[%s20731_s5 + $0xeb8] sm:$0xff] }
 0x655   :  { %5570 = vmatmul.mubr.f32.gmra.mrb[178].mxu1 %v17380_v15 }
 0x656   :  { %9834 = vmatprep.mubr.msk.f32.mxu1 %vm3244_vm5, %v17407_v19  ;;  %11475 = vmatpush1.bf16.msra.mxu1 %v11474_v0  ;;  %v11482_v0 = vpack.c.bf16 %v9798_v32, %v9794_v55  ;;  %v11486_v55 = vpack.c.bf16 %v9806_v33, %v9802_v12  ;;  %v11488_v32 = vpack.c.bf16 %v9815_v13, %v9811_v7  ;;  %v9818_v7 = vld [vmem:[%s20731_s5 + $0xed0] sm:$0xff] }
 0x657   :  { %11477 = vmatprep.subr.bf16.mxu1 %v11476_v22  ;;  %v11484_v22 = vpack.c.bf16 %v9807_v46, %v9803_v40  ;;  %v9810_v40 = vld [vmem:[%s20731_s5 + $0xe90] sm:$0xff]  ;;  %v11492_v33 = vpack.c.bf16 %v9823_v42, %v9819_v26  ;;  %v11592_v42 = vpack.c.bf16 %v9909_v38, %v9905_v2  ;;  %v9917_v2 = vld [vmem:[%s20731_s5 + $0xf68] sm:$0xff] }
 0x658   :  { %v9814_v46 = vld [vmem:[%s20731_s5 + $0xeb0] sm:$0xff] }
 0x659   :  { %5576 = vmatmul.mubr.f32.gmra.mrb[180].mxu1 %v17399_v60  ;;  %v11490_v12 = vpack.c.bf16 %v9814_v46, %v9810_v40  ;;  %v9822_v13 = vld [vmem:[%s20731_s5 + $0xef0] sm:$0xff]  ;;  %v20909_v40 = vld [vmem:[#allocation15_spill] sm:$0xff]  ;;  %v20910_v46 = vld [vmem:[#allocation16_spill] sm:$0xff] }
 0x65a   :  { %9835 = vmatprep.mubr.msk.f32.mxu1 %vm3244_vm5, %v17426_v48  ;;  %11479 = vmatpush1.bf16.msra.mxu1 %v11478_v41  ;;  %v20903_v41 = vld [vmem:[#allocation8_spill] sm:$0xff]  ;;  %v11494_v26 = vpack.c.bf16 %v9822_v13, %v9818_v7  ;;  %v20911_v38 = vld [vmem:[#allocation17_spill] sm:$0xff]  ;;  %v9912_v13 = vld [vmem:[%s20731_s5 + $0xf40] sm:$0xff] }
 0x65b   :  { %11481 = vmatprep.subr.bf16.mxu1 %v11480_v35  ;;  %v20904_v35 = vld [vmem:[#allocation10_spill] sm:$0xff] }
 0x65d   :  { %5582 = vmatmul.mubr.f32.gmra.mrb[182].mxu1 %v20903_v41 }
 0x65e   :  { %9836 = vmatprep.mubr.msk.f32.mxu1 %vm3244_vm5, %v20904_v35  ;;  %11483 = vmatpush1.bf16.msra.mxu1 %v11482_v0  ;;  %v20905_v0 = vld [vmem:[#allocation11_spill] sm:$0xff] }
 0x65f   :  { %11485 = vmatprep.subr.bf16.mxu1 %v11484_v22  ;;  %v20906_v22 = vld [vmem:[#allocation12_spill] sm:$0xff] }
 0x661   :  { %5588 = vmatmul.mubr.f32.gmra.mrb[184].mxu1 %v20905_v0 }
 0x662   :  { %9837 = vmatprep.mubr.msk.f32.mxu1 %vm3244_vm5, %v20906_v22  ;;  %11487 = vmatpush1.bf16.msra.mxu1 %v11486_v55  ;;  %v20907_v55 = vld [vmem:[#allocation13_spill] sm:$0xff] }
 0x663   :  { %11489 = vmatprep.subr.bf16.mxu1 %v11488_v32  ;;  %v20908_v32 = vld [vmem:[#allocation14_spill] sm:$0xff] }
 0x665   :  { %5594 = vmatmul.mubr.f32.gmra.mrb[186].mxu1 %v20907_v55 }
 0x666   :  { %9838 = vmatprep.mubr.msk.f32.mxu1 %vm3244_vm5, %v20908_v32  ;;  %11491 = vmatpush1.bf16.msra.mxu1 %v11490_v12  ;;  %v9913_v12 = vld [vmem:[%s20731_s5 + $0xf48] sm:$0xff] }
 0x667   :  { %11493 = vmatprep.subr.bf16.mxu1 %v11492_v33  ;;  %v11594_v33 = vpack.c.bf16 %v9908_v3, %v9904_v25  ;;  %v11596_v7 = vpack.c.bf16 %v9917_v2, %v9913_v12  ;;  %v9924_v12 = vld [vmem:[%s20731_s5 + $0xfa0] sm:$0xff]  ;;  %v9929_v2 = vld [vmem:[%s20731_s5 + $0xfc8] sm:$0xff] }
 0x669   :  { %5600 = vmatmul.mubr.f32.gmra.mrb[188].mxu1 %v20909_v40 }
 0x66a   :  { %9839 = vmatprep.mubr.msk.f32.mxu1 %vm3244_vm5, %v20910_v46  ;;  %11495 = vmatpush1.bf16.msra.mxu1 %v11494_v26  ;;  %v9916_v26 = vld [vmem:[%s20731_s5 + $0xf60] sm:$0xff] }
 0x66b   :  { %11593 = vmatprep.subr.bf16.mxu1 %v11592_v42  ;;  %v9921_v42 = vld [vmem:[%s20731_s5 + $0xf88] sm:$0xff]  ;;  %v11598_v25 = vpack.c.bf16 %v9916_v26, %v9912_v13 }
 0x66c   :  { %v11600_v3 = vpack.c.bf16 %v9925_v34, %v9921_v42  ;;  %v9937_v13 = vld [vmem:[%s20731_s5 + $0x1008] sm:$0xff]  ;;  %v9936_v42 = vld [vmem:[%s20731_s5 + $0x1000] sm:$0xff] }
 0x66d   :  { %5606 = vmatmul.mubr.f32.gmra.mrb[190].mxu1 %v20911_v38 }
 0x66e   :  { %9840 = vmatprep.mubr.msk.f32.mxu1 %vm3244_vm5, %v20901_v21  ;;  %v9920_v21 = vld [vmem:[%s20731_s5 + $0xf80] sm:$0xff] }
 0x66f   :  { %v11602_v34 = vpack.c.bf16 %v9924_v12, %v9920_v21  ;;  %v9944_v12 = vld [vmem:[%s20731_s5 + $0x1040] sm:$0xff] }
 0x671   :  { %5677 = vmatmul.mubr.f32.vlgmr.msra.gmra.mrb[192].mxu1 %v20902_v30 }
 0x672   :  { %9841 = vmatprep.mubr.msk.f32.mxu1 %vm3244_vm5, %v17236_v63  ;;  %11595 = vmatpush1.bf16.msra.mxu1 %v11594_v33  ;;  %v9933_v63 = vld [vmem:[%s20731_s5 + $0xfe8] sm:$0xff]  ;;  %v9928_v33 = vld [vmem:[%s20731_s5 + $0xfc0] sm:$0xff] }
 0x673   :  { %11597 = vmatprep.subr.bf16.mxu1 %v11596_v7  ;;  %v11604_v30 = vpack.c.bf16 %v9933_v63, %v9929_v2  ;;  %v9932_v7 = vld [vmem:[%s20731_s5 + $0xfe0] sm:$0xff]  ;;  %v9953_v63 = vld [vmem:[%s20731_s5 + $0x1088] sm:$0xff] }
 0x674   :  { %v9948_v2 = vld [vmem:[%s20731_s5 + $0x1060] sm:$0xff] }
 0x675   :  { %5683 = vmatmul.mubr.f32.gmra.mrb[194].mxu1 %v17228_v18  ;;  %v9941_v18 = vld [vmem:[%s20731_s5 + $0x1028] sm:$0xff] }
 0x676   :  { %9842 = vmatprep.mubr.msk.f32.mxu1 %vm3244_vm5, %v17255_v27  ;;  %11599 = vmatpush1.bf16.msra.mxu1 %v11598_v25  ;;  %v11606_v27 = vpack.c.bf16 %v9932_v7, %v9928_v33  ;;  %v11608_v26 = vpack.c.bf16 %v9941_v18, %v9937_v13  ;;  %v9940_v25 = vld [vmem:[%s20731_s5 + $0x1020] sm:$0xff]  ;;  %v9961_v7 = vld [vmem:[%s20731_s5 + $0x10c8] sm:$0xff] }
 0x677   :  { %11601 = vmatprep.subr.bf16.mxu1 %v11600_v3  ;;  %v9945_v3 = vld [vmem:[%s20731_s5 + $0x1048] sm:$0xff]  ;;  %v9956_v33 = vld [vmem:[%s20731_s5 + $0x10a0] sm:$0xff] }
 0x678   :  { %v9960_v18 = vld [vmem:[%s20731_s5 + $0x10c0] sm:$0xff] }
 0x679   :  { %5689 = vmatmul.mubr.f32.gmra.mrb[196].mxu1 %v17247_v54  ;;  %v9949_v54 = vld [vmem:[%s20731_s5 + $0x1068] sm:$0xff] }
 0x67a   :  { %9843 = vmatprep.mubr.msk.f32.mxu1 %vm3244_vm5, %v17274_v58  ;;  %11603 = vmatpush1.bf16.msra.mxu1 %v11602_v34  ;;  %v11610_v58 = vpack.c.bf16 %v9940_v25, %v9936_v42  ;;  %v11612_v21 = vpack.c.bf16 %v9949_v54, %v9945_v3  ;;  %v9968_v25 = vld [vmem:[%s20731_s5 + $0x1100] sm:$0xff]  ;;  %v9977_v54 = vld [vmem:[%s20731_s5 + $0x1148] sm:$0xff] }
 0x67b   :  { %11605 = vmatprep.subr.bf16.mxu1 %v11604_v30  ;;  %v9952_v30 = vld [vmem:[%s20731_s5 + $0x1080] sm:$0xff] }
 0x67c   :  { %v9972_v3 = vld [vmem:[%s20731_s5 + $0x1120] sm:$0xff] }
 0x67d   :  { %5695 = vmatmul.mubr.f32.gmra.mrb[198].mxu1 %v17266_v61  ;;  %v9957_v61 = vld [vmem:[%s20731_s5 + $0x10a8] sm:$0xff] }
 0x67e   :  { %9844 = vmatprep.mubr.msk.f32.mxu1 %vm3244_vm5, %v17293_v10  ;;  %11607 = vmatpush1.bf16.msra.mxu1 %v11606_v27  ;;  %v11614_v10 = vpack.c.bf16 %v9948_v2, %v9944_v12  ;;  %v11616_v34 = vpack.c.bf16 %v9957_v61, %v9953_v63  ;;  %v9964_v27 = vld [vmem:[%s20731_s5 + $0x10e0] sm:$0xff]  ;;  %v9985_v2 = vld [vmem:[%s20731_s5 + $0x1188] sm:$0xff] }
 0x67f   :  { %11609 = vmatprep.subr.bf16.mxu1 %v11608_v26  ;;  %v9969_v26 = vld [vmem:[%s20731_s5 + $0x1108] sm:$0xff]  ;;  %v9980_v12 = vld [vmem:[%s20731_s5 + $0x1160] sm:$0xff] }
 0x680   :  { %v9984_v61 = vld [vmem:[%s20731_s5 + $0x1180] sm:$0xff] }
 0x681   :  { %5701 = vmatmul.mubr.f32.gmra.mrb[200].mxu1 %v17285_v14  ;;  %v9965_v14 = vld [vmem:[%s20731_s5 + $0x10e8] sm:$0xff] }
 0x682   :  { %9845 = vmatprep.mubr.msk.f32.mxu1 %vm3244_vm5, %v17312_v23  ;;  %11611 = vmatpush1.bf16.msra.mxu1 %v11610_v58  ;;  %v11618_v23 = vpack.c.bf16 %v9956_v33, %v9952_v30  ;;  %v11620_v13 = vpack.c.bf16 %v9965_v14, %v9961_v7  ;;  %v9992_v33 = vld [vmem:[%s20731_s5 + $0x11c0] sm:$0xff]  ;;  %v10001_v14 = vld [vmem:[%s20731_s5 + $0x1208] sm:$0xff] }
 0x683   :  { %11613 = vmatprep.subr.bf16.mxu1 %v11612_v21  ;;  %v9976_v21 = vld [vmem:[%s20731_s5 + $0x1140] sm:$0xff] }
 0x684   :  { %v9996_v7 = vld [vmem:[%s20731_s5 + $0x11e0] sm:$0xff] }
 0x685   :  { %5707 = vmatmul.mubr.f32.gmra.mrb[202].mxu1 %v17304_v17  ;;  %v9973_v17 = vld [vmem:[%s20731_s5 + $0x1128] sm:$0xff] }
 0x686   :  { %9846 = vmatprep.mubr.msk.f32.mxu1 %vm3244_vm5, %v17331_v11  ;;  %11615 = vmatpush1.bf16.msra.mxu1 %v11614_v10  ;;  %v11622_v11 = vpack.c.bf16 %v9964_v27, %v9960_v18  ;;  %v11624_v42 = vpack.c.bf16 %v9973_v17, %v9969_v26  ;;  %v9988_v10 = vld [vmem:[%s20731_s5 + $0x11a0] sm:$0xff]  ;;  %v10009_v27 = vld [vmem:[%s20731_s5 + $0x1248] sm:$0xff] }
 0x687   :  { %11617 = vmatprep.subr.bf16.mxu1 %v11616_v34  ;;  %v9993_v34 = vld [vmem:[%s20731_s5 + $0x11c8] sm:$0xff]  ;;  %v10004_v18 = vld [vmem:[%s20731_s5 + $0x1220] sm:$0xff] }
 0x688   :  { %v10008_v17 = vld [vmem:[%s20731_s5 + $0x1240] sm:$0xff] }
 0x689   :  { %5713 = vmatmul.mubr.f32.gmra.mrb[204].mxu1 %v17323_v44  ;;  %v9981_v44 = vld [vmem:[%s20731_s5 + $0x1168] sm:$0xff] }
 0x68a   :  { %9847 = vmatprep.mubr.msk.f32.mxu1 %vm3244_vm5, %v17350_v29  ;;  %11619 = vmatpush1.bf16.msra.mxu1 %v11618_v23  ;;  %v11626_v29 = vpack.c.bf16 %v9972_v3, %v9968_v25  ;;  %v11628_v58 = vpack.c.bf16 %v9981_v44, %v9977_v54  ;;  %v10016_v3 = vld [vmem:[%s20731_s5 + $0x1280] sm:$0xff]  ;;  %v9907_v44 = vld [vmem:[%s20731_s5 + $0xf18] sm:$0xff] }
 0x68b   :  { %11621 = vmatprep.subr.bf16.mxu1 %v11620_v13  ;;  %v10000_v13 = vld [vmem:[%s20731_s5 + $0x1200] sm:$0xff] }
 0x68c   :  { %v10020_v54 = vld [vmem:[%s20731_s5 + $0x12a0] sm:$0xff] }
 0x68d   :  { %5719 = vmatmul.mubr.f32.gmra.mrb[206].mxu1 %v17342_v43  ;;  %v9989_v43 = vld [vmem:[%s20731_s5 + $0x11a8] sm:$0xff] }
 0x68e   :  { %9848 = vmatprep.mubr.msk.f32.mxu1 %vm3244_vm5, %v17369_v51  ;;  %11623 = vmatpush1.bf16.msra.mxu1 %v11622_v11  ;;  %v11630_v51 = vpack.c.bf16 %v9980_v12, %v9976_v21  ;;  %v11632_v63 = vpack.c.bf16 %v9989_v43, %v9985_v2  ;;  %v10012_v11 = vld [vmem:[%s20731_s5 + $0x1260] sm:$0xff]  ;;  %v9918_v21 = vld [vmem:[%s20731_s5 + $0xf70] sm:$0xff]  ;;  %v6914_v12 = vld [vmem:[%s20733_s7 + $0x8] sm:$0xff] }
 0x68f   :  { %11625 = vmatprep.subr.bf16.mxu1 %v11624_v42  ;;  %v10017_v42 = vld [vmem:[%s20731_s5 + $0x1288] sm:$0xff]  ;;  %v6916_v2 = vld [vmem:[%s20733_s7 + $0x18] sm:$0xff] }
 0x691   :  { %5725 = vmatmul.mubr.f32.gmra.mrb[208].mxu1 %v17361_v4  ;;  %v9997_v4 = vld [vmem:[%s20731_s5 + $0x11e8] sm:$0xff] }
 0x692   :  { %9849 = vmatprep.mubr.msk.f32.mxu1 %vm3244_vm5, %v17388_v39  ;;  %11627 = vmatpush1.bf16.msra.mxu1 %v11626_v29  ;;  %v11634_v39 = vpack.c.bf16 %v9988_v10, %v9984_v61  ;;  %v11636_v30 = vpack.c.bf16 %v9997_v4, %v9993_v34  ;;  %v6918_v61 = vld [vmem:[%s20733_s7 + $0x28] sm:$0xff]  ;;  %v6920_v10 = vld [vmem:[%s20733_s7 + $0x38] sm:$0xff] }
 0x693   :  { %11629 = vmatprep.subr.bf16.mxu1 %v11628_v58  ;;  %v9906_v58 = vld [vmem:[%s20731_s5 + $0xf10] sm:$0xff]  ;;  %v9923_v4 = vld [vmem:[%s20731_s5 + $0xf98] sm:$0xff] }
 0x695   :  { %5731 = vmatmul.mubr.f32.gmra.mrb[210].mxu1 %v17380_v15  ;;  %v10005_v15 = vld [vmem:[%s20731_s5 + $0x1228] sm:$0xff] }
 0x696   :  { %9850 = vmatprep.mubr.msk.f32.mxu1 %vm3244_vm5, %v17407_v19  ;;  %11631 = vmatpush1.bf16.msra.mxu1 %v11630_v51  ;;  %v11638_v19 = vpack.c.bf16 %v9996_v7, %v9992_v33  ;;  %v11640_v23 = vpack.c.bf16 %v10005_v15, %v10001_v14  ;;  %v11712_v51 = vpack.c.bf16 %v6916_v2, %v6914_v12  ;;  %v6917_v33 = vld [vmem:[%s20733_s7 + $0x20] sm:$0xff]  ;;  %v6919_v7 = vld [vmem:[%s20733_s7 + $0x30] sm:$0xff]  ;;  %v9927_v14 = vld [vmem:[%s20731_s5 + $0xfb8] sm:$0xff] }
 0x697   :  { %11633 = vmatprep.subr.bf16.mxu1 %v11632_v63  ;;  %v6915_v63 = vld [vmem:[%s20733_s7 + $0x10] sm:$0xff]  ;;  %v6922_v15 = vld [vmem:[%s20733_s7 + $0x48] sm:$0xff] }
 0x698   :  { %11713 = vmatprep.subr.bf16.mxu0 %v11712_v51 }
 0x699   :  { %5737 = vmatmul.mubr.f32.gmra.mrb[212].mxu1 %v17399_v60  ;;  %v10013_v60 = vld [vmem:[%s20731_s5 + $0x1268] sm:$0xff] }
 0x69a   :  { %9851 = vmatprep.mubr.msk.f32.mxu1 %vm3244_vm5, %v17426_v48  ;;  %11635 = vmatpush1.bf16.msra.mxu1 %v11634_v39  ;;  %v11642_v48 = vpack.c.bf16 %v10004_v18, %v10000_v13  ;;  %v11644_v26 = vpack.c.bf16 %v10013_v60, %v10009_v27  ;;  %v11718_v13 = vpack.c.bf16 %v6919_v7, %v6917_v33  ;;  %v6921_v27 = vld [vmem:[%s20733_s7 + $0x40] sm:$0xff]  ;;  %v6923_v60 = vld [vmem:[%s20733_s7 + $0x50] sm:$0xff] }
 0x69b   :  { %11637 = vmatprep.subr.bf16.mxu1 %v11636_v30  ;;  %v11716_v30 = vpack.c.bf16 %v6920_v10, %v6918_v61  ;;  %v9942_v61 = vld [vmem:[%s20731_s5 + $0x1030] sm:$0xff]  ;;  %v9947_v10 = vld [vmem:[%s20731_s5 + $0x1058] sm:$0xff] }
 0x69d   :  { %5743 = vmatmul.mubr.f32.gmra.mrb[214].mxu1 %v20903_v41  ;;  %v10021_v41 = vld [vmem:[%s20731_s5 + $0x12a8] sm:$0xff] }
 0x69e   :  { %9852 = vmatprep.mubr.msk.f32.mxu1 %vm3244_vm5, %v20904_v35  ;;  %11639 = vmatpush1.bf16.msra.mxu1 %v11638_v19  ;;  %v11646_v35 = vpack.c.bf16 %v10012_v11, %v10008_v17  ;;  %v11648_v25 = vpack.c.bf16 %v10021_v41, %v10017_v42  ;;  %v6924_v19 = vld [vmem:[%s20733_s7 + $0x58] sm:$0xff]  ;;  %v9926_v17 = vld [vmem:[%s20731_s5 + $0xfb0] sm:$0xff] }
 0x69f   :  { %11641 = vmatprep.subr.bf16.mxu1 %v11640_v23  ;;  %v20912_v23 = vld [vmem:[#allocation19_spill] sm:$0xff]  ;;  %v9931_v11 = vld [vmem:[%s20731_s5 + $0xfd8] sm:$0xff]  ;;  %v11720_v42 = vpack.c.bf16 %v6924_v19, %v6922_v15  ;;  %v6935_v15 = vld [vmem:[%s20733_s7 + $0xb0] sm:$0xff] }
 0x6a0   :  { %v9935_v41 = vld [vmem:[%s20731_s5 + $0xff8] sm:$0xff] }
 0x6a1   :  { %5749 = vmatmul.mubr.f32.gmra.mrb[216].mxu1 %v20905_v0  ;;  %v9911_v0 = vld [vmem:[%s20731_s5 + $0xf38] sm:$0xff] }
 0x6a2   :  { %9853 = vmatprep.mubr.msk.f32.mxu1 %vm3244_vm5, %v20906_v22  ;;  %11643 = vmatpush1.bf16.msra.mxu1 %v11642_v48  ;;  %v11650_v22 = vpack.c.bf16 %v10020_v54, %v10016_v3  ;;  %v11652_v29 = vpack.c.bf16 %v9911_v0, %v9907_v44  ;;  %v11660_v48 = vpack.c.bf16 %v9927_v14, %v9923_v4  ;;  %v6925_v44 = vld [vmem:[%s20733_s7 + $0x60] sm:$0xff]  ;;  %v6927_v0 = vld [vmem:[%s20733_s7 + $0x70] sm:$0xff]  ;;  %v9951_v4 = vld [vmem:[%s20731_s5 + $0x1078] sm:$0xff] }
 0x6a3   :  { %11645 = vmatprep.subr.bf16.mxu1 %v11644_v26  ;;  %v9922_v26 = vld [vmem:[%s20731_s5 + $0xf90] sm:$0xff]  ;;  %v11722_v3 = vpack.c.bf16 %v6923_v60, %v6921_v27  ;;  %v11726_v12 = vpack.c.bf16 %v6927_v0, %v6925_v44  ;;  %v6933_v14 = vld [vmem:[%s20733_s7 + $0xa0] sm:$0xff]  ;;  %v11672_v19 = vpack.c.bf16 %v9951_v4, %v9947_v10  ;;  %v9955_v27 = vld [vmem:[%s20731_s5 + $0x1098] sm:$0xff] }
 0x6a4   :  { %v11662_v54 = vpack.c.bf16 %v9926_v17, %v9922_v26  ;;  %v6938_v26 = vld [vmem:[%s20733_s7 + $0xc8] sm:$0xff]  ;;  %v6940_v17 = vld [vmem:[%s20733_s7 + $0xd8] sm:$0xff]  ;;  %v6945_v4 = vld [vmem:[%s20733_s7 + $0x100] sm:$0xff] }
 0x6a5   :  { %5755 = vmatmul.mubr.f32.gmra.mrb[218].mxu1 %v20907_v55  ;;  %v9910_v55 = vld [vmem:[%s20731_s5 + $0xf30] sm:$0xff]  ;;  %v9963_v44 = vld [vmem:[%s20731_s5 + $0x10d8] sm:$0xff]  ;;  %v11736_v0 = vpack.c.bf16 %v6940_v17, %v6938_v26 }
 0x6a6   :  { %9854 = vmatprep.mubr.msk.f32.mxu1 %vm3244_vm5, %v20908_v32  ;;  %11647 = vmatpush1.bf16.msra.mxu1 %v11646_v35  ;;  %v9915_v32 = vld [vmem:[%s20731_s5 + $0xf58] sm:$0xff]  ;;  %v11654_v43 = vpack.c.bf16 %v9910_v55, %v9906_v58  ;;  %v6926_v35 = vld [vmem:[%s20733_s7 + $0x68] sm:$0xff]  ;;  %v9934_v58 = vld [vmem:[%s20731_s5 + $0xff0] sm:$0xff] }
 0x6a7   :  { %11649 = vmatprep.subr.bf16.mxu1 %v11648_v25  ;;  %v6928_v25 = vld [vmem:[%s20733_s7 + $0x78] sm:$0xff]  ;;  %v6951_v26 = vld [vmem:[%s20733_s7 + $0x130] sm:$0xff] }
 0x6a8   :  { %v9939_v55 = vld [vmem:[%s20731_s5 + $0x1018] sm:$0xff] }
 0x6a9   :  { %5761 = vmatmul.mubr.f32.gmra.mrb[220].mxu1 %v20909_v40  ;;  %v9919_v40 = vld [vmem:[%s20731_s5 + $0xf78] sm:$0xff] }
 0x6aa   :  { %9855 = vmatprep.mubr.msk.f32.mxu1 %vm3244_vm5, %v20910_v46  ;;  %11651 = vmatpush1.bf16.msra.mxu1 %v11650_v22  ;;  %v9914_v46 = vld [vmem:[%s20731_s5 + $0xf50] sm:$0xff]  ;;  %v11656_v34 = vpack.c.bf16 %v9919_v40, %v9915_v32  ;;  %v11664_v22 = vpack.c.bf16 %v9935_v41, %v9931_v11  ;;  %v11724_v32 = vpack.c.bf16 %v6928_v25, %v6926_v35  ;;  %v9943_v40 = vld [vmem:[%s20731_s5 + $0x1038] sm:$0xff]  ;;  %v6937_v41 = vld [vmem:[%s20733_s7 + $0xc0] sm:$0xff] }
 0x6ab   :  { %11653 = vmatprep.subr.bf16.mxu1 %v11652_v29  ;;  %v11658_v18 = vpack.c.bf16 %v9918_v21, %v9914_v46  ;;  %v9930_v29 = vld [vmem:[%s20731_s5 + $0xfd0] sm:$0xff]  ;;  %v6930_v46 = vld [vmem:[%s20733_s7 + $0x88] sm:$0xff]  ;;  %v6932_v21 = vld [vmem:[%s20733_s7 + $0x98] sm:$0xff]  ;;  %v11668_v51 = vpack.c.bf16 %v9943_v40, %v9939_v55  ;;  %v11734_v11 = vpack.c.bf16 %v6935_v15, %v6933_v14 }
 0x6ac   :  { %v11666_v2 = vpack.c.bf16 %v9934_v58, %v9930_v29  ;;  %v6939_v35 = vld [vmem:[%s20733_s7 + $0xd0] sm:$0xff]  ;;  %v6942_v29 = vld [vmem:[%s20733_s7 + $0xe8] sm:$0xff]  ;;  %v6944_v58 = vld [vmem:[%s20733_s7 + $0xf8] sm:$0xff] }
 0x6ad   :  { %5767 = vmatmul.mubr.f32.gmra.mrb[222].mxu1 %v20911_v38  ;;  %v6913_v38 = vld [vmem:[%s20733_s7] sm:$0xff]  ;;  %v11738_v55 = vpack.c.bf16 %v6939_v35, %v6937_v41  ;;  %v9979_v14 = vld [vmem:[%s20731_s5 + $0x1158] sm:$0xff] }
 0x6ae   :  { %10024 = vmatprep.mubr.msk.f32.mxu1 %vm3244_vm5, %v17743_v5  ;;  %v11714_v39 = vpack.c.bf16 %v6915_v63, %v6913_v38  ;;  %v6929_v38 = vld [vmem:[%s20733_s7 + $0x80] sm:$0xff]  ;;  %v9938_v63 = vld [vmem:[%s20731_s5 + $0x1010] sm:$0xff]  ;;  %v9987_v41 = vld [vmem:[%s20731_s5 + $0x1198] sm:$0xff] }
 0x6af   :  { %v11670_v7 = vpack.c.bf16 %v9942_v61, %v9938_v63  ;;  %v6941_v40 = vld [vmem:[%s20733_s7 + $0xe0] sm:$0xff]  ;;  %v6946_v63 = vld [vmem:[%s20733_s7 + $0x108] sm:$0xff]  ;;  %v6948_v61 = vld [vmem:[%s20733_s7 + $0x118] sm:$0xff] }
 0x6b0   :  { %11715 = vmatpush1.bf16.msra.mxu0 %v11714_v39  ;;  %v6934_v39 = vld [vmem:[%s20733_s7 + $0xa8] sm:$0xff]  ;;  %v11744_v15 = vpack.c.bf16 %v6948_v61, %v6946_v63  ;;  %v6959_v63 = vld [vmem:[%s20733_s7 + $0x170] sm:$0xff] }
 0x6b1   :  { %6442 = vmatmul.mubr.f32.vlgmr.msra.gmra.mrb[160].mxu1 %v20912_v23  ;;  %11717 = vmatprep.subr.bf16.mxu0 %v11716_v30  ;;  %v6936_v30 = vld [vmem:[%s20733_s7 + $0xb8] sm:$0xff] }
 0x6b2   :  { %10025 = vmatprep.mubr.msk.f32.mxu1 %vm3244_vm5, %v17762_v20  ;;  %11655 = vmatpush1.bf16.msra.mxu1 %v11654_v43  ;;  %v6931_v43 = vld [vmem:[%s20733_s7 + $0x90] sm:$0xff]  ;;  %v11732_v60 = vpack.c.bf16 %v6936_v30, %v6934_v39 }
 0x6b3   :  { %11657 = vmatprep.subr.bf16.mxu1 %v11656_v34  ;;  %v11728_v34 = vpack.c.bf16 %v6932_v21, %v6930_v46  ;;  %v11730_v33 = vpack.c.bf16 %v6931_v43, %v6929_v38  ;;  %v6943_v46 = vld [vmem:[%s20733_s7 + $0xf0] sm:$0xff]  ;;  %v9971_v38 = vld [vmem:[%s20731_s5 + $0x1118] sm:$0xff]  ;;  %v11740_v43 = vpack.c.bf16 %v6944_v58, %v6942_v29 }
 0x6b4   :  { %11719 = vmatpush1.bf16.msra.mxu0 %v11718_v13  ;;  %v9946_v13 = vld [vmem:[%s20731_s5 + $0x1050] sm:$0xff]  ;;  %v11742_v10 = vpack.c.bf16 %v6943_v46, %v6941_v40  ;;  %v9995_v40 = vld [vmem:[%s20731_s5 + $0x11d8] sm:$0xff] }
 0x6b5   :  { %6448 = vmatmul.mubr.f32.gmra.mrb[162].mxu1 %v17754_v62  ;;  %11721 = vmatprep.subr.bf16.mxu0 %v11720_v42  ;;  %v6947_v39 = vld [vmem:[%s20733_s7 + $0x110] sm:$0xff] }
 0x6b6   :  { %10026 = vmatprep.mubr.msk.f32.mxu1 %vm3244_vm5, %v17781_v50  ;;  %11659 = vmatpush1.bf16.msra.mxu1 %v11658_v18  ;;  %v9950_v18 = vld [vmem:[%s20731_s5 + $0x1070] sm:$0xff] }
 0x6b7   :  { %11661 = vmatprep.subr.bf16.mxu1 %v11660_v48  ;;  %v9959_v48 = vld [vmem:[%s20731_s5 + $0x10b8] sm:$0xff]  ;;  %v11674_v42 = vpack.c.bf16 %v9950_v18, %v9946_v13  ;;  %v6950_v13 = vld [vmem:[%s20733_s7 + $0x128] sm:$0xff]  ;;  %v6955_v29 = vld [vmem:[%s20733_s7 + $0x150] sm:$0xff] }
 0x6b8   :  { %11723 = vmatpush1.bf16.msra.mxu0 %v11722_v3  ;;  %v11676_v25 = vpack.c.bf16 %v9959_v48, %v9955_v27  ;;  %v9954_v3 = vld [vmem:[%s20731_s5 + $0x1090] sm:$0xff]  ;;  %v6952_v18 = vld [vmem:[%s20733_s7 + $0x138] sm:$0xff]  ;;  %v11746_v27 = vpack.c.bf16 %v6947_v39, %v6945_v4  ;;  %v6949_v48 = vld [vmem:[%s20733_s7 + $0x120] sm:$0xff] }
 0x6b9   :  { %6454 = vmatmul.mubr.f32.gmra.mrb[164].mxu1 %v17773_v59  ;;  %11725 = vmatprep.subr.bf16.mxu0 %v11724_v32  ;;  %v11748_v35 = vpack.c.bf16 %v6952_v18, %v6950_v13  ;;  %v10003_v4 = vld [vmem:[%s20731_s5 + $0x1218] sm:$0xff]  ;;  %v6963_v13 = vld [vmem:[%s20733_s7 + $0x190] sm:$0xff] }
 0x6ba   :  { %10027 = vmatprep.mubr.msk.f32.mxu1 %vm3244_vm5, %v17800_v31  ;;  %11663 = vmatpush1.bf16.msra.mxu1 %v11662_v54  ;;  %v9958_v54 = vld [vmem:[%s20731_s5 + $0x10b0] sm:$0xff] }
 0x6bb   :  { %11665 = vmatprep.subr.bf16.mxu1 %v11664_v22  ;;  %v9967_v22 = vld [vmem:[%s20731_s5 + $0x10f8] sm:$0xff]  ;;  %v11678_v32 = vpack.c.bf16 %v9958_v54, %v9954_v3  ;;  %v6954_v3 = vld [vmem:[%s20733_s7 + $0x148] sm:$0xff] }
 0x6bc   :  { %11727 = vmatpush1.bf16.msra.mxu0 %v11726_v12  ;;  %v11680_v21 = vpack.c.bf16 %v9967_v22, %v9963_v44  ;;  %v9962_v12 = vld [vmem:[%s20731_s5 + $0x10d0] sm:$0xff]  ;;  %v6956_v54 = vld [vmem:[%s20733_s7 + $0x158] sm:$0xff]  ;;  %v11750_v44 = vpack.c.bf16 %v6951_v26, %v6949_v48  ;;  %v6953_v22 = vld [vmem:[%s20733_s7 + $0x140] sm:$0xff] }
 0x6bd   :  { %6460 = vmatmul.mubr.f32.gmra.mrb[166].mxu1 %v17792_v37  ;;  %11729 = vmatprep.subr.bf16.mxu0 %v11728_v34  ;;  %v11752_v46 = vpack.c.bf16 %v6956_v54, %v6954_v3  ;;  %v10011_v48 = vld [vmem:[%s20731_s5 + $0x1258] sm:$0xff]  ;;  %v6965_v54 = vld [vmem:[%s20733_s7 + $0x1a0] sm:$0xff] }
 0x6be   :  { %10028 = vmatprep.mubr.msk.f32.mxu1 %vm3244_vm5, %v17819_v16  ;;  %11667 = vmatpush1.bf16.msra.mxu1 %v11666_v2  ;;  %v9966_v2 = vld [vmem:[%s20731_s5 + $0x10f0] sm:$0xff] }
 0x6bf   :  { %11669 = vmatprep.subr.bf16.mxu1 %v11668_v51  ;;  %v9975_v51 = vld [vmem:[%s20731_s5 + $0x1138] sm:$0xff]  ;;  %v11682_v34 = vpack.c.bf16 %v9966_v2, %v9962_v12  ;;  %v6958_v12 = vld [vmem:[%s20733_s7 + $0x168] sm:$0xff] }
 0x6c0   :  { %11731 = vmatpush1.bf16.msra.mxu0 %v11730_v33  ;;  %v11684_v30 = vpack.c.bf16 %v9975_v51, %v9971_v38  ;;  %v9970_v33 = vld [vmem:[%s20731_s5 + $0x1110] sm:$0xff]  ;;  %v6960_v2 = vld [vmem:[%s20733_s7 + $0x178] sm:$0xff]  ;;  %v11754_v38 = vpack.c.bf16 %v6955_v29, %v6953_v22  ;;  %v6957_v51 = vld [vmem:[%s20733_s7 + $0x160] sm:$0xff] }
 0x6c1   :  { %6466 = vmatmul.mubr.f32.gmra.mrb[168].mxu1 %v17811_v47  ;;  %11733 = vmatprep.subr.bf16.mxu0 %v11732_v60  ;;  %v11756_v39 = vpack.c.bf16 %v6960_v2, %v6958_v12  ;;  %v10010_v22 = vld [vmem:[%s20731_s5 + $0x1250] sm:$0xff]  ;;  %v20916_v2 = vld [vmem:[#allocation24_spill] sm:$0xff] }
 0x6c2   :  { %10029 = vmatprep.mubr.msk.f32.mxu1 %vm3244_vm5, %v17838_v57  ;;  %11671 = vmatpush1.bf16.msra.mxu1 %v11670_v7  ;;  %v9974_v7 = vld [vmem:[%s20731_s5 + $0x1130] sm:$0xff] }
 0x6c3   :  { %11673 = vmatprep.subr.bf16.mxu1 %v11672_v19  ;;  %v9983_v19 = vld [vmem:[%s20731_s5 + $0x1178] sm:$0xff]  ;;  %v11686_v60 = vpack.c.bf16 %v9974_v7, %v9970_v33  ;;  %v6962_v33 = vld [vmem:[%s20733_s7 + $0x188] sm:$0xff]  ;;  %v10014_v29 = vld [vmem:[%s20731_s5 + $0x1270] sm:$0xff] }
 0x6c4   :  { %11735 = vmatpush1.bf16.msra.mxu0 %v11734_v11  ;;  %v11688_v17 = vpack.c.bf16 %v9983_v19, %v9979_v14  ;;  %v9978_v11 = vld [vmem:[%s20731_s5 + $0x1150] sm:$0xff]  ;;  %v6964_v7 = vld [vmem:[%s20733_s7 + $0x198] sm:$0xff]  ;;  %v11758_v14 = vpack.c.bf16 %v6959_v63, %v6957_v51  ;;  %v6961_v19 = vld [vmem:[%s20733_s7 + $0x180] sm:$0xff] }
 0x6c5   :  { %6472 = vmatmul.mubr.f32.gmra.mrb[170].mxu1 %v17830_v28  ;;  %11737 = vmatprep.subr.bf16.mxu0 %v11736_v0  ;;  %v11760_v26 = vpack.c.bf16 %v6964_v7, %v6962_v33  ;;  %v10018_v51 = vld [vmem:[%s20731_s5 + $0x1290] sm:$0xff] }
 0x6c6   :  { %10030 = vmatprep.mubr.msk.f32.mxu1 %vm3244_vm5, %v17857_v53  ;;  %11675 = vmatpush1.bf16.msra.mxu1 %v11674_v42  ;;  %v9982_v42 = vld [vmem:[%s20731_s5 + $0x1170] sm:$0xff] }
 0x6c7   :  { %11677 = vmatprep.subr.bf16.mxu1 %v11676_v25  ;;  %v9991_v25 = vld [vmem:[%s20731_s5 + $0x11b8] sm:$0xff]  ;;  %v11690_v0 = vpack.c.bf16 %v9982_v42, %v9978_v11  ;;  %v6966_v11 = vld [vmem:[%s20733_s7 + $0x1a8] sm:$0xff]  ;;  %v10022_v63 = vld [vmem:[%s20731_s5 + $0x12b0] sm:$0xff] }
 0x6c8   :  { %11739 = vmatpush1.bf16.msra.mxu0 %v11738_v55  ;;  %v11692_v58 = vpack.c.bf16 %v9991_v25, %v9987_v41  ;;  %v9986_v55 = vld [vmem:[%s20731_s5 + $0x1190] sm:$0xff]  ;;  %v6968_v42 = vld [vmem:[%s20733_s7 + $0x1b8] sm:$0xff] }
 0x6c9   :  { %6478 = vmatmul.mubr.f32.gmra.mrb[172].mxu1 %v17849_v56  ;;  %11741 = vmatprep.subr.bf16.mxu0 %v11740_v43  ;;  %v20913_v41 = vld [vmem:[#allocation22_spill] sm:$0xff]  ;;  %v20914_v25 = vld [vmem:[#allocation21_spill] sm:$0xff] }
 0x6ca   :  { %10031 = vmatprep.mubr.msk.f32.mxu1 %vm3244_vm5, %v17876_v8  ;;  %11679 = vmatpush1.bf16.msra.mxu1 %v11678_v32  ;;  %v9990_v32 = vld [vmem:[%s20731_s5 + $0x11b0] sm:$0xff] }
 0x6cb   :  { %11681 = vmatprep.subr.bf16.mxu1 %v11680_v21  ;;  %v9999_v21 = vld [vmem:[%s20731_s5 + $0x11f8] sm:$0xff]  ;;  %v11694_v43 = vpack.c.bf16 %v9990_v32, %v9986_v55  ;;  %v11764_v55 = vpack.c.bf16 %v6968_v42, %v6966_v11  ;;  %v20921_v33 = vld [vmem:[#allocation29_spill] sm:$0xff] }
 0x6cc   :  { %11743 = vmatpush1.bf16.msra.mxu0 %v11742_v10  ;;  %v11696_v61 = vpack.c.bf16 %v9999_v21, %v9995_v40  ;;  %v9994_v10 = vld [vmem:[%s20731_s5 + $0x11d0] sm:$0xff]  ;;  %v10023_v32 = vld [vmem:[%s20731_s5 + $0x12b8] sm:$0xff]  ;;  %v6970_v40 = vld [vmem:[%s20733_s7 + $0x1c8] sm:$0xff] }
 0x6cd   :  { %6484 = vmatmul.mubr.f32.gmra.mrb[174].mxu1 %v17868_v49  ;;  %11745 = vmatprep.subr.bf16.mxu0 %v11744_v15  ;;  %v20915_v21 = vld [vmem:[#allocation18_spill] sm:$0xff]  ;;  %v6983_v11 = vld [vmem:[%s20733_s7 + $0x230] sm:$0xff] }
 0x6ce   :  { %10032 = vmatprep.mubr.msk.f32.mxu1 %vm3244_vm5, %v17895_v24  ;;  %11683 = vmatpush1.bf16.msra.mxu1 %v11682_v34  ;;  %v9998_v34 = vld [vmem:[%s20731_s5 + $0x11f0] sm:$0xff] }
 0x6cf   :  { %11685 = vmatprep.subr.bf16.mxu1 %v11684_v30  ;;  %v10007_v30 = vld [vmem:[%s20731_s5 + $0x1238] sm:$0xff]  ;;  %v11698_v15 = vpack.c.bf16 %v9998_v34, %v9994_v10  ;;  %v20917_v10 = vld [vmem:[#allocation25_spill] sm:$0xff] }
 0x6d0   :  { %11747 = vmatpush1.bf16.msra.mxu0 %v11746_v27  ;;  %v11700_v18 = vpack.c.bf16 %v10007_v30, %v10003_v4  ;;  %v10002_v27 = vld [vmem:[%s20731_s5 + $0x1210] sm:$0xff]  ;;  %v20918_v34 = vld [vmem:[#allocation26_spill] sm:$0xff]  ;;  %v11710_v4 = vpack.c.bf16 %v10022_v63, %v10018_v51  ;;  %v20920_v30 = vld [vmem:[#allocation28_spill] sm:$0xff] }
 0x6d1   :  { %6490 = vmatmul.mubr.f32.gmra.mrb[176].mxu1 %v17887_v36  ;;  %11749 = vmatprep.subr.bf16.mxu0 %v11748_v35  ;;  %v11762_v35 = vpack.c.bf16 %v6963_v13, %v6961_v19 }
 0x6d2   :  { %10033 = vmatprep.mubr.msk.f32.mxu1 %vm3244_vm5, %v17914_v1  ;;  %11687 = vmatpush1.bf16.msra.mxu1 %v11686_v60  ;;  %v10006_v60 = vld [vmem:[%s20731_s5 + $0x1230] sm:$0xff] }
 0x6d3   :  { %11689 = vmatprep.subr.bf16.mxu1 %v11688_v17  ;;  %v10015_v17 = vld [vmem:[%s20731_s5 + $0x1278] sm:$0xff]  ;;  %v11702_v3 = vpack.c.bf16 %v10006_v60, %v10002_v27 }
 0x6d4   :  { %11751 = vmatpush1.bf16.msra.mxu0 %v11750_v44  ;;  %v6967_v44 = vld [vmem:[%s20733_s7 + $0x1b0] sm:$0xff] }
 0x6d5   :  { %6496 = vmatmul.mubr.f32.gmra.mrb[178].mxu1 %v17906_v9  ;;  %11753 = vmatprep.subr.bf16.mxu0 %v11752_v46  ;;  %v6972_v46 = vld [vmem:[%s20733_s7 + $0x1d8] sm:$0xff]  ;;  %v11766_v12 = vpack.c.bf16 %v6967_v44, %v6965_v54 }
 0x6d6   :  { %10034 = vmatprep.mubr.msk.f32.mxu1 %vm3244_vm5, %v17933_v45  ;;  %11691 = vmatpush1.bf16.msra.mxu1 %v11690_v0  ;;  %v11704_v0 = vpack.c.bf16 %v10015_v17, %v10011_v48  ;;  %v6981_v17 = vld [vmem:[%s20733_s7 + $0x220] sm:$0xff] }
 0x6d7   :  { %11693 = vmatprep.subr.bf16.mxu1 %v11692_v58  ;;  %v10019_v58 = vld [vmem:[%s20731_s5 + $0x1298] sm:$0xff]  ;;  %v11782_v54 = vpack.c.bf16 %v6983_v11, %v6981_v17 }
 0x6d8   :  { %11755 = vmatpush1.bf16.msra.mxu0 %v11754_v38  ;;  %v11706_v38 = vpack.c.bf16 %v10014_v29, %v10010_v22 }
 0x6d9   :  { %6502 = vmatmul.mubr.f32.gmra.mrb[180].mxu1 %v17925_v6  ;;  %11757 = vmatprep.subr.bf16.mxu0 %v11756_v39  ;;  %v20919_v39 = vld [vmem:[#allocation27_spill] sm:$0xff] }
 0x6da   :  { %10035 = vmatprep.mubr.msk.f32.mxu1 %vm3244_vm5, %v17952_v52  ;;  %11695 = vmatpush1.bf16.msra.mxu1 %v11694_v43  ;;  %v11708_v43 = vpack.c.bf16 %v10023_v32, %v10019_v58  ;;  %v6985_v58 = vld [vmem:[%s20733_s7 + $0x240] sm:$0xff] }
 0x6db   :  { %11697 = vmatprep.subr.bf16.mxu1 %v11696_v61  ;;  %v11768_v61 = vpack.c.bf16 %v6972_v46, %v6970_v40  ;;  %v6990_v40 = vld [vmem:[%s20733_s7 + $0x268] sm:$0xff]  ;;  %v6992_v46 = vld [vmem:[%s20733_s7 + $0x278] sm:$0xff] }
 0x6dc   :  { %11759 = vmatpush1.bf16.msra.mxu0 %v11758_v14  ;;  %v6982_v14 = vld [vmem:[%s20733_s7 + $0x228] sm:$0xff]  ;;  %v11788_v63 = vpack.c.bf16 %v6992_v46, %v6990_v40  ;;  %v7007_v40 = vld [vmem:[%s20733_s7 + $0x2f0] sm:$0xff] }
 0x6dd   :  { %6508 = vmatmul.mubr.f32.gmra.mrb[182].mxu1 %v20913_v41  ;;  %11761 = vmatprep.subr.bf16.mxu0 %v11760_v26 }
 0x6de   :  { %10036 = vmatprep.mubr.msk.f32.mxu1 %vm3244_vm5, %v20914_v25  ;;  %11699 = vmatpush1.bf16.msra.mxu1 %v11698_v15  ;;  %v6984_v15 = vld [vmem:[%s20733_s7 + $0x238] sm:$0xff] }
 0x6df   :  { %11701 = vmatprep.subr.bf16.mxu1 %v11700_v18  ;;  %v11780_v26 = vpack.c.bf16 %v6984_v15, %v6982_v14  ;;  %v6999_v14 = vld [vmem:[%s20733_s7 + $0x2b0] sm:$0xff] }
 0x6e0   :  { %11763 = vmatpush1.bf16.msra.mxu0 %v11762_v35  ;;  %v6988_v35 = vld [vmem:[%s20733_s7 + $0x258] sm:$0xff] }
 0x6e1   :  { %6514 = vmatmul.mubr.f32.gmra.mrb[184].mxu1 %v20915_v21  ;;  %11765 = vmatprep.subr.bf16.mxu0 %v11764_v55  ;;  %v6987_v55 = vld [vmem:[%s20733_s7 + $0x250] sm:$0xff] }
 0x6e2   :  { %10037 = vmatprep.mubr.msk.f32.mxu1 %vm3244_vm5, %v20916_v2  ;;  %11703 = vmatpush1.bf16.msra.mxu1 %v11702_v3 }
 0x6e3   :  { %11705 = vmatprep.subr.bf16.mxu1 %v11704_v0 }
 0x6e4   :  { %11767 = vmatpush1.bf16.msra.mxu0 %v11766_v12 }
 0x6e5   :  { %6520 = vmatmul.mubr.f32.gmra.mrb[186].mxu1 %v20917_v10  ;;  %11769 = vmatprep.subr.bf16.mxu0 %v11768_v61  ;;  %v6989_v61 = vld [vmem:[%s20733_s7 + $0x260] sm:$0xff] }
 0x6e6   :  { %10038 = vmatprep.mubr.msk.f32.mxu1 %vm3244_vm5, %v20918_v34  ;;  %11707 = vmatpush1.bf16.msra.mxu1 %v11706_v38 }
 0x6e7   :  { %11709 = vmatprep.subr.bf16.mxu1 %v11708_v43 }
 0x6e9   :  { %6526 = vmatmul.mubr.f32.gmra.mrb[188].mxu1 %v20919_v39 }
 0x6ea   :  { %10039 = vmatprep.mubr.msk.f32.mxu1 %vm3244_vm5, %v20920_v30  ;;  %11711 = vmatpush1.bf16.msra.mxu1 %v11710_v4  ;;  %v6994_v4 = vld [vmem:[%s20733_s7 + $0x288] sm:$0xff] }
 0x6ed   :  { %6532 = vmatmul.mubr.f32.gmra.mrb[190].mxu1 %v20921_v33 }
 0x6ee   :  { %10040 = vmatprep.mubr.msk.f32.mxu1 %vm3244_vm5, %v17743_v5  ;;  %v6971_v5 = vld [vmem:[%s20733_s7 + $0x1d0] sm:$0xff] }
 0x6f1   :  { %6603 = vmatmul.mubr.f32.vlgmr.msra.gmra.mrb[192].mxu1 %v20912_v23  ;;  %v6979_v23 = vld [vmem:[%s20733_s7 + $0x210] sm:$0xff] }
 0x6f2   :  { %10041 = vmatprep.mubr.msk.f32.mxu1 %vm3244_vm5, %v17762_v20 }
 0x6f5   :  { %6609 = vmatmul.mubr.f32.gmra.mrb[194].mxu1 %v17754_v62  ;;  %v6969_v62 = vld [vmem:[%s20733_s7 + $0x1c0] sm:$0xff] }
 0x6f6   :  { %10042 = vmatprep.mubr.msk.f32.mxu1 %vm3244_vm5, %v17781_v50  ;;  %v11770_v20 = vpack.c.bf16 %v6971_v5, %v6969_v62  ;;  %v6976_v50 = vld [vmem:[%s20733_s7 + $0x1f8] sm:$0xff] }
 0x6f8   :  { %11771 = vmatpush1.bf16.msra.mxu0 %v11770_v20 }
 0x6f9   :  { %6615 = vmatmul.mubr.f32.gmra.mrb[196].mxu1 %v17773_v59  ;;  %v6974_v59 = vld [vmem:[%s20733_s7 + $0x1e8] sm:$0xff] }
 0x6fa   :  { %10043 = vmatprep.mubr.msk.f32.mxu1 %vm3244_vm5, %v17800_v31  ;;  %v6973_v31 = vld [vmem:[%s20733_s7 + $0x1e0] sm:$0xff] }
 0x6fd   :  { %6621 = vmatmul.mubr.f32.gmra.mrb[198].mxu1 %v17792_v37  ;;  %v11772_v37 = vpack.c.bf16 %v6976_v50, %v6974_v59 }
 0x6fe   :  { %10044 = vmatprep.mubr.msk.f32.mxu1 %vm3244_vm5, %v17819_v16 }
 0x6ff   :  { %11773 = vmatprep.subr.bf16.mxu0 %v11772_v37  ;;  %v6993_v37 = vld [vmem:[%s20733_s7 + $0x280] sm:$0xff] }
 0x701   :  { %6627 = vmatmul.mubr.f32.gmra.mrb[200].mxu1 %v17811_v47  ;;  %v6975_v47 = vld [vmem:[%s20733_s7 + $0x1f0] sm:$0xff] }
 0x702   :  { %10045 = vmatprep.mubr.msk.f32.mxu1 %vm3244_vm5, %v17838_v57  ;;  %v11774_v16 = vpack.c.bf16 %v6975_v47, %v6973_v31  ;;  %v6980_v57 = vld [vmem:[%s20733_s7 + $0x218] sm:$0xff]  ;;  %v6995_v31 = vld [vmem:[%s20733_s7 + $0x290] sm:$0xff] }
 0x704   :  { %11775 = vmatpush1.bf16.msra.mxu0 %v11774_v16  ;;  %v6998_v16 = vld [vmem:[%s20733_s7 + $0x2a8] sm:$0xff] }
 0x705   :  { %6633 = vmatmul.mubr.f32.gmra.mrb[202].mxu1 %v17830_v28  ;;  %v6978_v28 = vld [vmem:[%s20733_s7 + $0x208] sm:$0xff] }
 0x706   :  { %10046 = vmatprep.mubr.msk.f32.mxu1 %vm3244_vm5, %v17857_v53  ;;  %v20922_v53 = vmov 0.0  }
 0x709   :  { %6639 = vmatmul.mubr.f32.gmra.mrb[204].mxu1 %v17849_v56  ;;  %v11776_v56 = vpack.c.bf16 %v6980_v57, %v6978_v28  ;;  %v7000_v28 = vld [vmem:[%s20733_s7 + $0x2b8] sm:$0xff] }
 0x70a   :  { %10047 = vmatprep.mubr.msk.f32.mxu1 %vm3244_vm5, %v17876_v8  ;;  %v20923_v8 = vld [vmem:[#allocation5_spill] sm:$0xff] }
 0x70b   :  { %11777 = vmatprep.subr.bf16.mxu0 %v11776_v56 }
 0x70d   :  { %6645 = vmatmul.mubr.f32.gmra.mrb[206].mxu1 %v17868_v49  ;;  %v18935_v49 = vld [vmem:[%s20732_s6] sm:$0xf] }
 0x70e   :  { %10048 = vmatprep.mubr.msk.f32.mxu1 %vm3244_vm5, %v17895_v24  ;;  %v20924_v24 = vld [vmem:[#allocation6_spill] sm:$0xff] }
 0x711   :  { %6651 = vmatmul.mubr.f32.gmra.mrb[208].mxu1 %v17887_v36  ;;  %v18939_v36 = vrot.slane %v18935_v49, %v20923_v8 }
 0x712   :  { %10049 = vmatprep.mubr.msk.f32.mxu1 %vm3244_vm5, %v17914_v1 }
 0x715   :  { %6657 = vmatmul.mubr.f32.gmra.mrb[210].mxu1 %v17906_v9  ;;  %v18943_v9 = vrot.slane %v18935_v49, %v20924_v24 }
 0x716   :  { %10050 = vmatprep.mubr.msk.f32.mxu1 %vm3244_vm5, %v17933_v45 }
 0x719   :  { %6663 = vmatmul.mubr.f32.gmra.mrb[212].mxu1 %v17925_v6 }
 0x71a   :  { %10051 = vmatprep.mubr.msk.f32.mxu1 %vm3244_vm5, %v17952_v52  ;;  %v6977_v52 = vld [vmem:[%s20733_s7 + $0x200] sm:$0xff] }
 0x71b   :  { %v11778_v18 = vpack.c.bf16 %v6979_v23, %v6977_v52  ;;  %v11796_v23 = vpack.c.bf16 %v7000_v28, %v6998_v16 }
 0x71d   :  { %6669 = vmatmul.mubr.f32.gmra.mrb[214].mxu1 %v20913_v41  ;;  %v6986_v41 = vld [vmem:[%s20733_s7 + $0x248] sm:$0xff] }
 0x71e   :  { %10052 = vmatprep.mubr.msk.f32.mxu1 %vm3244_vm5, %v20914_v25  ;;  %v11784_v29 = vpack.c.bf16 %v6988_v35, %v6986_v41  ;;  %v7003_v41 = vld [vmem:[%s20733_s7 + $0x2d0] sm:$0xff] }
 0x721   :  { %6675 = vmatmul.mubr.f32.gmra.mrb[216].mxu1 %v20915_v21 }
 0x722   :  { %10053 = vmatprep.mubr.msk.f32.mxu1 %vm3244_vm5, %v20916_v2  ;;  %v11786_v2 = vpack.c.bf16 %v6987_v55, %v6985_v58 }
 0x725   :  { %6681 = vmatmul.mubr.f32.gmra.mrb[218].mxu1 %v20917_v10  ;;  %v6991_v10 = vld [vmem:[%s20733_s7 + $0x270] sm:$0xff] }
 0x726   :  { %10054 = vmatprep.mubr.msk.f32.mxu1 %vm3244_vm5, %v20918_v34  ;;  %v11790_v62 = vpack.c.bf16 %v6991_v10, %v6989_v61 }
 0x729   :  { %6687 = vmatmul.mubr.f32.gmra.mrb[220].mxu1 %v20919_v39  ;;  %v6996_v39 = vld [vmem:[%s20733_s7 + $0x298] sm:$0xff] }
 0x72a   :  { %10055 = vmatprep.mubr.msk.f32.mxu1 %vm3244_vm5, %v20920_v30  ;;  %v11792_v50 = vpack.c.bf16 %v6996_v39, %v6994_v4  ;;  %v7011_v4 = vld [vmem:[%s20733_s7 + $0x310] sm:$0xff] }
 0x72d   :  { %6693 = vmatmul.mubr.f32.gmra.mrb[222].mxu1 %v20921_v33 }
 0x72e   :  { %7630 = vmatprep.mubr.f32.mxu1 %v20922_v53 }
 0x784   :  { %v6443_v1 = vpop.f32.mrb[160].mxu1 }
 0x785   :  { %v6785_v6 = vadd.f32 %v18939_v36, %v6443_v1  ;;  %v6445_v45 = vpop.f32.mrb[161].mxu1  ;;  %v11794_v1 = vpack.c.bf16 %v6995_v31, %v6993_v37 }
 0x786   :  { %v6786_v7 = vadd.f32 %v18943_v9, %v6445_v45 }
 0x787   :  { %v6849_v27 = vmax.f32 %v6785_v6, 0.0 }
 0x788   :  { %v6850_v19 = vmax.f32 %v6786_v7, 0.0  ;;  %v6449_v13 = vpop.f32.mrb[162].mxu1  ;;  %v6997_v7 = vld [vmem:[%s20733_s7 + $0x2a0] sm:$0xff] }
 0x789   :  { %v6789_v60 = vadd.f32 %v18939_v36, %v6449_v13  ;;  %v6451_v48 = vpop.f32.mrb[163].mxu1  ;;  %v7004_v13 = vld [vmem:[%s20733_s7 + $0x2d8] sm:$0xff] }
 0x78a   :  { %v6790_v42 = vadd.f32 %v18943_v9, %v6451_v48  ;;  %7126 = vmatprep.mubr.f32.mxu0 %v6850_v19  ;;  %v7002_v19 = vld [vmem:[%s20733_s7 + $0x2c8] sm:$0xff] }
 0x78b   :  { %7127 = vmatmul.mubr.f32.vlgmr.msra.gmra.mrb[32].mxu0 %v6849_v27  ;;  %v6853_v44 = vmax.f32 %v6789_v60, 0.0  ;;  %v11798_v60 = vpack.c.bf16 %v6999_v14, %v6997_v7  ;;  %v11800_v11 = vpack.c.bf16 %v7004_v13, %v7002_v19 }
 0x78c   :  { %v6854_v25 = vmax.f32 %v6790_v42, 0.0  ;;  %v6455_v3 = vpop.f32.mrb[164].mxu1  ;;  %11779 = vmatpush1.bf16.msra.mxu0 %v11778_v18  ;;  %v7001_v42 = vld [vmem:[%s20733_s7 + $0x2c0] sm:$0xff] }
 0x78d   :  { %v6793_v0 = vadd.f32 %v18939_v36, %v6455_v3  ;;  %v6457_v22 = vpop.f32.mrb[165].mxu1  ;;  %11781 = vmatprep.subr.bf16.mxu0 %v11780_v26  ;;  %v7008_v3 = vld [vmem:[%s20733_s7 + $0x2f8] sm:$0xff] }
 0x78e   :  { %v6794_v32 = vadd.f32 %v18943_v9, %v6457_v22  ;;  %7132 = vmatprep.mubr.f32.mxu0 %v6854_v25  ;;  %v7006_v25 = vld [vmem:[%s20733_s7 + $0x2e8] sm:$0xff] }
 0x78f   :  { %7133 = vmatmul.mubr.f32.gmra.mrb[34].mxu0 %v6853_v44  ;;  %v6857_v38 = vmax.f32 %v6793_v0, 0.0  ;;  %v11802_v0 = vpack.c.bf16 %v7003_v41, %v7001_v42  ;;  %v11804_v55 = vpack.c.bf16 %v7008_v3, %v7006_v25 }
 0x790   :  { %v6858_v21 = vmax.f32 %v6794_v32, 0.0  ;;  %v6461_v12 = vpop.f32.mrb[166].mxu1  ;;  %11783 = vmatpush1.bf16.msra.mxu0 %v11782_v54  ;;  %v7005_v32 = vld [vmem:[%s20733_s7 + $0x2e0] sm:$0xff] }
 0x791   :  { %v6797_v43 = vadd.f32 %v18939_v36, %v6461_v12  ;;  %v6463_v51 = vpop.f32.mrb[167].mxu1  ;;  %11785 = vmatprep.subr.bf16.mxu0 %v11784_v29  ;;  %v7012_v12 = vld [vmem:[%s20733_s7 + $0x318] sm:$0xff] }
 0x792   :  { %v6798_v34 = vadd.f32 %v18943_v9, %v6463_v51  ;;  %7138 = vmatprep.mubr.f32.mxu0 %v6858_v21  ;;  %v7010_v21 = vld [vmem:[%s20733_s7 + $0x308] sm:$0xff] }
 0x793   :  { %7139 = vmatmul.mubr.f32.gmra.mrb[36].mxu0 %v6857_v38  ;;  %v6861_v5 = vmax.f32 %v6797_v43, 0.0  ;;  %v11806_v43 = vpack.c.bf16 %v7007_v40, %v7005_v32  ;;  %v11808_v10 = vpack.c.bf16 %v7012_v12, %v7010_v21 }
 0x794   :  { %v6862_v30 = vmax.f32 %v6798_v34, 0.0  ;;  %v6467_v33 = vpop.f32.mrb[168].mxu1  ;;  %11787 = vmatpush1.bf16.msra.mxu0 %v11786_v2  ;;  %v7009_v34 = vld [vmem:[%s20733_s7 + $0x300] sm:$0xff] }
 0x795   :  { %v6801_v20 = vadd.f32 %v18939_v36, %v6467_v33  ;;  %v6469_v59 = vpop.f32.mrb[169].mxu1  ;;  %11789 = vmatprep.subr.bf16.mxu0 %v11788_v63 }
 0x796   :  { %v6802_v47 = vadd.f32 %v18943_v9, %v6469_v59  ;;  %7144 = vmatprep.mubr.f32.mxu0 %v6862_v30 }
 0x797   :  { %7145 = vmatmul.mubr.f32.gmra.mrb[38].mxu0 %v6861_v5  ;;  %v6865_v6 = vmax.f32 %v6801_v20, 0.0 }
 0x798   :  { %v6866_v57 = vmax.f32 %v6802_v47, 0.0  ;;  %v6473_v56 = vpop.f32.mrb[170].mxu1  ;;  %11791 = vmatpush1.bf16.msra.mxu0 %v11790_v62  ;;  %v11810_v62 = vpack.c.bf16 %v7011_v4, %v7009_v34 }
 0x799   :  { %v6805_v45 = vadd.f32 %v18939_v36, %v6473_v56  ;;  %v6475_v52 = vpop.f32.mrb[171].mxu1  ;;  %11793 = vmatprep.subr.bf16.mxu0 %v11792_v50 }
 0x79a   :  { %v6806_v15 = vadd.f32 %v18943_v9, %v6475_v52  ;;  %7150 = vmatprep.mubr.f32.mxu0 %v6866_v57 }
 0x79b   :  { %7151 = vmatmul.mubr.f32.gmra.mrb[40].mxu0 %v6865_v6  ;;  %v6869_v48 = vmax.f32 %v6805_v45, 0.0 }
 0x79c   :  { %v6870_v18 = vmax.f32 %v6806_v15, 0.0  ;;  %v6479_v27 = vpop.f32.mrb[172].mxu1  ;;  %11795 = vmatpush1.bf16.msra.mxu0 %v11794_v1 }
 0x79d   :  { %v6809_v26 = vadd.f32 %v18939_v36, %v6479_v27  ;;  %v6481_v17 = vpop.f32.mrb[173].mxu1  ;;  %11797 = vmatprep.subr.bf16.mxu0 %v11796_v23 }
 0x79e   :  { %v6810_v35 = vadd.f32 %v18943_v9, %v6481_v17  ;;  %7156 = vmatprep.mubr.f32.mxu0 %v6870_v18 }
 0x79f   :  { %7157 = vmatmul.mubr.f32.gmra.mrb[42].mxu0 %v6869_v48  ;;  %v6873_v22 = vmax.f32 %v6809_v26, 0.0 }
 0x7a0   :  { %v6874_v54 = vmax.f32 %v6810_v35, 0.0  ;;  %v6485_v44 = vpop.f32.mrb[174].mxu1  ;;  %11799 = vmatpush1.bf16.msra.mxu0 %v11798_v60 }
 0x7a1   :  { %v6813_v29 = vadd.f32 %v18939_v36, %v6485_v44  ;;  %v6487_v58 = vpop.f32.mrb[175].mxu1  ;;  %11801 = vmatprep.subr.bf16.mxu0 %v11800_v11 }
 0x7a2   :  { %v6814_v46 = vadd.f32 %v18943_v9, %v6487_v58  ;;  %7162 = vmatprep.mubr.f32.mxu0 %v6874_v54 }
 0x7a3   :  { %7163 = vmatmul.mubr.f32.gmra.mrb[44].mxu0 %v6873_v22  ;;  %v6877_v51 = vmax.f32 %v6813_v29, 0.0 }
 0x7a4   :  { %v6878_v2 = vmax.f32 %v6814_v46, 0.0  ;;  %v6491_v38 = vpop.f32.mrb[176].mxu1  ;;  %11803 = vmatpush1.bf16.msra.mxu0 %v11802_v0  ;;  %v20926_v46 = vld [vmem:[#allocation20_spill] sm:$0xff] }
 0x7a5   :  { %v6817_v63 = vadd.f32 %v18939_v36, %v6491_v38  ;;  %v6493_v61 = vpop.f32.mrb[177].mxu1  ;;  %11805 = vmatprep.subr.bf16.mxu0 %v11804_v55  ;;  %v20925_v55 = vld [vmem:[#allocation23_spill] sm:$0xff]  ;;  %v19085_v21 = vrot.slane %v18935_v49, %v20926_v46 }
 0x7a6   :  { %v6818_v39 = vadd.f32 %v18943_v9, %v6493_v61  ;;  %7168 = vmatprep.mubr.f32.mxu0 %v6878_v2  ;;  %v19080_v32 = vrot.slane %v18935_v49, %v20925_v55 }
 0x7a7   :  { %7169 = vmatmul.mubr.f32.gmra.mrb[46].mxu0 %v6877_v51  ;;  %v6881_v5 = vmax.f32 %v6817_v63, 0.0 }
 0x7a8   :  { %v6882_v30 = vmax.f32 %v6818_v39, 0.0  ;;  %v6497_v33 = vpop.f32.mrb[178].mxu1  ;;  %11807 = vmatpush1.bf16.msra.mxu0 %v11806_v43 }
 0x7a9   :  { %v6821_v20 = vadd.f32 %v18939_v36, %v6497_v33  ;;  %v6499_v59 = vpop.f32.mrb[179].mxu1  ;;  %11809 = vmatprep.subr.bf16.mxu0 %v11808_v10 }
 0x7aa   :  { %v6822_v50 = vadd.f32 %v18943_v9, %v6499_v59  ;;  %7174 = vmatprep.mubr.f32.mxu0 %v6882_v30 }
 0x7ab   :  { %7175 = vmatmul.mubr.f32.gmra.mrb[48].mxu0 %v6881_v5  ;;  %v6885_v47 = vmax.f32 %v6821_v20, 0.0 }
 0x7ac   :  { %v6886_v37 = vmax.f32 %v6822_v50, 0.0  ;;  %v6503_v31 = vpop.f32.mrb[180].mxu1  ;;  %11811 = vmatpush1.bf16.msra.mxu0 %v11810_v62 }
 0x7ad   :  { %v6825_v16 = vadd.f32 %v18939_v36, %v6503_v31  ;;  %v6505_v28 = vpop.f32.mrb[181].mxu1 }
 0x7ae   :  { %v6826_v57 = vadd.f32 %v18943_v9, %v6505_v28  ;;  %7180 = vmatprep.mubr.f32.mxu0 %v6886_v37 }
 0x7af   :  { %7181 = vmatmul.mubr.f32.gmra.mrb[50].mxu0 %v6885_v47  ;;  %v6889_v6 = vmax.f32 %v6825_v16, 0.0 }
 0x7b0   :  { %v6890_v56 = vmax.f32 %v6826_v57, 0.0  ;;  %v6509_v1 = vpop.f32.mrb[182].mxu1 }
 0x7b1   :  { %v6829_v45 = vadd.f32 %v18939_v36, %v6509_v1  ;;  %v6511_v52 = vpop.f32.mrb[183].mxu1 }
 0x7b2   :  { %v6830_v23 = vadd.f32 %v18943_v9, %v6511_v52  ;;  %7186 = vmatprep.mubr.f32.mxu0 %v6890_v56 }
 0x7b3   :  { %7187 = vmatmul.mubr.f32.gmra.mrb[52].mxu0 %v6889_v6  ;;  %v6893_v15 = vmax.f32 %v6829_v45, 0.0 }
 0x7b4   :  { %v6894_v7 = vmax.f32 %v6830_v23, 0.0  ;;  %v6515_v14 = vpop.f32.mrb[184].mxu1 }
 0x7b5   :  { %v6833_v19 = vadd.f32 %v18939_v36, %v6515_v14  ;;  %v6517_v13 = vpop.f32.mrb[185].mxu1 }
 0x7b6   :  { %v6834_v18 = vadd.f32 %v18943_v9, %v6517_v13  ;;  %7192 = vmatprep.mubr.f32.mxu0 %v6894_v7 }
 0x7b7   :  { %7193 = vmatmul.mubr.f32.gmra.mrb[54].mxu0 %v6893_v15  ;;  %v6897_v48 = vmax.f32 %v6833_v19, 0.0 }
 0x7b8   :  { %v6898_v27 = vmax.f32 %v6834_v18, 0.0  ;;  %v6521_v60 = vpop.f32.mrb[186].mxu1 }
 0x7b9   :  { %v6837_v26 = vadd.f32 %v18939_v36, %v6521_v60  ;;  %v6523_v17 = vpop.f32.mrb[187].mxu1 }
 0x7ba   :  { %v6838_v11 = vadd.f32 %v18943_v9, %v6523_v17  ;;  %7198 = vmatprep.mubr.f32.mxu0 %v6898_v27 }
 0x7bb   :  { %7199 = vmatmul.mubr.f32.gmra.mrb[56].mxu0 %v6897_v48  ;;  %v6901_v35 = vmax.f32 %v6837_v26, 0.0 }
 0x7bc   :  { %v6902_v42 = vmax.f32 %v6838_v11, 0.0  ;;  %v6527_v41 = vpop.f32.mrb[188].mxu1 }
 0x7bd   :  { %v6841_v25 = vadd.f32 %v18939_v36, %v6527_v41  ;;  %v6529_v3 = vpop.f32.mrb[189].mxu1 }
 0x7be   :  { %v6842_v54 = vadd.f32 %v18943_v9, %v6529_v3  ;;  %7204 = vmatprep.mubr.f32.mxu0 %v6902_v42 }
 0x7bf   :  { %7205 = vmatmul.mubr.f32.gmra.mrb[58].mxu0 %v6901_v35  ;;  %v6905_v22 = vmax.f32 %v6841_v25, 0.0 }
 0x7c0   :  { %v6906_v44 = vmax.f32 %v6842_v54, 0.0  ;;  %v6533_v0 = vpop.f32.mrb[190].mxu1 }
 0x7c1   :  { %v6845_v29 = vadd.f32 %v18939_v36, %v6533_v0  ;;  %v6535_v58 = vpop.f32.mrb[191].mxu1 }
 0x7c2   :  { %v6846_v40 = vadd.f32 %v18943_v9, %v6535_v58  ;;  %7210 = vmatprep.mubr.f32.mxu0 %v6906_v44 }
 0x7c3   :  { %7211 = vmatmul.mubr.f32.gmra.mrb[60].mxu0 %v6905_v22  ;;  %v6909_v38 = vmax.f32 %v6845_v29, 0.0 }
 0x7c4   :  { %v6910_v12 = vmax.f32 %v6846_v40, 0.0  ;;  %v6604_v2 = vpop.f32.mrb[192].mxu1 }
 0x7c5   :  { %v6787_v43 = vadd.f32 %v19080_v32, %v6604_v2  ;;  %v6606_v51 = vpop.f32.mrb[193].mxu1 }
 0x7c6   :  { %v6788_v36 = vadd.f32 %v19085_v21, %v6606_v51  ;;  %7216 = vmatprep.mubr.f32.mxu0 %v6910_v12 }
 0x7c7   :  { %7217 = vmatmul.mubr.f32.gmra.mrb[62].mxu0 %v6909_v38  ;;  %v6851_v9 = vmax.f32 %v6787_v43, 0.0 }
 0x7c8   :  { %v6852_v63 = vmax.f32 %v6788_v36, 0.0  ;;  %v6610_v61 = vpop.f32.mrb[194].mxu1 }
 0x7c9   :  { %v6791_v10 = vadd.f32 %v19080_v32, %v6610_v61  ;;  %v6612_v34 = vpop.f32.mrb[195].mxu1 }
 0x7ca   :  { %v6792_v49 = vadd.f32 %v19085_v21, %v6612_v34  ;;  %10056 = vmatprep.mubr.msk.f32.mxu0 %vm7013_vm6, %v6852_v63 }
 0x7cb   :  { %7288 = vmatmul.mubr.f32.vlgmr.msra.gmra.mrb[32].mxu0 %v6851_v9  ;;  %v6855_v30 = vmax.f32 %v6791_v10, 0.0 }
 0x7cc   :  { %v6856_v4 = vmax.f32 %v6792_v49, 0.0  ;;  %v6616_v39 = vpop.f32.mrb[196].mxu1 }
 0x7cd   :  { %v6795_v33 = vadd.f32 %v19080_v32, %v6616_v39  ;;  %v6618_v62 = vpop.f32.mrb[197].mxu1 }
 0x7ce   :  { %v6796_v5 = vadd.f32 %v19085_v21, %v6618_v62  ;;  %10057 = vmatprep.mubr.msk.f32.mxu0 %vm7013_vm6, %v6856_v4 }
 0x7cf   :  { %7294 = vmatmul.mubr.f32.gmra.mrb[34].mxu0 %v6855_v30  ;;  %v6859_v50 = vmax.f32 %v6795_v33, 0.0 }
 0x7d0   :  { %v6860_v20 = vmax.f32 %v6796_v5, 0.0  ;;  %v6622_v59 = vpop.f32.mrb[198].mxu1 }
 0x7d1   :  { %v6799_v37 = vadd.f32 %v19080_v32, %v6622_v59  ;;  %v6624_v31 = vpop.f32.mrb[199].mxu1 }
 0x7d2   :  { %v6800_v47 = vadd.f32 %v19085_v21, %v6624_v31  ;;  %10058 = vmatprep.mubr.msk.f32.mxu0 %vm7013_vm6, %v6860_v20 }
 0x7d3   :  { %7300 = vmatmul.mubr.f32.gmra.mrb[36].mxu0 %v6859_v50  ;;  %v6863_v57 = vmax.f32 %v6799_v37, 0.0 }
 0x7d4   :  { %v6864_v16 = vmax.f32 %v6800_v47, 0.0  ;;  %v6628_v28 = vpop.f32.mrb[200].mxu1 }
 0x7d5   :  { %v6803_v56 = vadd.f32 %v19080_v32, %v6628_v28  ;;  %v6630_v1 = vpop.f32.mrb[201].mxu1 }
 0x7d6   :  { %v6804_v6 = vadd.f32 %v19085_v21, %v6630_v1  ;;  %10059 = vmatprep.mubr.msk.f32.mxu0 %vm7013_vm6, %v6864_v16 }
 0x7d7   :  { %7306 = vmatmul.mubr.f32.gmra.mrb[38].mxu0 %v6863_v57  ;;  %v6867_v23 = vmax.f32 %v6803_v56, 0.0 }
 0x7d8   :  { %v6868_v45 = vmax.f32 %v6804_v6, 0.0  ;;  %v6634_v52 = vpop.f32.mrb[202].mxu1 }
 0x7d9   :  { %v6807_v7 = vadd.f32 %v19080_v32, %v6634_v52  ;;  %v6636_v14 = vpop.f32.mrb[203].mxu1 }
 0x7da   :  { %v6808_v15 = vadd.f32 %v19085_v21, %v6636_v14  ;;  %10060 = vmatprep.mubr.msk.f32.mxu0 %vm7013_vm6, %v6868_v45 }
 0x7db   :  { %7312 = vmatmul.mubr.f32.gmra.mrb[40].mxu0 %v6867_v23  ;;  %v6871_v18 = vmax.f32 %v6807_v7, 0.0 }
 0x7dc   :  { %v6872_v19 = vmax.f32 %v6808_v15, 0.0  ;;  %v6640_v13 = vpop.f32.mrb[204].mxu1 }
 0x7dd   :  { %v6811_v27 = vadd.f32 %v19080_v32, %v6640_v13  ;;  %v6642_v60 = vpop.f32.mrb[205].mxu1 }
 0x7de   :  { %v6812_v48 = vadd.f32 %v19085_v21, %v6642_v60  ;;  %10061 = vmatprep.mubr.msk.f32.mxu0 %vm7013_vm6, %v6872_v19 }
 0x7df   :  { %7318 = vmatmul.mubr.f32.gmra.mrb[42].mxu0 %v6871_v18  ;;  %v6875_v11 = vmax.f32 %v6811_v27, 0.0 }
 0x7e0   :  { %v6876_v26 = vmax.f32 %v6812_v48, 0.0  ;;  %v6646_v17 = vpop.f32.mrb[206].mxu1 }
 0x7e1   :  { %v6815_v42 = vadd.f32 %v19080_v32, %v6646_v17  ;;  %v6648_v41 = vpop.f32.mrb[207].mxu1 }
 0x7e2   :  { %v6816_v35 = vadd.f32 %v19085_v21, %v6648_v41  ;;  %10062 = vmatprep.mubr.msk.f32.mxu0 %vm7013_vm6, %v6876_v26 }
 0x7e3   :  { %7324 = vmatmul.mubr.f32.gmra.mrb[44].mxu0 %v6875_v11  ;;  %v6879_v54 = vmax.f32 %v6815_v42, 0.0 }
 0x7e4   :  { %v6880_v25 = vmax.f32 %v6816_v35, 0.0  ;;  %v6652_v3 = vpop.f32.mrb[208].mxu1 }
 0x7e5   :  { %v6819_v44 = vadd.f32 %v19080_v32, %v6652_v3  ;;  %v6654_v0 = vpop.f32.mrb[209].mxu1 }
 0x7e6   :  { %v6820_v22 = vadd.f32 %v19085_v21, %v6654_v0  ;;  %10063 = vmatprep.mubr.msk.f32.mxu0 %vm7013_vm6, %v6880_v25 }
 0x7e7   :  { %7330 = vmatmul.mubr.f32.gmra.mrb[46].mxu0 %v6879_v54  ;;  %v6883_v40 = vmax.f32 %v6819_v44, 0.0 }
 0x7e8   :  { %v6884_v29 = vmax.f32 %v6820_v22, 0.0  ;;  %v6658_v58 = vpop.f32.mrb[210].mxu1 }
 0x7e9   :  { %v6823_v12 = vadd.f32 %v19080_v32, %v6658_v58  ;;  %v6660_v2 = vpop.f32.mrb[211].mxu1 }
 0x7ea   :  { %v6824_v38 = vadd.f32 %v19085_v21, %v6660_v2  ;;  %10064 = vmatprep.mubr.msk.f32.mxu0 %vm7013_vm6, %v6884_v29 }
 0x7eb   :  { %7336 = vmatmul.mubr.f32.gmra.mrb[48].mxu0 %v6883_v40  ;;  %v6887_v36 = vmax.f32 %v6823_v12, 0.0 }
 0x7ec   :  { %v6888_v43 = vmax.f32 %v6824_v38, 0.0  ;;  %v6664_v51 = vpop.f32.mrb[212].mxu1 }
 0x7ed   :  { %v6827_v63 = vadd.f32 %v19080_v32, %v6664_v51  ;;  %v6666_v61 = vpop.f32.mrb[213].mxu1 }
 0x7ee   :  { %v6828_v9 = vadd.f32 %v19085_v21, %v6666_v61  ;;  %10065 = vmatprep.mubr.msk.f32.mxu0 %vm7013_vm6, %v6888_v43 }
 0x7ef   :  { %7342 = vmatmul.mubr.f32.gmra.mrb[50].mxu0 %v6887_v36  ;;  %v6891_v49 = vmax.f32 %v6827_v63, 0.0 }
 0x7f0   :  { %v6892_v10 = vmax.f32 %v6828_v9, 0.0  ;;  %v6670_v34 = vpop.f32.mrb[214].mxu1 }
 0x7f1   :  { %v6831_v4 = vadd.f32 %v19080_v32, %v6670_v34  ;;  %v6672_v39 = vpop.f32.mrb[215].mxu1 }
 0x7f2   :  { %v6832_v30 = vadd.f32 %v19085_v21, %v6672_v39  ;;  %10066 = vmatprep.mubr.msk.f32.mxu0 %vm7013_vm6, %v6892_v10 }
 0x7f3   :  { %7348 = vmatmul.mubr.f32.gmra.mrb[52].mxu0 %v6891_v49  ;;  %v6895_v5 = vmax.f32 %v6831_v4, 0.0 }
 0x7f4   :  { %v6896_v33 = vmax.f32 %v6832_v30, 0.0  ;;  %v6676_v62 = vpop.f32.mrb[216].mxu1 }
 0x7f5   :  { %v6835_v20 = vadd.f32 %v19080_v32, %v6676_v62  ;;  %v6678_v59 = vpop.f32.mrb[217].mxu1 }
 0x7f6   :  { %v6836_v50 = vadd.f32 %v19085_v21, %v6678_v59  ;;  %10067 = vmatprep.mubr.msk.f32.mxu0 %vm7013_vm6, %v6896_v33 }
 0x7f7   :  { %7354 = vmatmul.mubr.f32.gmra.mrb[54].mxu0 %v6895_v5  ;;  %v6899_v47 = vmax.f32 %v6835_v20, 0.0 }
 0x7f8   :  { %v6900_v37 = vmax.f32 %v6836_v50, 0.0  ;;  %v6682_v31 = vpop.f32.mrb[218].mxu1 }
 0x7f9   :  { %v6839_v16 = vadd.f32 %v19080_v32, %v6682_v31  ;;  %v6684_v28 = vpop.f32.mrb[219].mxu1 }
 0x7fa   :  { %v6840_v57 = vadd.f32 %v19085_v21, %v6684_v28  ;;  %10068 = vmatprep.mubr.msk.f32.mxu0 %vm7013_vm6, %v6900_v37 }
 0x7fb   :  { %7360 = vmatmul.mubr.f32.gmra.mrb[56].mxu0 %v6899_v47  ;;  %v6903_v6 = vmax.f32 %v6839_v16, 0.0 }
 0x7fc   :  { %v6904_v56 = vmax.f32 %v6840_v57, 0.0  ;;  %v6688_v1 = vpop.f32.mrb[220].mxu1  ;;  %v10075_v57 = vld [vmem:[%s20735_s9 + $0x328] sm:$0xff] }
 0x7fd   :  { %v6843_v45 = vadd.f32 %v19080_v32, %v6688_v1  ;;  %v6690_v52 = vpop.f32.mrb[221].mxu1  ;;  %v10077_v1 = vld [vmem:[%s20735_s9 + $0x338] sm:$0xff] }
 0x7fe   :  { %v6844_v23 = vadd.f32 %v19085_v21, %v6690_v52  ;;  %10069 = vmatprep.mubr.msk.f32.mxu0 %vm7013_vm6, %v6904_v56  ;;  %v10079_v56 = vld [vmem:[%s20735_s9 + $0x348] sm:$0xff] }
 0x7ff   :  { %7366 = vmatmul.mubr.f32.gmra.mrb[58].mxu0 %v6903_v6  ;;  %v6907_v15 = vmax.f32 %v6843_v45, 0.0  ;;  %v10081_v6 = vld [vmem:[%s20735_s9 + $0x358] sm:$0xff] }
 0x800   :  { %v6908_v7 = vmax.f32 %v6844_v23, 0.0  ;;  %v6694_v14 = vpop.f32.mrb[222].mxu1 }
 0x801   :  { %v6847_v19 = vadd.f32 %v19080_v32, %v6694_v14  ;;  %v6696_v13 = vpop.f32.mrb[223].mxu1  ;;  %v11876_v14 = vpack.c.bf16 %v10079_v56, %v10075_v57  ;;  %v10105_v57 = vld [vmem:[%s20735_s9 + $0x418] sm:$0xff] }
 0x802   :  { %v6848_v18 = vadd.f32 %v19085_v21, %v6696_v13  ;;  %10070 = vmatprep.mubr.msk.f32.mxu0 %vm7013_vm6, %v6908_v7  ;;  %v10078_v13 = vld [vmem:[%s20735_s9 + $0x340] sm:$0xff] }
 0x803   :  { %7372 = vmatmul.mubr.f32.gmra.mrb[60].mxu0 %v6907_v15  ;;  %v6911_v60 = vmax.f32 %v6847_v19, 0.0  ;;  %v11924_v15 = vpack.c.bf16 %v10081_v6, %v10077_v1  ;;  %v10074_v19 = vld [vmem:[%s20735_s9 + $0x320] sm:$0xff] }
 0x804   :  { %v6912_v27 = vmax.f32 %v6848_v18, 0.0  ;;  %v10076_v18 = vld [vmem:[%s20735_s9 + $0x330] sm:$0xff]  ;;  %v10098_v6 = vld [vmem:[%s20735_s9 + $0x3e0] sm:$0xff] }
 0x806   :  { %10071 = vmatprep.mubr.msk.f32.mxu0 %vm7013_vm6, %v6912_v27  ;;  %v10080_v27 = vld [vmem:[%s20735_s9 + $0x350] sm:$0xff] }
 0x807   :  { %7378 = vmatmul.mubr.f32.gmra.mrb[62].mxu0 %v6911_v60  ;;  %v10083_v60 = vld [vmem:[%s20735_s9 + $0x368] sm:$0xff] }
 0x808   :  { %7450 = vmatprep.mubr.f32.mxu0 %v20922_v53 }
 0x89e   :  { %v7289_v48 = vpop.f32.mrb[32].mxu0 }
 0x89f   :  { %v7291_v26 = vpop.f32.mrb[33].mxu0 }
 0x8a2   :  { %v7295_v17 = vpop.f32.mrb[34].mxu0 }
 0x8a3   :  { %v19136_v11 = vpack.c.bf16 %v7295_v17, %v7289_v48  ;;  %v7297_v42 = vpop.f32.mrb[35].mxu0  ;;  %v10087_v48 = vld [vmem:[%s20735_s9 + $0x388] sm:$0xff]  ;;  %v10089_v17 = vld [vmem:[%s20735_s9 + $0x398] sm:$0xff] }
 0x8a4   :  { %v19138_v32 = vpack.c.bf16 %v7297_v42, %v7291_v26  ;;  %v10085_v26 = vld [vmem:[%s20735_s9 + $0x378] sm:$0xff]  ;;  %v10072_v42 = vld [vmem:[%s20734_s8 + $0x10] sm:$0xff] }
 0x8a6   :  { %v7301_v41 = vpop.f32.mrb[36].mxu0  ;;  %11813 = vmatprep.subr.bf16.mxu0 %v19138_v32  ;;  %11845 = vmatprep.subr.bf16.mxu1 %v19138_v32 }
 0x8a7   :  { %v7303_v21 = vpop.f32.mrb[37].mxu0  ;;  %11815 = vmatpush1.bf16.msra.mxu0 %v19136_v11  ;;  %11847 = vmatpush1.bf16.msra.mxu1 %v19136_v11 }
 0x8aa   :  { %v7307_v35 = vpop.f32.mrb[38].mxu0 }
 0x8ab   :  { %v19144_v25 = vpack.c.bf16 %v7307_v35, %v7301_v41  ;;  %v7309_v3 = vpop.f32.mrb[39].mxu0  ;;  %v7384_v41 = vld [vmem:[%s20734_s8] sm:$0xff]  ;;  %v11926_v35 = vpack.c.bf16 %v10080_v27, %v10076_v18  ;;  %v10111_v18 = vld [vmem:[%s20735_s9 + $0x448] sm:$0xff]  ;;  %v10109_v27 = vld [vmem:[%s20735_s9 + $0x438] sm:$0xff] }
 0x8ac   :  { %v19146_v54 = vpack.c.bf16 %v7309_v3, %v7303_v21  ;;  %v11878_v21 = vpack.c.bf16 %v10078_v13, %v10074_v19  ;;  %v10082_v3 = vld [vmem:[%s20735_s9 + $0x360] sm:$0xff]  ;;  %v10104_v19 = vld [vmem:[%s20735_s9 + $0x410] sm:$0xff]  ;;  %v10107_v13 = vld [vmem:[%s20735_s9 + $0x428] sm:$0xff] }
 0x8ae   :  { %v7313_v44 = vpop.f32.mrb[40].mxu0  ;;  %11817 = vmatprep.subr.bf16.mxu0 %v19146_v54  ;;  %11849 = vmatprep.subr.bf16.mxu1 %v19146_v54 }
 0x8af   :  { %v7315_v0 = vpop.f32.mrb[41].mxu0  ;;  %11819 = vmatpush1.bf16.msra.mxu0 %v19144_v25  ;;  %11851 = vmatpush1.bf16.msra.mxu1 %v19144_v25 }
 0x8b2   :  { %v7319_v22 = vpop.f32.mrb[42].mxu0 }
 0x8b3   :  { %v19152_v29 = vpack.c.bf16 %v7319_v22, %v7313_v44  ;;  %v7321_v58 = vpop.f32.mrb[43].mxu0  ;;  %v10086_v44 = vld [vmem:[%s20735_s9 + $0x380] sm:$0xff]  ;;  %v11928_v22 = vpack.c.bf16 %v10089_v17, %v10085_v26 }
 0x8b4   :  { %v19154_v40 = vpack.c.bf16 %v7321_v58, %v7315_v0  ;;  %v11880_v0 = vpack.c.bf16 %v10087_v48, %v10083_v60  ;;  %v10084_v58 = vld [vmem:[%s20735_s9 + $0x370] sm:$0xff]  ;;  %v10113_v60 = vld [vmem:[%s20735_s9 + $0x458] sm:$0xff]  ;;  %v10106_v17 = vld [vmem:[%s20735_s9 + $0x420] sm:$0xff] }
 0x8b6   :  { %v7325_v12 = vpop.f32.mrb[44].mxu0  ;;  %11821 = vmatprep.subr.bf16.mxu0 %v19154_v40  ;;  %11853 = vmatprep.subr.bf16.mxu1 %v19154_v40 }
 0x8b7   :  { %v7327_v2 = vpop.f32.mrb[45].mxu0  ;;  %11823 = vmatpush1.bf16.msra.mxu0 %v19152_v29  ;;  %11855 = vmatpush1.bf16.msra.mxu1 %v19152_v29 }
 0x8ba   :  { %v7331_v38 = vpop.f32.mrb[46].mxu0 }
 0x8bb   :  { %v19160_v43 = vpack.c.bf16 %v7331_v38, %v7325_v12  ;;  %v7333_v51 = vpop.f32.mrb[47].mxu0  ;;  %v10088_v12 = vld [vmem:[%s20735_s9 + $0x390] sm:$0xff]  ;;  %v10095_v38 = vld [vmem:[%s20735_s9 + $0x3c8] sm:$0xff] }
 0x8bc   :  { %v19162_v36 = vpack.c.bf16 %v7333_v51, %v7327_v2  ;;  %v10091_v2 = vld [vmem:[%s20735_s9 + $0x3a8] sm:$0xff]  ;;  %v10093_v51 = vld [vmem:[%s20735_s9 + $0x3b8] sm:$0xff] }
 0x8be   :  { %v7337_v63 = vpop.f32.mrb[48].mxu0  ;;  %11825 = vmatprep.subr.bf16.mxu0 %v19162_v36  ;;  %11857 = vmatprep.subr.bf16.mxu1 %v19162_v36 }
 0x8bf   :  { %v7339_v61 = vpop.f32.mrb[49].mxu0  ;;  %11827 = vmatpush1.bf16.msra.mxu0 %v19160_v43  ;;  %11859 = vmatpush1.bf16.msra.mxu1 %v19160_v43 }
 0x8c2   :  { %v7343_v9 = vpop.f32.mrb[50].mxu0 }
 0x8c3   :  { %v19168_v10 = vpack.c.bf16 %v7343_v9, %v7337_v63  ;;  %v7345_v34 = vpop.f32.mrb[51].mxu0  ;;  %v10097_v63 = vld [vmem:[%s20735_s9 + $0x3d8] sm:$0xff]  ;;  %v7385_v9 = vld [vmem:[%s20734_s8 + $0x8] sm:$0xff] }
 0x8c4   :  { %v19170_v49 = vpack.c.bf16 %v7345_v34, %v7339_v61  ;;  %v10073_v61 = vld [vmem:[%s20734_s8 + $0x18] sm:$0xff]  ;;  %v11882_v34 = vpack.c.bf16 %v10086_v44, %v10082_v3  ;;  %v10112_v3 = vld [vmem:[%s20735_s9 + $0x450] sm:$0xff]  ;;  %v10115_v44 = vld [vmem:[%s20735_s9 + $0x468] sm:$0xff] }
 0x8c6   :  { %v7349_v4 = vpop.f32.mrb[52].mxu0  ;;  %11829 = vmatprep.subr.bf16.mxu0 %v19170_v49  ;;  %11861 = vmatprep.subr.bf16.mxu1 %v19170_v49 }
 0x8c7   :  { %v7351_v39 = vpop.f32.mrb[53].mxu0  ;;  %11831 = vmatpush1.bf16.msra.mxu0 %v19168_v10  ;;  %11863 = vmatpush1.bf16.msra.mxu1 %v19168_v10 }
 0x8ca   :  { %v7355_v30 = vpop.f32.mrb[54].mxu0 }
 0x8cb   :  { %v19176_v33 = vpack.c.bf16 %v7355_v30, %v7349_v4  ;;  %v7357_v62 = vpop.f32.mrb[55].mxu0  ;;  %v11930_v4 = vpack.c.bf16 %v10088_v12, %v10084_v58  ;;  %v10094_v30 = vld [vmem:[%s20735_s9 + $0x3c0] sm:$0xff]  ;;  %v10121_v58 = vld [vmem:[%s20735_s9 + $0x498] sm:$0xff] }
 0x8cc   :  { %v19178_v5 = vpack.c.bf16 %v7357_v62, %v7351_v39  ;;  %v10090_v39 = vld [vmem:[%s20735_s9 + $0x3a0] sm:$0xff]  ;;  %v11884_v62 = vpack.c.bf16 %v10095_v38, %v10091_v2 }
 0x8cd   :  { %v11886_v56 = vpack.c.bf16 %v10094_v30, %v10090_v39  ;;  %v10114_v38 = vld [vmem:[%s20735_s9 + $0x460] sm:$0xff]  ;;  %v10127_v39 = vld [vmem:[%s20735_s9 + $0x4c8] sm:$0xff]  ;;  %v10125_v30 = vld [vmem:[%s20735_s9 + $0x4b8] sm:$0xff] }
 0x8ce   :  { %v7361_v20 = vpop.f32.mrb[56].mxu0  ;;  %11833 = vmatprep.subr.bf16.mxu0 %v19178_v5  ;;  %11865 = vmatprep.subr.bf16.mxu1 %v19178_v5 }
 0x8cf   :  { %v7363_v59 = vpop.f32.mrb[57].mxu0  ;;  %11835 = vmatpush1.bf16.msra.mxu0 %v19176_v33  ;;  %11867 = vmatpush1.bf16.msra.mxu1 %v19176_v33 }
 0x8d2   :  { %v7367_v50 = vpop.f32.mrb[58].mxu0 }
 0x8d3   :  { %v19184_v37 = vpack.c.bf16 %v7367_v50, %v7361_v20  ;;  %v7369_v31 = vpop.f32.mrb[59].mxu0  ;;  %v11932_v20 = vpack.c.bf16 %v10097_v63, %v10093_v51  ;;  %v10096_v50 = vld [vmem:[%s20735_s9 + $0x3d0] sm:$0xff]  ;;  %v10118_v51 = vld [vmem:[%s20735_s9 + $0x480] sm:$0xff] }
 0x8d4   :  { %v19186_v47 = vpack.c.bf16 %v7369_v31, %v7363_v59  ;;  %v10092_v59 = vld [vmem:[%s20735_s9 + $0x3b0] sm:$0xff]  ;;  %v10099_v31 = vld [vmem:[%s20735_s9 + $0x3e8] sm:$0xff] }
 0x8d5   :  { %v11934_v1 = vpack.c.bf16 %v10096_v50, %v10092_v59  ;;  %v10122_v50 = vld [vmem:[%s20735_s9 + $0x4a0] sm:$0xff] }
 0x8d6   :  { %v7373_v16 = vpop.f32.mrb[60].mxu0  ;;  %11837 = vmatprep.subr.bf16.mxu0 %v19186_v47  ;;  %11869 = vmatprep.subr.bf16.mxu1 %v19186_v47 }
 0x8d7   :  { %v7375_v28 = vpop.f32.mrb[61].mxu0  ;;  %11839 = vmatpush1.bf16.msra.mxu0 %v19184_v37  ;;  %11871 = vmatpush1.bf16.msra.mxu1 %v19184_v37 }
 0x8da   :  { %v7379_v45 = vpop.f32.mrb[62].mxu0 }
 0x8db   :  { %v19204_v52 = vpack.c.bf16 %v7379_v45, %v7373_v16  ;;  %v7381_v23 = vpop.f32.mrb[63].mxu0  ;;  %v10103_v16 = vld [vmem:[%s20735_s9 + $0x408] sm:$0xff]  ;;  %v10102_v45 = vld [vmem:[%s20735_s9 + $0x400] sm:$0xff] }
 0x8dc   :  { %v19206_v7 = vpack.c.bf16 %v7381_v23, %v7375_v28  ;;  %v10101_v28 = vld [vmem:[%s20735_s9 + $0x3f8] sm:$0xff]  ;;  %v11888_v23 = vpack.c.bf16 %v10103_v16, %v10099_v31  ;;  %v11890_v48 = vpack.c.bf16 %v10102_v45, %v10098_v6  ;;  %v10126_v31 = vld [vmem:[%s20735_s9 + $0x4c0] sm:$0xff]  ;;  %v10135_v6 = vld [vmem:[%s20735_s9 + $0x508] sm:$0xff] }
 0x8dd   :  { %v10133_v45 = vld [vmem:[%s20735_s9 + $0x4f8] sm:$0xff] }
 0x8de   :  { %11841 = vmatprep.subr.bf16.mxu0 %v19206_v7  ;;  %11873 = vmatprep.subr.bf16.mxu1 %v19206_v7 }
 0x8df   :  { %11843 = vmatpush1.bf16.msra.mxu0 %v19204_v52  ;;  %11875 = vmatpush1.bf16.msra.mxu1 %v19204_v52 }
 0x8e0   :  { %11877 = vmatprep.subr.bf16.mxu0 %v11876_v14  ;;  %11925 = vmatprep.subr.bf16.mxu1 %v11924_v15  ;;  %v11936_v14 = vpack.c.bf16 %v10105_v57, %v10101_v28  ;;  %v10100_v15 = vld [vmem:[%s20735_s9 + $0x3f0] sm:$0xff] }
 0x8e1   :  { %v11938_v26 = vpack.c.bf16 %v10104_v19, %v10100_v15  ;;  %v10124_v57 = vld [vmem:[%s20735_s9 + $0x4b0] sm:$0xff]  ;;  %v10130_v19 = vld [vmem:[%s20735_s9 + $0x4e0] sm:$0xff] }
 0x8e2   :  { %7631 = vmatmul.mubr.f32.vlgmr.msra.gmra.mrb[224].mxu1 %v10072_v42  ;;  %7451 = vmatmul.mubr.f32.vlgmr.msra.gmra.mrb[64].mxu0 %v7384_v41  ;;  %v10110_v42 = vld [vmem:[%s20735_s9 + $0x440] sm:$0xff]  ;;  %v11892_v41 = vpack.c.bf16 %v10111_v18, %v10107_v13 }
 0x8e3   :  { %7636 = vmatprep.mubr.f32.mxu1 %v20922_v53  ;;  %7456 = vmatprep.mubr.f32.mxu0 %v20922_v53  ;;  %v11894_v12 = vpack.c.bf16 %v10110_v42, %v10106_v17  ;;  %v10134_v13 = vld [vmem:[%s20735_s9 + $0x500] sm:$0xff]  ;;  %v10143_v17 = vld [vmem:[%s20735_s9 + $0x548] sm:$0xff]  ;;  %v10141_v42 = vld [vmem:[%s20735_s9 + $0x538] sm:$0xff] }
 0x8e4   :  { %11879 = vmatpush1.bf16.msra.mxu0 %v11878_v21  ;;  %11927 = vmatpush1.bf16.msra.mxu1 %v11926_v35  ;;  %v11940_v21 = vpack.c.bf16 %v10113_v60, %v10109_v27  ;;  %v10108_v35 = vld [vmem:[%s20735_s9 + $0x430] sm:$0xff] }
 0x8e5   :  { %11881 = vmatprep.subr.bf16.mxu0 %v11880_v0  ;;  %11929 = vmatprep.subr.bf16.mxu1 %v11928_v22  ;;  %v10119_v0 = vld [vmem:[%s20735_s9 + $0x488] sm:$0xff]  ;;  %v10117_v22 = vld [vmem:[%s20735_s9 + $0x478] sm:$0xff]  ;;  %v11942_v2 = vpack.c.bf16 %v10112_v3, %v10108_v35  ;;  %v10132_v60 = vld [vmem:[%s20735_s9 + $0x4f0] sm:$0xff] }
 0x8e6   :  { %7637 = vmatmul.mubr.f32.gmra.mrb[226].mxu1 %v10073_v61  ;;  %7457 = vmatmul.mubr.f32.gmra.mrb[66].mxu0 %v7385_v9  ;;  %v11896_v63 = vpack.c.bf16 %v10119_v0, %v10115_v44  ;;  %v11944_v61 = vpack.c.bf16 %v10121_v58, %v10117_v22  ;;  %v10116_v9 = vld [vmem:[%s20735_s9 + $0x470] sm:$0xff]  ;;  %v10138_v3 = vld [vmem:[%s20735_s9 + $0x520] sm:$0xff] }
 0x8e7   :  { %v10142_v44 = vld [vmem:[%s20735_s9 + $0x540] sm:$0xff]  ;;  %v10140_v58 = vld [vmem:[%s20735_s9 + $0x530] sm:$0xff] }
 0x8e8   :  { %11883 = vmatpush1.bf16.msra.mxu0 %v11882_v34  ;;  %11931 = vmatpush1.bf16.msra.mxu1 %v11930_v4  ;;  %v10120_v34 = vld [vmem:[%s20735_s9 + $0x490] sm:$0xff]  ;;  %v10123_v4 = vld [vmem:[%s20735_s9 + $0x4a8] sm:$0xff] }
 0x8e9   :  { %11885 = vmatprep.subr.bf16.mxu0 %v11884_v62  ;;  %11933 = vmatprep.subr.bf16.mxu1 %v11932_v20  ;;  %v10129_v62 = vld [vmem:[%s20735_s9 + $0x4d8] sm:$0xff]  ;;  %v11898_v20 = vpack.c.bf16 %v10118_v51, %v10114_v38  ;;  %v11946_v59 = vpack.c.bf16 %v10120_v34, %v10116_v9  ;;  %v11900_v16 = vpack.c.bf16 %v10127_v39, %v10123_v4  ;;  %v10151_v38 = vld [vmem:[%s20735_s9 + $0x588] sm:$0xff]  ;;  %v10146_v34 = vld [vmem:[%s20735_s9 + $0x560] sm:$0xff] }
 0x8ea   :  { %v11948_v28 = vpack.c.bf16 %v10129_v62, %v10125_v30  ;;  %v10149_v51 = vld [vmem:[%s20735_s9 + $0x578] sm:$0xff]  ;;  %v10150_v4 = vld [vmem:[%s20735_s9 + $0x580] sm:$0xff]  ;;  %v10148_v62 = vld [vmem:[%s20735_s9 + $0x570] sm:$0xff] }
 0x8ec   :  { %11887 = vmatpush1.bf16.msra.mxu0 %v11886_v56  ;;  %11935 = vmatpush1.bf16.msra.mxu1 %v11934_v1  ;;  %v10128_v56 = vld [vmem:[%s20735_s9 + $0x4d0] sm:$0xff]  ;;  %v10131_v1 = vld [vmem:[%s20735_s9 + $0x4e8] sm:$0xff] }
 0x8ed   :  { %11889 = vmatprep.subr.bf16.mxu0 %v11888_v23  ;;  %11937 = vmatprep.subr.bf16.mxu1 %v11936_v14  ;;  %v10137_v23 = vld [vmem:[%s20735_s9 + $0x518] sm:$0xff]  ;;  %v11902_v14 = vpack.c.bf16 %v10126_v31, %v10122_v50  ;;  %v11950_v15 = vpack.c.bf16 %v10128_v56, %v10124_v57  ;;  %v11904_v18 = vpack.c.bf16 %v10135_v6, %v10131_v1  ;;  %v10159_v50 = vld [vmem:[%s20735_s9 + $0x5c8] sm:$0xff]  ;;  %v10154_v56 = vld [vmem:[%s20735_s9 + $0x5a0] sm:$0xff] }
 0x8ee   :  { %v11952_v27 = vpack.c.bf16 %v10137_v23, %v10133_v45  ;;  %v10157_v31 = vld [vmem:[%s20735_s9 + $0x5b8] sm:$0xff]  ;;  %v10158_v1 = vld [vmem:[%s20735_s9 + $0x5c0] sm:$0xff]  ;;  %v10156_v23 = vld [vmem:[%s20735_s9 + $0x5b0] sm:$0xff] }
 0x8f0   :  { %11891 = vmatpush1.bf16.msra.mxu0 %v11890_v48  ;;  %11939 = vmatpush1.bf16.msra.mxu1 %v11938_v26  ;;  %v10136_v48 = vld [vmem:[%s20735_s9 + $0x510] sm:$0xff]  ;;  %v10139_v26 = vld [vmem:[%s20735_s9 + $0x528] sm:$0xff] }
 0x8f1   :  { %11893 = vmatprep.subr.bf16.mxu0 %v11892_v41  ;;  %11941 = vmatprep.subr.bf16.mxu1 %v11940_v21  ;;  %v10145_v41 = vld [vmem:[%s20735_s9 + $0x558] sm:$0xff]  ;;  %v11906_v21 = vpack.c.bf16 %v10134_v13, %v10130_v19  ;;  %v11954_v35 = vpack.c.bf16 %v10136_v48, %v10132_v60  ;;  %v11908_v0 = vpack.c.bf16 %v10143_v17, %v10139_v26  ;;  %v10167_v19 = vld [vmem:[%s20735_s9 + $0x608] sm:$0xff]  ;;  %v10162_v48 = vld [vmem:[%s20735_s9 + $0x5e0] sm:$0xff] }
 0x8f2   :  { %v11956_v22 = vpack.c.bf16 %v10145_v41, %v10141_v42  ;;  %v10165_v13 = vld [vmem:[%s20735_s9 + $0x5f8] sm:$0xff]  ;;  %v10166_v42 = vld [vmem:[%s20735_s9 + $0x600] sm:$0xff]  ;;  %v10164_v41 = vld [vmem:[%s20735_s9 + $0x5f0] sm:$0xff] }
 0x8f4   :  { %11895 = vmatpush1.bf16.msra.mxu0 %v11894_v12  ;;  %11943 = vmatpush1.bf16.msra.mxu1 %v11942_v2  ;;  %v10144_v12 = vld [vmem:[%s20735_s9 + $0x550] sm:$0xff]  ;;  %v10147_v2 = vld [vmem:[%s20735_s9 + $0x568] sm:$0xff] }
 0x8f5   :  { %11897 = vmatprep.subr.bf16.mxu0 %v11896_v63  ;;  %11945 = vmatprep.subr.bf16.mxu1 %v11944_v61  ;;  %v10153_v63 = vld [vmem:[%s20735_s9 + $0x598] sm:$0xff]  ;;  %v11910_v61 = vpack.c.bf16 %v10142_v44, %v10138_v3  ;;  %v11958_v9 = vpack.c.bf16 %v10144_v12, %v10140_v58  ;;  %v11912_v39 = vpack.c.bf16 %v10151_v38, %v10147_v2  ;;  %v10171_v44 = vld [vmem:[%s20735_s9 + $0x628] sm:$0xff]  ;;  %v10170_v58 = vld [vmem:[%s20735_s9 + $0x620] sm:$0xff] }
 0x8f6   :  { %v11960_v30 = vpack.c.bf16 %v10153_v63, %v10149_v51  ;;  %v10172_v12 = vld [vmem:[%s20735_s9 + $0x630] sm:$0xff]  ;;  %v7468_v2 = vld [vmem:[%s20735_s9 + $0x28] sm:$0xff]  ;;  %v7466_v51 = vld [vmem:[%s20735_s9 + $0x18] sm:$0xff] }
 0x8f7   :  { %v7470_v63 = vld [vmem:[%s20735_s9 + $0x38] sm:$0xff] }
 0x8f8   :  { %11899 = vmatpush1.bf16.msra.mxu0 %v11898_v20  ;;  %11947 = vmatpush1.bf16.msra.mxu1 %v11946_v59  ;;  %v10152_v20 = vld [vmem:[%s20735_s9 + $0x590] sm:$0xff]  ;;  %v10155_v59 = vld [vmem:[%s20735_s9 + $0x5a8] sm:$0xff] }
 0x8f9   :  { %11901 = vmatprep.subr.bf16.mxu0 %v11900_v16  ;;  %11949 = vmatprep.subr.bf16.mxu1 %v11948_v28  ;;  %v10161_v16 = vld [vmem:[%s20735_s9 + $0x5d8] sm:$0xff]  ;;  %v11914_v28 = vpack.c.bf16 %v10150_v4, %v10146_v34  ;;  %v11962_v57 = vpack.c.bf16 %v10152_v20, %v10148_v62  ;;  %v11916_v6 = vpack.c.bf16 %v10159_v50, %v10155_v59  ;;  %v7467_v34 = vld [vmem:[%s20735_s9 + $0x20] sm:$0xff]  ;;  %v7465_v4 = vld [vmem:[%s20735_s9 + $0x10] sm:$0xff] }
 0x8fa   :  { %v11964_v45 = vpack.c.bf16 %v10161_v16, %v10157_v31  ;;  %v7476_v62 = vld [vmem:[%s20735_s9 + $0x68] sm:$0xff]  ;;  %v7474_v20 = vld [vmem:[%s20735_s9 + $0x58] sm:$0xff] }
 0x8fb   :  { %v7478_v59 = vld [vmem:[%s20735_s9 + $0x78] sm:$0xff] }
 0x8fc   :  { %11903 = vmatpush1.bf16.msra.mxu0 %v11902_v14  ;;  %11951 = vmatpush1.bf16.msra.mxu1 %v11950_v15  ;;  %v10160_v14 = vld [vmem:[%s20735_s9 + $0x5d0] sm:$0xff]  ;;  %v10163_v15 = vld [vmem:[%s20735_s9 + $0x5e8] sm:$0xff] }
 0x8fd   :  { %11905 = vmatprep.subr.bf16.mxu0 %v11904_v18  ;;  %11953 = vmatprep.subr.bf16.mxu1 %v11952_v27  ;;  %v10169_v18 = vld [vmem:[%s20735_s9 + $0x618] sm:$0xff]  ;;  %v11918_v27 = vpack.c.bf16 %v10158_v1, %v10154_v56  ;;  %v11966_v60 = vpack.c.bf16 %v10160_v14, %v10156_v23  ;;  %v11920_v26 = vpack.c.bf16 %v10167_v19, %v10163_v15  ;;  %v7473_v23 = vld [vmem:[%s20735_s9 + $0x50] sm:$0xff]  ;;  %v7480_v15 = vld [vmem:[%s20735_s9 + $0x88] sm:$0xff] }
 0x8fe   :  { %v11968_v17 = vpack.c.bf16 %v10169_v18, %v10165_v13  ;;  %v7477_v14 = vld [vmem:[%s20735_s9 + $0x70] sm:$0xff]  ;;  %v7484_v13 = vld [vmem:[%s20735_s9 + $0xa8] sm:$0xff]  ;;  %v7482_v18 = vld [vmem:[%s20735_s9 + $0x98] sm:$0xff] }
 0x900   :  { %11907 = vmatpush1.bf16.msra.mxu0 %v11906_v21  ;;  %11955 = vmatpush1.bf16.msra.mxu1 %v11954_v35  ;;  %v10168_v21 = vld [vmem:[%s20735_s9 + $0x610] sm:$0xff]  ;;  %v11922_v35 = vpack.c.bf16 %v10166_v42, %v10162_v48  ;;  %v12026_v48 = vpack.c.bf16 %v7477_v14, %v7473_v23  ;;  %v7504_v14 = vld [vmem:[%s20735_s9 + $0x148] sm:$0xff] }
 0x901   :  { %11909 = vmatprep.subr.bf16.mxu0 %v11908_v0  ;;  %11957 = vmatprep.subr.bf16.mxu1 %v11956_v22  ;;  %v11970_v3 = vpack.c.bf16 %v10168_v21, %v10164_v41  ;;  %v10173_v0 = vld [vmem:[%s20735_s9 + $0x638] sm:$0xff]  ;;  %v7464_v22 = vld [vmem:[%s20735_s9 + $0x8] sm:$0xff]  ;;  %v11980_v21 = vpack.c.bf16 %v7484_v13, %v7480_v15  ;;  %v7501_v23 = vld [vmem:[%s20735_s9 + $0x130] sm:$0xff] }
 0x902   :  { %v11972_v38 = vpack.c.bf16 %v7468_v2, %v7464_v22  ;;  %v7490_v2 = vld [vmem:[%s20735_s9 + $0xd8] sm:$0xff]  ;;  %v7508_v15 = vld [vmem:[%s20735_s9 + $0x168] sm:$0xff] }
 0x903   :  { %v7510_v13 = vld [vmem:[%s20735_s9 + $0x178] sm:$0xff] }
 0x904   :  { %11911 = vmatpush1.bf16.msra.mxu0 %v11910_v61  ;;  %11959 = vmatpush1.bf16.msra.mxu1 %v11958_v9  ;;  %v12020_v61 = vpack.c.bf16 %v7470_v63, %v7466_v51  ;;  %v7463_v9 = vld [vmem:[%s20735_s9] sm:$0xff] }
 0x905   :  { %11913 = vmatprep.subr.bf16.mxu0 %v11912_v39  ;;  %11961 = vmatprep.subr.bf16.mxu1 %v11960_v30  ;;  %v7469_v39 = vld [vmem:[%s20735_s9 + $0x30] sm:$0xff]  ;;  %v7472_v30 = vld [vmem:[%s20735_s9 + $0x48] sm:$0xff]  ;;  %v11974_v31 = vpack.c.bf16 %v7467_v34, %v7463_v9  ;;  %v7491_v9 = vld [vmem:[%s20735_s9 + $0xe0] sm:$0xff] }
 0x906   :  { %v12022_v16 = vpack.c.bf16 %v7469_v39, %v7465_v4  ;;  %v7489_v39 = vld [vmem:[%s20735_s9 + $0xd0] sm:$0xff] }
 0x908   :  { %11915 = vmatpush1.bf16.msra.mxu0 %v11914_v28  ;;  %11963 = vmatpush1.bf16.msra.mxu1 %v11962_v57  ;;  %v7471_v28 = vld [vmem:[%s20735_s9 + $0x40] sm:$0xff] }
 0x909   :  { %11917 = vmatprep.subr.bf16.mxu0 %v11916_v6  ;;  %11965 = vmatprep.subr.bf16.mxu1 %v11964_v45  ;;  %v7475_v57 = vld [vmem:[%s20735_s9 + $0x60] sm:$0xff]  ;;  %v11976_v6 = vpack.c.bf16 %v7476_v62, %v7472_v30  ;;  %v12024_v45 = vpack.c.bf16 %v7478_v59, %v7474_v20  ;;  %v7493_v30 = vld [vmem:[%s20735_s9 + $0xf0] sm:$0xff]  ;;  %v7496_v62 = vld [vmem:[%s20735_s9 + $0x108] sm:$0xff] }
 0x90a   :  { %v7500_v20 = vld [vmem:[%s20735_s9 + $0x128] sm:$0xff]  ;;  %v7498_v59 = vld [vmem:[%s20735_s9 + $0x118] sm:$0xff] }
 0x90c   :  { %11919 = vmatpush1.bf16.msra.mxu0 %v11918_v27  ;;  %11967 = vmatpush1.bf16.msra.mxu1 %v11966_v60  ;;  %v7486_v27 = vld [vmem:[%s20735_s9 + $0xb8] sm:$0xff]  ;;  %v11978_v60 = vpack.c.bf16 %v7475_v57, %v7471_v28  ;;  %v7495_v28 = vld [vmem:[%s20735_s9 + $0x100] sm:$0xff] }
 0x90d   :  { %11921 = vmatprep.subr.bf16.mxu0 %v11920_v26  ;;  %11969 = vmatprep.subr.bf16.mxu1 %v11968_v17  ;;  %v7479_v26 = vld [vmem:[%s20735_s9 + $0x80] sm:$0xff] }
 0x90e   :  { %v7483_v17 = vld [vmem:[%s20735_s9 + $0xa0] sm:$0xff] }
 0x90f   :  { %v11982_v51 = vpack.c.bf16 %v7483_v17, %v7479_v26  ;;  %v7499_v57 = vld [vmem:[%s20735_s9 + $0x120] sm:$0xff]  ;;  %v11992_v26 = vpack.c.bf16 %v7508_v15, %v7504_v14 }
 0x910   :  { %11923 = vmatpush1.bf16.msra.mxu0 %v11922_v35  ;;  %11971 = vmatpush1.bf16.msra.mxu1 %v11970_v3  ;;  %v12028_v35 = vpack.c.bf16 %v7486_v27, %v7482_v18  ;;  %v7481_v3 = vld [vmem:[%s20735_s9 + $0x90] sm:$0xff]  ;;  %v11990_v18 = vpack.c.bf16 %v7499_v57, %v7495_v28 }
 0x911   :  { %7799 = vmatprep.subr.mxu0 %v10171_v44  ;;  %7876 = vmatprep.subr.mxu1 %v10173_v0  ;;  %v7485_v44 = vld [vmem:[%s20735_s9 + $0xb0] sm:$0xff]  ;;  %v7488_v0 = vld [vmem:[%s20735_s9 + $0xc8] sm:$0xff] }
 0x912   :  { %v12030_v63 = vpack.c.bf16 %v7485_v44, %v7481_v3  ;;  %v7516_v3 = vld [vmem:[%s20735_s9 + $0x1a8] sm:$0xff]  ;;  %v7514_v44 = vld [vmem:[%s20735_s9 + $0x198] sm:$0xff]  ;;  %v7521_v28 = vld [vmem:[%s20735_s9 + $0x1d0] sm:$0xff] }
 0x913   :  { %v7525_v57 = vld [vmem:[%s20735_s9 + $0x1f0] sm:$0xff] }
 0x914   :  { %7800 = vmatpush1.msra.mxu0 %v10170_v58  ;;  %7877 = vmatpush1.msra.mxu1 %v10172_v12  ;;  %v7492_v12 = vld [vmem:[%s20735_s9 + $0xe8] sm:$0xff]  ;;  %v12050_v15 = vpack.c.bf16 %v7525_v57, %v7521_v28  ;;  %v7554_v28 = vld [vmem:[%s20735_s9 + $0x2d8] sm:$0xff] }
 0x915   :  { %11973 = vmatprep.subr.bf16.mxu0 %v11972_v38  ;;  %12021 = vmatprep.subr.bf16.mxu1 %v12020_v61  ;;  %v7494_v38 = vld [vmem:[%s20735_s9 + $0xf8] sm:$0xff]  ;;  %v7487_v61 = vld [vmem:[%s20735_s9 + $0xc0] sm:$0xff]  ;;  %v11984_v34 = vpack.c.bf16 %v7492_v12, %v7488_v0 }
 0x916   :  { %v12032_v4 = vpack.c.bf16 %v7494_v38, %v7490_v2  ;;  %v7518_v0 = vld [vmem:[%s20735_s9 + $0x1b8] sm:$0xff]  ;;  %v7511_v2 = vld [vmem:[%s20735_s9 + $0x180] sm:$0xff] }
 0x917   :  { %v7515_v38 = vld [vmem:[%s20735_s9 + $0x1a0] sm:$0xff]  ;;  %v7558_v57 = vld [vmem:[%s20735_s9 + $0x2f8] sm:$0xff] }
 0x9b5   :  { %v7632_v50 = vpop.f32.mrb[224].mxu1  ;;  %v19556_v56 = vpop.f32.mrb[64].mxu0 }
 0x9b6   :  { %v7634_v1 = vpop.f32.mrb[225].mxu1  ;;  %v7454_v19 = vpop.f32.mrb[65].mxu0 }
 0x9b7   :  { %10174 = vmatprep.mubr.msk.f32.mxu0 %vm7744_vm7, %v7634_v1  ;;  %10176 = vmatprep.mubr.msk.f32.mxu1 %vm7744_vm7, %v7634_v1  ;;  %v11988_v1 = vpack.c.bf16 %v7500_v20, %v7496_v62  ;;  %v11998_v62 = vpack.c.bf16 %v7515_v38, %v7511_v2  ;;  %v7537_v2 = vld [vmem:[%s20735_s9 + $0x250] sm:$0xff] }
 0x9b8   :  { %7816 = vmatmul.mubr.f32.vlgmr.msra.gmra.mrb[68].mxu0 %v7632_v50  ;;  %7893 = vmatmul.mubr.f32.vlgmr.msra.gmra.mrb[228].mxu1 %v7632_v50  ;;  %v7502_v50 = vld [vmem:[%s20735_s9 + $0x138] sm:$0xff]  ;;  %v7541_v38 = vld [vmem:[%s20735_s9 + $0x270] sm:$0xff] }
 0x9b9   :  { %11975 = vmatpush1.bf16.msra.mxu0 %v11974_v31  ;;  %12023 = vmatpush1.bf16.msra.mxu1 %v12022_v16  ;;  %v7638_v42 = vpop.f32.mrb[226].mxu1  ;;  %v19584_v41 = vpop.f32.mrb[66].mxu0  ;;  %v11986_v31 = vpack.c.bf16 %v7491_v9, %v7487_v61  ;;  %v12034_v16 = vpack.c.bf16 %v7493_v30, %v7489_v39  ;;  %v7513_v61 = vld [vmem:[%s20735_s9 + $0x190] sm:$0xff]  ;;  %v7522_v39 = vld [vmem:[%s20735_s9 + $0x1d8] sm:$0xff] }
 0x9ba   :  { %11977 = vmatprep.subr.bf16.mxu0 %v11976_v6  ;;  %12025 = vmatprep.subr.bf16.mxu1 %v12024_v45  ;;  %v7640_v22 = vpop.f32.mrb[227].mxu1  ;;  %v19595_v58 = vpop.f32.mrb[67].mxu0  ;;  %v12036_v6 = vpack.c.bf16 %v7502_v50, %v7498_v59  ;;  %v7497_v45 = vld [vmem:[%s20735_s9 + $0x110] sm:$0xff]  ;;  %v7526_v30 = vld [vmem:[%s20735_s9 + $0x1f8] sm:$0xff]  ;;  %v7519_v59 = vld [vmem:[%s20735_s9 + $0x1c0] sm:$0xff] }
 0x9bb   :  { %10175 = vmatprep.mubr.msk.f32.mxu0 %vm7744_vm7, %v7640_v22  ;;  %10177 = vmatprep.mubr.msk.f32.mxu1 %vm7744_vm7, %v7640_v22  ;;  %v12038_v27 = vpack.c.bf16 %v7501_v23, %v7497_v45  ;;  %v7517_v9 = vld [vmem:[%s20735_s9 + $0x1b0] sm:$0xff]  ;;  %v7523_v50 = vld [vmem:[%s20735_s9 + $0x1e0] sm:$0xff]  ;;  %v7530_v45 = vld [vmem:[%s20735_s9 + $0x218] sm:$0xff] }
 0x9bc   :  { %7822 = vmatmul.mubr.f32.gmra.mrb[70].mxu0 %v7638_v42  ;;  %7899 = vmatmul.mubr.f32.gmra.mrb[230].mxu1 %v7638_v42  ;;  %v7505_v42 = vld [vmem:[%s20735_s9 + $0x150] sm:$0xff]  ;;  %v12046_v20 = vpack.c.bf16 %v7517_v9, %v7513_v61  ;;  %v7534_v23 = vld [vmem:[%s20735_s9 + $0x238] sm:$0xff]  ;;  %v12002_v14 = vpack.c.bf16 %v7523_v50, %v7519_v59 }
 0x9bd   :  { %11979 = vmatpush1.bf16.msra.mxu0 %v11978_v60  ;;  %12027 = vmatpush1.bf16.msra.mxu1 %v12026_v48  ;;  %v7503_v60 = vld [vmem:[%s20735_s9 + $0x140] sm:$0xff]  ;;  %v7546_v61 = vld [vmem:[%s20735_s9 + $0x298] sm:$0xff]  ;;  %v7545_v59 = vld [vmem:[%s20735_s9 + $0x290] sm:$0xff] }
 0x9be   :  { %11981 = vmatprep.subr.bf16.mxu0 %v11980_v21  ;;  %12029 = vmatprep.subr.bf16.mxu1 %v12028_v35  ;;  %v7507_v48 = vld [vmem:[%s20735_s9 + $0x160] sm:$0xff]  ;;  %v7509_v21 = vld [vmem:[%s20735_s9 + $0x170] sm:$0xff]  ;;  %v7512_v35 = vld [vmem:[%s20735_s9 + $0x188] sm:$0xff] }
 0x9bf   :  { %10178 = vmatprep.mubr.msk.f32.mxu0 %vm7744_vm7, %v7454_v19  ;;  %10180 = vmatprep.mubr.msk.f32.mxu1 %vm7744_vm7, %v7454_v19  ;;  %v7506_v19 = vld [vmem:[%s20735_s9 + $0x158] sm:$0xff]  ;;  %v11994_v22 = vpack.c.bf16 %v7507_v48, %v7503_v60  ;;  %v12042_v12 = vpack.c.bf16 %v7509_v21, %v7505_v42  ;;  %v7529_v60 = vld [vmem:[%s20735_s9 + $0x210] sm:$0xff] }
 0x9c0   :  { %v12040_v17 = vpack.c.bf16 %v7510_v13, %v7506_v19  ;;  %v7527_v19 = vld [vmem:[%s20735_s9 + $0x200] sm:$0xff]  ;;  %v7533_v48 = vld [vmem:[%s20735_s9 + $0x230] sm:$0xff]  ;;  %v7538_v42 = vld [vmem:[%s20735_s9 + $0x258] sm:$0xff] }
 0x9c1   :  { %11983 = vmatpush1.bf16.msra.mxu0 %v11982_v51  ;;  %12031 = vmatpush1.bf16.msra.mxu1 %v12030_v63  ;;  %v11996_v51 = vpack.c.bf16 %v7516_v3, %v7512_v35  ;;  %v12044_v63 = vpack.c.bf16 %v7518_v0, %v7514_v44  ;;  %v7531_v13 = vld [vmem:[%s20735_s9 + $0x220] sm:$0xff]  ;;  %v7542_v21 = vld [vmem:[%s20735_s9 + $0x278] sm:$0xff]  ;;  %v12054_v3 = vpack.c.bf16 %v7533_v48, %v7529_v60  ;;  %v7549_v50 = vld [vmem:[%s20735_s9 + $0x2b0] sm:$0xff] }
 0x9c2   :  { %11985 = vmatprep.subr.bf16.mxu0 %v11984_v34  ;;  %12033 = vmatprep.subr.bf16.mxu1 %v12032_v4  ;;  %v7520_v34 = vld [vmem:[%s20735_s9 + $0x1c8] sm:$0xff]  ;;  %v12006_v35 = vpack.c.bf16 %v7531_v13, %v7527_v19  ;;  %v7535_v44 = vld [vmem:[%s20735_s9 + $0x240] sm:$0xff]  ;;  %v7550_v9 = vld [vmem:[%s20735_s9 + $0x2b8] sm:$0xff] }
 0x9c3   :  { %v7524_v4 = vld [vmem:[%s20735_s9 + $0x1e8] sm:$0xff]  ;;  %v7539_v0 = vld [vmem:[%s20735_s9 + $0x260] sm:$0xff]  ;;  %v7553_v19 = vld [vmem:[%s20735_s9 + $0x2d0] sm:$0xff] }
 0x9c4   :  { %v7557_v13 = vld [vmem:[%s20735_s9 + $0x2f0] sm:$0xff]  ;;  %v7560_v60 = vld [vmem:[%s20735_s9 + $0x308] sm:$0xff]  ;;  %v7562_v48 = vld [vmem:[%s20735_s9 + $0x318] sm:$0xff] }
 0x9c5   :  { %11987 = vmatpush1.bf16.msra.mxu0 %v11986_v31  ;;  %12035 = vmatpush1.bf16.msra.mxu1 %v12034_v16  ;;  %v12000_v31 = vpack.c.bf16 %v7524_v4, %v7520_v34  ;;  %v12048_v16 = vpack.c.bf16 %v7526_v30, %v7522_v39  ;;  %v12010_v34 = vpack.c.bf16 %v7539_v0, %v7535_v44  ;;  %v7543_v39 = vld [vmem:[%s20735_s9 + $0x280] sm:$0xff]  ;;  %v10195_v0 = vld [vmem:[%s20735_s9 + $0x698] sm:$0xff] }
 0x9c6   :  { %11989 = vmatprep.subr.bf16.mxu0 %v11988_v1  ;;  %12037 = vmatprep.subr.bf16.mxu1 %v12036_v6  ;;  %v7528_v1 = vld [vmem:[%s20735_s9 + $0x208] sm:$0xff]  ;;  %v12058_v4 = vpack.c.bf16 %v7541_v38, %v7537_v2  ;;  %v7547_v30 = vld [vmem:[%s20735_s9 + $0x2a0] sm:$0xff]  ;;  %v10194_v38 = vld [vmem:[%s20735_s9 + $0x690] sm:$0xff] }
 0x9c7   :  { %v7532_v6 = vld [vmem:[%s20735_s9 + $0x228] sm:$0xff] }
 0x9c9   :  { %11991 = vmatpush1.bf16.msra.mxu0 %v11990_v18  ;;  %12039 = vmatpush1.bf16.msra.mxu1 %v12038_v27  ;;  %v12004_v18 = vpack.c.bf16 %v7532_v6, %v7528_v1  ;;  %v12052_v27 = vpack.c.bf16 %v7534_v23, %v7530_v45  ;;  %v12014_v1 = vpack.c.bf16 %v7547_v30, %v7543_v39  ;;  %v7551_v45 = vld [vmem:[%s20735_s9 + $0x2c0] sm:$0xff]  ;;  %v10206_v39 = vld [vmem:[%s20735_s9 + $0x6f0] sm:$0xff]  ;;  %v10215_v30 = vld [vmem:[%s20735_s9 + $0x738] sm:$0xff] }
 0x9ca   :  { %11993 = vmatprep.subr.bf16.mxu0 %v11992_v26  ;;  %12041 = vmatprep.subr.bf16.mxu1 %v12040_v17  ;;  %v7536_v26 = vld [vmem:[%s20735_s9 + $0x248] sm:$0xff]  ;;  %v12062_v6 = vpack.c.bf16 %v7549_v50, %v7545_v59  ;;  %v10210_v59 = vld [vmem:[%s20735_s9 + $0x710] sm:$0xff]  ;;  %v10223_v50 = vld [vmem:[%s20735_s9 + $0x778] sm:$0xff] }
 0x9cb   :  { %v7540_v17 = vld [vmem:[%s20735_s9 + $0x268] sm:$0xff] }
 0x9cd   :  { %11995 = vmatpush1.bf16.msra.mxu0 %v11994_v22  ;;  %12043 = vmatpush1.bf16.msra.mxu1 %v12042_v12  ;;  %v12008_v22 = vpack.c.bf16 %v7540_v17, %v7536_v26  ;;  %v12056_v12 = vpack.c.bf16 %v7542_v21, %v7538_v42  ;;  %v10187_v26 = vld [vmem:[%s20735_s9 + $0x658] sm:$0xff]  ;;  %v7559_v42 = vld [vmem:[%s20735_s9 + $0x300] sm:$0xff]  ;;  %v10186_v21 = vld [vmem:[%s20735_s9 + $0x650] sm:$0xff] }
 0x9ce   :  { %11997 = vmatprep.subr.bf16.mxu0 %v11996_v51  ;;  %12045 = vmatprep.subr.bf16.mxu1 %v12044_v63  ;;  %v7544_v51 = vld [vmem:[%s20735_s9 + $0x288] sm:$0xff]  ;;  %v10191_v17 = vld [vmem:[%s20735_s9 + $0x678] sm:$0xff] }
 0x9cf   :  { %v7548_v63 = vld [vmem:[%s20735_s9 + $0x2a8] sm:$0xff]  ;;  %v12148_v44 = vpack.c.bf16 %v10191_v17, %v10187_v26  ;;  %v10243_v26 = vld [vmem:[%s20735_s9 + $0x818] sm:$0xff] }
 0x9d0   :  { %v10247_v17 = vld [vmem:[%s20735_s9 + $0x838] sm:$0xff] }
 0x9d1   :  { %11999 = vmatpush1.bf16.msra.mxu0 %v11998_v62  ;;  %12047 = vmatpush1.bf16.msra.mxu1 %v12046_v20  ;;  %v12012_v62 = vpack.c.bf16 %v7548_v63, %v7544_v51  ;;  %v12060_v20 = vpack.c.bf16 %v7550_v9, %v7546_v61  ;;  %v10198_v51 = vld [vmem:[%s20735_s9 + $0x6b0] sm:$0xff]  ;;  %v10203_v63 = vld [vmem:[%s20735_s9 + $0x6d8] sm:$0xff] }
 0x9d2   :  { %12001 = vmatprep.subr.bf16.mxu0 %v12000_v31  ;;  %12049 = vmatprep.subr.bf16.mxu1 %v12048_v16  ;;  %v7552_v31 = vld [vmem:[%s20735_s9 + $0x2c8] sm:$0xff]  ;;  %v10207_v61 = vld [vmem:[%s20735_s9 + $0x6f8] sm:$0xff]  ;;  %v12154_v9 = vpack.c.bf16 %v10198_v51, %v10194_v38  ;;  %v10254_v38 = vld [vmem:[%s20735_s9 + $0x870] sm:$0xff] }
 0x9d3   :  { %v7556_v16 = vld [vmem:[%s20735_s9 + $0x2e8] sm:$0xff]  ;;  %v10259_v51 = vld [vmem:[%s20735_s9 + $0x898] sm:$0xff] }
 0x9d4   :  { %v12016_v23 = vpack.c.bf16 %v7556_v16, %v7552_v31 }
 0x9d5   :  { %12003 = vmatpush1.bf16.msra.mxu0 %v12002_v14  ;;  %12051 = vmatpush1.bf16.msra.mxu1 %v12050_v15  ;;  %v12064_v14 = vpack.c.bf16 %v7558_v57, %v7554_v28  ;;  %v7555_v15 = vld [vmem:[%s20735_s9 + $0x2e0] sm:$0xff]  ;;  %v10218_v28 = vld [vmem:[%s20735_s9 + $0x750] sm:$0xff] }
 0x9d6   :  { %12005 = vmatprep.subr.bf16.mxu0 %v12004_v18  ;;  %12053 = vmatprep.subr.bf16.mxu1 %v12052_v27  ;;  %v12018_v18 = vpack.c.bf16 %v7555_v15, %v7551_v45  ;;  %v12066_v27 = vpack.c.bf16 %v7557_v13, %v7553_v19  ;;  %v10222_v57 = vld [vmem:[%s20735_s9 + $0x770] sm:$0xff]  ;;  %v10235_v19 = vld [vmem:[%s20735_s9 + $0x7d8] sm:$0xff] }
 0x9d7   :  { %v12166_v45 = vpack.c.bf16 %v10222_v57, %v10218_v28  ;;  %v10230_v15 = vld [vmem:[%s20735_s9 + $0x7b0] sm:$0xff]  ;;  %v10239_v13 = vld [vmem:[%s20735_s9 + $0x7f8] sm:$0xff] }
 0x9d8   :  { %v10274_v57 = vld [vmem:[%s20735_s9 + $0x910] sm:$0xff] }
 0x9d9   :  { %12007 = vmatpush1.bf16.msra.mxu0 %v12006_v35  ;;  %12055 = vmatpush1.bf16.msra.mxu1 %v12054_v3  ;;  %v10190_v35 = vld [vmem:[%s20735_s9 + $0x670] sm:$0xff] }
 0x9da   :  { %12009 = vmatprep.subr.bf16.mxu0 %v12008_v22  ;;  %12057 = vmatprep.subr.bf16.mxu1 %v12056_v12  ;;  %v7561_v3 = vld [vmem:[%s20735_s9 + $0x310] sm:$0xff]  ;;  %v10199_v22 = vld [vmem:[%s20735_s9 + $0x6b8] sm:$0xff]  ;;  %v12150_v12 = vpack.c.bf16 %v10190_v35, %v10186_v21  ;;  %v12176_v21 = vpack.c.bf16 %v10247_v17, %v10243_v26  ;;  %v10192_v26 = vld [vmem:[%s20735_s9 + $0x680] sm:$0xff] }
 0x9db   :  { %v12152_v2 = vpack.c.bf16 %v10199_v22, %v10195_v0  ;;  %v10242_v35 = vld [vmem:[%s20735_s9 + $0x810] sm:$0xff]  ;;  %v10255_v0 = vld [vmem:[%s20735_s9 + $0x878] sm:$0xff]  ;;  %v10196_v17 = vld [vmem:[%s20735_s9 + $0x6a0] sm:$0xff] }
 0x9dd   :  { %12011 = vmatpush1.bf16.msra.mxu0 %v12010_v34  ;;  %12059 = vmatpush1.bf16.msra.mxu1 %v12058_v4  ;;  %v12156_v34 = vpack.c.bf16 %v10207_v61, %v10203_v63  ;;  %v10202_v4 = vld [vmem:[%s20735_s9 + $0x6d0] sm:$0xff]  ;;  %v10263_v63 = vld [vmem:[%s20735_s9 + $0x8b8] sm:$0xff]  ;;  %v10182_v61 = vld [vmem:[%s20734_s8 + $0x20] sm:$0xff] }
 0x9de   :  { %12013 = vmatprep.subr.bf16.mxu0 %v12012_v62  ;;  %12061 = vmatprep.subr.bf16.mxu1 %v12060_v20  ;;  %v12158_v62 = vpack.c.bf16 %v10206_v39, %v10202_v4  ;;  %v10258_v4 = vld [vmem:[%s20735_s9 + $0x890] sm:$0xff] }
 0x9df   :  { %v10262_v39 = vld [vmem:[%s20735_s9 + $0x8b0] sm:$0xff] }
 0x9e1   :  { %12015 = vmatpush1.bf16.msra.mxu0 %v12014_v1  ;;  %12063 = vmatpush1.bf16.msra.mxu1 %v12062_v6  ;;  %v10227_v1 = vld [vmem:[%s20735_s9 + $0x798] sm:$0xff] }
 0x9e2   :  { %12017 = vmatprep.subr.bf16.mxu0 %v12016_v23  ;;  %12065 = vmatprep.subr.bf16.mxu1 %v12064_v14  ;;  %v10231_v6 = vld [vmem:[%s20735_s9 + $0x7b8] sm:$0xff]  ;;  %v10226_v14 = vld [vmem:[%s20735_s9 + $0x790] sm:$0xff] }
 0x9e3   :  { %v12168_v23 = vpack.c.bf16 %v10231_v6, %v10227_v1  ;;  %v10278_v1 = vld [vmem:[%s20735_s9 + $0x930] sm:$0xff] }
 0x9e4   :  { %v12194_v6 = vpack.c.bf16 %v10278_v1, %v10274_v57  ;;  %v10232_v57 = vld [vmem:[%s20735_s9 + $0x7c0] sm:$0xff] }
 0x9e5   :  { %12019 = vmatpush1.bf16.msra.mxu0 %v12018_v18  ;;  %12067 = vmatpush1.bf16.msra.mxu1 %v12066_v27  ;;  %v12170_v18 = vpack.c.bf16 %v10230_v15, %v10226_v14  ;;  %v12172_v27 = vpack.c.bf16 %v10239_v13, %v10235_v19  ;;  %v10185_v14 = vld [vmem:[%s20735_s9 + $0x648] sm:$0xff]  ;;  %v10184_v13 = vld [vmem:[%s20735_s9 + $0x640] sm:$0xff] }
 0x9e6   :  { %7959 = vmatprep.subr.mxu0 %v7560_v60  ;;  %8036 = vmatprep.subr.mxu1 %v7562_v48  ;;  %v10234_v60 = vld [vmem:[%s20735_s9 + $0x7d0] sm:$0xff]  ;;  %v10189_v15 = vld [vmem:[%s20735_s9 + $0x668] sm:$0xff]  ;;  %v10236_v1 = vld [vmem:[%s20735_s9 + $0x7e0] sm:$0xff] }
 0x9e7   :  { %v10238_v48 = vld [vmem:[%s20735_s9 + $0x7f0] sm:$0xff]  ;;  %v12100_v19 = vpack.c.bf16 %v10189_v15, %v10185_v14  ;;  %v10240_v15 = vld [vmem:[%s20735_s9 + $0x800] sm:$0xff] }
 0x9e9   :  { %7960 = vmatpush1.msra.mxu0 %v7559_v42  ;;  %8037 = vmatpush1.msra.mxu1 %v7561_v3  ;;  %v12174_v42 = vpack.c.bf16 %v10238_v48, %v10234_v60  ;;  %v10246_v3 = vld [vmem:[%s20735_s9 + $0x830] sm:$0xff]  ;;  %v10197_v60 = vld [vmem:[%s20735_s9 + $0x6a8] sm:$0xff] }
 0x9ea   :  { %12069 = vmatprep.subr.bf16.mxu0 %v19138_v32  ;;  %12149 = vmatprep.subr.bf16.mxu1 %v12148_v44  ;;  %v10251_v44 = vld [vmem:[%s20735_s9 + $0x858] sm:$0xff]  ;;  %v12178_v22 = vpack.c.bf16 %v10246_v3, %v10242_v35  ;;  %v10205_v35 = vld [vmem:[%s20735_s9 + $0x6e8] sm:$0xff] }
 0x9eb   :  { %7976 = vmatmul.mubr.f32.vlgmr.msra.gmra.mrb[68].mxu0 %v19556_v56  ;;  %8053 = vmatmul.mubr.f32.vlgmr.msra.gmra.mrb[228].mxu1 %v19556_v56  ;;  %v10211_v56 = vld [vmem:[%s20735_s9 + $0x718] sm:$0xff] }
 0x9ec   :  { %12071 = vmatpush1.bf16.msra.mxu0 %v19136_v11  ;;  %12151 = vmatpush1.bf16.msra.mxu1 %v12150_v12  ;;  %v12160_v20 = vpack.c.bf16 %v10215_v30, %v10211_v56  ;;  %v12180_v12 = vpack.c.bf16 %v10255_v0, %v10251_v44  ;;  %v10267_v56 = vld [vmem:[%s20735_s9 + $0x8d8] sm:$0xff]  ;;  %v10200_v44 = vld [vmem:[%s20735_s9 + $0x6c0] sm:$0xff] }
 0x9ed   :  { %12073 = vmatprep.subr.bf16.mxu0 %v19146_v54  ;;  %12153 = vmatprep.subr.bf16.mxu1 %v12152_v2  ;;  %v10250_v2 = vld [vmem:[%s20735_s9 + $0x850] sm:$0xff]  ;;  %v10271_v30 = vld [vmem:[%s20735_s9 + $0x8f8] sm:$0xff]  ;;  %v10204_v0 = vld [vmem:[%s20735_s9 + $0x6e0] sm:$0xff] }
 0x9ee   :  { %10179 = vmatprep.mubr.msk.f32.mxu0 %vm7744_vm7, %v19595_v58  ;;  %10181 = vmatprep.mubr.msk.f32.mxu1 %vm7744_vm7, %v19595_v58  ;;  %v10214_v58 = vld [vmem:[%s20735_s9 + $0x730] sm:$0xff] }
 0x9ef   :  { %7982 = vmatmul.mubr.f32.gmra.mrb[70].mxu0 %v19584_v41  ;;  %8059 = vmatmul.mubr.f32.gmra.mrb[230].mxu1 %v19584_v41  ;;  %v10219_v41 = vld [vmem:[%s20735_s9 + $0x758] sm:$0xff]  ;;  %v12162_v31 = vpack.c.bf16 %v10214_v58, %v10210_v59  ;;  %v12188_v59 = vpack.c.bf16 %v10271_v30, %v10267_v56  ;;  %v10266_v58 = vld [vmem:[%s20735_s9 + $0x8d0] sm:$0xff]  ;;  %v10220_v56 = vld [vmem:[%s20735_s9 + $0x760] sm:$0xff] }
 0x9f0   :  { %12075 = vmatpush1.bf16.msra.mxu0 %v19144_v25  ;;  %12155 = vmatpush1.bf16.msra.mxu1 %v12154_v9  ;;  %v12164_v16 = vpack.c.bf16 %v10223_v50, %v10219_v41  ;;  %v12182_v9 = vpack.c.bf16 %v10254_v38, %v10250_v2  ;;  %v10270_v41 = vld [vmem:[%s20735_s9 + $0x8f0] sm:$0xff]  ;;  %v10275_v50 = vld [vmem:[%s20735_s9 + $0x918] sm:$0xff]  ;;  %v10213_v2 = vld [vmem:[%s20735_s9 + $0x728] sm:$0xff] }
 0x9f1   :  { %12077 = vmatprep.subr.bf16.mxu0 %v19154_v40  ;;  %12157 = vmatprep.subr.bf16.mxu1 %v12156_v34  ;;  %v12184_v34 = vpack.c.bf16 %v10263_v63, %v10259_v51  ;;  %v10208_v51 = vld [vmem:[%s20735_s9 + $0x700] sm:$0xff] }
 0x9f2   :  { %8132 = vmatprep.mubr.f32.mxu0 %v20922_v53  ;;  %v10212_v63 = vld [vmem:[%s20735_s9 + $0x720] sm:$0xff] }
 0x9f4   :  { %12079 = vmatpush1.bf16.msra.mxu0 %v19152_v29  ;;  %12159 = vmatpush1.bf16.msra.mxu1 %v12158_v62  ;;  %v12186_v62 = vpack.c.bf16 %v10262_v39, %v10258_v4  ;;  %v10216_v39 = vld [vmem:[%s20735_s9 + $0x740] sm:$0xff] }
 0x9f5   :  { %12081 = vmatprep.subr.bf16.mxu0 %v19162_v36  ;;  %12161 = vmatprep.subr.bf16.mxu1 %v12160_v20  ;;  %v10183_v20 = vld [vmem:[%s20734_s8 + $0x28] sm:$0xff]  ;;  %v12118_v30 = vpack.c.bf16 %v10220_v56, %v10216_v39 }
 0x9f6   :  { %v10281_v56 = vld [vmem:[%s20735_s9 + $0x948] sm:$0xff] }
 0x9f8   :  { %12083 = vmatpush1.bf16.msra.mxu0 %v19160_v43  ;;  %12163 = vmatpush1.bf16.msra.mxu1 %v12162_v31  ;;  %v10279_v31 = vld [vmem:[%s20735_s9 + $0x938] sm:$0xff] }
 0x9f9   :  { %12085 = vmatprep.subr.bf16.mxu0 %v19170_v49  ;;  %12165 = vmatprep.subr.bf16.mxu1 %v12164_v16  ;;  %v12190_v16 = vpack.c.bf16 %v10270_v41, %v10266_v58  ;;  %v12192_v28 = vpack.c.bf16 %v10279_v31, %v10275_v50  ;;  %v10224_v58 = vld [vmem:[%s20735_s9 + $0x780] sm:$0xff]  ;;  %v10233_v31 = vld [vmem:[%s20735_s9 + $0x7c8] sm:$0xff] }
 0x9fa   :  { %v10228_v41 = vld [vmem:[%s20735_s9 + $0x7a0] sm:$0xff] }
 0x9fb   :  { %v12122_v50 = vpack.c.bf16 %v10228_v41, %v10224_v58  ;;  %v10290_v58 = vld [vmem:[%s20735_s9 + $0x960] sm:$0xff] }
 0x9fc   :  { %12087 = vmatpush1.bf16.msra.mxu0 %v19168_v10  ;;  %12167 = vmatpush1.bf16.msra.mxu1 %v12166_v45  ;;  %v10283_v45 = vld [vmem:[%s20735_s9 + $0x958] sm:$0xff]  ;;  %v10294_v41 = vld [vmem:[%s20735_s9 + $0x980] sm:$0xff] }
 0x9fd   :  { %12089 = vmatprep.subr.bf16.mxu0 %v19178_v5  ;;  %12169 = vmatprep.subr.bf16.mxu1 %v12168_v23  ;;  %v10282_v23 = vld [vmem:[%s20735_s9 + $0x950] sm:$0xff] }
 0xa00   :  { %12091 = vmatpush1.bf16.msra.mxu0 %v19176_v33  ;;  %12171 = vmatpush1.bf16.msra.mxu1 %v12170_v18  ;;  %v10188_v18 = vld [vmem:[%s20735_s9 + $0x660] sm:$0xff] }
 0xa01   :  { %12093 = vmatprep.subr.bf16.mxu0 %v19186_v47  ;;  %12173 = vmatprep.subr.bf16.mxu1 %v12172_v27  ;;  %v12102_v27 = vpack.c.bf16 %v10188_v18, %v10184_v13  ;;  %v10249_v18 = vld [vmem:[%s20735_s9 + $0x848] sm:$0xff] }
 0xa04   :  { %12095 = vmatpush1.bf16.msra.mxu0 %v19184_v37  ;;  %12175 = vmatpush1.bf16.msra.mxu1 %v12174_v42  ;;  %v12106_v42 = vpack.c.bf16 %v10196_v17, %v10192_v26  ;;  %v10257_v17 = vld [vmem:[%s20735_s9 + $0x888] sm:$0xff] }
 0xa05   :  { %12097 = vmatprep.subr.bf16.mxu0 %v19206_v7  ;;  %12177 = vmatprep.subr.bf16.mxu1 %v12176_v21  ;;  %v10201_v21 = vld [vmem:[%s20735_s9 + $0x6c8] sm:$0xff] }
 0xa06   :  { %v12108_v3 = vpack.c.bf16 %v10205_v35, %v10201_v21  ;;  %v10256_v35 = vld [vmem:[%s20735_s9 + $0x880] sm:$0xff] }
 0xa08   :  { %12099 = vmatpush1.bf16.msra.mxu0 %v19204_v52  ;;  %12179 = vmatpush1.bf16.msra.mxu1 %v12178_v22  ;;  %v12110_v22 = vpack.c.bf16 %v10204_v0, %v10200_v44  ;;  %v10265_v0 = vld [vmem:[%s20735_s9 + $0x8c8] sm:$0xff] }
 0xa09   :  { %12181 = vmatprep.subr.bf16.mxu1 %v12180_v12  ;;  %12101 = vmatprep.subr.bf16.mxu0 %v12100_v19  ;;  %v10209_v12 = vld [vmem:[%s20735_s9 + $0x708] sm:$0xff]  ;;  %v10244_v19 = vld [vmem:[%s20735_s9 + $0x820] sm:$0xff] }
 0xa0a   :  { %v12112_v38 = vpack.c.bf16 %v10213_v2, %v10209_v12  ;;  %v12130_v13 = vpack.c.bf16 %v10244_v19, %v10240_v15  ;;  %v10264_v2 = vld [vmem:[%s20735_s9 + $0x8c0] sm:$0xff] }
 0xa0b   :  { %8133 = vmatmul.mubr.f32.vlgmr.msra.gmra.mrb[72].mxu0 %v10182_v61  ;;  %v12114_v61 = vpack.c.bf16 %v10212_v63, %v10208_v51  ;;  %v10273_v63 = vld [vmem:[%s20735_s9 + $0x908] sm:$0xff] }
 0xa0c   :  { %12183 = vmatpush1.bf16.msra.mxu1 %v12182_v9  ;;  %8138 = vmatprep.mubr.f32.mxu0 %v20922_v53  ;;  %v10217_v9 = vld [vmem:[%s20735_s9 + $0x748] sm:$0xff] }
 0xa0d   :  { %12185 = vmatprep.subr.bf16.mxu1 %v12184_v34  ;;  %12103 = vmatpush1.bf16.msra.mxu0 %v12102_v27  ;;  %v10221_v34 = vld [vmem:[%s20735_s9 + $0x768] sm:$0xff] }
 0xa0e   :  { %v12116_v4 = vpack.c.bf16 %v10221_v34, %v10217_v9  ;;  %v10253_v27 = vld [vmem:[%s20735_s9 + $0x868] sm:$0xff]  ;;  %v10272_v34 = vld [vmem:[%s20735_s9 + $0x900] sm:$0xff] }
 0xa0f   :  { %8139 = vmatmul.mubr.f32.gmra.mrb[74].mxu0 %v10183_v20  ;;  %v10229_v20 = vld [vmem:[%s20735_s9 + $0x7a8] sm:$0xff] }
 0xa10   :  { %12187 = vmatpush1.bf16.msra.mxu1 %v12186_v62  ;;  %v10225_v62 = vld [vmem:[%s20735_s9 + $0x788] sm:$0xff] }
 0xa11   :  { %12189 = vmatprep.subr.bf16.mxu1 %v12188_v59  ;;  %v12120_v59 = vpack.c.bf16 %v10229_v20, %v10225_v62  ;;  %v10291_v62 = vld [vmem:[%s20735_s9 + $0x968] sm:$0xff] }
 0xa12   :  { %v10295_v20 = vld [vmem:[%s20735_s9 + $0x988] sm:$0xff] }
 0xa14   :  { %12191 = vmatpush1.bf16.msra.mxu1 %v12190_v16  ;;  %v10237_v16 = vld [vmem:[%s20735_s9 + $0x7e8] sm:$0xff] }
 0xa15   :  { %12193 = vmatprep.subr.bf16.mxu1 %v12192_v28  ;;  %v12124_v28 = vpack.c.bf16 %v10237_v16, %v10233_v31  ;;  %v10303_v31 = vld [vmem:[%s20735_s9 + $0x9c8] sm:$0xff] }
 0xa18   :  { %12195 = vmatpush1.bf16.msra.mxu1 %v12194_v6  ;;  %v12126_v6 = vpack.c.bf16 %v10236_v1, %v10232_v57 }
 0xa19   :  { %8377 = vmatprep.subr.mxu1 %v10283_v45  ;;  %v10241_v45 = vld [vmem:[%s20735_s9 + $0x808] sm:$0xff] }
 0xa1c   :  { %8378 = vmatpush1.msra.mxu1 %v10282_v23  ;;  %v10245_v23 = vld [vmem:[%s20735_s9 + $0x828] sm:$0xff] }
 0xa1d   :  { %12197 = vmatprep.subr.bf16.mxu1 %v19138_v32  ;;  %v10193_v32 = vld [vmem:[%s20735_s9 + $0x688] sm:$0xff]  ;;  %v12128_v14 = vpack.c.bf16 %v10245_v23, %v10241_v45  ;;  %v10302_v45 = vld [vmem:[%s20735_s9 + $0x9c0] sm:$0xff] }
 0xa1e   :  { %v12104_v48 = vpack.c.bf16 %v10197_v60, %v10193_v32  ;;  %v12132_v32 = vpack.c.bf16 %v10253_v27, %v10249_v18  ;;  %v10248_v60 = vld [vmem:[%s20735_s9 + $0x840] sm:$0xff]  ;;  %v10307_v23 = vld [vmem:[%s20735_s9 + $0x9e8] sm:$0xff] }
 0xa1f   :  { %v10306_v27 = vld [vmem:[%s20735_s9 + $0x9e0] sm:$0xff] }
 0xa20   :  { %12105 = vmatprep.subr.bf16.mxu0 %v12104_v48  ;;  %v10252_v48 = vld [vmem:[%s20735_s9 + $0x860] sm:$0xff] }
 0xa21   :  { %12107 = vmatpush1.bf16.msra.mxu0 %v12106_v42  ;;  %v12134_v26 = vpack.c.bf16 %v10252_v48, %v10248_v60  ;;  %v10261_v42 = vld [vmem:[%s20735_s9 + $0x8a8] sm:$0xff] }
 0xa22   :  { %12109 = vmatprep.subr.bf16.mxu0 %v12108_v3  ;;  %v12136_v21 = vpack.c.bf16 %v10261_v42, %v10257_v17  ;;  %v10260_v3 = vld [vmem:[%s20735_s9 + $0x8a0] sm:$0xff] }
 0xa23   :  { %v12138_v44 = vpack.c.bf16 %v10260_v3, %v10256_v35  ;;  %v10318_v17 = vld [vmem:[%s20735_s9 + $0xa40] sm:$0xff] }
 0xa24   :  { %v10322_v35 = vld [vmem:[%s20735_s9 + $0xa60] sm:$0xff] }
 0xa25   :  { %12111 = vmatpush1.bf16.msra.mxu0 %v12110_v22  ;;  %v10269_v22 = vld [vmem:[%s20735_s9 + $0x8e8] sm:$0xff]  ;;  %v10326_v3 = vld [vmem:[%s20735_s9 + $0xa80] sm:$0xff] }
 0xa26   :  { %12113 = vmatprep.subr.bf16.mxu0 %v12112_v38  ;;  %v12140_v12 = vpack.c.bf16 %v10269_v22, %v10265_v0  ;;  %v10268_v38 = vld [vmem:[%s20735_s9 + $0x8e0] sm:$0xff] }
 0xa27   :  { %v12142_v51 = vpack.c.bf16 %v10268_v38, %v10264_v2  ;;  %v10330_v22 = vld [vmem:[%s20735_s9 + $0xaa0] sm:$0xff]  ;;  %v10339_v2 = vld [vmem:[%s20735_s9 + $0xae8] sm:$0xff] }
 0xa29   :  { %12115 = vmatpush1.bf16.msra.mxu0 %v12114_v61  ;;  %v10277_v61 = vld [vmem:[%s20735_s9 + $0x928] sm:$0xff] }
 0xa2a   :  { %12117 = vmatprep.subr.bf16.mxu0 %v12116_v4  ;;  %v12144_v9 = vpack.c.bf16 %v10277_v61, %v10273_v63  ;;  %v10276_v4 = vld [vmem:[%s20735_s9 + $0x920] sm:$0xff]  ;;  %v10347_v61 = vld [vmem:[%s20735_s9 + $0xb28] sm:$0xff] }
 0xa2b   :  { %v12146_v39 = vpack.c.bf16 %v10276_v4, %v10272_v34  ;;  %v10342_v63 = vld [vmem:[%s20735_s9 + $0xb00] sm:$0xff]  ;;  %v10297_v34 = vld [vmem:[%s20735_s9 + $0x998] sm:$0xff] }
 0xa2d   :  { %12119 = vmatpush1.bf16.msra.mxu0 %v12118_v30  ;;  %v10280_v30 = vld [vmem:[%s20735_s9 + $0x940] sm:$0xff] }
 0xa2e   :  { %12121 = vmatprep.subr.bf16.mxu0 %v12120_v59  ;;  %v12228_v59 = vpack.c.bf16 %v10295_v20, %v10291_v62  ;;  %v10292_v62 = vld [vmem:[%s20735_s9 + $0x970] sm:$0xff] }
 0xa2f   :  { %v10296_v20 = vld [vmem:[%s20735_s9 + $0x990] sm:$0xff] }
 0xa31   :  { %12123 = vmatpush1.bf16.msra.mxu0 %v12122_v50  ;;  %v10299_v50 = vld [vmem:[%s20735_s9 + $0x9a8] sm:$0xff] }
 0xa32   :  { %12125 = vmatprep.subr.bf16.mxu0 %v12124_v28  ;;  %v12230_v28 = vpack.c.bf16 %v10294_v41, %v10290_v58  ;;  %v12232_v1 = vpack.c.bf16 %v10303_v31, %v10299_v50  ;;  %v10354_v41 = vld [vmem:[%s20735_s9 + $0xb60] sm:$0xff]  ;;  %v10363_v31 = vld [vmem:[%s20735_s9 + $0xba8] sm:$0xff] }
 0xa33   :  { %v10358_v50 = vld [vmem:[%s20735_s9 + $0xb80] sm:$0xff] }
 0xa35   :  { %12127 = vmatpush1.bf16.msra.mxu0 %v12126_v6  ;;  %v10298_v6 = vld [vmem:[%s20735_s9 + $0x9a0] sm:$0xff] }
 0xa36   :  { %12129 = vmatprep.subr.bf16.mxu0 %v12128_v14  ;;  %v10311_v14 = vld [vmem:[%s20735_s9 + $0xa08] sm:$0xff] }
 0xa37   :  { %v12236_v18 = vpack.c.bf16 %v10311_v14, %v10307_v23  ;;  %v10309_v23 = vld [vmem:[%s20735_s9 + $0x9f8] sm:$0xff] }
 0xa38   :  { %v10313_v14 = vld [vmem:[%s20735_s9 + $0xa18] sm:$0xff] }
 0xa39   :  { %12131 = vmatpush1.bf16.msra.mxu0 %v12130_v13  ;;  %v12234_v13 = vpack.c.bf16 %v10302_v45, %v10298_v6  ;;  %v10300_v6 = vld [vmem:[%s20735_s9 + $0x9b0] sm:$0xff] }
 0xa3a   :  { %12133 = vmatprep.subr.bf16.mxu0 %v12132_v32  ;;  %v10319_v32 = vld [vmem:[%s20735_s9 + $0xa48] sm:$0xff]  ;;  %v10304_v45 = vld [vmem:[%s20735_s9 + $0x9d0] sm:$0xff] }
 0xa3d   :  { %12135 = vmatpush1.bf16.msra.mxu0 %v12134_v26  ;;  %v10314_v26 = vld [vmem:[%s20735_s9 + $0xa20] sm:$0xff] }
 0xa3e   :  { %12137 = vmatprep.subr.bf16.mxu0 %v12136_v21  ;;  %v12242_v42 = vpack.c.bf16 %v10318_v17, %v10314_v26  ;;  %v10317_v26 = vld [vmem:[%s20735_s9 + $0xa38] sm:$0xff] }
 0xa41   :  { %12139 = vmatpush1.bf16.msra.mxu0 %v12138_v44  ;;  %v10331_v44 = vld [vmem:[%s20735_s9 + $0xaa8] sm:$0xff] }
 0xa42   :  { %12141 = vmatprep.subr.bf16.mxu0 %v12140_v12  ;;  %v10334_v12 = vld [vmem:[%s20735_s9 + $0xac0] sm:$0xff] }
 0xa45   :  { %12143 = vmatpush1.bf16.msra.mxu0 %v12142_v51  ;;  %v10338_v51 = vld [vmem:[%s20735_s9 + $0xae0] sm:$0xff] }
 0xa46   :  { %12145 = vmatprep.subr.bf16.mxu0 %v12144_v9  ;;  %v12254_v9 = vpack.c.bf16 %v10342_v63, %v10338_v51 }
 0xa49   :  { %12147 = vmatpush1.bf16.msra.mxu0 %v12146_v39  ;;  %v10346_v39 = vld [vmem:[%s20735_s9 + $0xb20] sm:$0xff] }
 0xa4a   :  { %8300 = vmatprep.subr.mxu0 %v10281_v56  ;;  %v10359_v56 = vld [vmem:[%s20735_s9 + $0xb88] sm:$0xff] }
 0xa4d   :  { %8301 = vmatpush1.msra.mxu0 %v10280_v30 }
 0xa4e   :  { %12229 = vmatprep.subr.bf16.mxu0 %v12228_v59  ;;  %v10301_v59 = vld [vmem:[%s20735_s9 + $0x9b8] sm:$0xff] }
 0xade   :  { %v8134_v16 = vpop.f32.mrb[72].mxu0 }
 0xadf   :  { %v8136_v57 = vpop.f32.mrb[73].mxu0 }
 0xae0   :  { %10286 = vmatprep.mubr.msk.f32.mxu1 %vm7744_vm7, %v8136_v57  ;;  %10284 = vmatprep.mubr.msk.f32.mxu0 %vm7744_vm7, %v8136_v57  ;;  %v12278_v57 = vpack.c.bf16 %v10296_v20, %v10292_v62 }
 0xae1   :  { %8394 = vmatmul.mubr.f32.vlgmr.msra.gmra.mrb[228].mxu1 %v8134_v16  ;;  %8317 = vmatmul.mubr.f32.vlgmr.msra.gmra.mrb[68].mxu0 %v8134_v16  ;;  %v10367_v16 = vld [vmem:[%s20735_s9 + $0xbc8] sm:$0xff] }
 0xae2   :  { %12199 = vmatpush1.bf16.msra.mxu1 %v19136_v11  ;;  %v8140_v15 = vpop.f32.mrb[74].mxu0  ;;  %12231 = vmatpush1.bf16.msra.mxu0 %v12230_v28  ;;  %v10310_v11 = vld [vmem:[%s20735_s9 + $0xa00] sm:$0xff]  ;;  %v10288_v28 = vld [vmem:[%s20734_s8 + $0x30] sm:$0xff] }
 0xae3   :  { %12201 = vmatprep.subr.bf16.mxu1 %v19146_v54  ;;  %v8142_v19 = vpop.f32.mrb[75].mxu0  ;;  %12233 = vmatprep.subr.bf16.mxu0 %v12232_v1  ;;  %v10315_v54 = vld [vmem:[%s20735_s9 + $0xa28] sm:$0xff]  ;;  %v12238_v60 = vpack.c.bf16 %v10310_v11, %v10306_v27  ;;  %v10289_v11 = vld [vmem:[%s20734_s8 + $0x38] sm:$0xff] }
 0xae4   :  { %10287 = vmatprep.mubr.msk.f32.mxu1 %vm7744_vm7, %v8142_v19  ;;  %10285 = vmatprep.mubr.msk.f32.mxu0 %vm7744_vm7, %v8142_v19  ;;  %v12240_v48 = vpack.c.bf16 %v10319_v32, %v10315_v54  ;;  %v10362_v19 = vld [vmem:[%s20735_s9 + $0xba0] sm:$0xff]  ;;  %v10375_v27 = vld [vmem:[%s20735_s9 + $0xc08] sm:$0xff]  ;;  %v12282_v54 = vpack.c.bf16 %v10304_v45, %v10300_v6  ;;  %v12284_v32 = vpack.c.bf16 %v10313_v14, %v10309_v23  ;;  %v10356_v45 = vld [vmem:[%s20735_s9 + $0xb70] sm:$0xff] }
 0xae5   :  { %8400 = vmatmul.mubr.f32.gmra.mrb[230].mxu1 %v8140_v15  ;;  %8323 = vmatmul.mubr.f32.gmra.mrb[70].mxu0 %v8140_v15  ;;  %v12264_v15 = vpack.c.bf16 %v10367_v16, %v10363_v31  ;;  %v10348_v31 = vld [vmem:[%s20735_s9 + $0xb30] sm:$0xff]  ;;  %v10369_v14 = vld [vmem:[%s20735_s9 + $0xbd8] sm:$0xff] }
 0xae6   :  { %12203 = vmatpush1.bf16.msra.mxu1 %v19144_v25  ;;  %8481 = vmatprep.mubr.f32.mxu1 %v20922_v53  ;;  %v10323_v25 = vld [vmem:[%s20735_s9 + $0xa68] sm:$0xff]  ;;  %v10352_v16 = vld [vmem:[%s20735_s9 + $0xb50] sm:$0xff] }
 0xae7   :  { %12205 = vmatprep.subr.bf16.mxu1 %v19154_v40  ;;  %12235 = vmatpush1.bf16.msra.mxu0 %v12234_v13  ;;  %v10327_v40 = vld [vmem:[%s20735_s9 + $0xa88] sm:$0xff]  ;;  %v10366_v13 = vld [vmem:[%s20735_s9 + $0xbc0] sm:$0xff]  ;;  %v10360_v23 = vld [vmem:[%s20735_s9 + $0xb90] sm:$0xff] }
 0xae8   :  { %12237 = vmatprep.subr.bf16.mxu0 %v12236_v18  ;;  %v12244_v21 = vpack.c.bf16 %v10327_v40, %v10323_v25  ;;  %v10371_v18 = vld [vmem:[%s20735_s9 + $0xbe8] sm:$0xff]  ;;  %v12266_v17 = vpack.c.bf16 %v10366_v13, %v10362_v19  ;;  %v10321_v25 = vld [vmem:[%s20735_s9 + $0xa58] sm:$0xff]  ;;  %v10364_v13 = vld [vmem:[%s20735_s9 + $0xbb0] sm:$0xff] }
 0xae9   :  { %v12268_v40 = vpack.c.bf16 %v10375_v27, %v10371_v18  ;;  %v10368_v18 = vld [vmem:[%s20735_s9 + $0xbd0] sm:$0xff]  ;;  %v10373_v27 = vld [vmem:[%s20735_s9 + $0xbf8] sm:$0xff] }
 0xaea   :  { %12207 = vmatpush1.bf16.msra.mxu1 %v19152_v29  ;;  %v10335_v29 = vld [vmem:[%s20735_s9 + $0xac8] sm:$0xff] }
 0xaeb   :  { %12209 = vmatprep.subr.bf16.mxu1 %v19162_v36  ;;  %12239 = vmatpush1.bf16.msra.mxu0 %v12238_v60  ;;  %v12246_v36 = vpack.c.bf16 %v10326_v3, %v10322_v35  ;;  %v12248_v0 = vpack.c.bf16 %v10335_v29, %v10331_v44  ;;  %v10308_v60 = vld [vmem:[%s20735_s9 + $0x9f0] sm:$0xff]  ;;  %v10379_v35 = vld [vmem:[%s20735_s9 + $0xc28] sm:$0xff]  ;;  %v12288_v29 = vpack.c.bf16 %v10321_v25, %v10317_v26  ;;  %v10381_v26 = vld [vmem:[%s20735_s9 + $0xc38] sm:$0xff] }
 0xaec   :  { %12241 = vmatprep.subr.bf16.mxu0 %v12240_v48  ;;  %v10312_v48 = vld [vmem:[%s20735_s9 + $0xa10] sm:$0xff]  ;;  %v10383_v3 = vld [vmem:[%s20735_s9 + $0xc48] sm:$0xff] }
 0xaed   :  { %v12286_v44 = vpack.c.bf16 %v10312_v48, %v10308_v60  ;;  %v10372_v60 = vld [vmem:[%s20735_s9 + $0xbf0] sm:$0xff] }
 0xaee   :  { %12211 = vmatpush1.bf16.msra.mxu1 %v19160_v43  ;;  %v10343_v43 = vld [vmem:[%s20735_s9 + $0xb08] sm:$0xff]  ;;  %v10376_v48 = vld [vmem:[%s20735_s9 + $0xc10] sm:$0xff] }
 0xaef   :  { %12213 = vmatprep.subr.bf16.mxu1 %v19170_v49  ;;  %12243 = vmatpush1.bf16.msra.mxu0 %v12242_v42  ;;  %v12250_v49 = vpack.c.bf16 %v10334_v12, %v10330_v22  ;;  %v12252_v38 = vpack.c.bf16 %v10343_v43, %v10339_v2  ;;  %v10370_v42 = vld [vmem:[%s20735_s9 + $0xbe0] sm:$0xff]  ;;  %v10325_v22 = vld [vmem:[%s20735_s9 + $0xa78] sm:$0xff]  ;;  %v12272_v43 = vpack.c.bf16 %v10383_v3, %v10379_v35  ;;  %v10387_v3 = vld [vmem:[%s20735_s9 + $0xc68] sm:$0xff] }
 0xaf0   :  { %12245 = vmatprep.subr.bf16.mxu0 %v12244_v21  ;;  %v10374_v21 = vld [vmem:[%s20735_s9 + $0xc00] sm:$0xff]  ;;  %v10329_v2 = vld [vmem:[%s20735_s9 + $0xa98] sm:$0xff]  ;;  %v12318_v25 = vpack.c.bf16 %v10376_v48, %v10372_v60  ;;  %v8810_v48 = vld [vmem:[%s20737_s11 + $0x48] sm:$0xff] }
 0xaf1   :  { %v12270_v12 = vpack.c.bf16 %v10374_v21, %v10370_v42  ;;  %v12292_v63 = vpack.c.bf16 %v10329_v2, %v10325_v22  ;;  %v10380_v42 = vld [vmem:[%s20735_s9 + $0xc30] sm:$0xff]  ;;  %v8817_v22 = vld [vmem:[%s20737_s11 + $0x80] sm:$0xff] }
 0xaf2   :  { %12215 = vmatpush1.bf16.msra.mxu1 %v19168_v10  ;;  %v10351_v10 = vld [vmem:[%s20735_s9 + $0xb48] sm:$0xff]  ;;  %v10384_v21 = vld [vmem:[%s20735_s9 + $0xc50] sm:$0xff]  ;;  %v8809_v60 = vld [vmem:[%s20737_s11 + $0x40] sm:$0xff] }
 0xaf3   :  { %12217 = vmatprep.subr.bf16.mxu1 %v19178_v5  ;;  %12247 = vmatpush1.bf16.msra.mxu0 %v12246_v36  ;;  %v10293_v5 = vld [vmem:[%s20735_s9 + $0x978] sm:$0xff]  ;;  %v12256_v4 = vpack.c.bf16 %v10351_v10, %v10347_v61  ;;  %v10316_v36 = vld [vmem:[%s20735_s9 + $0xa30] sm:$0xff]  ;;  %v12322_v35 = vpack.c.bf16 %v10384_v21, %v10380_v42  ;;  %v12342_v42 = vpack.c.bf16 %v8810_v48, %v8809_v60 }
 0xaf4   :  { %12249 = vmatprep.subr.bf16.mxu0 %v12248_v0  ;;  %v12276_v30 = vpack.c.bf16 %v10297_v34, %v10293_v5  ;;  %v10320_v0 = vld [vmem:[%s20735_s9 + $0xa50] sm:$0xff]  ;;  %v10337_v34 = vld [vmem:[%s20735_s9 + $0xad8] sm:$0xff] }
 0xaf5   :  { %v12290_v51 = vpack.c.bf16 %v10320_v0, %v10316_v36  ;;  %v10324_v61 = vld [vmem:[%s20735_s9 + $0xa70] sm:$0xff]  ;;  %v13010_v0 = vmov 0.0|0.0   ;;  %v8844_v21 = vld [vmem:[%s20737_s11 + $0x158] sm:$0xff] }
 0xaf6   :  { %12219 = vmatpush1.bf16.msra.mxu1 %v19176_v33  ;;  %v10350_v33 = vld [vmem:[%s20735_s9 + $0xb40] sm:$0xff]  ;;  %v10328_v10 = vld [vmem:[%s20735_s9 + $0xa90] sm:$0xff] }
 0xaf7   :  { %12221 = vmatprep.subr.bf16.mxu1 %v19186_v47  ;;  %12251 = vmatpush1.bf16.msra.mxu0 %v12250_v49  ;;  %v10355_v47 = vld [vmem:[%s20735_s9 + $0xb68] sm:$0xff]  ;;  %v12258_v58 = vpack.c.bf16 %v10350_v33, %v10346_v39  ;;  %v10378_v49 = vld [vmem:[%s20735_s9 + $0xc20] sm:$0xff]  ;;  %v10332_v33 = vld [vmem:[%s20735_s9 + $0xab0] sm:$0xff] }
 0xaf8   :  { %12253 = vmatprep.subr.bf16.mxu0 %v12252_v38  ;;  %v10382_v38 = vld [vmem:[%s20735_s9 + $0xc40] sm:$0xff]  ;;  %v10388_v36 = vld [vmem:[%s20735_s9 + $0xc70] sm:$0xff] }
 0xaf9   :  { %v12274_v5 = vpack.c.bf16 %v10382_v38, %v10378_v49  ;;  %v8834_v49 = vld [vmem:[%s20737_s11 + $0x108] sm:$0xff]  ;;  %v8801_v38 = vld [vmem:[%s20737_s11] sm:$0xff] }
 0xafa   :  { %12223 = vmatpush1.bf16.msra.mxu1 %v19184_v37  ;;  %v10305_v37 = vld [vmem:[%s20735_s9 + $0x9d8] sm:$0xff] }
 0xafb   :  { %12225 = vmatprep.subr.bf16.mxu1 %v19206_v7  ;;  %12255 = vmatpush1.bf16.msra.mxu0 %v12254_v9  ;;  %v12260_v7 = vpack.c.bf16 %v10359_v56, %v10355_v47  ;;  %v12280_v1 = vpack.c.bf16 %v10305_v37, %v10301_v59  ;;  %v10333_v9 = vld [vmem:[%s20735_s9 + $0xab8] sm:$0xff]  ;;  %v10336_v47 = vld [vmem:[%s20735_s9 + $0xad0] sm:$0xff] }
 0xafc   :  { %12257 = vmatprep.subr.bf16.mxu0 %v12256_v4  ;;  %v12294_v4 = vpack.c.bf16 %v10328_v10, %v10324_v61  ;;  %v12296_v39 = vpack.c.bf16 %v10337_v34, %v10333_v9  ;;  %v10341_v56 = vld [vmem:[%s20735_s9 + $0xaf8] sm:$0xff]  ;;  %v12298_v62 = vpack.c.bf16 %v10336_v47, %v10332_v33  ;;  %v10340_v59 = vld [vmem:[%s20735_s9 + $0xaf0] sm:$0xff] }
 0xafd   :  { %v10349_v37 = vld [vmem:[%s20735_s9 + $0xb38] sm:$0xff]  ;;  %v8835_v9 = vld [vmem:[%s20737_s11 + $0x110] sm:$0xff] }
 0xafe   :  { %12227 = vmatpush1.bf16.msra.mxu1 %v19204_v52  ;;  %v12262_v52 = vpack.c.bf16 %v10358_v50, %v10354_v41  ;;  %v8820_v61 = vld [vmem:[%s20737_s11 + $0x98] sm:$0xff]  ;;  %v8803_v47 = vld [vmem:[%s20737_s11 + $0x10] sm:$0xff] }
 0xaff   :  { %12277 = vmatprep.subr.bf16.mxu1 %v12276_v30  ;;  %12259 = vmatpush1.bf16.msra.mxu0 %v12258_v58  ;;  %v10345_v30 = vld [vmem:[%s20735_s9 + $0xb18] sm:$0xff]  ;;  %v10344_v58 = vld [vmem:[%s20735_s9 + $0xb10] sm:$0xff] }
 0xb00   :  { %12261 = vmatprep.subr.bf16.mxu0 %v12260_v7  ;;  %v12300_v20 = vpack.c.bf16 %v10345_v30, %v10341_v56  ;;  %v10353_v7 = vld [vmem:[%s20735_s9 + $0xb58] sm:$0xff]  ;;  %v12302_v41 = vpack.c.bf16 %v10344_v58, %v10340_v59  ;;  %v8821_v30 = vld [vmem:[%s20737_s11 + $0xa0] sm:$0xff] }
 0xb01   :  { %8482 = vmatmul.mubr.f32.vlgmr.msra.gmra.mrb[232].mxu1 %v10288_v28  ;;  %v12304_v50 = vpack.c.bf16 %v10353_v7, %v10349_v37  ;;  %v10357_v28 = vld [vmem:[%s20735_s9 + $0xb78] sm:$0xff]  ;;  %v8837_v58 = vld [vmem:[%s20737_s11 + $0x120] sm:$0xff] }
 0xb02   :  { %8487 = vmatprep.mubr.f32.mxu1 %v20922_v53  ;;  %12279 = vmatpush1.bf16.msra.mxu1 %v12278_v57  ;;  %v10361_v57 = vld [vmem:[%s20735_s9 + $0xb98] sm:$0xff] }
 0xb03   :  { %12281 = vmatprep.subr.bf16.mxu1 %v12280_v1  ;;  %12263 = vmatpush1.bf16.msra.mxu0 %v12262_v52  ;;  %v12306_v1 = vpack.c.bf16 %v10352_v16, %v10348_v31  ;;  %v12308_v6 = vpack.c.bf16 %v10361_v57, %v10357_v28  ;;  %v10365_v52 = vld [vmem:[%s20735_s9 + $0xbb8] sm:$0xff]  ;;  %v8805_v31 = vld [vmem:[%s20737_s11 + $0x20] sm:$0xff]  ;;  %v8806_v16 = vld [vmem:[%s20737_s11 + $0x28] sm:$0xff] }
 0xb04   :  { %12265 = vmatprep.subr.bf16.mxu0 %v12264_v15  ;;  %v12310_v15 = vpack.c.bf16 %v10360_v23, %v10356_v45  ;;  %v12312_v19 = vpack.c.bf16 %v10369_v14, %v10365_v52  ;;  %v8804_v56 = vld [vmem:[%s20737_s11 + $0x18] sm:$0xff]  ;;  %v8823_v28 = vld [vmem:[%s20737_s11 + $0xb0] sm:$0xff]  ;;  %v12334_v45 = vpack.c.bf16 %v8806_v16, %v8805_v31  ;;  %v8813_v31 = vld [vmem:[%s20737_s11 + $0x60] sm:$0xff] }
 0xb05   :  { %8488 = vmatmul.mubr.f32.gmra.mrb[234].mxu1 %v10289_v11  ;;  %v10377_v11 = vld [vmem:[%s20735_s9 + $0xc18] sm:$0xff]  ;;  %v12330_v37 = vpack.c.bf16 %v8804_v56, %v8803_v47  ;;  %v8807_v14 = vld [vmem:[%s20737_s11 + $0x30] sm:$0xff]  ;;  %v8854_v47 = vld [vmem:[%s20737_s11 + $0x1a8] sm:$0xff] }
 0xb06   :  { %12283 = vmatpush1.bf16.msra.mxu1 %v12282_v54  ;;  %v12314_v54 = vpack.c.bf16 %v10368_v18, %v10364_v13  ;;  %v8824_v57 = vld [vmem:[%s20737_s11 + $0xb8] sm:$0xff]  ;;  %v8826_v13 = vld [vmem:[%s20737_s11 + $0xc8] sm:$0xff] }
 0xb07   :  { %12285 = vmatprep.subr.bf16.mxu1 %v12284_v32  ;;  %12267 = vmatpush1.bf16.msra.mxu0 %v12266_v17  ;;  %v12316_v32 = vpack.c.bf16 %v10377_v11, %v10373_v27  ;;  %v10385_v17 = vld [vmem:[%s20735_s9 + $0xc58] sm:$0xff]  ;;  %v12336_v52 = vpack.c.bf16 %v8824_v57, %v8823_v28  ;;  %v8841_v27 = vld [vmem:[%s20737_s11 + $0x140] sm:$0xff]  ;;  %v8814_v16 = vld [vmem:[%s20737_s11 + $0x68] sm:$0xff] }
 0xb08   :  { %12269 = vmatprep.subr.bf16.mxu0 %v12268_v40  ;;  %v12320_v40 = vpack.c.bf16 %v10385_v17, %v10381_v26  ;;  %v8840_v23 = vld [vmem:[%s20737_s11 + $0x138] sm:$0xff]  ;;  %v8827_v26 = vld [vmem:[%s20737_s11 + $0xd0] sm:$0xff]  ;;  %v12350_v28 = vpack.c.bf16 %v8814_v16, %v8813_v31  ;;  %v8861_v57 = vld [vmem:[%s20737_s11 + $0x1e0] sm:$0xff] }
 0xb09   :  { %v8828_v17 = vld [vmem:[%s20737_s11 + $0xd8] sm:$0xff] }
 0xb0a   :  { %12287 = vmatpush1.bf16.msra.mxu1 %v12286_v44  ;;  %v10389_v44 = vld [vmem:[%s20735_s9 + $0xc78] sm:$0xff] }
 0xb0b   :  { %12289 = vmatprep.subr.bf16.mxu1 %v12288_v29  ;;  %12271 = vmatpush1.bf16.msra.mxu0 %v12270_v12  ;;  %v10386_v29 = vld [vmem:[%s20735_s9 + $0xc60] sm:$0xff]  ;;  %v8818_v12 = vld [vmem:[%s20737_s11 + $0x88] sm:$0xff] }
 0xb0c   :  { %12273 = vmatprep.subr.bf16.mxu0 %v12272_v43  ;;  %v12324_v2 = vpack.c.bf16 %v8818_v12, %v8817_v22  ;;  %v8833_v43 = vld [vmem:[%s20737_s11 + $0x100] sm:$0xff] }
 0xb0e   :  { %12291 = vmatpush1.bf16.msra.mxu1 %v12290_v51  ;;  %v8802_v51 = vld [vmem:[%s20737_s11 + $0x8] sm:$0xff] }
 0xb0f   :  { %12293 = vmatprep.subr.bf16.mxu1 %v12292_v63  ;;  %12275 = vmatpush1.bf16.msra.mxu0 %v12274_v5  ;;  %v8819_v63 = vld [vmem:[%s20737_s11 + $0x90] sm:$0xff]  ;;  %v12357_v5 = vpack.c.bf16 %v8834_v49, %v8833_v43  ;;  %v12326_v34 = vpack.c.bf16 %v8802_v51, %v8801_v38  ;;  %v8846_v43 = vld [vmem:[%s20737_s11 + $0x168] sm:$0xff] }
 0xb10   :  { %8649 = vmatprep.subr.mxu0 %v10387_v3  ;;  %v12328_v33 = vpack.c.bf16 %v8820_v61, %v8819_v63  ;;  %v8811_v3 = vld [vmem:[%s20737_s11 + $0x50] sm:$0xff]  ;;  %v8848_v63 = vld [vmem:[%s20737_s11 + $0x178] sm:$0xff] }
 0xb11   :  { %v8847_v51 = vld [vmem:[%s20737_s11 + $0x170] sm:$0xff] }
 0xb12   :  { %12295 = vmatpush1.bf16.msra.mxu1 %v12294_v4  ;;  %v12378_v61 = vpack.c.bf16 %v8848_v63, %v8847_v51  ;;  %v10394_v63 = vld [vmem:[%s20738_s12] ss:$0 sm:$0xff]  ;;  %s13011_s12 = smov [#allocation2]  }
 0xb13   :  { %12297 = vmatprep.subr.bf16.mxu1 %v12296_v39  ;;  %8650 = vmatpush1.msra.mxu0 %v10386_v29  ;;  %v8836_v39 = vld [vmem:[%s20737_s11 + $0x118] sm:$0xff]  ;;  %v8829_v29 = vld [vmem:[%s20737_s11 + $0xe0] sm:$0xff]  ;;  %s9065_s27 = sshll.u32 %s13011_s12, 4  ;;  %s9066_s27 = int_to_ptr.vmem [resolvable:$true] %s9065_s27 }
 0xb14   :  { %12325 = vmatprep.subr.bf16.mxu0 %v12324_v2  ;;  %v12360_v59 = vpack.c.bf16 %v8836_v39, %v8835_v9  ;;  %v8845_v2 = vld [vmem:[%s20737_s11 + $0x160] sm:$0xff]  ;;  %s12984_s28 = scalar_lea.vmem %s9066_s27, 256  ;;  %p12989_p1 = scmp.lt.s32.totalorder %s9066_s27, %s9066_s27 }
 0xb15   :  { %v12375_v38 = vpack.c.bf16 %v8846_v43, %v8845_v2  ;;  %p12985_p0 = scmp.ne.s32.totalorder %s9066_s27, %s12984_s28  ;;  %p12990_p2 = scmp.lt.s32.totalorder %s12984_s28, %s12984_s28 }
 0xb16   :  { %12299 = vmatpush1.bf16.msra.mxu1 %v12298_v62  ;;  %v8822_v62 = vld [vmem:[%s20737_s11 + $0xa8] sm:$0xff] }
 0xb17   :  { %12301 = vmatprep.subr.bf16.mxu1 %v12300_v20  ;;  %p12991_p3 = por %p12990_p2, %p12989_p1 }
 0xb19   :  { %p12992_p4 = pnand %p12991_p3, %p12985_p0 }
 0xb1a   :  { %12303 = vmatpush1.bf16.msra.mxu1 %v12302_v41  ;;  %v8838_v41 = vld [vmem:[%s20737_s11 + $0x128] sm:$0xff] }
 0xb1b   :  { %12305 = vmatprep.subr.bf16.mxu1 %v12304_v50  ;;  %v12332_v50 = vpack.c.bf16 %v8822_v62, %v8821_v30  ;;  %v8855_v30 = vld [vmem:[%s20737_s11 + $0x1b0] sm:$0xff]  ;;  %v8856_v62 = vld [vmem:[%s20737_s11 + $0x1b8] sm:$0xff] }
 0xb1e   :  { %12307 = vmatpush1.bf16.msra.mxu1 %v12306_v1  ;;  %v12363_v1 = vpack.c.bf16 %v8838_v41, %v8837_v58  ;;  %v8858_v58 = vld [vmem:[%s20737_s11 + $0x1c8] sm:$0xff]  ;;  %v8860_v41 = vld [vmem:[%s20737_s11 + $0x1d8] sm:$0xff] }
 0xb1f   :  { %12309 = vmatprep.subr.bf16.mxu1 %v12308_v6  ;;  %v8839_v6 = vld [vmem:[%s20737_s11 + $0x130] sm:$0xff] }
 0xb20   :  { %v12366_v18 = vpack.c.bf16 %v8840_v23, %v8839_v6 }
 0xb22   :  { %12311 = vmatpush1.bf16.msra.mxu1 %v12310_v15  ;;  %v8808_v15 = vld [vmem:[%s20737_s11 + $0x38] sm:$0xff] }
 0xb23   :  { %12313 = vmatprep.subr.bf16.mxu1 %v12312_v19  ;;  %v8825_v19 = vld [vmem:[%s20737_s11 + $0xc0] sm:$0xff]  ;;  %v12338_v11 = vpack.c.bf16 %v8808_v15, %v8807_v14  ;;  %v8816_v14 = vld [vmem:[%s20737_s11 + $0x78] sm:$0xff] }
 0xb26   :  { %12315 = vmatpush1.bf16.msra.mxu1 %v12314_v54  ;;  %v8842_v54 = vld [vmem:[%s20737_s11 + $0x148] sm:$0xff] }
 0xb27   :  { %12317 = vmatprep.subr.bf16.mxu1 %v12316_v32  ;;  %v12340_v32 = vpack.c.bf16 %v8826_v13, %v8825_v19  ;;  %v8863_v19 = vld [vmem:[%s20737_s11 + $0x1f0] sm:$0xf]  ;;  %v8763_v13 = vld [vmem:[%s20736_s10] sm:$0xf] }
 0xb2a   :  { %12319 = vmatpush1.bf16.msra.mxu1 %v12318_v25  ;;  %v12369_v25 = vpack.c.bf16 %v8842_v54, %v8841_v27  ;;  %v8776_v27 = vrot.slane %v8763_v13, %v20925_v55  ;;  %v8780_v54 = vrot.slane %v8763_v13, %v20926_v46 }
 0xb2b   :  { %12321 = vmatprep.subr.bf16.mxu1 %v12320_v40  ;;  %v8843_v40 = vld [vmem:[%s20737_s11 + $0x150] sm:$0xff] }
 0xb2c   :  { %v12372_v22 = vpack.c.bf16 %v8844_v21, %v8843_v40 }
 0xb2e   :  { %12323 = vmatpush1.bf16.msra.mxu1 %v12322_v35  ;;  %v12344_v35 = vpack.c.bf16 %v8828_v17, %v8827_v26 }
 0xb2f   :  { %8726 = vmatprep.subr.mxu1 %v10389_v44  ;;  %v8812_v44 = vld [vmem:[%s20737_s11 + $0x58] sm:$0xff] }
 0xb30   :  { %v12346_v12 = vpack.c.bf16 %v8812_v44, %v8811_v3 }
 0xb32   :  { %8727 = vmatpush1.msra.mxu1 %v10388_v36  ;;  %v8830_v36 = vld [vmem:[%s20737_s11 + $0xe8] sm:$0xff] }
 0xb33   :  { %12356 = vmatprep.subr.bf16.mxu1 %v13010_v0  ;;  %v12348_v49 = vpack.c.bf16 %v8830_v36, %v8829_v29 }
 0xbd4   :  { %v8483_v10 = vpop.f32.mrb[232].mxu1 }
 0xbd5   :  { %v8485_v4 = vpop.f32.mrb[233].mxu1 }
 0xbd6   :  { %10390 = vmatprep.mubr.msk.f32.mxu0 %vm7744_vm7, %v8485_v4  ;;  %10392 = vmatprep.mubr.msk.f32.mxu1 %vm7744_vm7, %v8485_v4  ;;  %v8852_v4 = vld [vmem:[%s20737_s11 + $0x198] sm:$0xff] }
 0xbd7   :  { %8666 = vmatmul.mubr.f32.vlgmr.msra.gmra.mrb[68].mxu0 %v8483_v10  ;;  %8743 = vmatmul.mubr.f32.vlgmr.msra.gmra.mrb[228].mxu1 %v8483_v10  ;;  %v8849_v10 = vld [vmem:[%s20737_s11 + $0x180] sm:$0xff] }
 0xbd8   :  { %v8489_v20 = vpop.f32.mrb[234].mxu1  ;;  %12358 = vmatpush1.bf16.msra.mxu1 %v12357_v5  ;;  %12327 = vmatpush3.bf16.msra.mxu0 %v12326_v34  ;;  %v8850_v5 = vld [vmem:[%s20737_s11 + $0x188] sm:$0xff]  ;;  %v8851_v34 = vld [vmem:[%s20737_s11 + $0x190] sm:$0xff] }
 0xbd9   :  { %v8491_v7 = vpop.f32.mrb[235].mxu1  ;;  %12359 = vmatprep.subr.bf16.mxu1 %v13010_v0  ;;  %12329 = vmatprep.subr.bf16.mxu0 %v12328_v33  ;;  %v12381_v9 = vpack.c.bf16 %v8850_v5, %v8849_v10  ;;  %v12384_v39 = vpack.c.bf16 %v8852_v4, %v8851_v34  ;;  %v8853_v33 = vld [vmem:[%s20737_s11 + $0x1a0] sm:$0xff] }
 0xbda   :  { %10391 = vmatprep.mubr.msk.f32.mxu0 %vm7744_vm7, %v8491_v7  ;;  %10393 = vmatprep.mubr.msk.f32.mxu1 %vm7744_vm7, %v8491_v7  ;;  %v12387_v56 = vpack.c.bf16 %v8854_v47, %v8853_v33  ;;  %v8859_v7 = vld [vmem:[%s20737_s11 + $0x1d0] sm:$0xff] }
 0xbdb   :  { %8672 = vmatmul.mubr.f32.gmra.mrb[70].mxu0 %v8489_v20  ;;  %8749 = vmatmul.mubr.f32.gmra.mrb[230].mxu1 %v8489_v20  ;;  %v12390_v20 = vpack.c.bf16 %v8856_v62, %v8855_v30 }
 0xbdc   :  { %12361 = vmatpush1.bf16.msra.mxu1 %v12360_v59  ;;  %12331 = vmatpush3.bf16.msra.mxu0 %v12330_v37  ;;  %v8857_v59 = vld [vmem:[%s20737_s11 + $0x1c0] sm:$0xff] }
 0xbdd   :  { %12362 = vmatprep.subr.bf16.mxu1 %v13010_v0  ;;  %12333 = vmatprep.subr.bf16.mxu0 %v12332_v50  ;;  %v12393_v37 = vpack.c.bf16 %v8858_v58, %v8857_v59  ;;  %v12396_v50 = vpack.c.bf16 %v8860_v41, %v8859_v7 }
 0xbe0   :  { %12364 = vmatpush1.bf16.msra.mxu1 %v12363_v1  ;;  %12335 = vmatpush3.bf16.msra.mxu0 %v12334_v45  ;;  %v8862_v1 = vld [vmem:[%s20737_s11 + $0x1e8] sm:$0xff]  ;;  %v8832_v45 = vld [vmem:[%s20737_s11 + $0xf8] sm:$0xff] }
 0xbe1   :  { %12365 = vmatprep.subr.bf16.mxu1 %v13010_v0  ;;  %12337 = vmatprep.subr.bf16.mxu0 %v12336_v52  ;;  %v12399_v6 = vpack.c.bf16 %v8862_v1, %v8861_v57  ;;  %v8815_v52 = vld [vmem:[%s20737_s11 + $0x70] sm:$0xff] }
 0xbe2   :  { %v12354_v15 = vpack.c.bf16 %v8816_v14, %v8815_v52 }
 0xbe4   :  { %12367 = vmatpush1.bf16.msra.mxu1 %v12366_v18  ;;  %12339 = vmatpush3.bf16.msra.mxu0 %v12338_v11  ;;  %v8768_v18 = vrot.slane %v8763_v13, %v20923_v8  ;;  %v8772_v11 = vrot.slane %v8763_v13, %v20924_v24 }
 0xbe5   :  { %12368 = vmatprep.subr.bf16.mxu1 %v13010_v0  ;;  %12341 = vmatprep.subr.bf16.mxu0 %v12340_v32 }
 0xbe8   :  { %12370 = vmatpush1.bf16.msra.mxu1 %v12369_v25  ;;  %12343 = vmatpush3.bf16.msra.mxu0 %v12342_v42 }
 0xbe9   :  { %12371 = vmatprep.subr.bf16.mxu1 %v13010_v0  ;;  %12345 = vmatprep.subr.bf16.mxu0 %v12344_v35 }
 0xbec   :  { %12373 = vmatpush1.bf16.msra.mxu1 %v12372_v22  ;;  %12347 = vmatpush3.bf16.msra.mxu0 %v12346_v12 }
 0xbed   :  { %12374 = vmatprep.subr.bf16.mxu1 %v13010_v0  ;;  %12349 = vmatprep.subr.bf16.mxu0 %v12348_v49 }
 0xbf0   :  { %12376 = vmatpush1.bf16.msra.mxu1 %v12375_v38  ;;  %12351 = vmatpush3.bf16.msra.mxu0 %v12350_v28 }
 0xbf1   :  { %12377 = vmatprep.subr.bf16.mxu1 %v13010_v0 }
 0xbf4   :  { %12379 = vmatpush1.bf16.msra.mxu1 %v12378_v61 }
 0xbf5   :  { %12380 = vmatprep.subr.bf16.mxu1 %v13010_v0 }
 0xbf8   :  { %12382 = vmatpush1.bf16.msra.mxu1 %v12381_v9 }
 0xbf9   :  { %12383 = vmatprep.subr.bf16.mxu1 %v13010_v0 }
 0xbfc   :  { %12385 = vmatpush1.bf16.msra.mxu1 %v12384_v39 }
 0xbfd   :  { %12386 = vmatprep.subr.bf16.mxu1 %v13010_v0 }
 0xc00   :  { %12388 = vmatpush1.bf16.msra.mxu1 %v12387_v56 }
 0xc01   :  { %12389 = vmatprep.subr.bf16.mxu1 %v13010_v0 }
 0xc04   :  { %12391 = vmatpush1.bf16.msra.mxu1 %v12390_v20 }
 0xc05   :  { %12392 = vmatprep.subr.bf16.mxu1 %v13010_v0 }
 0xc08   :  { %12394 = vmatpush1.bf16.msra.mxu1 %v12393_v37 }
 0xc09   :  { %12395 = vmatprep.subr.bf16.mxu1 %v13010_v0 }
 0xc0c   :  { %12397 = vmatpush1.bf16.msra.mxu1 %v12396_v50 }
 0xc0d   :  { %12398 = vmatprep.subr.bf16.mxu1 %v13010_v0  ;;  %v8831_v0 = vld [vmem:[%s20737_s11 + $0xf0] sm:$0xff] }
 0xc0e   :  { %v12352_v23 = vpack.c.bf16 %v8832_v45, %v8831_v0 }
 0xc10   :  { %12400 = vmatpush1.bf16.msra.mxu1 %v12399_v6  ;;  %12353 = vmatprep.subr.bf16.mxu0 %v12352_v23 }
 0xc11   :  { %9016 = vmatprep.subr.mxu1 %v20922_v53  ;;  %12355 = vmatpush3.bf16.msra.mxu0 %v12354_v15 }
 0xc14   :  { %10395 = vmatpush1.msk.msra.mxu1 %vm380_vm1, %v8863_v19 }
 0xcaa   :  { %v8667_v53 = vpop.f32.mrb[68].mxu0  ;;  %v8744_v32 = vpop.f32.mrb[228].mxu1 }
 0xcab   :  { %v8785_v60 = vadd.f32 %v8768_v18, %v8667_v53  ;;  %v8787_v48 = vadd.f32 %v8776_v27, %v8744_v32  ;;  %v8669_v26 = vpop.f32.mrb[69].mxu0  ;;  %v8746_v17 = vpop.f32.mrb[229].mxu1 }
 0xcac   :  { %v8786_v25 = vadd.f32 %v8772_v11, %v8669_v26  ;;  %v8788_v40 = vadd.f32 %v8780_v54, %v8746_v17 }
 0xcad   :  { %v8793_v8 = vmax.f32 %v8785_v60, 0.0  ;;  %v8795_v44 = vmax.f32 %v8787_v48, 0.0 }
 0xcae   :  { %v8794_v42 = vmax.f32 %v8786_v25, 0.0  ;;  %v8796_v21 = vmax.f32 %v8788_v40, 0.0  ;;  %v8673_v35 = vpop.f32.mrb[70].mxu0  ;;  %v8750_v3 = vpop.f32.mrb[230].mxu1 }
 0xcaf   :  { %v8789_v55 = vadd.f32 %v8768_v18, %v8673_v35  ;;  %v8791_v29 = vadd.f32 %v8776_v27, %v8750_v3  ;;  %v8675_v24 = vpop.f32.mrb[71].mxu0  ;;  %v8752_v36 = vpop.f32.mrb[231].mxu1 }
 0xcb0   :  { %v8790_v46 = vadd.f32 %v8772_v11, %v8675_v24  ;;  %v8792_v22 = vadd.f32 %v8780_v54, %v8752_v36  ;;  %8945 = vmatprep.mubr.f32.mxu0 %v8794_v42  ;;  %10396 = vmatprep.mubr.msk.f32.mxu1 %vm8871_vm8, %v8796_v21 }
 0xcb1   :  { %8946 = vmatmul.mubr.f32.vlgmr.msra.gmra.mrb[76].mxu0 %v8793_v8  ;;  %9021 = vmatmul.mubr.f32.vlgmr.msra.gmra.mrb[236].mxu1 %v8795_v44  ;;  %v8797_v43 = vmax.f32 %v8789_v55, 0.0  ;;  %v8799_v49 = vmax.f32 %v8791_v29, 0.0 }
 0xcb2   :  { %v8798_v12 = vmax.f32 %v8790_v46, 0.0  ;;  %v8800_v2 = vmax.f32 %v8792_v22, 0.0 }
 0xcb4   :  { %8950 = vmatprep.mubr.f32.mxu0 %v8798_v12  ;;  %10397 = vmatprep.mubr.msk.f32.mxu1 %vm8871_vm8, %v8800_v2 }
 0xcb5   :  { %8951 = vmatmul.mubr.f32.gmra.mrb[78].mxu0 %v8797_v43  ;;  %9026 = vmatmul.mubr.f32.gmra.mrb[238].mxu1 %v8799_v49 }
 0xd84   :  { %v10430_v38 = vpop.f32.mrb[76].mxu0  ;;  %v9022_v51 = vpop.f32.mrb[236].mxu1 }
 0xd85   :  { %v10431_v61 = vpop.f32.mrb[77].mxu0  ;;  %v9024_v10 = vpop.f32.mrb[237].mxu1 }
 0xd86   :  { %v10432_v5 = vadd.f32 %v10431_v61, %v10430_v38 }
 0xd88   :  { %v8948_v9 = vadd.f32 %v10432_v5, %v10394_v63  ;;  %v10433_v34 = vpop.f32.mrb[78].mxu0  ;;  %v9027_v4 = vpop.f32.mrb[238].mxu1 }
 0xd89   :  { %v10434_v39 = vpop.f32.mrb[79].mxu0  ;;  %v9029_v33 = vpop.f32.mrb[239].mxu1 }
 0xd8a   :  { %v10435_v47 = vadd.f32 %v10434_v39, %v10433_v34  ;;  %v9023_v56 = vadd.f32 %v9022_v51, %v8948_v9 }
 0xd8c   :  { %v8953_v30 = vadd.f32 %v10435_v47, %v10394_v63  ;;  %v9032_v62 = vsel %vm9031_vm9, %v9023_v56, -inf }
 0xd8d   :  { %9033 = vmax.xlane.f32.xlu0 %v9032_v62 }
 0xd8e   :  { %v9028_v20 = vadd.f32 %v9027_v4, %v8953_v30 }
 0xd90   :  { %v9035_v59 = vsel %vm9031_vm9, %v9028_v20, -inf }
 0xd91   :  { %9036 = vmax.xlane.f32.xlu0 %v9035_v59 }
 0xe1a   :  { %v9034_v58 = vpop.xlane.xlu0 %9033 }
 0xe1b   :  { %v9038_v37 = vsub.f32 %v9023_v56, %v9034_v58 }
 0xe1d   :  { %v9040_v7 = vmul.f32 1.442695, %v9038_v37 }
 0xe1e   :  { %v9037_v41 = vpop.xlane.xlu0 %9036 }
 0xe1f   :  { %12975 = vpow2.f32 %v9040_v7  ;;  %v9039_v50 = vsub.f32 %v9028_v20, %v9037_v41 }
 0xe21   :  { %v9042_v31 = vmul.f32 1.442695, %v9039_v50 }
 0xe23   :  { %12977 = vpow2.f32 %v9042_v31 }
 0xe29   :  { %v12976_v16 = vpop.eup %12975 }
 0xe2a   :  { %v9044_v28 = vsel %vm9031_vm9, %v12976_v16, 0.0 }
 0xe2b   :  { %9045 = vadd.xlane.f32.xlu1 %v9044_v28 }
 0xe2d   :  { %v12978_v57 = vpop.eup %12977 }
 0xe2e   :  { %v9047_v1 = vsel %vm9031_vm9, %v12978_v57, 0.0 }
 0xe2f   :  { %9048 = vadd.xlane.f32.xlu1 %v9047_v1 }
 0xeb8   :  { %v9046_v6 = vpop.xlane.xlu1 %9045 }
 0xeb9   :  { %12979 = vlog2.f32 %v9046_v6 }
 0xebc   :  { %v9049_v0 = vpop.xlane.xlu1 %9048 }
 0xebd   :  { %12981 = vlog2.f32 %v9049_v0 }
 0xec3   :  { %v12980_v45 = vpop.eup %12979 }
 0xec4   :  { %v9051_v23 = vmul.f32 0.6931472, %v12980_v45 }
 0xec6   :  { %v9054_v52 = vadd.f32 %v9051_v23, %v9034_v58 }
 0xec7   :  { %v12982_v14 = vpop.eup %12981 }
 0xec8   :  { %v9056_v15 = vsub.f32 %v9023_v56, %v9054_v52  ;;  %v9053_v19 = vmul.f32 0.6931472, %v12982_v14 }
 0xeca   :  { %9058 = vst.msk [vmem:[#allocation2] sm:$0xff] %vm9031_vm9, %v9056_v15  ;;  %v9055_v13 = vadd.f32 %v9053_v19, %v9037_v41 }
 0xecc   :  { %v9057_v18 = vsub.f32 %v9028_v20, %v9055_v13 }
 0xece   :  { %9059 = vst.msk [vmem:[#allocation2 + $0x8] sm:$0xff] %vm9031_vm9, %v9057_v18 }
 0xecf   :  { %12995 = shalt.err (!%p12992_p4)
}
 0xed0   :  { %s12996_s6 = scalar_lea.hbm %s20739_s13, 256 }
 0xed1   :  { %p12997_p5 = scmp.ne.s32.totalorder %s20739_s13, %s12996_s6  ;;  %p13000_p6 = scmp.lt.u32.totalorder %s12996_s6, %s20739_s13 }
 0xed3   :  { %p13002_p7 = pnand %p13000_p6, %p12997_p5 }
 0xed5   :  { %13005 = shalt.err (!%p13002_p7)
}
 0xed6   :  { %s13012_s4 = smov 128   ;;  %s13013_s17 = smov 8  }
 0xed7   :  { %9071 = dma.vmem_to_hbm [thread:$0]  %s9066_s27, 256, %s20739_s13, [#allocation3], %s13012_s4, %s13012_s4, %s13013_s17  }
 0xed8   :  { %13006 = dma.done.wait [#allocation3], 256  }
 0xed9   :  { %13007 = vsyncadd [#allocation3], 4294967040 }
 0xeda   :  { %9075 = vsyncpa [#allocation3], 1 }

</bundles_post_ra>
